<compile_context>
chip_gen: v7x
topology: tpu7x:2x2x1
jax: 0.10.0
libtpu: 0.0.40
codegen_flags: <defaults>
</compile_context>

<pallas_src>
import jax
import jax.numpy as jnp
from jax.experimental import pallas as pl
from jax.experimental.pallas import tpu as pltpu


def _round_up(x, m):
    return ((x + m - 1) // m) * m


def _choose_tile_n(N, max_tile):
    """Largest divisor of N that is a multiple of 16 (bf16 sublane tile) and <= max_tile."""
    best = None
    t = 16
    while t <= min(N, max_tile):
        if N % t == 0:
            best = t
        t += 16
    return best if best is not None else N


def pointnet_kernel(x_ref,
                    w1_ref, b1_ref,
                    w2_ref, b2_ref,
                    w3_ref, b3_ref,
                    w4_ref, b4_ref,
                    w5_ref, b5_ref,
                    o_ref):
    tb, tn, cin = x_ref.shape
    # (TILE_B, TILE_N, CIN_PAD) -> (TILE_B*TILE_N, CIN_PAD); leading-dim merge is layout-free.
    h = x_ref[...].reshape(tb * tn, cin)

    def layer(h, w_ref, b_ref, last=False):
        # Conv1d(kernel_size=1, bias=False) with BN scale pre-folded == one MXU matmul.
        y = jnp.dot(h, w_ref[...], preferred_element_type=jnp.float32)
        y = jnp.maximum(y + b_ref[...], 0.0)           # folded BN shift + ReLU, in f32
        return y if last else y.astype(jnp.bfloat16)   # bf16 feed for the next MXU matmul

    h = layer(h, w1_ref, b1_ref)               # (TB*TN, 64)
    h = layer(h, w2_ref, b2_ref)               # (TB*TN, 64)
    h = layer(h, w3_ref, b3_ref)               # (TB*TN, 64)
    h = layer(h, w4_ref, b4_ref)               # (TB*TN, 128)
    h = layer(h, w5_ref, b5_ref, last=True)    # (TB*TN, EMB_PAD) f32

    # adaptive_max_pool1d(x, 1): per-batch max over this tile of points.
    blk_max = jnp.max(h.reshape(tb, tn, -1), axis=1)   # (TILE_B, EMB_PAD)

    n = pl.program_id(1)   # point-tile axis (last grid axis, "arbitrary")

    @pl.when(n == 0)
    def _():
        o_ref[...] = blk_max

    @pl.when(n > 0)
    def _():
        o_ref[...] = jnp.maximum(o_ref[...], blk_max)


def pointnet_forward(x_ncl, params, emb_dims, *, tile_b=8, max_tile_n=1024):
    """x_ncl: (B, 3, N) float32 in PyTorch's NCL convention.
    params: list of (W_folded_bf16[cin, cout], shift_f32[1, cout]) per layer."""
    B, CIN, N = x_ncl.shape
    CIN_PAD = 8
    EMB_PAD = params[-1][0].shape[1]

    TILE_B = tile_b
    TILE_N = _choose_tile_n(N, max_tile_n)
    B_PAD = _round_up(B, TILE_B)

    # channels-last, pad channels 3->8 and batch B->B_PAD with zeros, cast to bf16.
    x = jnp.transpose(x_ncl, (0, 2, 1))                             # (B, N, 3)
    x = jnp.pad(x, ((0, B_PAD - B), (0, 0), (0, CIN_PAD - CIN)))    # (B_PAD, N, 8)
    x = x.astype(jnp.bfloat16)

    in_specs = [pl.BlockSpec((TILE_B, TILE_N, CIN_PAD), lambda b, n: (b, n, 0))]
    flat_params = []
    for (W, bvec) in params:
        in_specs.append(pl.BlockSpec(W.shape, lambda b, n: (0, 0)))
        in_specs.append(pl.BlockSpec(bvec.shape, lambda b, n: (0, 0)))
        flat_params.extend([W, bvec])

    out_spec = pl.BlockSpec((TILE_B, EMB_PAD), lambda b, n: (b, 0))

    out = pl.pallas_call(
        pointnet_kernel,
        out_shape=jax.ShapeDtypeStruct((B_PAD, EMB_PAD), jnp.float32),
        grid_spec=pltpu.PrefetchScalarGridSpec(
            num_scalar_prefetch=0,
            grid=(B_PAD // TILE_B, N // TILE_N),   # reduction (point) axis last
            in_specs=in_specs,
            out_specs=out_spec,
        ),
        compiler_params=pltpu.CompilerParams(
            dimension_semantics=("parallel", "arbitrary"),
            vmem_limit_bytes=48 * 1024 * 1024,   # above default scoped limit, < v7x 64 MiB
        ),
    )(x, *flat_params)

    # drop batch / embedding padding
    return out[:B, :emb_dims]


def make_params(key, emb_dims):
    """Synthetic weights matching the PyTorch module shapes, BN (eval mode) folded in.

    Returns:
      params: [(W_folded_bf16[cin_pad, cout_pad], shift_f32[1, cout_pad]), ...]  (kernel)
      raw:    [(W_f32[cin, cout], scale[cout], shift[cout]), ...]                (reference)
    """
    dims = [(3, 64), (64, 64), (64, 64), (64, 128), (128, emb_dims)]
    CIN_PAD = 8
    EMB_PAD = _round_up(emb_dims, 128)
    eps = 1e-5
    params, raw = [], []
    for i, (cin, cout) in enumerate(dims):
        key, k1, k2, k3, k4, k5 = jax.random.split(key, 6)
        # Conv1d weight (cout, cin, 1) stored transposed as (cin, cout)
        W = jax.random.normal(k1, (cin, cout), jnp.float32) * 0.1
        gamma = 1.0 + 0.1 * jax.random.normal(k2, (cout,), jnp.float32)
        beta = 0.1 * jax.random.normal(k3, (cout,), jnp.float32)
        run_mean = 0.1 * jax.random.normal(k4, (cout,), jnp.float32)
        run_var = jnp.abs(1.0 + 0.1 * jax.random.normal(k5, (cout,), jnp.float32))
        s = gamma / jnp.sqrt(run_var + eps)     # eval-mode BN scale
        b = beta - run_mean * s                 # eval-mode BN shift
        raw.append((W, s, b))

        Wf = W * s[None, :]                     # fold BN scale into the conv weight
        cin_k, cout_k = cin, cout
        if i == 0:                              # pad input channels 3 -> 8 (zero rows)
            Wf = jnp.zeros((CIN_PAD, cout), jnp.float32).at[:cin, :].set(Wf)
            cin_k = CIN_PAD
        bf = b
        if i == len(dims) - 1:                  # pad emb_dims to a lane-dense multiple of 128
            Wf = jnp.zeros((cin_k, EMB_PAD), jnp.float32).at[:, :cout].set(Wf)
            bf = jnp.zeros((EMB_PAD,), jnp.float32).at[:cout].set(b)
            cout_k = EMB_PAD
        params.append((Wf.astype(jnp.bfloat16), bf.reshape(1, cout_k)))
    return params, raw


def reference_forward(x_ncl, raw):
    """Pure-JAX f32 reference in PyTorch's NCL convention (eval-mode BN)."""
    h = jnp.transpose(x_ncl, (0, 2, 1))            # (B, N, 3)
    for (W, s, b) in raw:
        h = jnp.maximum(h @ W * s + b, 0.0)
    return jnp.max(h, axis=1)                      # (B, emb_dims)


if __name__ == "__main__":
    # hparams['emb_dims'] = 32; PyTorch input convention (B, 3, num_points)
    B, N, emb_dims = 14, 512, 32
    key = jax.random.PRNGKey(0)
    kx, kp = jax.random.split(key)

    x_ncl = jax.random.normal(kx, (B, 3, N), jnp.float32)
    params, raw = make_params(kp, emb_dims)

    # max_tile_n=256 -> grid = (2 batch tiles, 2 point tiles): exercises megacore
    # sharding, the max-accumulator path, and batch/emb padding removal.
    out = pointnet_forward(x_ncl, params, emb_dims, max_tile_n=256)
    out = jax.block_until_ready(out)

    ref = reference_forward(x_ncl, raw)
    assert out.shape == (B, emb_dims)
    # bf16 matmuls vs f32 reference -> loosened tolerance
    assert jnp.allclose(out, ref, atol=3e-2, rtol=3e-2), float(jnp.max(jnp.abs(out - ref)))

    print("KERNEL_OK")
</pallas_src>

<mosaic_0001>
module attributes {stable_mosaic.version = 11 : i64} {
  func.func @pointnet_kernel(%arg0: i32, %arg1: i32, %arg2: memref<8x256x8xbf16, #tpu.memory_space<vmem>>, %arg3: memref<8x64xbf16, #tpu.memory_space<vmem>>, %arg4: memref<1x64xf32, #tpu.memory_space<vmem>>, %arg5: memref<64x64xbf16, #tpu.memory_space<vmem>>, %arg6: memref<1x64xf32, #tpu.memory_space<vmem>>, %arg7: memref<64x64xbf16, #tpu.memory_space<vmem>>, %arg8: memref<1x64xf32, #tpu.memory_space<vmem>>, %arg9: memref<64x128xbf16, #tpu.memory_space<vmem>>, %arg10: memref<1x128xf32, #tpu.memory_space<vmem>>, %arg11: memref<128x128xbf16, #tpu.memory_space<vmem>>, %arg12: memref<1x128xf32, #tpu.memory_space<vmem>>, %arg13: memref<8x128xf32, #tpu.memory_space<vmem>>) attributes {dimension_semantics = [#tpu.dimension_semantics<parallel>, #tpu.dimension_semantics<arbitrary>], iteration_bounds = array<i64: 2, 2>, scalar_prefetch = 0 : i64, scratch_operands = 0 : i64, tpu.core_type = #tpu.core_type<tc>, window_params = [{transform_indices = @transform_0, window_bounds = array<i64: 8, 256, 8>}, {pipeline_mode = #tpu.pipeline_mode<synchronous>, transform_indices = @transform_1, window_bounds = array<i64: 8, 64>}, {pipeline_mode = #tpu.pipeline_mode<synchronous>, transform_indices = @transform_2, window_bounds = array<i64: 1, 64>}, {pipeline_mode = #tpu.pipeline_mode<synchronous>, transform_indices = @transform_3, window_bounds = array<i64: 64, 64>}, {pipeline_mode = #tpu.pipeline_mode<synchronous>, transform_indices = @transform_4, window_bounds = array<i64: 1, 64>}, {pipeline_mode = #tpu.pipeline_mode<synchronous>, transform_indices = @transform_5, window_bounds = array<i64: 64, 64>}, {pipeline_mode = #tpu.pipeline_mode<synchronous>, transform_indices = @transform_6, window_bounds = array<i64: 1, 64>}, {pipeline_mode = #tpu.pipeline_mode<synchronous>, transform_indices = @transform_7, window_bounds = array<i64: 64, 128>}, {pipeline_mode = #tpu.pipeline_mode<synchronous>, transform_indices = @transform_8, window_bounds = array<i64: 1, 128>}, {pipeline_mode = #tpu.pipeline_mode<synchronous>, transform_indices = @transform_9, window_bounds = array<i64: 128, 128>}, {pipeline_mode = #tpu.pipeline_mode<synchronous>, transform_indices = @transform_10, window_bounds = array<i64: 1, 128>}, {transform_indices = @transform_11, window_bounds = array<i64: 8, 128>}]} {
    %c0 = arith.constant 0 : index
    %c0_0 = arith.constant 0 : index
    %c0_1 = arith.constant 0 : index
    %0 = vector.load %arg2[%c0, %c0_0, %c0_1] : memref<8x256x8xbf16, #tpu.memory_space<vmem>>, vector<8x256x8xbf16>
    %1 = vector.shape_cast %0 : vector<8x256x8xbf16> to vector<2048x8xbf16>
    %c0_2 = arith.constant 0 : index
    %c0_3 = arith.constant 0 : index
    %2 = vector.load %arg3[%c0_2, %c0_3] : memref<8x64xbf16, #tpu.memory_space<vmem>>, vector<8x64xbf16>
    %cst = arith.constant dense<0.000000e+00> : vector<2048x64xf32>
    %3 = tpu.matmul %1, %2, %cst {dimension_numbers = #tpu.dot_dimension_numbers<[1], [0], [0], [1], [0, 0, 1, 1], [], []>} : vector<2048x8xbf16>, vector<8x64xbf16>, vector<2048x64xf32> -> vector<2048x64xf32>
    %c0_4 = arith.constant 0 : index
    %c0_5 = arith.constant 0 : index
    %4 = vector.load %arg4[%c0_4, %c0_5] : memref<1x64xf32, #tpu.memory_space<vmem>>, vector<1x64xf32>
    %5 = vector.broadcast %4 : vector<1x64xf32> to vector<2048x64xf32>
    %6 = arith.addf %3, %5 : vector<2048x64xf32>
    %cst_6 = arith.constant 0.000000e+00 : f32
    %7 = vector.broadcast %cst_6 : f32 to vector<2048x64xf32>
    %8 = arith.maximumf %6, %7 : vector<2048x64xf32>
    %9 = arith.truncf %8 : vector<2048x64xf32> to vector<2048x64xbf16>
    %c0_7 = arith.constant 0 : index
    %c0_8 = arith.constant 0 : index
    %10 = vector.load %arg5[%c0_7, %c0_8] : memref<64x64xbf16, #tpu.memory_space<vmem>>, vector<64x64xbf16>
    %cst_9 = arith.constant dense<0.000000e+00> : vector<2048x64xf32>
    %11 = tpu.matmul %9, %10, %cst_9 {dimension_numbers = #tpu.dot_dimension_numbers<[1], [0], [0], [1], [0, 0, 1, 1], [], []>} : vector<2048x64xbf16>, vector<64x64xbf16>, vector<2048x64xf32> -> vector<2048x64xf32>
    %c0_10 = arith.constant 0 : index
    %c0_11 = arith.constant 0 : index
    %12 = vector.load %arg6[%c0_10, %c0_11] : memref<1x64xf32, #tpu.memory_space<vmem>>, vector<1x64xf32>
    %13 = vector.broadcast %12 : vector<1x64xf32> to vector<2048x64xf32>
    %14 = arith.addf %11, %13 : vector<2048x64xf32>
    %cst_12 = arith.constant 0.000000e+00 : f32
    %15 = vector.broadcast %cst_12 : f32 to vector<2048x64xf32>
    %16 = arith.maximumf %14, %15 : vector<2048x64xf32>
    %17 = arith.truncf %16 : vector<2048x64xf32> to vector<2048x64xbf16>
    %c0_13 = arith.constant 0 : index
    %c0_14 = arith.constant 0 : index
    %18 = vector.load %arg7[%c0_13, %c0_14] : memref<64x64xbf16, #tpu.memory_space<vmem>>, vector<64x64xbf16>
    %cst_15 = arith.constant dense<0.000000e+00> : vector<2048x64xf32>
    %19 = tpu.matmul %17, %18, %cst_15 {dimension_numbers = #tpu.dot_dimension_numbers<[1], [0], [0], [1], [0, 0, 1, 1], [], []>} : vector<2048x64xbf16>, vector<64x64xbf16>, vector<2048x64xf32> -> vector<2048x64xf32>
    %c0_16 = arith.constant 0 : index
    %c0_17 = arith.constant 0 : index
    %20 = vector.load %arg8[%c0_16, %c0_17] : memref<1x64xf32, #tpu.memory_space<vmem>>, vector<1x64xf32>
    %21 = vector.broadcast %20 : vector<1x64xf32> to vector<2048x64xf32>
    %22 = arith.addf %19, %21 : vector<2048x64xf32>
    %cst_18 = arith.constant 0.000000e+00 : f32
    %23 = vector.broadcast %cst_18 : f32 to vector<2048x64xf32>
    %24 = arith.maximumf %22, %23 : vector<2048x64xf32>
    %25 = arith.truncf %24 : vector<2048x64xf32> to vector<2048x64xbf16>
    %c0_19 = arith.constant 0 : index
    %c0_20 = arith.constant 0 : index
    %26 = vector.load %arg9[%c0_19, %c0_20] : memref<64x128xbf16, #tpu.memory_space<vmem>>, vector<64x128xbf16>
    %cst_21 = arith.constant dense<0.000000e+00> : vector<2048x128xf32>
    %27 = tpu.matmul %25, %26, %cst_21 {dimension_numbers = #tpu.dot_dimension_numbers<[1], [0], [0], [1], [0, 0, 1, 1], [], []>} : vector<2048x64xbf16>, vector<64x128xbf16>, vector<2048x128xf32> -> vector<2048x128xf32>
    %c0_22 = arith.constant 0 : index
    %c0_23 = arith.constant 0 : index
    %28 = vector.load %arg10[%c0_22, %c0_23] : memref<1x128xf32, #tpu.memory_space<vmem>>, vector<1x128xf32>
    %29 = vector.broadcast %28 : vector<1x128xf32> to vector<2048x128xf32>
    %30 = arith.addf %27, %29 : vector<2048x128xf32>
    %cst_24 = arith.constant 0.000000e+00 : f32
    %31 = vector.broadcast %cst_24 : f32 to vector<2048x128xf32>
    %32 = arith.maximumf %30, %31 : vector<2048x128xf32>
    %33 = arith.truncf %32 : vector<2048x128xf32> to vector<2048x128xbf16>
    %c0_25 = arith.constant 0 : index
    %c0_26 = arith.constant 0 : index
    %34 = vector.load %arg11[%c0_25, %c0_26] : memref<128x128xbf16, #tpu.memory_space<vmem>>, vector<128x128xbf16>
    %cst_27 = arith.constant dense<0.000000e+00> : vector<2048x128xf32>
    %35 = tpu.matmul %33, %34, %cst_27 {dimension_numbers = #tpu.dot_dimension_numbers<[1], [0], [0], [1], [0, 0, 1, 1], [], []>} : vector<2048x128xbf16>, vector<128x128xbf16>, vector<2048x128xf32> -> vector<2048x128xf32>
    %c0_28 = arith.constant 0 : index
    %c0_29 = arith.constant 0 : index
    %36 = vector.load %arg12[%c0_28, %c0_29] : memref<1x128xf32, #tpu.memory_space<vmem>>, vector<1x128xf32>
    %37 = vector.broadcast %36 : vector<1x128xf32> to vector<2048x128xf32>
    %38 = arith.addf %35, %37 : vector<2048x128xf32>
    %cst_30 = arith.constant 0.000000e+00 : f32
    %39 = vector.broadcast %cst_30 : f32 to vector<2048x128xf32>
    %40 = arith.maximumf %38, %39 : vector<2048x128xf32>
    %41 = vector.shape_cast %40 : vector<2048x128xf32> to vector<8x256x128xf32>
    %cst_31 = arith.constant dense<0xFF800000> : vector<8x128xf32>
    %42 = vector.multi_reduction <maximumf>, %41, %cst_31 [1] : vector<8x256x128xf32> to vector<8x128xf32>
    %c0_i32 = arith.constant 0 : i32
    %43 = arith.cmpi eq, %arg1, %c0_i32 : i32
    %44 = arith.extui %43 : i1 to i32
    %c0_i32_32 = arith.constant 0 : i32
    %45 = arith.cmpi ne, %44, %c0_i32_32 : i32
    scf.if %45 {
      %c0_35 = arith.constant 0 : index
      %c0_36 = arith.constant 0 : index
      %49 = vector.load %arg13[%c0_35, %c0_36] : memref<8x128xf32, #tpu.memory_space<vmem>>, vector<8x128xf32>
      tpu.vector_store %arg13[%c0_35, %c0_36], %42 {strides = array<i32>} : memref<8x128xf32, #tpu.memory_space<vmem>>, vector<8x128xf32>,
    } else {
    }
    %c0_i32_33 = arith.constant 0 : i32
    %46 = arith.cmpi sgt, %arg1, %c0_i32_33 : i32
    %47 = arith.extui %46 : i1 to i32
    %c0_i32_34 = arith.constant 0 : i32
    %48 = arith.cmpi ne, %47, %c0_i32_34 : i32
    scf.if %48 {
      %c0_35 = arith.constant 0 : index
      %c0_36 = arith.constant 0 : index
      %49 = vector.load %arg13[%c0_35, %c0_36] : memref<8x128xf32, #tpu.memory_space<vmem>>, vector<8x128xf32>
      %50 = arith.maximumf %49, %42 : vector<8x128xf32>
      %c0_37 = arith.constant 0 : index
      %c0_38 = arith.constant 0 : index
      %51 = vector.load %arg13[%c0_37, %c0_38] : memref<8x128xf32, #tpu.memory_space<vmem>>, vector<8x128xf32>
      tpu.vector_store %arg13[%c0_37, %c0_38], %50 {strides = array<i32>} : memref<8x128xf32, #tpu.memory_space<vmem>>, vector<8x128xf32>,
    } else {
    }
    return
  }
  func.func @transform_0(%arg0: i32, %arg1: i32) -> (i32, i32, i32) {
    %c0_i32 = arith.constant 0 : i32
    %c0_i32_0 = arith.constant 0 : i32
    return %arg0, %arg1, %c0_i32 : i32, i32, i32
  }
  func.func @transform_1(%arg0: i32, %arg1: i32) -> (i32, i32) {
    %c0_i32 = arith.constant 0 : i32
    %c0_i32_0 = arith.constant 0 : i32
    %c0_i32_1 = arith.constant 0 : i32
    return %c0_i32, %c0_i32_0 : i32, i32
  }
  func.func @transform_2(%arg0: i32, %arg1: i32) -> (i32, i32) {
    %c0_i32 = arith.constant 0 : i32
    %c0_i32_0 = arith.constant 0 : i32
    %c0_i32_1 = arith.constant 0 : i32
    return %c0_i32, %c0_i32_0 : i32, i32
  }
  func.func @transform_3(%arg0: i32, %arg1: i32) -> (i32, i32) {
    %c0_i32 = arith.constant 0 : i32
    %c0_i32_0 = arith.constant 0 : i32
    %c0_i32_1 = arith.constant 0 : i32
    return %c0_i32, %c0_i32_0 : i32, i32
  }
  func.func @transform_4(%arg0: i32, %arg1: i32) -> (i32, i32) {
    %c0_i32 = arith.constant 0 : i32
    %c0_i32_0 = arith.constant 0 : i32
    %c0_i32_1 = arith.constant 0 : i32
    return %c0_i32, %c0_i32_0 : i32, i32
  }
  func.func @transform_5(%arg0: i32, %arg1: i32) -> (i32, i32) {
    %c0_i32 = arith.constant 0 : i32
    %c0_i32_0 = arith.constant 0 : i32
    %c0_i32_1 = arith.constant 0 : i32
    return %c0_i32, %c0_i32_0 : i32, i32
  }
  func.func @transform_6(%arg0: i32, %arg1: i32) -> (i32, i32) {
    %c0_i32 = arith.constant 0 : i32
    %c0_i32_0 = arith.constant 0 : i32
    %c0_i32_1 = arith.constant 0 : i32
    return %c0_i32, %c0_i32_0 : i32, i32
  }
  func.func @transform_7(%arg0: i32, %arg1: i32) -> (i32, i32) {
    %c0_i32 = arith.constant 0 : i32
    %c0_i32_0 = arith.constant 0 : i32
    %c0_i32_1 = arith.constant 0 : i32
    return %c0_i32, %c0_i32_0 : i32, i32
  }
  func.func @transform_8(%arg0: i32, %arg1: i32) -> (i32, i32) {
    %c0_i32 = arith.constant 0 : i32
    %c0_i32_0 = arith.constant 0 : i32
    %c0_i32_1 = arith.constant 0 : i32
    return %c0_i32, %c0_i32_0 : i32, i32
  }
  func.func @transform_9(%arg0: i32, %arg1: i32) -> (i32, i32) {
    %c0_i32 = arith.constant 0 : i32
    %c0_i32_0 = arith.constant 0 : i32
    %c0_i32_1 = arith.constant 0 : i32
    return %c0_i32, %c0_i32_0 : i32, i32
  }
  func.func @transform_10(%arg0: i32, %arg1: i32) -> (i32, i32) {
    %c0_i32 = arith.constant 0 : i32
    %c0_i32_0 = arith.constant 0 : i32
    %c0_i32_1 = arith.constant 0 : i32
    return %c0_i32, %c0_i32_0 : i32, i32
  }
  func.func @transform_11(%arg0: i32, %arg1: i32) -> (i32, i32) {
    %c0_i32 = arith.constant 0 : i32
    %c0_i32_0 = arith.constant 0 : i32
    return %arg0, %c0_i32 : i32, i32
  }
}

</mosaic_0001>

<bundles_post_ra>
// kernel: tpu_custom_call.1
= control target key start
LH: loop header
LB: loop body
LE: loop exit
PB: predicated region body
PF: predicated region fallthrough
CT: control target
= control target key end

     0   :  { %s18029_s0 = inlined_call_operand.vmem [shape: bf16[16,512,8], index: 0, kind: input, shape index: {}]   ;;  %s18030_s1 = inlined_call_operand.vmem [shape: bf16[8,64], index: 1, kind: input, shape index: {}]   ;;  %s18031_s2 = inlined_call_operand.vmem [shape: f32[1,64], index: 2, kind: input, shape index: {}]   ;;  %s18032_s3 = inlined_call_operand.vmem [shape: bf16[64,64], index: 3, kind: input, shape index: {}]   ;;  %s18033_s4 = inlined_call_operand.vmem [shape: f32[1,64], index: 4, kind: input, shape index: {}]   ;;  %s18034_s5 = inlined_call_operand.vmem [shape: bf16[64,64], index: 5, kind: input, shape index: {}]   ;;  %s18035_s6 = inlined_call_operand.vmem [shape: f32[1,64], index: 6, kind: input, shape index: {}]   ;;  %s18036_s7 = inlined_call_operand.vmem [shape: bf16[64,128], index: 7, kind: input, shape index: {}]   ;;  %s18037_s8 = inlined_call_operand.vmem [shape: f32[1,128], index: 8, kind: input, shape index: {}]   ;;  %s18038_s9 = inlined_call_operand.vmem [shape: bf16[128,128], index: 9, kind: input, shape index: {}]   ;;  %s18039_s10 = inlined_call_operand.vmem [shape: f32[1,128], index: 10, kind: input, shape index: {}]   ;;  %s18040_s11 = inlined_call_operand.hbm [shape: f32[16,128], index: 11, kind: output, shape index: {}]  }
   0x1   :  { %18046 = sst [smem:[#allocation42_spill]] %s18029_s0 }
   0x2   :  { %18047 = sst [smem:[#allocation43_spill]] %s18030_s1 }
   0x3   :  { %18048 = sst [smem:[#allocation44_spill]] %s18031_s2 }
   0x4   :  { %18049 = sst [smem:[#allocation45_spill]] %s18032_s3 }
   0x5   :  { %18050 = sst [smem:[#allocation46_spill]] %s18040_s11 }
   0x6   :  { %16 = vsyncpa [#allocation4], 0 }
   0x7   :  { %18 = vsyncpa [#allocation4 + $0x1], 0  ;;  %s14718_s17 = smov 0   ;;  %s14720_s18 = smov 0  }
   0x8   :  { %s14722_s19 = smov 0   ;;  %s14724_s20 = smov 0  }
   0x9   :  { %s14726_s21 = smov 0   ;;  %s14728_s22 = smov 0  }
   0xa   :  { %s14730_s23 = smov 0   ;;  %s14732_s24 = smov 0  }
   0xb   :  { %s14734_s25 = smov 0   ;;  %s14736_s26 = smov 0  }
   0xc LB: > { %18051 = sst [smem:[#allocation6_spill]] %s14619_s17  ;;  %s11625_s27 = sadd.s32 4294967295, %s14655_s26   ;;  %s14655_s26 = sphi %s14736_s26, %s24_s26   ;;  %s14651_s25 = sphi %s14734_s25, %s18141_s25   ;;  %s14647_s24 = sphi %s14732_s24, %s18140_s24   ;;  %s14643_s23 = sphi %s14730_s23, %s18139_s23   ;;  %s14639_s22 = sphi %s14728_s22, %s18138_s22   ;;  %s14635_s21 = sphi %s14726_s21, %s18137_s21   ;;  %s14631_s20 = sphi %s14724_s20, %s18136_s20   ;;  %s14627_s19 = sphi %s14722_s19, %s18135_s19   ;;  %s14623_s18 = sphi %s14720_s18, %s18134_s18   ;;  %s14619_s17 = sphi %s14718_s17, %s18133_s17  }
   0xd   : > { %18052 = sst [smem:[#allocation7_spill]] %s14639_s22  ;;  %s11626_s28 = sadd.s32 4294967294, %s14655_s26  }
   0xe   : > { %18053 = sst [smem:[#allocation8_spill]] %s14643_s23  ;;  %s33_s29 = sadd.s32 1, %s14647_s24 }
   0xf   : > { %s36_s30 = sadd.s32 1, %s14651_s25  ;;  %p34_p0 = scmp.ge.s32.totalorder %s33_s29, 2 }
  0x10   : > { %s45_s12 = sadd.s32 1, %s14635_s21  ;;  %p52_p1 = scmp.ne.s32.totalorder %s14635_s21, %s14631_s20 }
  0x11   : > { %p53_p2 = scmp.eq.s32.totalorder %s14655_s26, 0  ;;  %s18143_s29 = smov (%p34_p0, %s33_s29), 0 }
  0x12   : > { %18054 = sst [smem:[#allocation9_spill]] %s18143_s29  ;;  %s18145_s30 = smov (!%p34_p0, %s36_s30), %s14651_s25 }
  0x13   : > { %s41_s13 = ssub.s32 %s14647_s24, %s18143_s29  ;;  %p14781_p3 = por %p53_p2, %p52_p1 }
  0x14   : > { %p38_p4 = scmp.ge.s32.totalorder %s18145_s30, 2  ;;  %s281_s15 = sadd.s32 1, %s14627_s19 }
  0x15   : > { %p291_p5 = scmp.ne.s32.totalorder %s14627_s19, %s14623_s18  ;;  %p292_p6 = scmp.eq.s32.totalorder %s11625_s27, 3 }
  0x16   : > { %s18147_s30 = smov (%p38_p4, %s18145_s30), 0  ;;  %p297_p8 = scmp.ne.s32.totalorder %s14623_s18, %s14619_s17 }
  0x17   : > { %18056 = sst [smem:[#allocation10_spill]] %s18147_s30  ;;  %p14790_p7 = por %p292_p6, %p291_p5 }
  0x18   : > { %s40_s11 = ssub.s32 %s14651_s25, %s18147_s30  ;;  %p298_p9 = scmp.eq.s32.totalorder %s11626_s28, 3 }
  0x19   : > { %s42_s29 = sor.u32 %s41_s13, %s40_s11  ;;  %p279_p10 = scmp.eq.s32.totalorder %s40_s11, 0 }
  0x1a   : > { %p43_p11 = scmp.eq.s32.totalorder %s42_s29, 0  ;;  %p14798_p12 = por %p298_p9, %p297_p8 }
  0x1b   : > { %s14803_s22 = scalar_select %p279_p10, %s14627_s19, %s281_s15  }
  0x1c   : > { %s18058_s23 = scalar_select %p14798_p12, 1, 0 }
  0x1d   : > { %s14806_s27 = scalar_select %p43_p11, %s14635_s21, %s45_s12  }
  0x1e   : > { %18059 = sst [smem:[#allocation11_spill]] %s18058_s23  ;;  %p11628_p13 = scmp.ge.s32.totalorder %s14655_s26, 4 }
  0x20   : > { %344 = sbr.rel (%p11628_p13) target bundleno = 113 (0x71), region = 56 }
  0x27   : > { %347 = sbr.rel (!%p14781_p3) target bundleno = 113 (0x71), region = 60  ;;  %s349_s28 = sand.u32 (%p14781_p3), 1, %s14635_s21  }
  0x28   : > { %s11631_s11 = sshll.u32 (%p14781_p3), %s14647_s24, 5  ;;  %s11629_s29 = sshll.u32 (%p14781_p3), %s349_s28, 10 }
  0x29   : > { %s12308_s13 = sshll.u32 (%p14781_p3), %s14651_s25, 9  ;;  %s18060_s0 = sld [smem:[#allocation42_spill]] (%p14781_p3) }
  0x2a   : > { %s355_s30 = sadd.s32 (%p14781_p3), %s12308_s13, %s11631_s11  ;;  %s14822_s14 = scalar_lea.vmem (%p14781_p3), [#allocation2], %s11629_s29 }
  0x2b   : > { %s11633_s17 = sshll.u32 (%p14781_p3), %s355_s30, 2 }
  0x2f   : > { %s14817_s12 = scalar_lea.vmem %s18060_s0, %s11633_s17 }
  0x30   : > { %v373_v0 = vld [vmem:[%s14817_s12] sm:$0xff]   ;;  %v377_v1 = vld [vmem:[%s14817_s12 + $0x8] sm:$0xff]   ;;  %v381_v2 = vld [vmem:[%s14817_s12 + $0x10] sm:$0xff]  }
  0x31   : > { %374 = vst [vmem:[%s14822_s14] sm:$0xff] %v373_v0   ;;  %378 = vst [vmem:[%s14822_s14 + $0x8] sm:$0xff] %v377_v1   ;;  %v385_v3 = vld [vmem:[%s14817_s12 + $0x18] sm:$0xff]   ;;  %v389_v4 = vld [vmem:[%s14817_s12 + $0x20] sm:$0xff]  }
  0x32   : > { %382 = vst [vmem:[%s14822_s14 + $0x10] sm:$0xff] %v381_v2   ;;  %v393_v5 = vld [vmem:[%s14817_s12 + $0x28] sm:$0xff]   ;;  %386 = vst [vmem:[%s14822_s14 + $0x18] sm:$0xff] %v385_v3   ;;  %v397_v6 = vld [vmem:[%s14817_s12 + $0x30] sm:$0xff]  }
  0x33   : > { %390 = vst [vmem:[%s14822_s14 + $0x20] sm:$0xff] %v389_v4   ;;  %394 = vst [vmem:[%s14822_s14 + $0x28] sm:$0xff] %v393_v5   ;;  %v401_v7 = vld [vmem:[%s14817_s12 + $0x38] sm:$0xff]   ;;  %v405_v8 = vld [vmem:[%s14817_s12 + $0x40] sm:$0xff]  }
  0x34   : > { %398 = vst [vmem:[%s14822_s14 + $0x30] sm:$0xff] %v397_v6   ;;  %402 = vst [vmem:[%s14822_s14 + $0x38] sm:$0xff] %v401_v7   ;;  %v409_v9 = vld [vmem:[%s14817_s12 + $0x48] sm:$0xff]   ;;  %v413_v10 = vld [vmem:[%s14817_s12 + $0x50] sm:$0xff]  }
  0x35   : > { %406 = vst [vmem:[%s14822_s14 + $0x40] sm:$0xff] %v405_v8   ;;  %v417_v11 = vld [vmem:[%s14817_s12 + $0x58] sm:$0xff]   ;;  %410 = vst [vmem:[%s14822_s14 + $0x48] sm:$0xff] %v409_v9   ;;  %v421_v12 = vld [vmem:[%s14817_s12 + $0x60] sm:$0xff]  }
  0x36   : > { %414 = vst [vmem:[%s14822_s14 + $0x50] sm:$0xff] %v413_v10   ;;  %418 = vst [vmem:[%s14822_s14 + $0x58] sm:$0xff] %v417_v11   ;;  %v425_v13 = vld [vmem:[%s14817_s12 + $0x68] sm:$0xff]   ;;  %v429_v14 = vld [vmem:[%s14817_s12 + $0x70] sm:$0xff]  }
  0x37   : > { %422 = vst [vmem:[%s14822_s14 + $0x60] sm:$0xff] %v421_v12   ;;  %426 = vst [vmem:[%s14822_s14 + $0x68] sm:$0xff] %v425_v13   ;;  %v433_v15 = vld [vmem:[%s14817_s12 + $0x78] sm:$0xff]   ;;  %v437_v16 = vld [vmem:[%s14817_s12 + $0x100] sm:$0xff]  }
  0x38   : > { %430 = vst [vmem:[%s14822_s14 + $0x70] sm:$0xff] %v429_v14   ;;  %v441_v17 = vld [vmem:[%s14817_s12 + $0x108] sm:$0xff]   ;;  %434 = vst [vmem:[%s14822_s14 + $0x78] sm:$0xff] %v433_v15   ;;  %v445_v18 = vld [vmem:[%s14817_s12 + $0x110] sm:$0xff]  }
  0x39   : > { %438 = vst [vmem:[%s14822_s14 + $0x80] sm:$0xff] %v437_v16   ;;  %442 = vst [vmem:[%s14822_s14 + $0x88] sm:$0xff] %v441_v17   ;;  %v449_v19 = vld [vmem:[%s14817_s12 + $0x118] sm:$0xff]   ;;  %v453_v20 = vld [vmem:[%s14817_s12 + $0x120] sm:$0xff]  }
  0x3a   : > { %446 = vst [vmem:[%s14822_s14 + $0x90] sm:$0xff] %v445_v18   ;;  %450 = vst [vmem:[%s14822_s14 + $0x98] sm:$0xff] %v449_v19   ;;  %v457_v21 = vld [vmem:[%s14817_s12 + $0x128] sm:$0xff]   ;;  %v461_v22 = vld [vmem:[%s14817_s12 + $0x130] sm:$0xff]  }
  0x3b   : > { %454 = vst [vmem:[%s14822_s14 + $0xa0] sm:$0xff] %v453_v20   ;;  %v465_v23 = vld [vmem:[%s14817_s12 + $0x138] sm:$0xff]   ;;  %458 = vst [vmem:[%s14822_s14 + $0xa8] sm:$0xff] %v457_v21   ;;  %v469_v24 = vld [vmem:[%s14817_s12 + $0x140] sm:$0xff]  }
  0x3c   : > { %462 = vst [vmem:[%s14822_s14 + $0xb0] sm:$0xff] %v461_v22   ;;  %466 = vst [vmem:[%s14822_s14 + $0xb8] sm:$0xff] %v465_v23   ;;  %v473_v25 = vld [vmem:[%s14817_s12 + $0x148] sm:$0xff]   ;;  %v477_v26 = vld [vmem:[%s14817_s12 + $0x150] sm:$0xff]  }
  0x3d   : > { %470 = vst [vmem:[%s14822_s14 + $0xc0] sm:$0xff] %v469_v24   ;;  %474 = vst [vmem:[%s14822_s14 + $0xc8] sm:$0xff] %v473_v25   ;;  %v481_v27 = vld [vmem:[%s14817_s12 + $0x158] sm:$0xff]   ;;  %v485_v28 = vld [vmem:[%s14817_s12 + $0x160] sm:$0xff]  }
  0x3e   : > { %478 = vst [vmem:[%s14822_s14 + $0xd0] sm:$0xff] %v477_v26   ;;  %v489_v29 = vld [vmem:[%s14817_s12 + $0x168] sm:$0xff]   ;;  %482 = vst [vmem:[%s14822_s14 + $0xd8] sm:$0xff] %v481_v27   ;;  %v493_v30 = vld [vmem:[%s14817_s12 + $0x170] sm:$0xff]  }
  0x3f   : > { %486 = vst [vmem:[%s14822_s14 + $0xe0] sm:$0xff] %v485_v28   ;;  %490 = vst [vmem:[%s14822_s14 + $0xe8] sm:$0xff] %v489_v29   ;;  %v497_v31 = vld [vmem:[%s14817_s12 + $0x178] sm:$0xff]   ;;  %v501_v32 = vld [vmem:[%s14817_s12 + $0x200] sm:$0xff]  }
  0x40   : > { %494 = vst [vmem:[%s14822_s14 + $0xf0] sm:$0xff] %v493_v30   ;;  %498 = vst [vmem:[%s14822_s14 + $0xf8] sm:$0xff] %v497_v31   ;;  %v505_v33 = vld [vmem:[%s14817_s12 + $0x208] sm:$0xff]   ;;  %v509_v34 = vld [vmem:[%s14817_s12 + $0x210] sm:$0xff]  }
  0x41   : > { %502 = vst [vmem:[%s14822_s14 + $0x100] sm:$0xff] %v501_v32   ;;  %v513_v35 = vld [vmem:[%s14817_s12 + $0x218] sm:$0xff]   ;;  %506 = vst [vmem:[%s14822_s14 + $0x108] sm:$0xff] %v505_v33   ;;  %v517_v36 = vld [vmem:[%s14817_s12 + $0x220] sm:$0xff]  }
  0x42   : > { %510 = vst [vmem:[%s14822_s14 + $0x110] sm:$0xff] %v509_v34   ;;  %514 = vst [vmem:[%s14822_s14 + $0x118] sm:$0xff] %v513_v35   ;;  %v521_v37 = vld [vmem:[%s14817_s12 + $0x228] sm:$0xff]   ;;  %v525_v38 = vld [vmem:[%s14817_s12 + $0x230] sm:$0xff]  }
  0x43   : > { %518 = vst [vmem:[%s14822_s14 + $0x120] sm:$0xff] %v517_v36   ;;  %522 = vst [vmem:[%s14822_s14 + $0x128] sm:$0xff] %v521_v37   ;;  %v529_v39 = vld [vmem:[%s14817_s12 + $0x238] sm:$0xff]   ;;  %v533_v40 = vld [vmem:[%s14817_s12 + $0x240] sm:$0xff]  }
  0x44   : > { %526 = vst [vmem:[%s14822_s14 + $0x130] sm:$0xff] %v525_v38   ;;  %v537_v41 = vld [vmem:[%s14817_s12 + $0x248] sm:$0xff]   ;;  %530 = vst [vmem:[%s14822_s14 + $0x138] sm:$0xff] %v529_v39   ;;  %v541_v42 = vld [vmem:[%s14817_s12 + $0x250] sm:$0xff]  }
  0x45   : > { %534 = vst [vmem:[%s14822_s14 + $0x140] sm:$0xff] %v533_v40   ;;  %538 = vst [vmem:[%s14822_s14 + $0x148] sm:$0xff] %v537_v41   ;;  %v545_v43 = vld [vmem:[%s14817_s12 + $0x258] sm:$0xff]   ;;  %v549_v44 = vld [vmem:[%s14817_s12 + $0x260] sm:$0xff]  }
  0x46   : > { %542 = vst [vmem:[%s14822_s14 + $0x150] sm:$0xff] %v541_v42   ;;  %546 = vst [vmem:[%s14822_s14 + $0x158] sm:$0xff] %v545_v43   ;;  %v553_v45 = vld [vmem:[%s14817_s12 + $0x268] sm:$0xff]   ;;  %v557_v46 = vld [vmem:[%s14817_s12 + $0x270] sm:$0xff]  }
  0x47   : > { %550 = vst [vmem:[%s14822_s14 + $0x160] sm:$0xff] %v549_v44   ;;  %v561_v47 = vld [vmem:[%s14817_s12 + $0x278] sm:$0xff]   ;;  %554 = vst [vmem:[%s14822_s14 + $0x168] sm:$0xff] %v553_v45   ;;  %v565_v48 = vld [vmem:[%s14817_s12 + $0x300] sm:$0xff]  }
  0x48   : > { %558 = vst [vmem:[%s14822_s14 + $0x170] sm:$0xff] %v557_v46   ;;  %562 = vst [vmem:[%s14822_s14 + $0x178] sm:$0xff] %v561_v47   ;;  %v569_v49 = vld [vmem:[%s14817_s12 + $0x308] sm:$0xff]   ;;  %v573_v50 = vld [vmem:[%s14817_s12 + $0x310] sm:$0xff]  }
  0x49   : > { %566 = vst [vmem:[%s14822_s14 + $0x180] sm:$0xff] %v565_v48   ;;  %570 = vst [vmem:[%s14822_s14 + $0x188] sm:$0xff] %v569_v49   ;;  %v577_v51 = vld [vmem:[%s14817_s12 + $0x318] sm:$0xff]   ;;  %v581_v52 = vld [vmem:[%s14817_s12 + $0x320] sm:$0xff]  }
  0x4a   : > { %574 = vst [vmem:[%s14822_s14 + $0x190] sm:$0xff] %v573_v50   ;;  %v585_v53 = vld [vmem:[%s14817_s12 + $0x328] sm:$0xff]   ;;  %578 = vst [vmem:[%s14822_s14 + $0x198] sm:$0xff] %v577_v51   ;;  %v589_v54 = vld [vmem:[%s14817_s12 + $0x330] sm:$0xff]  }
  0x4b   : > { %582 = vst [vmem:[%s14822_s14 + $0x1a0] sm:$0xff] %v581_v52   ;;  %586 = vst [vmem:[%s14822_s14 + $0x1a8] sm:$0xff] %v585_v53   ;;  %v593_v55 = vld [vmem:[%s14817_s12 + $0x338] sm:$0xff]   ;;  %v597_v56 = vld [vmem:[%s14817_s12 + $0x340] sm:$0xff]  }
  0x4c   : > { %590 = vst [vmem:[%s14822_s14 + $0x1b0] sm:$0xff] %v589_v54   ;;  %594 = vst [vmem:[%s14822_s14 + $0x1b8] sm:$0xff] %v593_v55   ;;  %v601_v57 = vld [vmem:[%s14817_s12 + $0x348] sm:$0xff]   ;;  %v605_v58 = vld [vmem:[%s14817_s12 + $0x350] sm:$0xff]  }
  0x4d   : > { %598 = vst [vmem:[%s14822_s14 + $0x1c0] sm:$0xff] %v597_v56   ;;  %v609_v59 = vld [vmem:[%s14817_s12 + $0x358] sm:$0xff]   ;;  %602 = vst [vmem:[%s14822_s14 + $0x1c8] sm:$0xff] %v601_v57   ;;  %v613_v60 = vld [vmem:[%s14817_s12 + $0x360] sm:$0xff]  }
  0x4e   : > { %606 = vst [vmem:[%s14822_s14 + $0x1d0] sm:$0xff] %v605_v58   ;;  %610 = vst [vmem:[%s14822_s14 + $0x1d8] sm:$0xff] %v609_v59   ;;  %v617_v61 = vld [vmem:[%s14817_s12 + $0x368] sm:$0xff]   ;;  %v621_v62 = vld [vmem:[%s14817_s12 + $0x370] sm:$0xff]  }
  0x4f   : > { %614 = vst [vmem:[%s14822_s14 + $0x1e0] sm:$0xff] %v613_v60   ;;  %618 = vst [vmem:[%s14822_s14 + $0x1e8] sm:$0xff] %v617_v61   ;;  %v625_v63 = vld [vmem:[%s14817_s12 + $0x378] sm:$0xff]   ;;  %v629_v0 = vld [vmem:[%s14817_s12 + $0x400] sm:$0xff]  }
  0x50   : > { %622 = vst [vmem:[%s14822_s14 + $0x1f0] sm:$0xff] %v621_v62   ;;  %v633_v1 = vld [vmem:[%s14817_s12 + $0x408] sm:$0xff]   ;;  %626 = vst [vmem:[%s14822_s14 + $0x1f8] sm:$0xff] %v625_v63   ;;  %v637_v2 = vld [vmem:[%s14817_s12 + $0x410] sm:$0xff]  }
  0x51   : > { %630 = vst [vmem:[%s14822_s14 + $0x200] sm:$0xff] %v629_v0   ;;  %634 = vst [vmem:[%s14822_s14 + $0x208] sm:$0xff] %v633_v1   ;;  %v641_v3 = vld [vmem:[%s14817_s12 + $0x418] sm:$0xff]   ;;  %v645_v4 = vld [vmem:[%s14817_s12 + $0x420] sm:$0xff]  }
  0x52   : > { %638 = vst [vmem:[%s14822_s14 + $0x210] sm:$0xff] %v637_v2   ;;  %642 = vst [vmem:[%s14822_s14 + $0x218] sm:$0xff] %v641_v3   ;;  %v649_v5 = vld [vmem:[%s14817_s12 + $0x428] sm:$0xff]   ;;  %v653_v6 = vld [vmem:[%s14817_s12 + $0x430] sm:$0xff]  }
  0x53   : > { %646 = vst [vmem:[%s14822_s14 + $0x220] sm:$0xff] %v645_v4   ;;  %v657_v7 = vld [vmem:[%s14817_s12 + $0x438] sm:$0xff]   ;;  %650 = vst [vmem:[%s14822_s14 + $0x228] sm:$0xff] %v649_v5   ;;  %v661_v8 = vld [vmem:[%s14817_s12 + $0x440] sm:$0xff]  }
  0x54   : > { %654 = vst [vmem:[%s14822_s14 + $0x230] sm:$0xff] %v653_v6   ;;  %658 = vst [vmem:[%s14822_s14 + $0x238] sm:$0xff] %v657_v7   ;;  %v665_v9 = vld [vmem:[%s14817_s12 + $0x448] sm:$0xff]   ;;  %v669_v10 = vld [vmem:[%s14817_s12 + $0x450] sm:$0xff]  }
  0x55   : > { %662 = vst [vmem:[%s14822_s14 + $0x240] sm:$0xff] %v661_v8   ;;  %666 = vst [vmem:[%s14822_s14 + $0x248] sm:$0xff] %v665_v9   ;;  %v673_v11 = vld [vmem:[%s14817_s12 + $0x458] sm:$0xff]   ;;  %v677_v12 = vld [vmem:[%s14817_s12 + $0x460] sm:$0xff]  }
  0x56   : > { %670 = vst [vmem:[%s14822_s14 + $0x250] sm:$0xff] %v669_v10   ;;  %v681_v13 = vld [vmem:[%s14817_s12 + $0x468] sm:$0xff]   ;;  %674 = vst [vmem:[%s14822_s14 + $0x258] sm:$0xff] %v673_v11   ;;  %v685_v14 = vld [vmem:[%s14817_s12 + $0x470] sm:$0xff]  }
  0x57   : > { %678 = vst [vmem:[%s14822_s14 + $0x260] sm:$0xff] %v677_v12   ;;  %682 = vst [vmem:[%s14822_s14 + $0x268] sm:$0xff] %v681_v13   ;;  %v689_v15 = vld [vmem:[%s14817_s12 + $0x478] sm:$0xff]   ;;  %v693_v16 = vld [vmem:[%s14817_s12 + $0x500] sm:$0xff]  }
  0x58   : > { %686 = vst [vmem:[%s14822_s14 + $0x270] sm:$0xff] %v685_v14   ;;  %690 = vst [vmem:[%s14822_s14 + $0x278] sm:$0xff] %v689_v15   ;;  %v697_v17 = vld [vmem:[%s14817_s12 + $0x508] sm:$0xff]   ;;  %v701_v18 = vld [vmem:[%s14817_s12 + $0x510] sm:$0xff]  }
  0x59   : > { %694 = vst [vmem:[%s14822_s14 + $0x280] sm:$0xff] %v693_v16   ;;  %v705_v19 = vld [vmem:[%s14817_s12 + $0x518] sm:$0xff]   ;;  %698 = vst [vmem:[%s14822_s14 + $0x288] sm:$0xff] %v697_v17   ;;  %v709_v20 = vld [vmem:[%s14817_s12 + $0x520] sm:$0xff]  }
  0x5a   : > { %702 = vst [vmem:[%s14822_s14 + $0x290] sm:$0xff] %v701_v18   ;;  %706 = vst [vmem:[%s14822_s14 + $0x298] sm:$0xff] %v705_v19   ;;  %v713_v21 = vld [vmem:[%s14817_s12 + $0x528] sm:$0xff]   ;;  %v717_v22 = vld [vmem:[%s14817_s12 + $0x530] sm:$0xff]  }
  0x5b   : > { %710 = vst [vmem:[%s14822_s14 + $0x2a0] sm:$0xff] %v709_v20   ;;  %714 = vst [vmem:[%s14822_s14 + $0x2a8] sm:$0xff] %v713_v21   ;;  %v721_v23 = vld [vmem:[%s14817_s12 + $0x538] sm:$0xff]   ;;  %v725_v24 = vld [vmem:[%s14817_s12 + $0x540] sm:$0xff]  }
  0x5c   : > { %718 = vst [vmem:[%s14822_s14 + $0x2b0] sm:$0xff] %v717_v22   ;;  %v729_v25 = vld [vmem:[%s14817_s12 + $0x548] sm:$0xff]   ;;  %722 = vst [vmem:[%s14822_s14 + $0x2b8] sm:$0xff] %v721_v23   ;;  %v733_v26 = vld [vmem:[%s14817_s12 + $0x550] sm:$0xff]  }
  0x5d   : > { %726 = vst [vmem:[%s14822_s14 + $0x2c0] sm:$0xff] %v725_v24   ;;  %730 = vst [vmem:[%s14822_s14 + $0x2c8] sm:$0xff] %v729_v25   ;;  %v737_v27 = vld [vmem:[%s14817_s12 + $0x558] sm:$0xff]   ;;  %v741_v28 = vld [vmem:[%s14817_s12 + $0x560] sm:$0xff]  }
  0x5e   : > { %734 = vst [vmem:[%s14822_s14 + $0x2d0] sm:$0xff] %v733_v26   ;;  %738 = vst [vmem:[%s14822_s14 + $0x2d8] sm:$0xff] %v737_v27   ;;  %v745_v29 = vld [vmem:[%s14817_s12 + $0x568] sm:$0xff]   ;;  %v749_v30 = vld [vmem:[%s14817_s12 + $0x570] sm:$0xff]  }
  0x5f   : > { %742 = vst [vmem:[%s14822_s14 + $0x2e0] sm:$0xff] %v741_v28   ;;  %v753_v31 = vld [vmem:[%s14817_s12 + $0x578] sm:$0xff]   ;;  %746 = vst [vmem:[%s14822_s14 + $0x2e8] sm:$0xff] %v745_v29   ;;  %v757_v32 = vld [vmem:[%s14817_s12 + $0x600] sm:$0xff]  }
  0x60   : > { %750 = vst [vmem:[%s14822_s14 + $0x2f0] sm:$0xff] %v749_v30   ;;  %754 = vst [vmem:[%s14822_s14 + $0x2f8] sm:$0xff] %v753_v31   ;;  %v761_v33 = vld [vmem:[%s14817_s12 + $0x608] sm:$0xff]   ;;  %v765_v34 = vld [vmem:[%s14817_s12 + $0x610] sm:$0xff]  }
  0x61   : > { %758 = vst [vmem:[%s14822_s14 + $0x300] sm:$0xff] %v757_v32   ;;  %762 = vst [vmem:[%s14822_s14 + $0x308] sm:$0xff] %v761_v33   ;;  %v769_v35 = vld [vmem:[%s14817_s12 + $0x618] sm:$0xff]   ;;  %v773_v36 = vld [vmem:[%s14817_s12 + $0x620] sm:$0xff]  }
  0x62   : > { %766 = vst [vmem:[%s14822_s14 + $0x310] sm:$0xff] %v765_v34   ;;  %v777_v37 = vld [vmem:[%s14817_s12 + $0x628] sm:$0xff]   ;;  %770 = vst [vmem:[%s14822_s14 + $0x318] sm:$0xff] %v769_v35   ;;  %v781_v38 = vld [vmem:[%s14817_s12 + $0x630] sm:$0xff]  }
  0x63   : > { %774 = vst [vmem:[%s14822_s14 + $0x320] sm:$0xff] %v773_v36   ;;  %778 = vst [vmem:[%s14822_s14 + $0x328] sm:$0xff] %v777_v37   ;;  %v785_v39 = vld [vmem:[%s14817_s12 + $0x638] sm:$0xff]   ;;  %v789_v40 = vld [vmem:[%s14817_s12 + $0x640] sm:$0xff]  }
  0x64   : > { %782 = vst [vmem:[%s14822_s14 + $0x330] sm:$0xff] %v781_v38   ;;  %786 = vst [vmem:[%s14822_s14 + $0x338] sm:$0xff] %v785_v39   ;;  %v793_v41 = vld [vmem:[%s14817_s12 + $0x648] sm:$0xff]   ;;  %v797_v42 = vld [vmem:[%s14817_s12 + $0x650] sm:$0xff]  }
  0x65   : > { %790 = vst [vmem:[%s14822_s14 + $0x340] sm:$0xff] %v789_v40   ;;  %v801_v43 = vld [vmem:[%s14817_s12 + $0x658] sm:$0xff]   ;;  %794 = vst [vmem:[%s14822_s14 + $0x348] sm:$0xff] %v793_v41   ;;  %v805_v44 = vld [vmem:[%s14817_s12 + $0x660] sm:$0xff]  }
  0x66   : > { %798 = vst [vmem:[%s14822_s14 + $0x350] sm:$0xff] %v797_v42   ;;  %802 = vst [vmem:[%s14822_s14 + $0x358] sm:$0xff] %v801_v43   ;;  %v809_v45 = vld [vmem:[%s14817_s12 + $0x668] sm:$0xff]   ;;  %v813_v46 = vld [vmem:[%s14817_s12 + $0x670] sm:$0xff]  }
  0x67   : > { %806 = vst [vmem:[%s14822_s14 + $0x360] sm:$0xff] %v805_v44   ;;  %810 = vst [vmem:[%s14822_s14 + $0x368] sm:$0xff] %v809_v45   ;;  %v817_v47 = vld [vmem:[%s14817_s12 + $0x678] sm:$0xff]   ;;  %v821_v48 = vld [vmem:[%s14817_s12 + $0x700] sm:$0xff]  }
  0x68   : > { %814 = vst [vmem:[%s14822_s14 + $0x370] sm:$0xff] %v813_v46   ;;  %v825_v49 = vld [vmem:[%s14817_s12 + $0x708] sm:$0xff]   ;;  %818 = vst [vmem:[%s14822_s14 + $0x378] sm:$0xff] %v817_v47   ;;  %v829_v50 = vld [vmem:[%s14817_s12 + $0x710] sm:$0xff]  }
  0x69   : > { %822 = vst [vmem:[%s14822_s14 + $0x380] sm:$0xff] %v821_v48   ;;  %826 = vst [vmem:[%s14822_s14 + $0x388] sm:$0xff] %v825_v49   ;;  %v833_v51 = vld [vmem:[%s14817_s12 + $0x718] sm:$0xff]   ;;  %v837_v52 = vld [vmem:[%s14817_s12 + $0x720] sm:$0xff]  }
  0x6a   : > { %830 = vst [vmem:[%s14822_s14 + $0x390] sm:$0xff] %v829_v50   ;;  %834 = vst [vmem:[%s14822_s14 + $0x398] sm:$0xff] %v833_v51   ;;  %v841_v53 = vld [vmem:[%s14817_s12 + $0x728] sm:$0xff]   ;;  %v845_v54 = vld [vmem:[%s14817_s12 + $0x730] sm:$0xff]  }
  0x6b   : > { %838 = vst [vmem:[%s14822_s14 + $0x3a0] sm:$0xff] %v837_v52   ;;  %v849_v55 = vld [vmem:[%s14817_s12 + $0x738] sm:$0xff]   ;;  %842 = vst [vmem:[%s14822_s14 + $0x3a8] sm:$0xff] %v841_v53   ;;  %v853_v56 = vld [vmem:[%s14817_s12 + $0x740] sm:$0xff]  }
  0x6c   : > { %846 = vst [vmem:[%s14822_s14 + $0x3b0] sm:$0xff] %v845_v54   ;;  %850 = vst [vmem:[%s14822_s14 + $0x3b8] sm:$0xff] %v849_v55   ;;  %v857_v57 = vld [vmem:[%s14817_s12 + $0x748] sm:$0xff]   ;;  %v861_v58 = vld [vmem:[%s14817_s12 + $0x750] sm:$0xff]  }
  0x6d   : > { %854 = vst [vmem:[%s14822_s14 + $0x3c0] sm:$0xff] %v853_v56   ;;  %858 = vst [vmem:[%s14822_s14 + $0x3c8] sm:$0xff] %v857_v57   ;;  %v865_v59 = vld [vmem:[%s14817_s12 + $0x758] sm:$0xff]   ;;  %v869_v60 = vld [vmem:[%s14817_s12 + $0x760] sm:$0xff]  }
  0x6e   : > { %862 = vst [vmem:[%s14822_s14 + $0x3d0] sm:$0xff] %v861_v58   ;;  %v873_v61 = vld [vmem:[%s14817_s12 + $0x768] sm:$0xff]   ;;  %866 = vst [vmem:[%s14822_s14 + $0x3d8] sm:$0xff] %v865_v59   ;;  %v877_v62 = vld [vmem:[%s14817_s12 + $0x770] sm:$0xff]  }
  0x6f   : > { %870 = vst [vmem:[%s14822_s14 + $0x3e0] sm:$0xff] %v869_v60   ;;  %874 = vst [vmem:[%s14822_s14 + $0x3e8] sm:$0xff] %v873_v61   ;;  %v881_v63 = vld [vmem:[%s14817_s12 + $0x778] sm:$0xff]  }
  0x70   : > { %878 = vst [vmem:[%s14822_s14 + $0x3f0] sm:$0xff] %v877_v62   ;;  %882 = vst [vmem:[%s14822_s14 + $0x3f8] sm:$0xff] %v881_v63  }
  0x71 PF: > { %p11634_p0 = scmp.ge.s32.totalorder %s14655_s26, 1  ;;  %p1418_p1 = scmp.lt.s32.totalorder %s14655_s26, 5 }
  0x73   : > { %p1419_p2 = pnand %p11634_p0, %p1418_p1 }
  0x75   : > { %1422 = sbr.rel (%p1419_p2) target bundleno = 1911 (0x777), region = 101 }
  0x7c   : > { %s18061_s1 = sld [smem:[#allocation43_spill]]  ;;  %vm2756_vm0 = vcmask 1043456   ;;  %s1425_s30 = sand.u32 1, %s14631_s20   ;;  %vm2371_vm1 = vcmask 64512   ;;  %v14491_v62 = vld [vmem:[%s18034_s5] sm:$0xff]   ;;  %vm4240_vm2 = vcmask 523264  }
  0x7d   : > { %s18062_s3 = sld [smem:[#allocation45_spill]]  ;;  %s11635_s29 = sshll.u32 %s1425_s30, 10 }
  0x7e   : > { %s1461_s13 = sand.u32 1, %s14623_s18   ;;  %s15087_s15 = scalar_lea.vmem [#allocation2], %s11635_s29 }
  0x7f   : > { %v14383_v3 = vld [vmem:[%s15087_s15 + $0x200] sm:$0xff]   ;;  %s15092_s20 = sshll.u32 %s1461_s13, 3  ;;  %v14385_v4 = vld [vmem:[%s15087_s15 + $0x208] sm:$0xff]   ;;  %v14386_v5 = vld [vmem:[%s15087_s15 + $0x210] sm:$0xff]   ;;  %s18063_s2 = sld [smem:[#allocation44_spill]] }
  0x80   : > { %13100 = vmatprep.mubr.msk.bf16.mxu1 %vm2371_vm1, %v14383_v3  ;;  %v14387_v6 = vld [vmem:[%s15087_s15 + $0x218] sm:$0xff]   ;;  %v14388_v7 = vld [vmem:[%s15087_s15 + $0x220] sm:$0xff]   ;;  %v14393_v9 = vld [vmem:[%s15087_s15 + $0x8] sm:$0xff]   ;;  %s17948_s28 = scalar_lea.vmem [#allocation3], %s15092_s20  ;;  %s18124_s11 = sld [smem:[#allocation7_spill]] }
  0x81   : > { %v14392_v8 = vld [vmem:[%s15087_s15] sm:$0xff]   ;;  %v14396_v10 = vld [vmem:[%s15087_s15 + $0x10] sm:$0xff]   ;;  %v14389_v11 = vld [vmem:[%s15087_s15 + $0x228] sm:$0xff]  }
  0x82   : > { %v1723_v0 = vld [vmem:[%s18061_s1] sm:$0xf]  ;;  %12972 = vmatprep.mubr.msk.bf16.mxu0 %vm2371_vm1, %v14392_v8  ;;  %v14390_v12 = vld [vmem:[%s15087_s15 + $0x230] sm:$0xff]   ;;  %v14397_v13 = vld [vmem:[%s15087_s15 + $0x18] sm:$0xff]  }
  0x83   : > { %v14384_v1 = vld [vmem:[%s18062_s3] sm:$0xff]   ;;  %14295 = vmatprep.subr.msk.bf16.mxu1 %vm2756_vm0, %v1723_v0  ;;  %v2758_v2 = vsel %vm2756_vm0, %v1723_v0, 0  ;;  %14294 = vmatprep.subr.msk.bf16.mxu0 %vm2756_vm0, %v1723_v0  ;;  %v14391_v15 = vld [vmem:[%s15087_s15 + $0x238] sm:$0xff]   ;;  %v14401_v17 = vld [vmem:[%s15087_s15 + $0x28] sm:$0xff]  }
  0x84   : > { %14293 = vmatpush3.bf16.msra.mxu1 %v2758_v2  ;;  %12971 = vmatpush3.bf16.msra.mxu0 %v2758_v2  ;;  %v14400_v14 = vld [vmem:[%s15087_s15 + $0x20] sm:$0xff]   ;;  %v14404_v18 = vld [vmem:[%s15087_s15 + $0x30] sm:$0xff]   ;;  %v14411_v19 = vld [vmem:[%s18062_s3 + $0x8] sm:$0xff]  }
  0x85   : > { %13228 = vmatprep.subr.bf16.mxu1 %v14384_v1  ;;  %v14394_v16 = vld [vmem:[%s15087_s15 + $0x240] sm:$0xff]   ;;  %v14395_v20 = vld [vmem:[%s15087_s15 + $0x248] sm:$0xff]   ;;  %v14398_v21 = vld [vmem:[%s15087_s15 + $0x250] sm:$0xff]   ;;  %13492 = vmatprep.subr.bf16.mxu0 %v14491_v62 }
  0x86   : > { %v14405_v22 = vld [vmem:[%s15087_s15 + $0x38] sm:$0xff]   ;;  %v14408_v23 = vld [vmem:[%s15087_s15 + $0x40] sm:$0xff]   ;;  %v14409_v26 = vld [vmem:[%s15087_s15 + $0x48] sm:$0xff]   ;;  %p12302_p3 = scmp.ne.s32.totalorder %s18124_s11, 0 }
  0x87   : > { %13101 = vmatmul.mubr.msk.bf16.vlgmr.msra.gmra.mrb[0].mxu1 %vm2371_vm1, %v14385_v4  ;;  %12973 = vmatmul.mubr.msk.bf16.vlgmr.msra.gmra.mrb[0].mxu0 %vm2371_vm1, %v14393_v9  ;;  %v14399_v24 = vld [vmem:[%s15087_s15 + $0x258] sm:$0xff]   ;;  %v14402_v25 = vld [vmem:[%s15087_s15 + $0x260] sm:$0xff]   ;;  %v14413_v27 = vld [vmem:[%s15087_s15 + $0x50] sm:$0xff]   ;;  %vm11486_vm3 = vcmask (!%p12302_p3), 1041409   ;;  %vm11488_vm4 = vcmask (!%p12302_p3), 1042434   ;;  %vm11490_vm5 = vcmask (!%p12302_p3), 1043459  }
  0x88   : > { %13229 = vmatpush3.bf16.msra.mxu1 %v14384_v1  ;;  %13104 = vmatprep.mubr.msk.bf16.mxu1 %vm2371_vm1, %v14386_v5  ;;  %v14403_v28 = vld [vmem:[%s15087_s15 + $0x268] sm:$0xff]   ;;  %v14406_v29 = vld [vmem:[%s15087_s15 + $0x270] sm:$0xff]   ;;  %v14414_v30 = vld [vmem:[%s15087_s15 + $0x58] sm:$0xff]   ;;  %vm11492_vm6 = vcmask (!%p12302_p3), 1044484   ;;  %vm11494_vm7 = vcmask (!%p12302_p3), 1045509   ;;  %vm11496_vm8 = vcmask (!%p12302_p3), 1046534  }
  0x89   : > { %12976 = vmatprep.mubr.msk.bf16.mxu0 %vm2371_vm1, %v14396_v10  ;;  %13230 = vmatprep.subr.bf16.mxu1 %v14411_v19  ;;  %v14417_v31 = vld [vmem:[%s15087_s15 + $0x60] sm:$0xff]   ;;  %v14407_v32 = vld [vmem:[%s15087_s15 + $0x278] sm:$0xff]   ;;  %v14418_v34 = vld [vmem:[%s15087_s15 + $0x68] sm:$0xff]   ;;  %vm11498_vm9 = vcmask (!%p12302_p3), 1047559  }
  0x8a   : > { %v14410_v33 = vld [vmem:[%s15087_s15 + $0x280] sm:$0xff]   ;;  %v14421_v35 = vld [vmem:[%s15087_s15 + $0x70] sm:$0xff]   ;;  %v14412_v37 = vld [vmem:[%s15087_s15 + $0x288] sm:$0xff]   ;;  %13493 = vmatpush3.bf16.msra.mxu0 %v14491_v62 }
  0x8b   : > { %v14444_v36 = vld [vmem:[%s18062_s3 + $0x10] sm:$0xff]   ;;  %v14422_v39 = vld [vmem:[%s15087_s15 + $0x78] sm:$0xff]   ;;  %v14425_v40 = vld [vmem:[%s15087_s15 + $0x80] sm:$0xff]  }
  0x8c   : > { %13231 = vmatpush3.bf16.msra.mxu1 %v14411_v19  ;;  %v14415_v38 = vld [vmem:[%s15087_s15 + $0x290] sm:$0xff]   ;;  %v14416_v41 = vld [vmem:[%s15087_s15 + $0x298] sm:$0xff]   ;;  %v14419_v42 = vld [vmem:[%s15087_s15 + $0x2a0] sm:$0xff]  }
  0x8d   : > { %13232 = vmatprep.subr.bf16.mxu1 %v14444_v36  ;;  %v14426_v43 = vld [vmem:[%s15087_s15 + $0x88] sm:$0xff]   ;;  %v14429_v44 = vld [vmem:[%s15087_s15 + $0x90] sm:$0xff]   ;;  %v14430_v47 = vld [vmem:[%s15087_s15 + $0x98] sm:$0xff]  }
  0x8e   : > { %v14420_v45 = vld [vmem:[%s15087_s15 + $0x2a8] sm:$0xff]   ;;  %v14423_v46 = vld [vmem:[%s15087_s15 + $0x2b0] sm:$0xff]   ;;  %v14433_v48 = vld [vmem:[%s15087_s15 + $0xa0] sm:$0xff]  }
  0x8f   : > { %13105 = vmatmul.mubr.msk.bf16.gmra.mrb[4].mxu1 %vm2371_vm1, %v14387_v6  ;;  %12977 = vmatmul.mubr.msk.bf16.gmra.mrb[4].mxu0 %vm2371_vm1, %v14397_v13  ;;  %v14424_v49 = vld [vmem:[%s15087_s15 + $0x2b8] sm:$0xff]   ;;  %v14427_v50 = vld [vmem:[%s15087_s15 + $0x2c0] sm:$0xff]   ;;  %v14434_v51 = vld [vmem:[%s15087_s15 + $0xa8] sm:$0xff]  }
  0x90   : > { %13108 = vmatprep.mubr.msk.bf16.mxu1 %vm2371_vm1, %v14388_v7  ;;  %12980 = vmatprep.mubr.msk.bf16.mxu0 %vm2371_vm1, %v14400_v14  ;;  %v14437_v52 = vld [vmem:[%s15087_s15 + $0xb0] sm:$0xff]   ;;  %v14428_v53 = vld [vmem:[%s15087_s15 + $0x2c8] sm:$0xff]   ;;  %v14477_v54 = vld [vmem:[%s18062_s3 + $0x18] sm:$0xff]  }
  0x91   : > { %13233 = vmatpush3.bf16.msra.mxu1 %v14444_v36  ;;  %v14431_v55 = vld [vmem:[%s15087_s15 + $0x2d0] sm:$0xff]   ;;  %v14438_v56 = vld [vmem:[%s15087_s15 + $0xb8] sm:$0xff]   ;;  %v14441_v57 = vld [vmem:[%s15087_s15 + $0xc0] sm:$0xff]  }
  0x92   : > { %13234 = vmatprep.subr.bf16.mxu1 %v14477_v54  ;;  %v14432_v58 = vld [vmem:[%s15087_s15 + $0x2d8] sm:$0xff]   ;;  %v14435_v59 = vld [vmem:[%s15087_s15 + $0x2e0] sm:$0xff]   ;;  %v14442_v60 = vld [vmem:[%s15087_s15 + $0xc8] sm:$0xff]  }
  0x93   : > { %v14446_v61 = vld [vmem:[%s15087_s15 + $0xd0] sm:$0xff]   ;;  %v14436_v63 = vld [vmem:[%s15087_s15 + $0x2e8] sm:$0xff]   ;;  %v14447_v1 = vld [vmem:[%s15087_s15 + $0xd8] sm:$0xff]  }
  0x94   : > { %v14439_v0 = vld [vmem:[%s15087_s15 + $0x2f0] sm:$0xff]   ;;  %v14450_v2 = vld [vmem:[%s15087_s15 + $0xe0] sm:$0xff]   ;;  %v14440_v3 = vld [vmem:[%s15087_s15 + $0x2f8] sm:$0xff]  }
  0x95   : > { %13235 = vmatpush3.bf16.msra.mxu1 %v14477_v54  ;;  %v14443_v4 = vld [vmem:[%s15087_s15 + $0x300] sm:$0xff]   ;;  %v14451_v5 = vld [vmem:[%s15087_s15 + $0xe8] sm:$0xff]   ;;  %v14454_v6 = vld [vmem:[%s15087_s15 + $0xf0] sm:$0xff]  }
  0x96   : > { %v14445_v7 = vld [vmem:[%s15087_s15 + $0x308] sm:$0xff]   ;;  %v14448_v8 = vld [vmem:[%s15087_s15 + $0x310] sm:$0xff]   ;;  %v14455_v9 = vld [vmem:[%s15087_s15 + $0xf8] sm:$0xff]  }
  0x97   : > { %13109 = vmatmul.mubr.msk.bf16.gmra.mrb[8].mxu1 %vm2371_vm1, %v14389_v11  ;;  %12981 = vmatmul.mubr.msk.bf16.gmra.mrb[8].mxu0 %vm2371_vm1, %v14401_v17  ;;  %v14458_v10 = vld [vmem:[%s15087_s15 + $0x100] sm:$0xff]   ;;  %v14449_v11 = vld [vmem:[%s15087_s15 + $0x318] sm:$0xff]   ;;  %v14459_v14 = vld [vmem:[%s15087_s15 + $0x108] sm:$0xff]  }
  0x98   : > { %13112 = vmatprep.mubr.msk.bf16.mxu1 %vm2371_vm1, %v14390_v12  ;;  %12984 = vmatprep.mubr.msk.bf16.mxu0 %vm2371_vm1, %v14404_v18  ;;  %v14452_v12 = vld [vmem:[%s15087_s15 + $0x320] sm:$0xff]   ;;  %v14463_v17 = vld [vmem:[%s15087_s15 + $0x118] sm:$0xff]   ;;  %v14456_v18 = vld [vmem:[%s15087_s15 + $0x330] sm:$0xff]  }
  0x99   : > { %v15246_v13 = vld [vmem:[%s18036_s7] sm:$0xff]   ;;  %v14504_v62 = vld [vmem:[%s15087_s15 + $0x1b0] sm:$0xff]  }
  0x9a   : > { %13756 = vmatprep.subr.bf16.mxu1 %v15246_v13  ;;  %v14466_v19 = vld [vmem:[%s15087_s15 + $0x120] sm:$0xff]  }
  0x9b   : > { %v14483_v36 = vld [vmem:[%s15087_s15 + $0x160] sm:$0xff]  }
  0x9f   : > { %13113 = vmatmul.mubr.msk.bf16.gmra.mrb[12].mxu1 %vm2371_vm1, %v14391_v15  ;;  %12985 = vmatmul.mubr.msk.bf16.gmra.mrb[12].mxu0 %vm2371_vm1, %v14405_v22  ;;  %v14462_v15 = vld [vmem:[%s15087_s15 + $0x110] sm:$0xff]   ;;  %v14460_v22 = vld [vmem:[%s15087_s15 + $0x340] sm:$0xff]  }
  0xa0   : > { %13116 = vmatprep.mubr.msk.bf16.mxu1 %vm2371_vm1, %v14394_v16  ;;  %12988 = vmatprep.mubr.msk.bf16.mxu0 %vm2371_vm1, %v14408_v23  ;;  %v14453_v16 = vld [vmem:[%s15087_s15 + $0x328] sm:$0xff]   ;;  %v14470_v23 = vld [vmem:[%s15087_s15 + $0x130] sm:$0xff]  }
  0xa7   : > { %13117 = vmatmul.mubr.msk.bf16.gmra.mrb[16].mxu1 %vm2371_vm1, %v14395_v20  ;;  %12989 = vmatmul.mubr.msk.bf16.gmra.mrb[16].mxu0 %vm2371_vm1, %v14409_v26  ;;  %v14457_v20 = vld [vmem:[%s15087_s15 + $0x338] sm:$0xff]   ;;  %v14464_v26 = vld [vmem:[%s15087_s15 + $0x350] sm:$0xff]  }
  0xa8   : > { %13120 = vmatprep.mubr.msk.bf16.mxu1 %vm2371_vm1, %v14398_v21  ;;  %12992 = vmatprep.mubr.msk.bf16.mxu0 %vm2371_vm1, %v14413_v27  ;;  %v14467_v21 = vld [vmem:[%s15087_s15 + $0x128] sm:$0xff]   ;;  %v14474_v27 = vld [vmem:[%s15087_s15 + $0x140] sm:$0xff]  }
  0xaf   : > { %13121 = vmatmul.mubr.msk.bf16.gmra.mrb[20].mxu1 %vm2371_vm1, %v14399_v24  ;;  %12993 = vmatmul.mubr.msk.bf16.gmra.mrb[20].mxu0 %vm2371_vm1, %v14414_v30  ;;  %v14461_v24 = vld [vmem:[%s15087_s15 + $0x348] sm:$0xff]  }
  0xb0   : > { %13124 = vmatprep.mubr.msk.bf16.mxu1 %vm2371_vm1, %v14402_v25  ;;  %12996 = vmatprep.mubr.msk.bf16.mxu0 %vm2371_vm1, %v14417_v31  ;;  %v14471_v25 = vld [vmem:[%s15087_s15 + $0x138] sm:$0xff]   ;;  %v14475_v30 = vld [vmem:[%s15087_s15 + $0x148] sm:$0xff]   ;;  %v14468_v31 = vld [vmem:[%s15087_s15 + $0x360] sm:$0xff]  }
  0xb7   : > { %13125 = vmatmul.mubr.msk.bf16.gmra.mrb[24].mxu1 %vm2371_vm1, %v14403_v28  ;;  %12997 = vmatmul.mubr.msk.bf16.gmra.mrb[24].mxu0 %vm2371_vm1, %v14418_v34  ;;  %v14517_v28 = vld [vmem:[%s18034_s5 + $0x8] sm:$0xff]   ;;  %v14480_v34 = vld [vmem:[%s15087_s15 + $0x158] sm:$0xff]  }
  0xb8   : > { %13128 = vmatprep.mubr.msk.bf16.mxu1 %vm2371_vm1, %v14406_v29  ;;  %13000 = vmatprep.mubr.msk.bf16.mxu0 %vm2371_vm1, %v14421_v35  ;;  %v14465_v29 = vld [vmem:[%s15087_s15 + $0x358] sm:$0xff]   ;;  %v14472_v35 = vld [vmem:[%s15087_s15 + $0x370] sm:$0xff]  }
  0xb9   : > { %13494 = vmatprep.subr.bf16.mxu0 %v14517_v28 }
  0xba   : > { %13495 = vmatpush3.bf16.msra.mxu0 %v14517_v28 }
  0xbf   : > { %13129 = vmatmul.mubr.msk.bf16.gmra.mrb[28].mxu1 %vm2371_vm1, %v14407_v32  ;;  %13001 = vmatmul.mubr.msk.bf16.gmra.mrb[28].mxu0 %vm2371_vm1, %v14422_v39  ;;  %v14479_v32 = vld [vmem:[%s15087_s15 + $0x150] sm:$0xff]   ;;  %v14476_v39 = vld [vmem:[%s15087_s15 + $0x380] sm:$0xff]  }
  0xc0   : > { %13132 = vmatprep.mubr.msk.bf16.mxu1 %vm2371_vm1, %v14410_v33  ;;  %13004 = vmatprep.mubr.msk.bf16.mxu0 %vm2371_vm1, %v14425_v40  ;;  %v14469_v33 = vld [vmem:[%s15087_s15 + $0x368] sm:$0xff]   ;;  %v14487_v40 = vld [vmem:[%s15087_s15 + $0x170] sm:$0xff]  }
  0xc7   : > { %13133 = vmatmul.mubr.msk.bf16.gmra.mrb[32].mxu1 %vm2371_vm1, %v14412_v37  ;;  %13005 = vmatmul.mubr.msk.bf16.gmra.mrb[32].mxu0 %vm2371_vm1, %v14426_v43  ;;  %v14473_v37 = vld [vmem:[%s15087_s15 + $0x378] sm:$0xff]   ;;  %v14481_v43 = vld [vmem:[%s15087_s15 + $0x390] sm:$0xff]  }
  0xc8   : > { %13136 = vmatprep.mubr.msk.bf16.mxu1 %vm2371_vm1, %v14415_v38  ;;  %13008 = vmatprep.mubr.msk.bf16.mxu0 %vm2371_vm1, %v14429_v44  ;;  %v14484_v38 = vld [vmem:[%s15087_s15 + $0x168] sm:$0xff]   ;;  %v14492_v44 = vld [vmem:[%s15087_s15 + $0x180] sm:$0xff]  }
  0xcf   : > { %13137 = vmatmul.mubr.msk.bf16.gmra.mrb[36].mxu1 %vm2371_vm1, %v14416_v41  ;;  %13009 = vmatmul.mubr.msk.bf16.gmra.mrb[36].mxu0 %vm2371_vm1, %v14430_v47  ;;  %v14478_v41 = vld [vmem:[%s15087_s15 + $0x388] sm:$0xff]   ;;  %v14485_v47 = vld [vmem:[%s15087_s15 + $0x3a0] sm:$0xff]  }
  0xd0   : > { %13140 = vmatprep.mubr.msk.bf16.mxu1 %vm2371_vm1, %v14419_v42  ;;  %13012 = vmatprep.mubr.msk.bf16.mxu0 %vm2371_vm1, %v14433_v48  ;;  %v14488_v42 = vld [vmem:[%s15087_s15 + $0x178] sm:$0xff]   ;;  %v14496_v48 = vld [vmem:[%s15087_s15 + $0x190] sm:$0xff]  }
  0xd7   : > { %13141 = vmatmul.mubr.msk.bf16.gmra.mrb[40].mxu1 %vm2371_vm1, %v14420_v45  ;;  %13013 = vmatmul.mubr.msk.bf16.gmra.mrb[40].mxu0 %vm2371_vm1, %v14434_v51  ;;  %v14482_v45 = vld [vmem:[%s15087_s15 + $0x398] sm:$0xff]   ;;  %v14489_v51 = vld [vmem:[%s15087_s15 + $0x3b0] sm:$0xff]  }
  0xd8   : > { %13144 = vmatprep.mubr.msk.bf16.mxu1 %vm2371_vm1, %v14423_v46  ;;  %13016 = vmatprep.mubr.msk.bf16.mxu0 %vm2371_vm1, %v14437_v52  ;;  %v14493_v46 = vld [vmem:[%s15087_s15 + $0x188] sm:$0xff]   ;;  %v14500_v52 = vld [vmem:[%s15087_s15 + $0x1a0] sm:$0xff]  }
  0xdf   : > { %13145 = vmatmul.mubr.msk.bf16.gmra.mrb[44].mxu1 %vm2371_vm1, %v14424_v49  ;;  %13017 = vmatmul.mubr.msk.bf16.gmra.mrb[44].mxu0 %vm2371_vm1, %v14438_v56  ;;  %v14486_v49 = vld [vmem:[%s15087_s15 + $0x3a8] sm:$0xff]  }
  0xe0   : > { %13148 = vmatprep.mubr.msk.bf16.mxu1 %vm2371_vm1, %v14427_v50  ;;  %13020 = vmatprep.mubr.msk.bf16.mxu0 %vm2371_vm1, %v14441_v57  ;;  %v14497_v50 = vld [vmem:[%s15087_s15 + $0x198] sm:$0xff]  }
  0xe1   : > { %v14490_v57 = vld [vmem:[%s15087_s15 + $0x3b8] sm:$0xff]  }
  0xe7   : > { %13149 = vmatmul.mubr.msk.bf16.gmra.mrb[48].mxu1 %vm2371_vm1, %v14428_v53  ;;  %13021 = vmatmul.mubr.msk.bf16.gmra.mrb[48].mxu0 %vm2371_vm1, %v14442_v60  ;;  %v15331_v53 = vld [vmem:[%s18063_s2] ss:$0 sm:$0xff] }
  0xe8   : > { %13152 = vmatprep.mubr.msk.bf16.mxu1 %vm2371_vm1, %v14431_v55  ;;  %13024 = vmatprep.mubr.msk.bf16.mxu0 %vm2371_vm1, %v14446_v61  ;;  %v14494_v61 = vld [vmem:[%s15087_s15 + $0x3c0] sm:$0xff]  }
  0xef   : > { %13153 = vmatmul.mubr.msk.bf16.gmra.mrb[52].mxu1 %vm2371_vm1, %v14432_v58  ;;  %13025 = vmatmul.mubr.msk.bf16.gmra.mrb[52].mxu0 %vm2371_vm1, %v14447_v1  ;;  %v14501_v58 = vld [vmem:[%s15087_s15 + $0x1a8] sm:$0xff]  }
  0xf0   : > { %13156 = vmatprep.mubr.msk.bf16.mxu1 %vm2371_vm1, %v14435_v59  ;;  %13028 = vmatprep.mubr.msk.bf16.mxu0 %vm2371_vm1, %v14450_v2 }
  0xf7   : > { %13157 = vmatmul.mubr.msk.bf16.gmra.mrb[56].mxu1 %vm2371_vm1, %v14436_v63  ;;  %13029 = vmatmul.mubr.msk.bf16.gmra.mrb[56].mxu0 %vm2371_vm1, %v14451_v5 }
  0xf8   : > { %13160 = vmatprep.mubr.msk.bf16.mxu1 %vm2371_vm1, %v14439_v0  ;;  %13032 = vmatprep.mubr.msk.bf16.mxu0 %vm2371_vm1, %v14454_v6 }
  0xff   : > { %13161 = vmatmul.mubr.msk.bf16.gmra.mrb[60].mxu1 %vm2371_vm1, %v14440_v3  ;;  %13033 = vmatmul.mubr.msk.bf16.gmra.mrb[60].mxu0 %vm2371_vm1, %v14455_v9 }
 0x100   : > { %13164 = vmatprep.mubr.msk.bf16.mxu1 %vm2371_vm1, %v14443_v4  ;;  %13036 = vmatprep.mubr.msk.bf16.mxu0 %vm2371_vm1, %v14458_v10 }
 0x107   : > { %13165 = vmatmul.mubr.msk.bf16.gmra.mrb[64].mxu1 %vm2371_vm1, %v14445_v7  ;;  %13037 = vmatmul.mubr.msk.bf16.gmra.mrb[64].mxu0 %vm2371_vm1, %v14459_v14 }
 0x108   : > { %13168 = vmatprep.mubr.msk.bf16.mxu1 %vm2371_vm1, %v14448_v8  ;;  %13040 = vmatprep.mubr.msk.bf16.mxu0 %vm2371_vm1, %v14462_v15 }
 0x10f   : > { %13169 = vmatmul.mubr.msk.bf16.gmra.mrb[68].mxu1 %vm2371_vm1, %v14449_v11  ;;  %13041 = vmatmul.mubr.msk.bf16.gmra.mrb[68].mxu0 %vm2371_vm1, %v14463_v17 }
 0x110   : > { %13172 = vmatprep.mubr.msk.bf16.mxu1 %vm2371_vm1, %v14452_v12  ;;  %13044 = vmatprep.mubr.msk.bf16.mxu0 %vm2371_vm1, %v14466_v19  ;;  %v14495_v12 = vld [vmem:[%s15087_s15 + $0x3c8] sm:$0xff]   ;;  %v14498_v19 = vld [vmem:[%s15087_s15 + $0x3d0] sm:$0xff]  }
 0x117   : > { %13173 = vmatmul.mubr.msk.bf16.gmra.mrb[72].mxu1 %vm2371_vm1, %v14453_v16  ;;  %13045 = vmatmul.mubr.msk.bf16.gmra.mrb[72].mxu0 %vm2371_vm1, %v14467_v21  ;;  %v14505_v16 = vld [vmem:[%s15087_s15 + $0x1b8] sm:$0xff]  }
 0x118   : > { %13176 = vmatprep.mubr.msk.bf16.mxu1 %vm2371_vm1, %v14456_v18  ;;  %13048 = vmatprep.mubr.msk.bf16.mxu0 %vm2371_vm1, %v14470_v23 }
 0x11f   : > { %13177 = vmatmul.mubr.msk.bf16.gmra.mrb[76].mxu1 %vm2371_vm1, %v14457_v20  ;;  %13049 = vmatmul.mubr.msk.bf16.gmra.mrb[76].mxu0 %vm2371_vm1, %v14471_v25 }
 0x120   : > { %13180 = vmatprep.mubr.msk.bf16.mxu1 %vm2371_vm1, %v14460_v22  ;;  %13052 = vmatprep.mubr.msk.bf16.mxu0 %vm2371_vm1, %v14474_v27  ;;  %v14508_v22 = vld [vmem:[%s15087_s15 + $0x1c0] sm:$0xff]  }
 0x127   : > { %13181 = vmatmul.mubr.msk.bf16.gmra.mrb[80].mxu1 %vm2371_vm1, %v14461_v24  ;;  %13053 = vmatmul.mubr.msk.bf16.gmra.mrb[80].mxu0 %vm2371_vm1, %v14475_v30 }
 0x128   : > { %13184 = vmatprep.mubr.msk.bf16.mxu1 %vm2371_vm1, %v14464_v26  ;;  %13056 = vmatprep.mubr.msk.bf16.mxu0 %vm2371_vm1, %v14479_v32 }
 0x12f   : > { %13185 = vmatmul.mubr.msk.bf16.gmra.mrb[84].mxu1 %vm2371_vm1, %v14465_v29  ;;  %13057 = vmatmul.mubr.msk.bf16.gmra.mrb[84].mxu0 %vm2371_vm1, %v14480_v34 }
 0x130   : > { %13188 = vmatprep.mubr.msk.bf16.mxu1 %vm2371_vm1, %v14468_v31  ;;  %13060 = vmatprep.mubr.msk.bf16.mxu0 %vm2371_vm1, %v14483_v36 }
 0x137   : > { %13189 = vmatmul.mubr.msk.bf16.gmra.mrb[88].mxu1 %vm2371_vm1, %v14469_v33  ;;  %13061 = vmatmul.mubr.msk.bf16.gmra.mrb[88].mxu0 %vm2371_vm1, %v14484_v38 }
 0x138   : > { %13192 = vmatprep.mubr.msk.bf16.mxu1 %vm2371_vm1, %v14472_v35  ;;  %13064 = vmatprep.mubr.msk.bf16.mxu0 %vm2371_vm1, %v14487_v40 }
 0x13f   : > { %13193 = vmatmul.mubr.msk.bf16.gmra.mrb[92].mxu1 %vm2371_vm1, %v14473_v37  ;;  %13065 = vmatmul.mubr.msk.bf16.gmra.mrb[92].mxu0 %vm2371_vm1, %v14488_v42 }
 0x140   : > { %13196 = vmatprep.mubr.msk.bf16.mxu1 %vm2371_vm1, %v14476_v39  ;;  %13068 = vmatprep.mubr.msk.bf16.mxu0 %vm2371_vm1, %v14492_v44  ;;  %v14518_v39 = vld [vmem:[%s18034_s5 + $0x10] sm:$0xff]  }
 0x141   : > { %13496 = vmatprep.subr.bf16.mxu0 %v14518_v39 }
 0x142   : > { %13497 = vmatpush3.bf16.msra.mxu0 %v14518_v39 }
 0x147   : > { %13197 = vmatmul.mubr.msk.bf16.gmra.mrb[96].mxu1 %vm2371_vm1, %v14478_v41  ;;  %13069 = vmatmul.mubr.msk.bf16.gmra.mrb[96].mxu0 %vm2371_vm1, %v14493_v46  ;;  %v14499_v46 = vld [vmem:[%s15087_s15 + $0x3d8] sm:$0xff]  }
 0x148   : > { %13200 = vmatprep.mubr.msk.bf16.mxu1 %vm2371_vm1, %v14481_v43  ;;  %13072 = vmatprep.mubr.msk.bf16.mxu0 %vm2371_vm1, %v14496_v48 }
 0x14f   : > { %13201 = vmatmul.mubr.msk.bf16.gmra.mrb[100].mxu1 %vm2371_vm1, %v14482_v45  ;;  %13073 = vmatmul.mubr.msk.bf16.gmra.mrb[100].mxu0 %vm2371_vm1, %v14497_v50 }
 0x150   : > { %13204 = vmatprep.mubr.msk.bf16.mxu1 %vm2371_vm1, %v14485_v47  ;;  %13076 = vmatprep.mubr.msk.bf16.mxu0 %vm2371_vm1, %v14500_v52  ;;  %v14502_v52 = vld [vmem:[%s15087_s15 + $0x3e0] sm:$0xff]  }
 0x157   : > { %13205 = vmatmul.mubr.msk.bf16.gmra.mrb[104].mxu1 %vm2371_vm1, %v14486_v49  ;;  %13077 = vmatmul.mubr.msk.bf16.gmra.mrb[104].mxu0 %vm2371_vm1, %v14501_v58  ;;  %v14509_v49 = vld [vmem:[%s15087_s15 + $0x1c8] sm:$0xff]  }
 0x158   : > { %13208 = vmatprep.mubr.msk.bf16.mxu1 %vm2371_vm1, %v14489_v51  ;;  %13080 = vmatprep.mubr.msk.bf16.mxu0 %vm2371_vm1, %v14504_v62 }
 0x15a   : > { %v13102_v54 = vpop.f32.mrb[0].mxu1  ;;  %v12974_v9 = vpop.f32.mrb[0].mxu0 }
 0x15b   : > { %v3315_v55 = vadd.f32 %v13102_v54, %v15331_v53  ;;  %v3306_v56 = vpop.f32.mrb[1].mxu1  ;;  %v2803_v14 = vadd.f32 %v12974_v9, %v15331_v53  ;;  %v2794_v15 = vpop.f32.mrb[1].mxu0 }
 0x15c   : > { %v3307_v59 = vadd.f32 %v15331_v53, %v3306_v56  ;;  %v13103_v60 = vpop.f32.mrb[2].mxu1  ;;  %v2795_v20 = vadd.f32 %v15331_v53, %v2794_v15  ;;  %v12975_v21 = vpop.f32.mrb[2].mxu0  ;;  %v14511_v56 = vld [vmem:[%s15087_s15 + $0x1d0] sm:$0xff]  }
 0x15d   : > { %v3318_v63 = vadd.f32 %v13103_v60, %v15331_v53  ;;  %v3309_v0 = vpop.f32.mrb[3].mxu1  ;;  %v3947_v2 = vmax.f32 %v3315_v55, 0.0  ;;  %v3819_v25 = vmax.f32 %v2803_v14, 0.0  ;;  %v2806_v26 = vadd.f32 %v12975_v21, %v15331_v53  ;;  %v2797_v27 = vpop.f32.mrb[3].mxu0  ;;  %v14512_v21 = vld [vmem:[%s15087_s15 + $0x1d8] sm:$0xff]  }
 0x15e   : > { %v3310_v1 = vadd.f32 %v15331_v53, %v3309_v0  ;;  %v3945_v4 = vmax.f32 %v3307_v59, 0.0  ;;  %v3817_v29 = vmax.f32 %v2795_v20, 0.0  ;;  %v2798_v30 = vadd.f32 %v15331_v53, %v2797_v27  ;;  %v14513_v27 = vld [vmem:[%s15087_s15 + $0x1e0] sm:$0xff]  }
 0x15f   : > { %v3948_v3 = vmax.f32 %v3318_v63, 0.0  ;;  %13209 = vmatmul.mubr.msk.bf16.gmra.mrb[108].mxu1 %vm2371_vm1, %v14490_v57  ;;  %v3820_v33 = vmax.f32 %v2806_v26, 0.0  ;;  %13081 = vmatmul.mubr.msk.bf16.gmra.mrb[108].mxu0 %vm2371_vm1, %v14505_v16 }
 0x160   : > { %v3946_v5 = vmax.f32 %v3310_v1, 0.0  ;;  %13212 = vmatprep.mubr.msk.bf16.mxu1 %vm2371_vm1, %v14494_v61  ;;  %v3818_v36 = vmax.f32 %v2798_v30, 0.0  ;;  %13084 = vmatprep.mubr.msk.bf16.mxu0 %vm2371_vm1, %v14508_v22 }
 0x161   : > { %v15347_v6 = vpack.c.bf16 %v3948_v3, %v3947_v2  ;;  %v15369_v38 = vpack.c.bf16 %v3820_v33, %v3819_v25 }
 0x162   : > { %v15349_v7 = vpack.c.bf16 %v3946_v5, %v3945_v4  ;;  %v13106_v8 = vpop.f32.mrb[4].mxu1  ;;  %v15376_v42 = vpack.c.bf16 %v3818_v36, %v3817_v29  ;;  %v12978_v43 = vpop.f32.mrb[4].mxu0 }
 0x163   : > { %v3331_v10 = vadd.f32 %v13106_v8, %v15331_v53  ;;  %v3322_v11 = vpop.f32.mrb[5].mxu1  ;;  %v2819_v47 = vadd.f32 %v12978_v43, %v15331_v53  ;;  %v2810_v48 = vpop.f32.mrb[5].mxu0 }
 0x164   : > { %v3323_v17 = vadd.f32 %v15331_v53, %v3322_v11  ;;  %v13107_v18 = vpop.f32.mrb[6].mxu1  ;;  %v2811_v54 = vadd.f32 %v15331_v53, %v2810_v48  ;;  %v12979_v55 = vpop.f32.mrb[6].mxu0 }
 0x165   : > { %v3334_v23 = vadd.f32 %v13107_v18, %v15331_v53  ;;  %v3325_v24 = vpop.f32.mrb[7].mxu1  ;;  %v3951_v31 = vmax.f32 %v3331_v10, 0.0  ;;  %v3823_v59 = vmax.f32 %v2819_v47, 0.0  ;;  %v2822_v60 = vadd.f32 %v12979_v55, %v15331_v53  ;;  %v2813_v61 = vpop.f32.mrb[7].mxu0  ;;  %v14503_v18 = vld [vmem:[%s15087_s15 + $0x3e8] sm:$0xff]   ;;  %v14507_v55 = vld [vmem:[%s15087_s15 + $0x3f8] sm:$0xff]  }
 0x166   : > { %v3326_v28 = vadd.f32 %v15331_v53, %v3325_v24  ;;  %v3949_v34 = vmax.f32 %v3323_v17, 0.0  ;;  %v3821_v63 = vmax.f32 %v2811_v54, 0.0  ;;  %v2814_v0 = vadd.f32 %v15331_v53, %v2813_v61  ;;  %v14506_v24 = vld [vmem:[%s15087_s15 + $0x3f0] sm:$0xff]  }
 0x167   : > { %v3952_v32 = vmax.f32 %v3334_v23, 0.0  ;;  %13213 = vmatmul.mubr.msk.bf16.gmra.mrb[112].mxu1 %vm2371_vm1, %v14495_v12  ;;  %v3824_v3 = vmax.f32 %v2822_v60, 0.0  ;;  %13085 = vmatmul.mubr.msk.bf16.gmra.mrb[112].mxu0 %vm2371_vm1, %v14509_v49 }
 0x168   : > { %v3950_v35 = vmax.f32 %v3326_v28, 0.0  ;;  %13216 = vmatprep.mubr.msk.bf16.mxu1 %vm2371_vm1, %v14498_v19  ;;  %v3822_v8 = vmax.f32 %v2814_v0, 0.0  ;;  %13088 = vmatprep.mubr.msk.bf16.mxu0 %vm2371_vm1, %v14511_v56 }
 0x169   : > { %v15367_v37 = vpack.c.bf16 %v3952_v32, %v3951_v31  ;;  %v15396_v10 = vpack.c.bf16 %v3824_v3, %v3823_v59 }
 0x16a   : > { %v15374_v40 = vpack.c.bf16 %v3950_v35, %v3949_v34  ;;  %v13110_v41 = vpop.f32.mrb[8].mxu1  ;;  %v15400_v14 = vpack.c.bf16 %v3822_v8, %v3821_v63  ;;  %v12982_v15 = vpop.f32.mrb[8].mxu0  ;;  %v14515_v63 = vld [vmem:[%s15087_s15 + $0x1f0] sm:$0xff]  }
 0x16b   : > { %v3347_v44 = vadd.f32 %v13110_v41, %v15331_v53  ;;  %v3338_v45 = vpop.f32.mrb[9].mxu1  ;;  %v2835_v19 = vadd.f32 %v12982_v15, %v15331_v53  ;;  %v2826_v20 = vpop.f32.mrb[9].mxu0 }
 0x16c   : > { %v3339_v50 = vadd.f32 %v15331_v53, %v3338_v45  ;;  %v13111_v51 = vpop.f32.mrb[10].mxu1  ;;  %v2827_v25 = vadd.f32 %v15331_v53, %v2826_v20  ;;  %v12983_v26 = vpop.f32.mrb[10].mxu0 }
 0x16d   : > { %v3350_v57 = vadd.f32 %v13111_v51, %v15331_v53  ;;  %v3341_v58 = vpop.f32.mrb[11].mxu1  ;;  %v3955_v1 = vmax.f32 %v3347_v44, 0.0  ;;  %v3827_v30 = vmax.f32 %v2835_v19, 0.0  ;;  %v2838_v31 = vadd.f32 %v12983_v26, %v15331_v53  ;;  %v2829_v32 = vpop.f32.mrb[11].mxu0 }
 0x16e   : > { %v3342_v62 = vadd.f32 %v15331_v53, %v3341_v58  ;;  %v3953_v4 = vmax.f32 %v3339_v50, 0.0  ;;  %v3825_v34 = vmax.f32 %v2827_v25, 0.0  ;;  %v2830_v35 = vadd.f32 %v15331_v53, %v2829_v32  ;;  %v14514_v58 = vld [vmem:[%s15087_s15 + $0x1e8] sm:$0xff]  }
 0x16f   : > { %v3956_v2 = vmax.f32 %v3350_v57, 0.0  ;;  %13217 = vmatmul.mubr.msk.bf16.gmra.mrb[116].mxu1 %vm2371_vm1, %v14499_v46  ;;  %v3828_v41 = vmax.f32 %v2838_v31, 0.0  ;;  %13089 = vmatmul.mubr.msk.bf16.gmra.mrb[116].mxu0 %vm2371_vm1, %v14512_v21 }
 0x170   : > { %v3954_v5 = vmax.f32 %v3342_v62, 0.0  ;;  %13220 = vmatprep.mubr.msk.bf16.mxu1 %vm2371_vm1, %v14502_v52  ;;  %v3826_v45 = vmax.f32 %v2830_v35, 0.0  ;;  %13092 = vmatprep.mubr.msk.bf16.mxu0 %vm2371_vm1, %v14513_v27 }
 0x171   : > { %v15394_v9 = vpack.c.bf16 %v3956_v2, %v3955_v1  ;;  %v15420_v47 = vpack.c.bf16 %v3828_v41, %v3827_v30 }
 0x172   : > { %v15398_v11 = vpack.c.bf16 %v3954_v5, %v3953_v4  ;;  %v13114_v12 = vpop.f32.mrb[12].mxu1  ;;  %v15424_v50 = vpack.c.bf16 %v3826_v45, %v3825_v34  ;;  %v12986_v51 = vpop.f32.mrb[12].mxu0 }
 0x173   : > { %v3363_v16 = vadd.f32 %v13114_v12, %v15331_v53  ;;  %v3354_v17 = vpop.f32.mrb[13].mxu1  ;;  %v2851_v56 = vadd.f32 %v12986_v51, %v15331_v53  ;;  %v2842_v57 = vpop.f32.mrb[13].mxu0 }
 0x174   : > { %v3355_v22 = vadd.f32 %v15331_v53, %v3354_v17  ;;  %v13115_v23 = vpop.f32.mrb[14].mxu1  ;;  %v2843_v61 = vadd.f32 %v15331_v53, %v2842_v57  ;;  %v12987_v62 = vpop.f32.mrb[14].mxu0 }
 0x175   : > { %v3366_v28 = vadd.f32 %v13115_v23, %v15331_v53  ;;  %v3357_v29 = vpop.f32.mrb[15].mxu1  ;;  %v3959_v36 = vmax.f32 %v3363_v16, 0.0  ;;  %v3831_v2 = vmax.f32 %v2851_v56, 0.0  ;;  %v2854_v3 = vadd.f32 %v12987_v62, %v15331_v53  ;;  %v2845_v4 = vpop.f32.mrb[15].mxu0 }
 0x176   : > { %v3358_v33 = vadd.f32 %v15331_v53, %v3357_v29  ;;  %v3957_v43 = vmax.f32 %v3355_v22, 0.0  ;;  %v3829_v8 = vmax.f32 %v2843_v61, 0.0  ;;  %v2846_v12 = vadd.f32 %v15331_v53, %v2845_v4 }
 0x177   : > { %v3960_v39 = vmax.f32 %v3366_v28, 0.0  ;;  %13221 = vmatmul.mubr.msk.bf16.gmra.mrb[120].mxu1 %vm2371_vm1, %v14503_v18  ;;  %v3832_v17 = vmax.f32 %v2854_v3, 0.0  ;;  %13093 = vmatmul.mubr.msk.bf16.gmra.mrb[120].mxu0 %vm2371_vm1, %v14514_v58 }
 0x178   : > { %v3958_v44 = vmax.f32 %v3358_v33, 0.0  ;;  %13224 = vmatprep.mubr.msk.bf16.mxu1 %vm2371_vm1, %v14506_v24  ;;  %v3830_v20 = vmax.f32 %v2846_v12, 0.0  ;;  %13096 = vmatprep.mubr.msk.bf16.mxu0 %vm2371_vm1, %v14515_v63  ;;  %v14519_v63 = vld [vmem:[%s18036_s7 + $0x8] sm:$0xff]  }
 0x179   : > { %v15418_v46 = vpack.c.bf16 %v3960_v39, %v3959_v36  ;;  %v15444_v22 = vpack.c.bf16 %v3832_v17, %v3831_v2 }
 0x17a   : > { %v15422_v48 = vpack.c.bf16 %v3958_v44, %v3957_v43  ;;  %v13118_v49 = vpop.f32.mrb[16].mxu1  ;;  %v15448_v25 = vpack.c.bf16 %v3830_v20, %v3829_v8  ;;  %v12990_v26 = vpop.f32.mrb[16].mxu0 }
 0x17b   : > { %v3379_v52 = vadd.f32 %v13118_v49, %v15331_v53  ;;  %v3370_v54 = vpop.f32.mrb[17].mxu1  ;;  %v2867_v29 = vadd.f32 %v12990_v26, %v15331_v53  ;;  %v2858_v30 = vpop.f32.mrb[17].mxu0 }
 0x17c   : > { %v3371_v59 = vadd.f32 %v15331_v53, %v3370_v54  ;;  %v13119_v60 = vpop.f32.mrb[18].mxu1  ;;  %v2859_v33 = vadd.f32 %v15331_v53, %v2858_v30  ;;  %v12991_v34 = vpop.f32.mrb[18].mxu0 }
 0x17d   : > { %v3382_v0 = vadd.f32 %v13119_v60, %v15331_v53  ;;  %v3373_v1 = vpop.f32.mrb[19].mxu1  ;;  %v3963_v15 = vmax.f32 %v3379_v52, 0.0  ;;  %v3835_v39 = vmax.f32 %v2867_v29, 0.0  ;;  %v2870_v41 = vadd.f32 %v12991_v34, %v15331_v53  ;;  %v2861_v43 = vpop.f32.mrb[19].mxu0 }
 0x17e   : > { %v3374_v5 = vadd.f32 %v15331_v53, %v3373_v1  ;;  %v3961_v18 = vmax.f32 %v3371_v59, 0.0  ;;  %v3833_v45 = vmax.f32 %v2859_v33, 0.0  ;;  %v2862_v49 = vadd.f32 %v15331_v53, %v2861_v43 }
 0x17f   : > { %v3964_v16 = vmax.f32 %v3382_v0, 0.0  ;;  %13225 = vmatmul.mubr.msk.bf16.gmra.mrb[124].mxu1 %vm2371_vm1, %v14507_v55  ;;  %v3836_v54 = vmax.f32 %v2870_v41, 0.0 }
 0x180   : > { %v3962_v19 = vmax.f32 %v3374_v5, 0.0  ;;  %13236 = vmatprep.mubr.msk.bf16.mxu1 %vm4240_vm2, %v15376_v42  ;;  %v14516_v42 = vld [vmem:[%s15087_s15 + $0x1f8] sm:$0xff]   ;;  %v3834_v57 = vmax.f32 %v2862_v49, 0.0 }
 0x181   : > { %v15442_v21 = vpack.c.bf16 %v3964_v16, %v3963_v15  ;;  %13097 = vmatmul.mubr.msk.bf16.gmra.mrb[124].mxu0 %vm2371_vm1, %v14516_v42  ;;  %v15467_v59 = vpack.c.bf16 %v3836_v54, %v3835_v39 }
 0x182   : > { %v15446_v23 = vpack.c.bf16 %v3962_v19, %v3961_v18  ;;  %v13122_v24 = vpop.f32.mrb[20].mxu1  ;;  %v15471_v62 = vpack.c.bf16 %v3834_v57, %v3833_v45 }
 0x183   : > { %v3395_v27 = vadd.f32 %v13122_v24, %v15331_v53  ;;  %v3386_v28 = vpop.f32.mrb[21].mxu1 }
 0x184   : > { %v3387_v31 = vadd.f32 %v15331_v53, %v3386_v28  ;;  %v13123_v32 = vpop.f32.mrb[22].mxu1 }
 0x185   : > { %v3398_v35 = vadd.f32 %v13123_v32, %v15331_v53  ;;  %v3389_v36 = vpop.f32.mrb[23].mxu1  ;;  %v3967_v51 = vmax.f32 %v3395_v27, 0.0 }
 0x186   : > { %v3390_v44 = vadd.f32 %v15331_v53, %v3389_v36  ;;  %v3965_v55 = vmax.f32 %v3387_v31, 0.0 }
 0x187   : > { %v3968_v52 = vmax.f32 %v3398_v35, 0.0  ;;  %13237 = vmatmul.mubr.msk.bf16.vlgmr.msra.gmra.mrb[128].mxu1 %vm4240_vm2, %v15369_v38  ;;  %v12994_v38 = vpop.f32.mrb[20].mxu0 }
 0x188   : > { %v3966_v56 = vmax.f32 %v3390_v44, 0.0  ;;  %13757 = vmatpush3.bf16.msra.mxu1 %v15246_v13  ;;  %13240 = vmatprep.mubr.msk.bf16.mxu1 %vm4240_vm2, %v15400_v14  ;;  %v2883_v14 = vadd.f32 %v12994_v38, %v15331_v53  ;;  %v2874_v1 = vpop.f32.mrb[21].mxu0 }
 0x189   : > { %v15465_v58 = vpack.c.bf16 %v3968_v52, %v3967_v51  ;;  %v2875_v4 = vadd.f32 %v15331_v53, %v2874_v1  ;;  %v12995_v5 = vpop.f32.mrb[22].mxu0  ;;  %13758 = vmatprep.subr.bf16.mxu1 %v14519_v63 }
 0x18a   : > { %v15469_v60 = vpack.c.bf16 %v3966_v56, %v3965_v55  ;;  %v13126_v61 = vpop.f32.mrb[24].mxu1  ;;  %v3839_v15 = vmax.f32 %v2883_v14, 0.0  ;;  %v2886_v16 = vadd.f32 %v12995_v5, %v15331_v53  ;;  %v2877_v17 = vpop.f32.mrb[23].mxu0 }
 0x18b   : > { %v3411_v13 = vadd.f32 %v13126_v61, %v15331_v53  ;;  %v3402_v0 = vpop.f32.mrb[25].mxu1  ;;  %v3837_v19 = vmax.f32 %v2875_v4, 0.0  ;;  %v2878_v20 = vadd.f32 %v15331_v53, %v2877_v17  ;;  %v12998_v35 = vpop.f32.mrb[24].mxu0 }
 0x18c   : > { %v3403_v2 = vadd.f32 %v15331_v53, %v3402_v0  ;;  %v13127_v3 = vpop.f32.mrb[26].mxu1  ;;  %13759 = vmatpush3.bf16.msra.mxu1 %v14519_v63  ;;  %v3840_v27 = vmax.f32 %v2886_v16, 0.0  ;;  %v2899_v39 = vadd.f32 %v12998_v35, %v15331_v53  ;;  %v2890_v41 = vpop.f32.mrb[25].mxu0 }
 0x18d   : > { %v3414_v8 = vadd.f32 %v13127_v3, %v15331_v53  ;;  %v3405_v12 = vpop.f32.mrb[27].mxu1  ;;  %v3971_v24 = vmax.f32 %v3411_v13, 0.0  ;;  %v3838_v30 = vmax.f32 %v2878_v20, 0.0  ;;  %v2891_v44 = vadd.f32 %v15331_v53, %v2890_v41  ;;  %v12999_v45 = vpop.f32.mrb[26].mxu0 }
 0x18e   : > { %v3406_v18 = vadd.f32 %v15331_v53, %v3405_v12  ;;  %v3969_v28 = vmax.f32 %v3403_v2, 0.0  ;;  %v15490_v31 = vpack.c.bf16 %v3840_v27, %v3839_v15  ;;  %v3843_v52 = vmax.f32 %v2899_v39, 0.0  ;;  %v2893_v55 = vpop.f32.mrb[27].mxu0 }
 0x18f   : > { %v3972_v26 = vmax.f32 %v3414_v8, 0.0  ;;  %13241 = vmatmul.mubr.msk.bf16.gmra.mrb[132].mxu1 %vm4240_vm2, %v15396_v10  ;;  %v15494_v34 = vpack.c.bf16 %v3838_v30, %v3837_v19  ;;  %v2902_v54 = vadd.f32 %v12999_v45, %v15331_v53  ;;  %v3841_v57 = vmax.f32 %v2891_v44, 0.0 }
 0x190   : > { %v3970_v29 = vmax.f32 %v3406_v18, 0.0  ;;  %13244 = vmatprep.mubr.msk.bf16.mxu1 %vm4240_vm2, %v15424_v50  ;;  %v2894_v61 = vadd.f32 %v15331_v53, %v2893_v55 }
 0x191   : > { %v15488_v42 = vpack.c.bf16 %v3972_v26, %v3971_v24  ;;  %v3844_v13 = vmax.f32 %v2902_v54, 0.0 }
 0x192   : > { %v15492_v32 = vpack.c.bf16 %v3970_v29, %v3969_v28  ;;  %v13130_v33 = vpop.f32.mrb[28].mxu1  ;;  %v3842_v1 = vmax.f32 %v2894_v61, 0.0  ;;  %v13002_v12 = vpop.f32.mrb[28].mxu0 }
 0x193   : > { %v3427_v36 = vadd.f32 %v13130_v33, %v15331_v53  ;;  %v3418_v10 = vpop.f32.mrb[29].mxu1  ;;  %v15510_v3 = vpack.c.bf16 %v3844_v13, %v3843_v52  ;;  %v2915_v16 = vadd.f32 %v13002_v12, %v15331_v53  ;;  %v2906_v17 = vpop.f32.mrb[29].mxu0 }
 0x194   : > { %v3419_v43 = vadd.f32 %v15331_v53, %v3418_v10  ;;  %v13131_v50 = vpop.f32.mrb[30].mxu1  ;;  %v15514_v8 = vpack.c.bf16 %v3842_v1, %v3841_v57  ;;  %v2907_v19 = vadd.f32 %v15331_v53, %v2906_v17  ;;  %v13003_v20 = vpop.f32.mrb[30].mxu0 }
 0x195   : > { %v3430_v49 = vadd.f32 %v13131_v50, %v15331_v53  ;;  %v3421_v51 = vpop.f32.mrb[31].mxu1  ;;  %v3975_v38 = vmax.f32 %v3427_v36, 0.0  ;;  %v3847_v27 = vmax.f32 %v2915_v16, 0.0  ;;  %v2918_v28 = vadd.f32 %v13003_v20, %v15331_v53  ;;  %v2909_v29 = vpop.f32.mrb[31].mxu0 }
 0x196   : > { %v3422_v56 = vadd.f32 %v15331_v53, %v3421_v51  ;;  %v3973_v0 = vmax.f32 %v3419_v43, 0.0  ;;  %v3845_v33 = vmax.f32 %v2907_v19, 0.0  ;;  %v2910_v35 = vadd.f32 %v15331_v53, %v2909_v29 }
 0x197   : > { %v3976_v63 = vmax.f32 %v3430_v49, 0.0  ;;  %13245 = vmatmul.mubr.msk.bf16.gmra.mrb[136].mxu1 %vm4240_vm2, %v15420_v47  ;;  %v3848_v39 = vmax.f32 %v2918_v28, 0.0 }
 0x198   : > { %v3974_v14 = vmax.f32 %v3422_v56, 0.0  ;;  %13248 = vmatprep.mubr.msk.bf16.mxu1 %vm4240_vm2, %v15448_v25  ;;  %v3846_v50 = vmax.f32 %v2910_v35, 0.0 }
 0x199   : > { %v15508_v2 = vpack.c.bf16 %v3976_v63, %v3975_v38  ;;  %v15530_v45 = vpack.c.bf16 %v3848_v39, %v3847_v27  ;;  %v14520_v27 = vld [vmem:[%s18034_s5 + $0x18] sm:$0xff]  }
 0x19a   : > { %v15512_v4 = vpack.c.bf16 %v3974_v14, %v3973_v0  ;;  %v13134_v5 = vpop.f32.mrb[32].mxu1  ;;  %v15534_v52 = vpack.c.bf16 %v3846_v50, %v3845_v33  ;;  %v13006_v54 = vpop.f32.mrb[32].mxu0  ;;  %13498 = vmatprep.subr.bf16.mxu0 %v14520_v27 }
 0x19b   : > { %v3443_v15 = vadd.f32 %v13134_v5, %v15331_v53  ;;  %v3434_v47 = vpop.f32.mrb[33].mxu1  ;;  %v2931_v56 = vadd.f32 %v13006_v54, %v15331_v53  ;;  %v2922_v57 = vpop.f32.mrb[33].mxu0  ;;  %13499 = vmatpush3.bf16.msra.mxu0 %v14520_v27 }
 0x19c   : > { %v3435_v18 = vadd.f32 %v15331_v53, %v3434_v47  ;;  %v13135_v25 = vpop.f32.mrb[34].mxu1  ;;  %v2923_v38 = vadd.f32 %v15331_v53, %v2922_v57  ;;  %v13007_v63 = vpop.f32.mrb[34].mxu0 }
 0x19d   : > { %v3446_v24 = vadd.f32 %v13135_v25, %v15331_v53  ;;  %v3437_v26 = vpop.f32.mrb[35].mxu1  ;;  %v3979_v36 = vmax.f32 %v3443_v15, 0.0  ;;  %v3851_v14 = vmax.f32 %v2931_v56, 0.0  ;;  %v2934_v1 = vadd.f32 %v13007_v63, %v15331_v53  ;;  %v2925_v5 = vpop.f32.mrb[35].mxu0 }
 0x19e   : > { %v3438_v30 = vadd.f32 %v15331_v53, %v3437_v26  ;;  %v3977_v41 = vmax.f32 %v3435_v18, 0.0  ;;  %v3849_v15 = vmax.f32 %v2923_v38, 0.0  ;;  %v2926_v47 = vadd.f32 %v15331_v53, %v2925_v5 }
 0x19f   : > { %v3980_v10 = vmax.f32 %v3446_v24, 0.0  ;;  %13249 = vmatmul.mubr.msk.bf16.gmra.mrb[140].mxu1 %vm4240_vm2, %v15444_v22  ;;  %v3852_v18 = vmax.f32 %v2934_v1, 0.0 }
 0x1a0   : > { %v3978_v43 = vmax.f32 %v3438_v30, 0.0  ;;  %13252 = vmatprep.mubr.msk.bf16.mxu1 %vm4240_vm2, %v15471_v62  ;;  %v3850_v20 = vmax.f32 %v2926_v47, 0.0 }
 0x1a1   : > { %v15528_v44 = vpack.c.bf16 %v3980_v10, %v3979_v36  ;;  %v15550_v26 = vpack.c.bf16 %v3852_v18, %v3851_v14 }
 0x1a2   : > { %v15532_v49 = vpack.c.bf16 %v3978_v43, %v3977_v41  ;;  %v13138_v51 = vpop.f32.mrb[36].mxu1  ;;  %v15557_v30 = vpack.c.bf16 %v3850_v20, %v3849_v15 }
 0x1a3   : > { %v3459_v55 = vadd.f32 %v13138_v51, %v15331_v53  ;;  %v3450_v22 = vpop.f32.mrb[37].mxu1 }
 0x1a4   : > { %v3451_v61 = vadd.f32 %v15331_v53, %v3450_v22  ;;  %v13139_v62 = vpop.f32.mrb[38].mxu1 }
 0x1a5   : > { %v3462_v13 = vadd.f32 %v13139_v62, %v15331_v53  ;;  %v3453_v0 = vpop.f32.mrb[39].mxu1  ;;  %v3983_v16 = vmax.f32 %v3459_v55, 0.0 }
 0x1a6   : > { %v3454_v12 = vadd.f32 %v15331_v53, %v3453_v0  ;;  %v3981_v25 = vmax.f32 %v3451_v61, 0.0 }
 0x1a7   : > { %v3984_v17 = vmax.f32 %v3462_v13, 0.0  ;;  %13253 = vmatmul.mubr.msk.bf16.gmra.mrb[144].mxu1 %vm4240_vm2, %v15467_v59  ;;  %v13010_v59 = vpop.f32.mrb[36].mxu0 }
 0x1a8   : > { %v3982_v19 = vmax.f32 %v3454_v12, 0.0  ;;  %13256 = vmatprep.mubr.msk.bf16.mxu1 %vm4240_vm2, %v15494_v34  ;;  %v2947_v34 = vadd.f32 %v13010_v59, %v15331_v53  ;;  %v2938_v36 = vpop.f32.mrb[37].mxu0 }
 0x1a9   : > { %v15548_v24 = vpack.c.bf16 %v3984_v17, %v3983_v16  ;;  %v2939_v41 = vadd.f32 %v15331_v53, %v2938_v36  ;;  %v13011_v43 = vpop.f32.mrb[38].mxu0 }
 0x1aa   : > { %v15555_v28 = vpack.c.bf16 %v3982_v19, %v3981_v25  ;;  %v13142_v29 = vpop.f32.mrb[40].mxu1  ;;  %v3855_v54 = vmax.f32 %v2947_v34, 0.0  ;;  %v2950_v55 = vadd.f32 %v13011_v43, %v15331_v53  ;;  %v2941_v22 = vpop.f32.mrb[39].mxu0 }
 0x1ab   : > { %v3475_v33 = vadd.f32 %v13142_v29, %v15331_v53  ;;  %v3466_v35 = vpop.f32.mrb[41].mxu1  ;;  %v3853_v57 = vmax.f32 %v2939_v41, 0.0  ;;  %v2942_v61 = vadd.f32 %v15331_v53, %v2941_v22  ;;  %v13014_v16 = vpop.f32.mrb[40].mxu0 }
 0x1ac   : > { %v3467_v10 = vadd.f32 %v15331_v53, %v3466_v35  ;;  %v13143_v39 = vpop.f32.mrb[42].mxu1  ;;  %v3856_v63 = vmax.f32 %v2950_v55, 0.0  ;;  %v2963_v18 = vadd.f32 %v13014_v16, %v15331_v53  ;;  %v2954_v25 = vpop.f32.mrb[41].mxu0 }
 0x1ad   : > { %v3478_v50 = vadd.f32 %v13143_v39, %v15331_v53  ;;  %v3469_v51 = vpop.f32.mrb[43].mxu1  ;;  %v3987_v62 = vmax.f32 %v3475_v33, 0.0  ;;  %v3854_v14 = vmax.f32 %v2942_v61, 0.0  ;;  %v2955_v20 = vadd.f32 %v15331_v53, %v2954_v25  ;;  %v13015_v27 = vpop.f32.mrb[42].mxu0 }
 0x1ae   : > { %v3470_v56 = vadd.f32 %v15331_v53, %v3469_v51  ;;  %v3985_v13 = vmax.f32 %v3467_v10, 0.0  ;;  %v15573_v5 = vpack.c.bf16 %v3856_v63, %v3855_v54  ;;  %v3859_v33 = vmax.f32 %v2963_v18, 0.0  ;;  %v2957_v34 = vpop.f32.mrb[43].mxu0 }
 0x1af   : > { %v3988_v38 = vmax.f32 %v3478_v50, 0.0  ;;  %13257 = vmatmul.mubr.msk.bf16.gmra.mrb[148].mxu1 %vm4240_vm2, %v15490_v31  ;;  %v15577_v47 = vpack.c.bf16 %v3854_v14, %v3853_v57  ;;  %v2966_v35 = vadd.f32 %v13015_v27, %v15331_v53  ;;  %v3857_v10 = vmax.f32 %v2955_v20, 0.0 }
 0x1b0   : > { %v3986_v0 = vmax.f32 %v3470_v56, 0.0  ;;  %13260 = vmatprep.mubr.msk.bf16.mxu1 %vm4240_vm2, %v15514_v8  ;;  %v2958_v39 = vadd.f32 %v15331_v53, %v2957_v34 }
 0x1b1   : > { %v15571_v1 = vpack.c.bf16 %v3988_v38, %v3987_v62  ;;  %v3860_v50 = vmax.f32 %v2966_v35, 0.0 }
 0x1b2   : > { %v15575_v12 = vpack.c.bf16 %v3986_v0, %v3985_v13  ;;  %v13146_v15 = vpop.f32.mrb[44].mxu1  ;;  %v3858_v55 = vmax.f32 %v2958_v39, 0.0  ;;  %v13018_v38 = vpop.f32.mrb[44].mxu0 }
 0x1b3   : > { %v3491_v17 = vadd.f32 %v13146_v15, %v15331_v53  ;;  %v3482_v31 = vpop.f32.mrb[45].mxu1  ;;  %v15593_v56 = vpack.c.bf16 %v3860_v50, %v3859_v33  ;;  %v2979_v13 = vadd.f32 %v13018_v38, %v15331_v53  ;;  %v2970_v0 = vpop.f32.mrb[45].mxu0 }
 0x1b4   : > { %v3483_v19 = vadd.f32 %v15331_v53, %v3482_v31  ;;  %v13147_v8 = vpop.f32.mrb[46].mxu1  ;;  %v15597_v62 = vpack.c.bf16 %v3858_v55, %v3857_v10  ;;  %v2971_v15 = vadd.f32 %v15331_v53, %v2970_v0  ;;  %v13019_v16 = vpop.f32.mrb[46].mxu0 }
 0x1b5   : > { %v3494_v29 = vadd.f32 %v13147_v8, %v15331_v53  ;;  %v3485_v59 = vpop.f32.mrb[47].mxu1  ;;  %v3991_v41 = vmax.f32 %v3491_v17, 0.0  ;;  %v3863_v18 = vmax.f32 %v2979_v13, 0.0  ;;  %v2982_v25 = vadd.f32 %v13019_v16, %v15331_v53 }
 0x1b6   : > { %v3486_v36 = vadd.f32 %v15331_v53, %v3485_v59  ;;  %v3989_v51 = vmax.f32 %v3483_v19, 0.0  ;;  %v2973_v19 = vpop.f32.mrb[47].mxu0  ;;  %v3861_v20 = vmax.f32 %v2971_v15, 0.0 }
 0x1b7   : > { %v3992_v43 = vmax.f32 %v3494_v29, 0.0  ;;  %13261 = vmatmul.mubr.msk.bf16.gmra.mrb[152].mxu1 %vm4240_vm2, %v15510_v3  ;;  %v2974_v27 = vadd.f32 %v15331_v53, %v2973_v19  ;;  %v3864_v33 = vmax.f32 %v2982_v25, 0.0 }
 0x1b8   : > { %v3990_v54 = vmax.f32 %v3486_v36, 0.0  ;;  %13264 = vmatprep.mubr.msk.bf16.mxu1 %vm4240_vm2, %v15534_v52 }
 0x1b9   : > { %v15591_v22 = vpack.c.bf16 %v3992_v43, %v3991_v41  ;;  %v3862_v36 = vmax.f32 %v2974_v27, 0.0  ;;  %v15613_v39 = vpack.c.bf16 %v3864_v33, %v3863_v18 }
 0x1ba   : > { %v15595_v57 = vpack.c.bf16 %v3990_v54, %v3989_v51  ;;  %v13150_v61 = vpop.f32.mrb[48].mxu1  ;;  %v13022_v51 = vpop.f32.mrb[48].mxu0 }
 0x1bb   : > { %v3507_v63 = vadd.f32 %v13150_v61, %v15331_v53  ;;  %v3498_v3 = vpop.f32.mrb[49].mxu1  ;;  %v15617_v50 = vpack.c.bf16 %v3862_v36, %v3861_v20  ;;  %v2995_v55 = vadd.f32 %v13022_v51, %v15331_v53  ;;  %v2986_v61 = vpop.f32.mrb[49].mxu0 }
 0x1bc   : > { %v3499_v14 = vadd.f32 %v15331_v53, %v3498_v3  ;;  %v13151_v52 = vpop.f32.mrb[50].mxu1  ;;  %v13023_v3 = vpop.f32.mrb[50].mxu0 }
 0x1bd   : > { %v3510_v17 = vadd.f32 %v13151_v52, %v15331_v53  ;;  %v3501_v31 = vpop.f32.mrb[51].mxu1  ;;  %v3995_v29 = vmax.f32 %v3507_v63, 0.0  ;;  %v2987_v63 = vadd.f32 %v15331_v53, %v2986_v61  ;;  %v2998_v52 = vadd.f32 %v13023_v3, %v15331_v53  ;;  %v2989_v15 = vpop.f32.mrb[51].mxu0 }
 0x1be   : > { %v3502_v8 = vadd.f32 %v15331_v53, %v3501_v31  ;;  %v3993_v35 = vmax.f32 %v3499_v14, 0.0  ;;  %v3867_v14 = vmax.f32 %v2995_v55, 0.0  ;;  %v2990_v31 = vadd.f32 %v15331_v53, %v2989_v15 }
 0x1bf   : > { %v3996_v59 = vmax.f32 %v3510_v17, 0.0  ;;  %13265 = vmatmul.mubr.msk.bf16.gmra.mrb[156].mxu1 %vm4240_vm2, %v15530_v45  ;;  %v3865_v17 = vmax.f32 %v2987_v63, 0.0  ;;  %v3868_v19 = vmax.f32 %v2998_v52, 0.0 }
 0x1c0   : > { %v3994_v34 = vmax.f32 %v3502_v8, 0.0  ;;  %13268 = vmatprep.mubr.msk.bf16.mxu1 %vm4240_vm2, %v15557_v30  ;;  %v3866_v27 = vmax.f32 %v2990_v31, 0.0 }
 0x1c1   : > { %v15611_v10 = vpack.c.bf16 %v3996_v59, %v3995_v29  ;;  %v15633_v59 = vpack.c.bf16 %v3868_v19, %v3867_v14 }
 0x1c2   : > { %v15615_v41 = vpack.c.bf16 %v3994_v34, %v3993_v35  ;;  %v13154_v43 = vpop.f32.mrb[52].mxu1  ;;  %v15637_v34 = vpack.c.bf16 %v3866_v27, %v3865_v17  ;;  %v13026_v36 = vpop.f32.mrb[52].mxu0 }
 0x1c3   : > { %v3523_v54 = vadd.f32 %v13154_v43, %v15331_v53  ;;  %v3514_v45 = vpop.f32.mrb[53].mxu1  ;;  %v3011_v51 = vadd.f32 %v13026_v36, %v15331_v53 }
 0x1c4   : > { %v3515_v38 = vadd.f32 %v15331_v53, %v3514_v45  ;;  %v13155_v30 = vpop.f32.mrb[54].mxu1 }
 0x1c5   : > { %v3526_v13 = vadd.f32 %v13155_v30, %v15331_v53  ;;  %v3517_v0 = vpop.f32.mrb[55].mxu1  ;;  %v3999_v18 = vmax.f32 %v3523_v54, 0.0  ;;  %v3002_v54 = vpop.f32.mrb[53].mxu0  ;;  %v3871_v63 = vmax.f32 %v3011_v51, 0.0 }
 0x1c6   : > { %v3518_v16 = vadd.f32 %v15331_v53, %v3517_v0  ;;  %v3997_v8 = vmax.f32 %v3515_v38, 0.0  ;;  %v3003_v55 = vadd.f32 %v15331_v53, %v3002_v54  ;;  %v13027_v61 = vpop.f32.mrb[54].mxu0 }
 0x1c7   : > { %v4000_v25 = vmax.f32 %v3526_v13, 0.0  ;;  %13269 = vmatmul.mubr.msk.bf16.gmra.mrb[160].mxu1 %vm4240_vm2, %v15550_v26  ;;  %v3014_v3 = vadd.f32 %v13027_v61, %v15331_v53  ;;  %v3005_v13 = vpop.f32.mrb[55].mxu0 }
 0x1c8   : > { %v3998_v20 = vmax.f32 %v3518_v16, 0.0  ;;  %13272 = vmatprep.mubr.msk.bf16.mxu1 %vm4240_vm2, %v15577_v47  ;;  %v3869_v14 = vmax.f32 %v3003_v55, 0.0  ;;  %v3006_v52 = vadd.f32 %v15331_v53, %v3005_v13 }
 0x1c9   : > { %v15631_v29 = vpack.c.bf16 %v4000_v25, %v3999_v18  ;;  %v3872_v17 = vmax.f32 %v3014_v3, 0.0 }
 0x1ca   : > { %v15635_v33 = vpack.c.bf16 %v3998_v20, %v3997_v8  ;;  %v13158_v35 = vpop.f32.mrb[56].mxu1  ;;  %v3870_v25 = vmax.f32 %v3006_v52, 0.0  ;;  %v13030_v36 = vpop.f32.mrb[56].mxu0 }
 0x1cb   : > { %v3539_v43 = vadd.f32 %v13158_v35, %v15331_v53  ;;  %v3530_v26 = vpop.f32.mrb[57].mxu1  ;;  %v15653_v8 = vpack.c.bf16 %v3872_v17, %v3871_v63  ;;  %v3018_v51 = vpop.f32.mrb[57].mxu0 }
 0x1cc   : > { %v3531_v45 = vadd.f32 %v15331_v53, %v3530_v26  ;;  %v13159_v47 = vpop.f32.mrb[58].mxu1  ;;  %v15657_v35 = vpack.c.bf16 %v3870_v25, %v3869_v14  ;;  %v3027_v26 = vadd.f32 %v13030_v36, %v15331_v53 }
 0x1cd   : > { %v3542_v38 = vadd.f32 %v13159_v47, %v15331_v53  ;;  %v3533_v30 = vpop.f32.mrb[59].mxu1  ;;  %v4003_v15 = vmax.f32 %v3539_v43, 0.0  ;;  %v13031_v47 = vpop.f32.mrb[58].mxu0 }
 0x1ce   : > { %v3534_v0 = vadd.f32 %v15331_v53, %v3533_v30  ;;  %v4001_v31 = vmax.f32 %v3531_v45, 0.0  ;;  %v3019_v45 = vadd.f32 %v15331_v53, %v3018_v51  ;;  %v3030_v30 = vadd.f32 %v13031_v47, %v15331_v53  ;;  %v3021_v63 = vpop.f32.mrb[59].mxu0 }
 0x1cf   : > { %v4004_v16 = vmax.f32 %v3542_v38, 0.0  ;;  %13273 = vmatmul.mubr.msk.bf16.gmra.mrb[164].mxu1 %vm4240_vm2, %v15573_v5  ;;  %v3875_v38 = vmax.f32 %v3027_v26, 0.0 }
 0x1d0   : > { %v4002_v18 = vmax.f32 %v3534_v0, 0.0  ;;  %13276 = vmatprep.mubr.msk.bf16.mxu1 %vm4240_vm2, %v15597_v62  ;;  %v3873_v13 = vmax.f32 %v3019_v45, 0.0  ;;  %v3022_v0 = vadd.f32 %v15331_v53, %v3021_v63 }
 0x1d1   : > { %v15651_v19 = vpack.c.bf16 %v4004_v16, %v4003_v15  ;;  %v3876_v15 = vmax.f32 %v3030_v30, 0.0 }
 0x1d2   : > { %v15655_v20 = vpack.c.bf16 %v4002_v18, %v4001_v31  ;;  %v13162_v27 = vpop.f32.mrb[60].mxu1  ;;  %v3874_v31 = vmax.f32 %v3022_v0, 0.0 }
 0x1d3   : > { %v3555_v43 = vadd.f32 %v13162_v27, %v15331_v53  ;;  %v3546_v5 = vpop.f32.mrb[61].mxu1  ;;  %v15673_v25 = vpack.c.bf16 %v3876_v15, %v3875_v38 }
 0x1d4   : > { %v3547_v54 = vadd.f32 %v15331_v53, %v3546_v5  ;;  %v13163_v62 = vpop.f32.mrb[62].mxu1 }
 0x1d5   : > { %v3558_v55 = vadd.f32 %v13163_v62, %v15331_v53  ;;  %v3549_v61 = vpop.f32.mrb[63].mxu1  ;;  %v4007_v14 = vmax.f32 %v3555_v43, 0.0  ;;  %v13034_v43 = vpop.f32.mrb[60].mxu0 }
 0x1d6   : > { %v3550_v3 = vadd.f32 %v15331_v53, %v3549_v61  ;;  %v4005_v16 = vmax.f32 %v3547_v54, 0.0  ;;  %v15677_v53 = vpack.c.bf16 %v3874_v31, %v3873_v13  ;;  %v3034_v51 = vpop.f32.mrb[61].mxu0 }
 0x1d7   : > { %v4008_v52 = vmax.f32 %v3558_v55, 0.0  ;;  %13277 = vmatmul.mubr.msk.bf16.gmra.mrb[168].mxu1 %vm4240_vm2, %v15593_v56  ;;  %v15682_v56 = vld [vmem:[%s18063_s2] ss:$0 sm:$0xff]  ;;  %v13035_v47 = vpop.f32.mrb[62].mxu0 }
 0x1d8   : > { %v4006_v17 = vmax.f32 %v3550_v3, 0.0  ;;  %13280 = vmatprep.mubr.msk.bf16.mxu1 %vm4240_vm2, %v15617_v50  ;;  %v3043_v50 = vadd.f32 %v15682_v56, %v13034_v43  ;;  %v3035_v45 = vadd.f32 %v15682_v56, %v3034_v51  ;;  %v3046_v30 = vadd.f32 %v15682_v56, %v13035_v47  ;;  %v3037_v63 = vpop.f32.mrb[63].mxu0 }
 0x1d9   : > { %v15671_v18 = vpack.c.bf16 %v4008_v52, %v4007_v14  ;;  %v3038_v0 = vadd.f32 %v15682_v56, %v3037_v63 }
 0x1da   : > { %v15675_v27 = vpack.c.bf16 %v4006_v17, %v4005_v16  ;;  %v13166_v36 = vpop.f32.mrb[64].mxu1  ;;  %v3879_v38 = vmax.f32 %v3043_v50, 0.0  ;;  %v3877_v13 = vmax.f32 %v3035_v45, 0.0  ;;  %v3880_v15 = vmax.f32 %v3046_v30, 0.0 }
 0x1db   : > { %v3571_v5 = vadd.f32 %v15682_v56, %v13166_v36  ;;  %v3562_v26 = vpop.f32.mrb[65].mxu1  ;;  %v3878_v31 = vmax.f32 %v3038_v0, 0.0 }
 0x1dc   : > { %v3563_v54 = vadd.f32 %v15682_v56, %v3562_v26  ;;  %v13167_v62 = vpop.f32.mrb[66].mxu1  ;;  %v15698_v43 = vpack.c.bf16 %v3880_v15, %v3879_v38 }
 0x1dd   : > { %v3574_v55 = vadd.f32 %v15682_v56, %v13167_v62  ;;  %v3565_v61 = vpop.f32.mrb[67].mxu1  ;;  %v4011_v14 = vmax.f32 %v3571_v5, 0.0  ;;  %v15702_v51 = vpack.c.bf16 %v3878_v31, %v3877_v13  ;;  %v13038_v5 = vpop.f32.mrb[64].mxu0 }
 0x1de   : > { %v3566_v3 = vadd.f32 %v15682_v56, %v3565_v61  ;;  %v4009_v16 = vmax.f32 %v3563_v54, 0.0  ;;  %v3059_v54 = vadd.f32 %v15682_v56, %v13038_v5  ;;  %v3050_v45 = vpop.f32.mrb[65].mxu0 }
 0x1df   : > { %v4012_v52 = vmax.f32 %v3574_v55, 0.0  ;;  %13281 = vmatmul.mubr.msk.bf16.gmra.mrb[172].mxu1 %vm4240_vm2, %v15613_v39  ;;  %v3051_v55 = vadd.f32 %v15682_v56, %v3050_v45  ;;  %v13039_v61 = vpop.f32.mrb[66].mxu0  ;;  %v15723_v45 = vld [vmem:[%s18038_s9] sm:$0xff]  }
 0x1e0   : > { %v4010_v17 = vmax.f32 %v3566_v3, 0.0  ;;  %13284 = vmatprep.mubr.msk.bf16.mxu1 %vm4240_vm2, %v15637_v34  ;;  %v3883_v63 = vmax.f32 %v3059_v54, 0.0  ;;  %v3062_v3 = vadd.f32 %v15682_v56, %v13039_v61  ;;  %v3053_v13 = vpop.f32.mrb[67].mxu0  ;;  %14020 = vmatprep.subr.bf16.mxu0 %v15723_v45 }
 0x1e1   : > { %v15696_v36 = vpack.c.bf16 %v4012_v52, %v4011_v14  ;;  %v3881_v14 = vmax.f32 %v3051_v55, 0.0  ;;  %v3054_v52 = vadd.f32 %v15682_v56, %v3053_v13 }
 0x1e2   : > { %v15700_v26 = vpack.c.bf16 %v4010_v17, %v4009_v16  ;;  %v13170_v50 = vpop.f32.mrb[68].mxu1  ;;  %v3884_v17 = vmax.f32 %v3062_v3, 0.0 }
 0x1e3   : > { %v3587_v62 = vadd.f32 %v15682_v56, %v13170_v50  ;;  %v3578_v39 = vpop.f32.mrb[69].mxu1  ;;  %v3882_v5 = vmax.f32 %v3054_v52, 0.0 }
 0x1e4   : > { %v3579_v47 = vadd.f32 %v15682_v56, %v3578_v39  ;;  %v13171_v34 = vpop.f32.mrb[70].mxu1  ;;  %v15718_v54 = vpack.c.bf16 %v3884_v17, %v3883_v63 }
 0x1e5   : > { %v3590_v38 = vadd.f32 %v15682_v56, %v13171_v34  ;;  %v3581_v30 = vpop.f32.mrb[71].mxu1  ;;  %v4015_v15 = vmax.f32 %v3587_v62, 0.0 }
 0x1e6   : > { %v3582_v0 = vadd.f32 %v15682_v56, %v3581_v30  ;;  %v4013_v31 = vmax.f32 %v3579_v47, 0.0  ;;  %v13042_v47 = vpop.f32.mrb[68].mxu0 }
 0x1e7   : > { %v4016_v16 = vmax.f32 %v3590_v38, 0.0  ;;  %13285 = vmatmul.mubr.msk.bf16.gmra.mrb[176].mxu1 %vm4240_vm2, %v15633_v59  ;;  %v15727_v59 = vpack.c.bf16 %v3882_v5, %v3881_v14  ;;  %v3066_v38 = vpop.f32.mrb[69].mxu0 }
 0x1e8   : > { %v4014_v50 = vmax.f32 %v3582_v0, 0.0  ;;  %13288 = vmatprep.mubr.msk.bf16.mxu1 %vm4240_vm2, %v15657_v35  ;;  %v3075_v35 = vadd.f32 %v15682_v56, %v13042_v47  ;;  %v3067_v3 = vadd.f32 %v15682_v56, %v3066_v38  ;;  %v13043_v13 = vpop.f32.mrb[70].mxu0 }
 0x1e9   : > { %v15716_v39 = vpack.c.bf16 %v4016_v16, %v4015_v15  ;;  %v3078_v15 = vadd.f32 %v15682_v56, %v13043_v13  ;;  %v3069_v16 = vpop.f32.mrb[71].mxu0 }
 0x1ea   : > { %v15725_v62 = vpack.c.bf16 %v4014_v50, %v4013_v31  ;;  %v13174_v34 = vpop.f32.mrb[72].mxu1  ;;  %v3887_v14 = vmax.f32 %v3075_v35, 0.0  ;;  %v3885_v31 = vmax.f32 %v3067_v3, 0.0  ;;  %v3070_v50 = vadd.f32 %v15682_v56, %v3069_v16 }
 0x1eb   : > { %18064 = vst [vmem:[#allocation12_spill] sm:$0xff] %v15716_v39  ;;  %v3603_v55 = vadd.f32 %v15682_v56, %v13174_v34  ;;  %v3594_v61 = vpop.f32.mrb[73].mxu1  ;;  %v3888_v47 = vmax.f32 %v3078_v15, 0.0 }
 0x1ec   : > { %18065 = vst [vmem:[#allocation13_spill] sm:$0xff] %v15725_v62  ;;  %v3595_v30 = vadd.f32 %v15682_v56, %v3594_v61  ;;  %v13175_v63 = vpop.f32.mrb[74].mxu1  ;;  %v3886_v35 = vmax.f32 %v3070_v50, 0.0 }
 0x1ed   : > { %v3606_v0 = vadd.f32 %v15682_v56, %v13175_v63  ;;  %v3597_v52 = vpop.f32.mrb[75].mxu1  ;;  %v4019_v5 = vmax.f32 %v3603_v55, 0.0  ;;  %v15744_v13 = vpack.c.bf16 %v3888_v47, %v3887_v14  ;;  %v13046_v55 = vpop.f32.mrb[72].mxu0 }
 0x1ee   : > { %v3598_v17 = vadd.f32 %v15682_v56, %v3597_v52  ;;  %v4017_v61 = vmax.f32 %v3595_v30, 0.0  ;;  %v15748_v16 = vpack.c.bf16 %v3886_v35, %v3885_v31  ;;  %v3091_v30 = vadd.f32 %v15682_v56, %v13046_v55  ;;  %v3082_v15 = vpop.f32.mrb[73].mxu0 }
 0x1ef   : > { %v4020_v34 = vmax.f32 %v3606_v0, 0.0  ;;  %13289 = vmatmul.mubr.msk.bf16.gmra.mrb[180].mxu1 %vm4240_vm2, %v15653_v8  ;;  %v3083_v50 = vadd.f32 %v15682_v56, %v3082_v15 }
 0x1f0   : > { %v4018_v38 = vmax.f32 %v3598_v17, 0.0  ;;  %13292 = vmatprep.mubr.msk.bf16.mxu1 %vm4240_vm2, %v15677_v53  ;;  %v3891_v47 = vmax.f32 %v3091_v30, 0.0 }
 0x1f1   : > { %v15742_v63 = vpack.c.bf16 %v4020_v34, %v4019_v5  ;;  %v13047_v5 = vpop.f32.mrb[74].mxu0  ;;  %v3889_v35 = vmax.f32 %v3083_v50, 0.0 }
 0x1f2   : > { %v15746_v52 = vpack.c.bf16 %v4018_v38, %v4017_v61  ;;  %v13178_v3 = vpop.f32.mrb[76].mxu1  ;;  %v3094_v31 = vadd.f32 %v15682_v56, %v13047_v5  ;;  %v3085_v61 = vpop.f32.mrb[75].mxu0 }
 0x1f3   : > { %18066 = vst [vmem:[#allocation14_spill] sm:$0xff] %v15742_v63  ;;  %v3619_v0 = vadd.f32 %v15682_v56, %v13178_v3  ;;  %v3610_v8 = vpop.f32.mrb[77].mxu1  ;;  %v3086_v3 = vadd.f32 %v15682_v56, %v3085_v61 }
 0x1f4   : > { %18067 = vst [vmem:[#allocation15_spill] sm:$0xff] %v15746_v52  ;;  %v3611_v17 = vadd.f32 %v15682_v56, %v3610_v8  ;;  %v13179_v53 = vpop.f32.mrb[78].mxu1  ;;  %v3892_v8 = vmax.f32 %v3094_v31, 0.0 }
 0x1f5   : > { %v3622_v14 = vadd.f32 %v15682_v56, %v13179_v53  ;;  %v3613_v34 = vpop.f32.mrb[79].mxu1  ;;  %v4023_v55 = vmax.f32 %v3619_v0, 0.0  ;;  %v3890_v30 = vmax.f32 %v3086_v3, 0.0  ;;  %v13050_v0 = vpop.f32.mrb[76].mxu0 }
 0x1f6   : > { %v3614_v38 = vadd.f32 %v15682_v56, %v3613_v34  ;;  %v4021_v15 = vmax.f32 %v3611_v17, 0.0  ;;  %v15764_v5 = vpack.c.bf16 %v3892_v8, %v3891_v47  ;;  %v3107_v17 = vadd.f32 %v15682_v56, %v13050_v0  ;;  %v3098_v31 = vpop.f32.mrb[77].mxu0 }
 0x1f7   : > { %v4024_v63 = vmax.f32 %v3622_v14, 0.0  ;;  %13293 = vmatmul.mubr.msk.bf16.gmra.mrb[184].mxu1 %vm4240_vm2, %v15673_v25  ;;  %v15768_v61 = vpack.c.bf16 %v3890_v30, %v3889_v35  ;;  %v13051_v3 = vpop.f32.mrb[78].mxu0 }
 0x1f8   : > { %v4022_v52 = vmax.f32 %v3614_v38, 0.0  ;;  %13296 = vmatprep.mubr.msk.bf16.mxu1 %vm4240_vm2, %v15702_v51  ;;  %v3110_v35 = vadd.f32 %v15682_v56, %v13051_v3  ;;  %v3101_v8 = vpop.f32.mrb[79].mxu0 }
 0x1f9   : > { %v15762_v53 = vpack.c.bf16 %v4024_v63, %v4023_v55  ;;  %v3099_v63 = vadd.f32 %v15682_v56, %v3098_v31  ;;  %v3895_v55 = vmax.f32 %v3107_v17, 0.0 }
 0x1fa   : > { %v15766_v34 = vpack.c.bf16 %v4022_v52, %v4021_v15  ;;  %v13182_v50 = vpop.f32.mrb[80].mxu1 }
 0x1fb   : > { %18068 = vst [vmem:[#allocation16_spill] sm:$0xff] %v15762_v53  ;;  %v3635_v14 = vadd.f32 %v15682_v56, %v13182_v50  ;;  %v3626_v25 = vpop.f32.mrb[81].mxu1  ;;  %v3893_v30 = vmax.f32 %v3099_v63, 0.0  ;;  %v3102_v50 = vadd.f32 %v15682_v56, %v3101_v8 }
 0x1fc   : > { %18069 = vst [vmem:[#allocation17_spill] sm:$0xff] %v15766_v34  ;;  %v3627_v38 = vadd.f32 %v15682_v56, %v3626_v25  ;;  %v13183_v51 = vpop.f32.mrb[82].mxu1  ;;  %v3896_v25 = vmax.f32 %v3110_v35, 0.0 }
 0x1fd   : > { %v3638_v47 = vadd.f32 %v15682_v56, %v13183_v51  ;;  %v3629_v52 = vpop.f32.mrb[83].mxu1  ;;  %v4027_v0 = vmax.f32 %v3635_v14, 0.0  ;;  %v3894_v17 = vmax.f32 %v3102_v50, 0.0  ;;  %v13054_v14 = vpop.f32.mrb[80].mxu0 }
 0x1fe   : > { %v3630_v15 = vadd.f32 %v15682_v56, %v3629_v52  ;;  %v4025_v31 = vmax.f32 %v3627_v38, 0.0  ;;  %v15784_v3 = vpack.c.bf16 %v3896_v25, %v3895_v55  ;;  %v3123_v38 = vadd.f32 %v15682_v56, %v13054_v14  ;;  %v3114_v35 = vpop.f32.mrb[81].mxu0 }
 0x1ff   : > { %v4028_v53 = vmax.f32 %v3638_v47, 0.0  ;;  %13297 = vmatmul.mubr.msk.bf16.gmra.mrb[188].mxu1 %vm4240_vm2, %v15698_v43  ;;  %v15788_v8 = vpack.c.bf16 %v3894_v17, %v3893_v30  ;;  %v13055_v50 = vpop.f32.mrb[82].mxu0 }
 0x200   : > { %v4026_v34 = vmax.f32 %v3630_v15, 0.0  ;;  %13300 = vmatprep.mubr.msk.bf16.mxu1 %vm4240_vm2, %v15727_v59  ;;  %v3126_v30 = vadd.f32 %v15682_v56, %v13055_v50  ;;  %v3117_v25 = vpop.f32.mrb[83].mxu0 }
 0x201   : > { %v15782_v51 = vpack.c.bf16 %v4028_v53, %v4027_v0  ;;  %v3115_v53 = vadd.f32 %v15682_v56, %v3114_v35  ;;  %v3899_v0 = vmax.f32 %v3123_v38, 0.0 }
 0x202   : > { %v15786_v52 = vpack.c.bf16 %v4026_v34, %v4025_v31  ;;  %v13186_v63 = vpop.f32.mrb[84].mxu1 }
 0x203   : > { %18070 = vst [vmem:[#allocation18_spill] sm:$0xff] %v15782_v51  ;;  %v3651_v47 = vadd.f32 %v15682_v56, %v13186_v63  ;;  %v3642_v43 = vpop.f32.mrb[85].mxu1  ;;  %v3897_v17 = vmax.f32 %v3115_v53, 0.0  ;;  %v3118_v63 = vadd.f32 %v15682_v56, %v3117_v25 }
 0x204   : > { %18071 = vst [vmem:[#allocation19_spill] sm:$0xff] %v15786_v52  ;;  %v3643_v15 = vadd.f32 %v15682_v56, %v3642_v43  ;;  %v13187_v59 = vpop.f32.mrb[86].mxu1  ;;  %v3900_v43 = vmax.f32 %v3126_v30, 0.0 }
 0x205   : > { %v3654_v55 = vadd.f32 %v15682_v56, %v13187_v59  ;;  %v3645_v34 = vpop.f32.mrb[87].mxu1  ;;  %v4031_v14 = vmax.f32 %v3651_v47, 0.0  ;;  %v3898_v38 = vmax.f32 %v3118_v63, 0.0  ;;  %v13058_v47 = vpop.f32.mrb[84].mxu0 }
 0x206   : > { %v3646_v31 = vadd.f32 %v15682_v56, %v3645_v34  ;;  %v4029_v35 = vmax.f32 %v3643_v15, 0.0  ;;  %v15804_v50 = vpack.c.bf16 %v3900_v43, %v3899_v0  ;;  %v3130_v30 = vpop.f32.mrb[85].mxu0 }
 0x207   : > { %v4032_v51 = vmax.f32 %v3654_v55, 0.0  ;;  %13301 = vmatmul.mubr.msk.bf16.gmra.mrb[192].mxu1 %vm4240_vm2, %v15718_v54  ;;  %v15808_v25 = vpack.c.bf16 %v3898_v38, %v3897_v17  ;;  %v14522_v54 = vld [vmem:[%s18036_s7 + $0x10] sm:$0xff]  }
 0x208   : > { %v4030_v52 = vmax.f32 %v3646_v31, 0.0  ;;  %13304 = vmatprep.mubr.msk.bf16.mxu1 %vm4240_vm2, %v15748_v16  ;;  %v3139_v16 = vadd.f32 %v15682_v56, %v13058_v47  ;;  %v13059_v31 = vpop.f32.mrb[86].mxu0  ;;  %13760 = vmatprep.subr.bf16.mxu1 %v14522_v54 }
 0x209   : > { %v15802_v59 = vpack.c.bf16 %v4032_v51, %v4031_v14  ;;  %v3142_v43 = vadd.f32 %v15682_v56, %v13059_v31  ;;  %13761 = vmatpush3.bf16.msra.mxu1 %v14522_v54 }
 0x20a   : > { %v15806_v34 = vpack.c.bf16 %v4030_v52, %v4029_v35  ;;  %v13190_v53 = vpop.f32.mrb[88].mxu1  ;;  %v3131_v52 = vadd.f32 %v15682_v56, %v3130_v30  ;;  %v3903_v14 = vmax.f32 %v3139_v16, 0.0  ;;  %v3133_v35 = vpop.f32.mrb[87].mxu0 }
 0x20b   : > { %18072 = vst [vmem:[#allocation20_spill] sm:$0xff] %v15802_v59  ;;  %v3667_v15 = vadd.f32 %v15682_v56, %v13190_v53  ;;  %v3658_v55 = vpop.f32.mrb[89].mxu1  ;;  %v3134_v47 = vadd.f32 %v15682_v56, %v3133_v35  ;;  %v3904_v30 = vmax.f32 %v3142_v43, 0.0 }
 0x20c   : > { %18073 = vst [vmem:[#allocation21_spill] sm:$0xff] %v15806_v34  ;;  %v3659_v51 = vadd.f32 %v15682_v56, %v3658_v55  ;;  %v13191_v0 = vpop.f32.mrb[90].mxu1  ;;  %v3901_v53 = vmax.f32 %v3131_v52, 0.0 }
 0x20d   : > { %v3670_v17 = vadd.f32 %v15682_v56, %v13191_v0  ;;  %v3661_v63 = vpop.f32.mrb[91].mxu1  ;;  %v4035_v59 = vmax.f32 %v3667_v15, 0.0  ;;  %v3902_v16 = vmax.f32 %v3134_v47, 0.0  ;;  %v15827_v54 = vpack.c.bf16 %v3904_v30, %v3903_v14  ;;  %v13062_v15 = vpop.f32.mrb[88].mxu0 }
 0x20e   : > { %v3662_v38 = vadd.f32 %v15682_v56, %v3661_v63  ;;  %v4033_v34 = vmax.f32 %v3659_v51, 0.0  ;;  %v3155_v51 = vadd.f32 %v15682_v56, %v13062_v15  ;;  %v3146_v43 = vpop.f32.mrb[89].mxu0 }
 0x20f   : > { %v4036_v55 = vmax.f32 %v3670_v17, 0.0  ;;  %13305 = vmatmul.mubr.msk.bf16.gmra.mrb[196].mxu1 %vm4240_vm2, %v15744_v13  ;;  %v15831_v63 = vpack.c.bf16 %v3902_v16, %v3901_v53 }
 0x210   : > { %v4034_v39 = vmax.f32 %v3662_v38, 0.0  ;;  %13308 = vmatprep.mubr.msk.bf16.mxu1 %vm4240_vm2, %v15768_v61  ;;  %v13063_v38 = vpop.f32.mrb[90].mxu0 }
 0x211   : > { %v15825_v0 = vpack.c.bf16 %v4036_v55, %v4035_v59  ;;  %v3147_v59 = vadd.f32 %v15682_v56, %v3146_v43  ;;  %v3158_v53 = vadd.f32 %v15682_v56, %v13063_v38  ;;  %v3149_v47 = vpop.f32.mrb[91].mxu0 }
 0x212   : > { %v15829_v31 = vpack.c.bf16 %v4034_v39, %v4033_v34  ;;  %v13194_v52 = vpop.f32.mrb[92].mxu1  ;;  %v3907_v34 = vmax.f32 %v3155_v51, 0.0  ;;  %v3150_v16 = vadd.f32 %v15682_v56, %v3149_v47 }
 0x213   : > { %18074 = vst [vmem:[#allocation22_spill] sm:$0xff] %v15825_v0  ;;  %v3683_v17 = vadd.f32 %v15682_v56, %v13194_v52  ;;  %v3674_v13 = vpop.f32.mrb[93].mxu1  ;;  %v3905_v30 = vmax.f32 %v3147_v59, 0.0 }
 0x214   : > { %18075 = vst [vmem:[#allocation23_spill] sm:$0xff] %v15829_v31  ;;  %v3675_v35 = vadd.f32 %v15682_v56, %v3674_v13  ;;  %v13195_v61 = vpop.f32.mrb[94].mxu1  ;;  %v3908_v13 = vmax.f32 %v3158_v53, 0.0  ;;  %v3906_v51 = vmax.f32 %v3150_v16, 0.0 }
 0x215   : > { %v3686_v14 = vadd.f32 %v15682_v56, %v13195_v61  ;;  %v3677_v39 = vpop.f32.mrb[95].mxu1  ;;  %v4039_v52 = vmax.f32 %v3683_v17, 0.0  ;;  %v13066_v17 = vpop.f32.mrb[92].mxu0 }
 0x216   : > { %v3678_v55 = vadd.f32 %v15682_v56, %v3677_v39  ;;  %v4037_v43 = vmax.f32 %v3675_v35, 0.0  ;;  %v15847_v38 = vpack.c.bf16 %v3908_v13, %v3907_v34  ;;  %v15851_v47 = vpack.c.bf16 %v3906_v51, %v3905_v30  ;;  %v3162_v53 = vpop.f32.mrb[93].mxu0 }
 0x217   : > { %v4040_v15 = vmax.f32 %v3686_v14, 0.0  ;;  %13309 = vmatmul.mubr.msk.bf16.gmra.mrb[200].mxu1 %vm4240_vm2, %v15764_v5  ;;  %v3171_v35 = vadd.f32 %v15682_v56, %v13066_v17  ;;  %v3163_v16 = vadd.f32 %v15682_v56, %v3162_v53 }
 0x218   : > { %v4038_v0 = vmax.f32 %v3678_v55, 0.0  ;;  %13312 = vmatprep.mubr.msk.bf16.mxu1 %vm4240_vm2, %v15788_v8 }
 0x219   : > { %v15845_v61 = vpack.c.bf16 %v4040_v15, %v4039_v52  ;;  %v13067_v52 = vpop.f32.mrb[94].mxu0  ;;  %v3911_v15 = vmax.f32 %v3171_v35, 0.0  ;;  %v3909_v51 = vmax.f32 %v3163_v16, 0.0 }
 0x21a   : > { %v15849_v39 = vpack.c.bf16 %v4038_v0, %v4037_v43  ;;  %v13198_v59 = vpop.f32.mrb[96].mxu1  ;;  %v3174_v30 = vadd.f32 %v15682_v56, %v13067_v52  ;;  %v3165_v13 = vpop.f32.mrb[95].mxu0 }
 0x21b   : > { %18076 = vst [vmem:[#allocation24_spill] sm:$0xff] %v15845_v61  ;;  %v3699_v14 = vadd.f32 %v15682_v56, %v13198_v59  ;;  %v3690_v5 = vpop.f32.mrb[97].mxu1  ;;  %v3166_v59 = vadd.f32 %v15682_v56, %v3165_v13 }
 0x21c   : > { %18077 = vst [vmem:[#allocation25_spill] sm:$0xff] %v15849_v39  ;;  %v3691_v55 = vadd.f32 %v15682_v56, %v3690_v5  ;;  %v13199_v8 = vpop.f32.mrb[98].mxu1  ;;  %v3912_v5 = vmax.f32 %v3174_v30, 0.0 }
 0x21d   : > { %v3702_v34 = vadd.f32 %v15682_v56, %v13199_v8  ;;  %v3693_v0 = vpop.f32.mrb[99].mxu1  ;;  %v4043_v17 = vmax.f32 %v3699_v14, 0.0  ;;  %v3910_v35 = vmax.f32 %v3166_v59, 0.0  ;;  %v13070_v14 = vpop.f32.mrb[96].mxu0 }
 0x21e   : > { %v3694_v43 = vadd.f32 %v15682_v56, %v3693_v0  ;;  %v4041_v53 = vmax.f32 %v3691_v55, 0.0  ;;  %v15867_v52 = vpack.c.bf16 %v3912_v5, %v3911_v15  ;;  %v3187_v55 = vadd.f32 %v15682_v56, %v13070_v14  ;;  %v3178_v30 = vpop.f32.mrb[97].mxu0 }
 0x21f   : > { %v4044_v61 = vmax.f32 %v3702_v34, 0.0  ;;  %13313 = vmatmul.mubr.msk.bf16.gmra.mrb[204].mxu1 %vm4240_vm2, %v15784_v3  ;;  %v15871_v13 = vpack.c.bf16 %v3910_v35, %v3909_v51  ;;  %v13071_v59 = vpop.f32.mrb[98].mxu0 }
 0x220   : > { %v4042_v39 = vmax.f32 %v3694_v43, 0.0  ;;  %13316 = vmatprep.mubr.msk.bf16.mxu1 %vm4240_vm2, %v15808_v25  ;;  %v3190_v51 = vadd.f32 %v15682_v56, %v13071_v59  ;;  %v3181_v5 = vpop.f32.mrb[99].mxu0 }
 0x221   : > { %v15865_v8 = vpack.c.bf16 %v4044_v61, %v4043_v17  ;;  %v3179_v61 = vadd.f32 %v15682_v56, %v3178_v30  ;;  %v3915_v17 = vmax.f32 %v3187_v55, 0.0 }
 0x222   : > { %v15869_v0 = vpack.c.bf16 %v4042_v39, %v4041_v53  ;;  %v13202_v16 = vpop.f32.mrb[100].mxu1 }
 0x223   : > { %18078 = vst [vmem:[#allocation26_spill] sm:$0xff] %v15865_v8  ;;  %v3715_v34 = vadd.f32 %v15682_v56, %v13202_v16  ;;  %v3706_v3 = vpop.f32.mrb[101].mxu1  ;;  %v3913_v35 = vmax.f32 %v3179_v61, 0.0  ;;  %v3182_v16 = vadd.f32 %v15682_v56, %v3181_v5 }
 0x224   : > { %18079 = vst [vmem:[#allocation27_spill] sm:$0xff] %v15869_v0  ;;  %v3707_v43 = vadd.f32 %v15682_v56, %v3706_v3  ;;  %v13203_v25 = vpop.f32.mrb[102].mxu1  ;;  %v3916_v3 = vmax.f32 %v3190_v51, 0.0 }
 0x225   : > { %v3718_v15 = vadd.f32 %v15682_v56, %v13203_v25  ;;  %v3709_v39 = vpop.f32.mrb[103].mxu1  ;;  %v4047_v14 = vmax.f32 %v3715_v34, 0.0  ;;  %v3914_v55 = vmax.f32 %v3182_v16, 0.0  ;;  %v13074_v34 = vpop.f32.mrb[100].mxu0 }
 0x226   : > { %v3710_v53 = vadd.f32 %v15682_v56, %v3709_v39  ;;  %v4045_v30 = vmax.f32 %v3707_v43, 0.0  ;;  %v15887_v59 = vpack.c.bf16 %v3916_v3, %v3915_v17  ;;  %v3203_v43 = vadd.f32 %v15682_v56, %v13074_v34  ;;  %v3194_v51 = vpop.f32.mrb[101].mxu0 }
 0x227   : > { %v4048_v8 = vmax.f32 %v3718_v15, 0.0  ;;  %13317 = vmatmul.mubr.msk.bf16.gmra.mrb[208].mxu1 %vm4240_vm2, %v15804_v50  ;;  %v15891_v5 = vpack.c.bf16 %v3914_v55, %v3913_v35  ;;  %v13075_v16 = vpop.f32.mrb[102].mxu0 }
 0x228   : > { %v4046_v0 = vmax.f32 %v3710_v53, 0.0  ;;  %13320 = vmatprep.mubr.msk.bf16.mxu1 %vm4240_vm2, %v15831_v63  ;;  %v3206_v35 = vadd.f32 %v15682_v56, %v13075_v16  ;;  %v3197_v3 = vpop.f32.mrb[103].mxu0 }
 0x229   : > { %v15885_v25 = vpack.c.bf16 %v4048_v8, %v4047_v14  ;;  %v3195_v8 = vadd.f32 %v15682_v56, %v3194_v51  ;;  %v3919_v14 = vmax.f32 %v3203_v43, 0.0 }
 0x22a   : > { %v15889_v39 = vpack.c.bf16 %v4046_v0, %v4045_v30  ;;  %v13206_v61 = vpop.f32.mrb[104].mxu1 }
 0x22b   : > { %18080 = vst [vmem:[#allocation28_spill] sm:$0xff] %v15885_v25  ;;  %v3731_v15 = vadd.f32 %v15682_v56, %v13206_v61  ;;  %v3722_v50 = vpop.f32.mrb[105].mxu1  ;;  %v3917_v55 = vmax.f32 %v3195_v8, 0.0  ;;  %v3198_v61 = vadd.f32 %v15682_v56, %v3197_v3 }
 0x22c   : > { %18081 = vst [vmem:[#allocation29_spill] sm:$0xff] %v15889_v39  ;;  %v3723_v53 = vadd.f32 %v15682_v56, %v3722_v50  ;;  %v13207_v63 = vpop.f32.mrb[106].mxu1  ;;  %v3920_v50 = vmax.f32 %v3206_v35, 0.0 }
 0x22d   : > { %v3734_v17 = vadd.f32 %v15682_v56, %v13207_v63  ;;  %v3725_v0 = vpop.f32.mrb[107].mxu1  ;;  %v4051_v34 = vmax.f32 %v3731_v15, 0.0  ;;  %v3918_v43 = vmax.f32 %v3198_v61, 0.0  ;;  %v13078_v15 = vpop.f32.mrb[104].mxu0 }
 0x22e   : > { %v3726_v30 = vadd.f32 %v15682_v56, %v3725_v0  ;;  %v4049_v51 = vmax.f32 %v3723_v53, 0.0  ;;  %v15907_v16 = vpack.c.bf16 %v3920_v50, %v3919_v14  ;;  %v3219_v53 = vadd.f32 %v15682_v56, %v13078_v15  ;;  %v3210_v35 = vpop.f32.mrb[105].mxu0 }
 0x22f   : > { %v4052_v25 = vmax.f32 %v3734_v17, 0.0  ;;  %13321 = vmatmul.mubr.msk.bf16.gmra.mrb[212].mxu1 %vm4240_vm2, %v15827_v54  ;;  %v15911_v3 = vpack.c.bf16 %v3918_v43, %v3917_v55  ;;  %v13079_v61 = vpop.f32.mrb[106].mxu0 }
 0x230   : > { %v4050_v39 = vmax.f32 %v3726_v30, 0.0  ;;  %13324 = vmatprep.mubr.msk.bf16.mxu1 %vm4240_vm2, %v15851_v47  ;;  %v3222_v55 = vadd.f32 %v15682_v56, %v13079_v61  ;;  %v3213_v50 = vpop.f32.mrb[107].mxu0 }
 0x231   : > { %v15905_v63 = vpack.c.bf16 %v4052_v25, %v4051_v34  ;;  %v3211_v25 = vadd.f32 %v15682_v56, %v3210_v35  ;;  %v3923_v34 = vmax.f32 %v3219_v53, 0.0 }
 0x232   : > { %v15909_v0 = vpack.c.bf16 %v4050_v39, %v4049_v51  ;;  %v13210_v8 = vpop.f32.mrb[108].mxu1 }
 0x233   : > { %18082 = vst [vmem:[#allocation30_spill] sm:$0xff] %v15905_v63  ;;  %v3747_v17 = vadd.f32 %v15682_v56, %v13210_v8  ;;  %v3738_v54 = vpop.f32.mrb[109].mxu1  ;;  %v3921_v43 = vmax.f32 %v3211_v25, 0.0  ;;  %v3214_v8 = vadd.f32 %v15682_v56, %v3213_v50 }
 0x234   : > { %18083 = vst [vmem:[#allocation31_spill] sm:$0xff] %v15909_v0  ;;  %v3739_v30 = vadd.f32 %v15682_v56, %v3738_v54  ;;  %v13211_v47 = vpop.f32.mrb[110].mxu1  ;;  %v3924_v54 = vmax.f32 %v3222_v55, 0.0 }
 0x235   : > { %v3750_v14 = vadd.f32 %v15682_v56, %v13211_v47  ;;  %v3741_v39 = vpop.f32.mrb[111].mxu1  ;;  %v4055_v15 = vmax.f32 %v3747_v17, 0.0  ;;  %v3922_v53 = vmax.f32 %v3214_v8, 0.0  ;;  %v13082_v17 = vpop.f32.mrb[108].mxu0 }
 0x236   : > { %v3742_v51 = vadd.f32 %v15682_v56, %v3741_v39  ;;  %v4053_v35 = vmax.f32 %v3739_v30, 0.0  ;;  %v15927_v61 = vpack.c.bf16 %v3924_v54, %v3923_v34  ;;  %v3235_v30 = vadd.f32 %v15682_v56, %v13082_v17  ;;  %v3226_v55 = vpop.f32.mrb[109].mxu0 }
 0x237   : > { %v4056_v63 = vmax.f32 %v3750_v14, 0.0  ;;  %13325 = vmatmul.mubr.msk.bf16.gmra.mrb[216].mxu1 %vm4240_vm2, %v15847_v38  ;;  %v15931_v50 = vpack.c.bf16 %v3922_v53, %v3921_v43  ;;  %v13083_v8 = vpop.f32.mrb[110].mxu0 }
 0x238   : > { %v4054_v0 = vmax.f32 %v3742_v51, 0.0  ;;  %13328 = vmatprep.mubr.msk.bf16.mxu1 %vm4240_vm2, %v15871_v13  ;;  %v3238_v43 = vadd.f32 %v15682_v56, %v13083_v8  ;;  %v3229_v54 = vpop.f32.mrb[111].mxu0 }
 0x239   : > { %v15925_v47 = vpack.c.bf16 %v4056_v63, %v4055_v15  ;;  %v3227_v63 = vadd.f32 %v15682_v56, %v3226_v55  ;;  %v3927_v15 = vmax.f32 %v3235_v30, 0.0 }
 0x23a   : > { %v15929_v39 = vpack.c.bf16 %v4054_v0, %v4053_v35  ;;  %v13214_v25 = vpop.f32.mrb[112].mxu1 }
 0x23b   : > { %18084 = vst [vmem:[#allocation32_spill] sm:$0xff] %v15925_v47  ;;  %v3763_v14 = vadd.f32 %v15682_v56, %v13214_v25  ;;  %v3754_v38 = vpop.f32.mrb[113].mxu1  ;;  %v3925_v53 = vmax.f32 %v3227_v63, 0.0  ;;  %v3230_v25 = vadd.f32 %v15682_v56, %v3229_v54 }
 0x23c   : > { %18085 = vst [vmem:[#allocation33_spill] sm:$0xff] %v15929_v39  ;;  %v3755_v51 = vadd.f32 %v15682_v56, %v3754_v38  ;;  %v13215_v13 = vpop.f32.mrb[114].mxu1  ;;  %v3928_v38 = vmax.f32 %v3238_v43, 0.0 }
 0x23d   : > { %v3766_v34 = vadd.f32 %v15682_v56, %v13215_v13  ;;  %v3757_v0 = vpop.f32.mrb[115].mxu1  ;;  %v4059_v17 = vmax.f32 %v3763_v14, 0.0  ;;  %v3926_v30 = vmax.f32 %v3230_v25, 0.0  ;;  %v13086_v14 = vpop.f32.mrb[112].mxu0 }
 0x23e   : > { %v3758_v35 = vadd.f32 %v15682_v56, %v3757_v0  ;;  %v4057_v55 = vmax.f32 %v3755_v51, 0.0  ;;  %v15947_v8 = vpack.c.bf16 %v3928_v38, %v3927_v15  ;;  %v3251_v51 = vadd.f32 %v15682_v56, %v13086_v14  ;;  %v3242_v43 = vpop.f32.mrb[113].mxu0 }
 0x23f   : > { %v4060_v47 = vmax.f32 %v3766_v34, 0.0  ;;  %13329 = vmatmul.mubr.msk.bf16.gmra.mrb[220].mxu1 %vm4240_vm2, %v15867_v52  ;;  %v15951_v54 = vpack.c.bf16 %v3926_v30, %v3925_v53  ;;  %v13087_v25 = vpop.f32.mrb[114].mxu0 }
 0x240   : > { %v4058_v39 = vmax.f32 %v3758_v35, 0.0  ;;  %13332 = vmatprep.mubr.msk.bf16.mxu1 %vm4240_vm2, %v15891_v5  ;;  %v3254_v53 = vadd.f32 %v15682_v56, %v13087_v25  ;;  %v3245_v38 = vpop.f32.mrb[115].mxu0 }
 0x241   : > { %v15945_v13 = vpack.c.bf16 %v4060_v47, %v4059_v17  ;;  %v3243_v47 = vadd.f32 %v15682_v56, %v3242_v43  ;;  %v3931_v17 = vmax.f32 %v3251_v51, 0.0 }
 0x242   : > { %v15949_v0 = vpack.c.bf16 %v4058_v39, %v4057_v55  ;;  %v13218_v63 = vpop.f32.mrb[116].mxu1 }
 0x243   : > { %18086 = vst [vmem:[#allocation34_spill] sm:$0xff] %v15945_v13  ;;  %v3779_v34 = vadd.f32 %v15682_v56, %v13218_v63  ;;  %v3770_v52 = vpop.f32.mrb[117].mxu1  ;;  %v3929_v30 = vmax.f32 %v3243_v47, 0.0  ;;  %v3246_v63 = vadd.f32 %v15682_v56, %v3245_v38 }
 0x244   : > { %18087 = vst [vmem:[#allocation35_spill] sm:$0xff] %v15949_v0  ;;  %v3771_v35 = vadd.f32 %v15682_v56, %v3770_v52  ;;  %v13219_v5 = vpop.f32.mrb[118].mxu1  ;;  %v3932_v52 = vmax.f32 %v3254_v53, 0.0 }
 0x245   : > { %v3782_v15 = vadd.f32 %v15682_v56, %v13219_v5  ;;  %v3773_v39 = vpop.f32.mrb[119].mxu1  ;;  %v4063_v14 = vmax.f32 %v3779_v34, 0.0  ;;  %v3930_v51 = vmax.f32 %v3246_v63, 0.0  ;;  %v13090_v34 = vpop.f32.mrb[116].mxu0 }
 0x246   : > { %v3774_v55 = vadd.f32 %v15682_v56, %v3773_v39  ;;  %v4061_v43 = vmax.f32 %v3771_v35, 0.0  ;;  %v15967_v25 = vpack.c.bf16 %v3932_v52, %v3931_v17  ;;  %v3267_v35 = vadd.f32 %v15682_v56, %v13090_v34  ;;  %v3258_v53 = vpop.f32.mrb[117].mxu0 }
 0x247   : > { %v4064_v13 = vmax.f32 %v3782_v15, 0.0  ;;  %13333 = vmatmul.mubr.msk.bf16.gmra.mrb[224].mxu1 %vm4240_vm2, %v15887_v59  ;;  %v15971_v38 = vpack.c.bf16 %v3930_v51, %v3929_v30  ;;  %v13091_v63 = vpop.f32.mrb[118].mxu0 }
 0x248   : > { %v4062_v0 = vmax.f32 %v3774_v55, 0.0  ;;  %13336 = vmatprep.mubr.msk.bf16.mxu1 %vm4240_vm2, %v15911_v3  ;;  %v3270_v30 = vadd.f32 %v15682_v56, %v13091_v63  ;;  %v3261_v52 = vpop.f32.mrb[119].mxu0 }
 0x249   : > { %v15965_v5 = vpack.c.bf16 %v4064_v13, %v4063_v14  ;;  %v3259_v13 = vadd.f32 %v15682_v56, %v3258_v53  ;;  %v3935_v14 = vmax.f32 %v3267_v35, 0.0 }
 0x24a   : > { %v15969_v39 = vpack.c.bf16 %v4062_v0, %v4061_v43  ;;  %v13222_v47 = vpop.f32.mrb[120].mxu1 }
 0x24b   : > { %18088 = vst [vmem:[#allocation36_spill] sm:$0xff] %v15965_v5  ;;  %v3795_v15 = vadd.f32 %v15682_v56, %v13222_v47  ;;  %v3786_v59 = vpop.f32.mrb[121].mxu1  ;;  %v3933_v51 = vmax.f32 %v3259_v13, 0.0  ;;  %v3262_v47 = vadd.f32 %v15682_v56, %v3261_v52 }
 0x24c   : > { %18089 = vst [vmem:[#allocation37_spill] sm:$0xff] %v15969_v39  ;;  %v3787_v55 = vadd.f32 %v15682_v56, %v3786_v59  ;;  %v13223_v3 = vpop.f32.mrb[122].mxu1  ;;  %v3936_v59 = vmax.f32 %v3270_v30, 0.0 }
 0x24d   : > { %v3798_v17 = vadd.f32 %v15682_v56, %v13223_v3  ;;  %v3789_v0 = vpop.f32.mrb[123].mxu1  ;;  %v4067_v34 = vmax.f32 %v3795_v15, 0.0  ;;  %v3934_v35 = vmax.f32 %v3262_v47, 0.0  ;;  %v13094_v15 = vpop.f32.mrb[120].mxu0 }
 0x24e   : > { %v3790_v43 = vadd.f32 %v15682_v56, %v3789_v0  ;;  %v4065_v53 = vmax.f32 %v3787_v55, 0.0  ;;  %v15987_v63 = vpack.c.bf16 %v3936_v59, %v3935_v14  ;;  %v3283_v55 = vadd.f32 %v15682_v56, %v13094_v15  ;;  %v3274_v30 = vpop.f32.mrb[121].mxu0 }
 0x24f   : > { %v4068_v5 = vmax.f32 %v3798_v17, 0.0  ;;  %13337 = vmatmul.mubr.msk.bf16.gmra.mrb[228].mxu1 %vm4240_vm2, %v15907_v16  ;;  %v15991_v52 = vpack.c.bf16 %v3934_v35, %v3933_v51  ;;  %v13095_v47 = vpop.f32.mrb[122].mxu0 }
 0x250   : > { %v4066_v39 = vmax.f32 %v3790_v43, 0.0  ;;  %13340 = vmatprep.mubr.msk.bf16.mxu1 %vm4240_vm2, %v15931_v50  ;;  %v3286_v51 = vadd.f32 %v15682_v56, %v13095_v47  ;;  %v3277_v59 = vpop.f32.mrb[123].mxu0 }
 0x251   : > { %v15985_v3 = vpack.c.bf16 %v4068_v5, %v4067_v34  ;;  %v3275_v5 = vadd.f32 %v15682_v56, %v3274_v30  ;;  %v3939_v34 = vmax.f32 %v3283_v55, 0.0  ;;  %v16006_v55 = vld [vmem:[%s18033_s4] ss:$0 sm:$0xff] }
 0x252   : > { %v15989_v0 = vpack.c.bf16 %v4066_v39, %v4065_v53  ;;  %v13226_v13 = vpop.f32.mrb[124].mxu1 }
 0x253   : > { %18090 = vst [vmem:[#allocation38_spill] sm:$0xff] %v15985_v3  ;;  %v3811_v17 = vadd.f32 %v15682_v56, %v13226_v13  ;;  %v3802_v16 = vpop.f32.mrb[125].mxu1  ;;  %v3937_v35 = vmax.f32 %v3275_v5, 0.0  ;;  %v3278_v13 = vadd.f32 %v15682_v56, %v3277_v59 }
 0x254   : > { %18091 = vst [vmem:[#allocation39_spill] sm:$0xff] %v15989_v0  ;;  %v3803_v43 = vadd.f32 %v15682_v56, %v3802_v16  ;;  %v13227_v50 = vpop.f32.mrb[126].mxu1  ;;  %v3940_v16 = vmax.f32 %v3286_v51, 0.0 }
 0x255   : > { %v3814_v14 = vadd.f32 %v15682_v56, %v13227_v50  ;;  %v3805_v39 = vpop.f32.mrb[127].mxu1  ;;  %v4071_v15 = vmax.f32 %v3811_v17, 0.0  ;;  %v3938_v50 = vmax.f32 %v3278_v13, 0.0 }
 0x256   : > { %v3806_v53 = vadd.f32 %v15682_v56, %v3805_v39  ;;  %v4069_v30 = vmax.f32 %v3803_v43, 0.0  ;;  %v16012_v47 = vpack.c.bf16 %v3940_v16, %v3939_v34  ;;  %v13098_v43 = vpop.f32.mrb[124].mxu0 }
 0x257   : > { %v4072_v3 = vmax.f32 %v3814_v14, 0.0  ;;  %13341 = vmatmul.mubr.msk.bf16.gmra.mrb[232].mxu1 %vm4240_vm2, %v15927_v61  ;;  %v16016_v61 = vpack.c.bf16 %v3938_v50, %v3937_v35  ;;  %v3299_v59 = vadd.f32 %v15682_v56, %v13098_v43 }
 0x258   : > { %v4070_v0 = vmax.f32 %v3806_v53, 0.0  ;;  %13344 = vmatprep.mubr.msk.bf16.mxu1 %vm4240_vm2, %v15951_v54  ;;  %v3290_v53 = vpop.f32.mrb[125].mxu0 }
 0x259   : > { %v16010_v5 = vpack.c.bf16 %v4072_v3, %v4071_v15  ;;  %v3291_v3 = vadd.f32 %v15682_v56, %v3290_v53  ;;  %v13099_v13 = vpop.f32.mrb[126].mxu0  ;;  %v3943_v15 = vmax.f32 %v3299_v59, 0.0 }
 0x25a   : > { %v16014_v17 = vpack.c.bf16 %v4070_v0, %v4069_v30  ;;  %v13238_v14 = vpop.f32.mrb[128].mxu1  ;;  %v3302_v35 = vadd.f32 %v15682_v56, %v13099_v13  ;;  %v3293_v16 = vpop.f32.mrb[127].mxu0 }
 0x25b   : > { %18092 = vst [vmem:[#allocation40_spill] sm:$0xff] %v16010_v5  ;;  %v4668_v39 = vadd.f32 %v13238_v14, %v16006_v55  ;;  %v4659_v51 = vpop.f32.mrb[129].mxu1  ;;  %v3941_v50 = vmax.f32 %v3291_v3, 0.0  ;;  %v3294_v14 = vadd.f32 %v15682_v56, %v3293_v16 }
 0x25c   : > { %18093 = vst [vmem:[#allocation41_spill] sm:$0xff] %v16014_v17  ;;  %v4660_v31 = vadd.f32 %v16006_v55, %v4659_v51  ;;  %v13239_v54 = vpop.f32.mrb[130].mxu1  ;;  %v3944_v51 = vmax.f32 %v3302_v35, 0.0 }
 0x25d   : > { %v4671_v34 = vadd.f32 %v13239_v54, %v16006_v55  ;;  %v4662_v0 = vpop.f32.mrb[131].mxu1  ;;  %v5684_v43 = vmax.f32 %v4668_v39, 0.0  ;;  %v3942_v59 = vmax.f32 %v3294_v14, 0.0 }
 0x25e   : > { %v4663_v30 = vadd.f32 %v16006_v55, %v4662_v0  ;;  %v5682_v53 = vmax.f32 %v4660_v31, 0.0  ;;  %v16030_v13 = vpack.c.bf16 %v3944_v51, %v3943_v15 }
 0x25f   : > { %v5685_v5 = vmax.f32 %v4671_v34, 0.0  ;;  %13345 = vmatmul.mubr.msk.bf16.gmra.mrb[236].mxu1 %vm4240_vm2, %v15947_v8  ;;  %v4135_v3 = vpack.c.bf16 %v3942_v59, %v3941_v50  ;;  %v14523_v8 = vld [vmem:[%s18038_s9 + $0x8] sm:$0xff]   ;;  %v14524_v50 = vld [vmem:[%s18038_s9 + $0x10] sm:$0xff]  }
 0x260   : > { %v5683_v17 = vmax.f32 %v4663_v30, 0.0  ;;  %13348 = vmatprep.mubr.msk.bf16.mxu1 %vm4240_vm2, %v15971_v38 }
 0x261   : > { %v5939_v54 = vpack.c.bf16 %v5685_v5, %v5684_v43 }
 0x262   : > { %v5938_v62 = vpack.c.bf16 %v5683_v17, %v5682_v53  ;;  %v13242_v0 = vpop.f32.mrb[132].mxu1 }
 0x263   : > { %v4684_v56 = vadd.f32 %v13242_v0, %v16006_v55  ;;  %v4675_v39 = vpop.f32.mrb[133].mxu1 }
 0x264   : > { %v4676_v31 = vadd.f32 %v16006_v55, %v4675_v39  ;;  %v13243_v34 = vpop.f32.mrb[134].mxu1  ;;  %13500 = vmatprep.mubr.msk.bf16.mxu0 %vm4240_vm2, %v5938_v62 }
 0x265   : > { %v4687_v38 = vadd.f32 %v13243_v34, %v16006_v55  ;;  %v4678_v5 = vpop.f32.mrb[135].mxu1  ;;  %13501 = vmatmul.mubr.msk.bf16.vlgmr.msra.gmra.mrb[128].mxu0 %vm4240_vm2, %v5939_v54  ;;  %v5688_v15 = vmax.f32 %v4684_v56, 0.0 }
 0x266   : > { %v4679_v17 = vadd.f32 %v16006_v55, %v4678_v5  ;;  %14021 = vmatpush3.bf16.msra.mxu0 %v15723_v45  ;;  %v5686_v16 = vmax.f32 %v4676_v31, 0.0 }
 0x267   : > { %v5689_v35 = vmax.f32 %v4687_v38, 0.0  ;;  %13349 = vmatmul.mubr.msk.bf16.gmra.mrb[240].mxu1 %vm4240_vm2, %v15967_v25  ;;  %14022 = vmatprep.subr.bf16.mxu0 %v14523_v8 }
 0x268   : > { %v5687_v30 = vmax.f32 %v4679_v17, 0.0  ;;  %13352 = vmatprep.mubr.msk.bf16.mxu1 %vm4240_vm2, %v15991_v52 }
 0x269   : > { %v5941_v62 = vpack.c.bf16 %v5689_v35, %v5688_v15 }
 0x26a   : > { %v5940_v14 = vpack.c.bf16 %v5687_v30, %v5686_v16  ;;  %v13246_v43 = vpop.f32.mrb[136].mxu1  ;;  %14023 = vmatpush3.bf16.msra.mxu0 %v14523_v8 }
 0x26b   : > { %v4700_v45 = vadd.f32 %v13246_v43, %v16006_v55  ;;  %v4691_v51 = vpop.f32.mrb[137].mxu1  ;;  %14024 = vmatprep.subr.bf16.mxu0 %v14524_v50 }
 0x26c   : > { %v4692_v25 = vadd.f32 %v16006_v55, %v4691_v51  ;;  %v13247_v53 = vpop.f32.mrb[138].mxu1  ;;  %13504 = vmatprep.mubr.msk.bf16.mxu0 %vm4240_vm2, %v5940_v14 }
 0x26d   : > { %v4703_v59 = vadd.f32 %v13247_v53, %v16006_v55  ;;  %v4694_v52 = vpop.f32.mrb[139].mxu1  ;;  %13505 = vmatmul.mubr.msk.bf16.gmra.mrb[132].mxu0 %vm4240_vm2, %v5941_v62  ;;  %v5692_v0 = vmax.f32 %v4700_v45, 0.0 }
 0x26e   : > { %v4695_v54 = vadd.f32 %v16006_v55, %v4694_v52  ;;  %14025 = vmatpush3.bf16.msra.mxu0 %v14524_v50  ;;  %v5690_v39 = vmax.f32 %v4692_v25, 0.0 }
 0x26f   : > { %v5693_v56 = vmax.f32 %v4703_v59, 0.0  ;;  %13353 = vmatmul.mubr.msk.bf16.gmra.mrb[244].mxu1 %vm4240_vm2, %v15987_v63 }
 0x270   : > { %v5691_v8 = vmax.f32 %v4695_v54, 0.0  ;;  %13356 = vmatprep.mubr.msk.bf16.mxu1 %vm4240_vm2, %v16016_v61 }
 0x271   : > { %v5943_v31 = vpack.c.bf16 %v5693_v56, %v5692_v0 }
 0x272   : > { %v5942_v34 = vpack.c.bf16 %v5691_v8, %v5690_v39  ;;  %v13250_v38 = vpop.f32.mrb[140].mxu1 }
 0x273   : > { %v4716_v5 = vadd.f32 %v13250_v38, %v16006_v55  ;;  %v4707_v17 = vpop.f32.mrb[141].mxu1 }
 0x274   : > { %v4708_v15 = vadd.f32 %v16006_v55, %v4707_v17  ;;  %v13251_v35 = vpop.f32.mrb[142].mxu1  ;;  %13508 = vmatprep.mubr.msk.bf16.mxu0 %vm4240_vm2, %v5942_v34 }
 0x275   : > { %v4719_v16 = vadd.f32 %v13251_v35, %v16006_v55  ;;  %v4710_v30 = vpop.f32.mrb[143].mxu1  ;;  %13509 = vmatmul.mubr.msk.bf16.gmra.mrb[136].mxu0 %vm4240_vm2, %v5943_v31  ;;  %v5696_v62 = vmax.f32 %v4716_v5, 0.0 }
 0x276   : > { %v4711_v63 = vadd.f32 %v16006_v55, %v4710_v30  ;;  %v5694_v50 = vmax.f32 %v4708_v15, 0.0 }
 0x277   : > { %v5697_v61 = vmax.f32 %v4719_v16, 0.0  ;;  %13357 = vmatmul.mubr.msk.bf16.gmra.mrb[248].mxu1 %vm4240_vm2, %v16012_v47 }
 0x278   : > { %v5695_v14 = vmax.f32 %v4711_v63, 0.0  ;;  %13360 = vmatprep.mubr.msk.bf16.mxu1 %vm4240_vm2, %v4135_v3 }
 0x279   : > { %v5945_v43 = vpack.c.bf16 %v5697_v61, %v5696_v62 }
 0x27a   : > { %v5944_v45 = vpack.c.bf16 %v5695_v14, %v5694_v50  ;;  %v13254_v51 = vpop.f32.mrb[144].mxu1 }
 0x27b   : > { %v4732_v25 = vadd.f32 %v13254_v51, %v16006_v55  ;;  %v4723_v53 = vpop.f32.mrb[145].mxu1 }
 0x27c   : > { %v4724_v59 = vadd.f32 %v16006_v55, %v4723_v53  ;;  %v13255_v52 = vpop.f32.mrb[146].mxu1  ;;  %13512 = vmatprep.mubr.msk.bf16.mxu0 %vm4240_vm2, %v5944_v45  ;;  %v14525_v45 = vld [vmem:[%s18036_s7 + $0x18] sm:$0xff]  }
 0x27d   : > { %v4735_v54 = vadd.f32 %v13255_v52, %v16006_v55  ;;  %v4726_v0 = vpop.f32.mrb[147].mxu1  ;;  %13513 = vmatmul.mubr.msk.bf16.gmra.mrb[140].mxu0 %vm4240_vm2, %v5945_v43  ;;  %v5700_v56 = vmax.f32 %v4732_v25, 0.0  ;;  %13762 = vmatprep.subr.bf16.mxu1 %v14525_v45 }
 0x27e   : > { %v4727_v47 = vadd.f32 %v16006_v55, %v4726_v0  ;;  %v5698_v39 = vmax.f32 %v4724_v59, 0.0  ;;  %13763 = vmatpush3.bf16.msra.mxu1 %v14525_v45 }
 0x27f   : > { %v5701_v3 = vmax.f32 %v4735_v54, 0.0  ;;  %13361 = vmatmul.mubr.msk.bf16.gmra.mrb[252].mxu1 %vm4240_vm2, %v16030_v13 }
 0x280   : > { %v5699_v8 = vmax.f32 %v4727_v47, 0.0  ;;  %13364 = vmatprep.mubr.msk.bf16.mxu1 %vm4240_vm2, %v15349_v7 }
 0x281   : > { %v5947_v31 = vpack.c.bf16 %v5701_v3, %v5700_v56 }
 0x282   : > { %v5946_v34 = vpack.c.bf16 %v5699_v8, %v5698_v39  ;;  %v13258_v38 = vpop.f32.mrb[148].mxu1 }
 0x283   : > { %v4748_v5 = vadd.f32 %v13258_v38, %v16006_v55  ;;  %v4739_v17 = vpop.f32.mrb[149].mxu1 }
 0x284   : > { %v4740_v15 = vadd.f32 %v16006_v55, %v4739_v17  ;;  %v13259_v35 = vpop.f32.mrb[150].mxu1  ;;  %13516 = vmatprep.mubr.msk.bf16.mxu0 %vm4240_vm2, %v5946_v34 }
 0x285   : > { %v4751_v16 = vadd.f32 %v13259_v35, %v16006_v55  ;;  %v4742_v30 = vpop.f32.mrb[151].mxu1  ;;  %13517 = vmatmul.mubr.msk.bf16.gmra.mrb[144].mxu0 %vm4240_vm2, %v5947_v31  ;;  %v5704_v63 = vmax.f32 %v4748_v5, 0.0 }
 0x286   : > { %v4743_v13 = vadd.f32 %v16006_v55, %v4742_v30  ;;  %v5702_v62 = vmax.f32 %v4740_v15, 0.0 }
 0x287   : > { %v5705_v7 = vmax.f32 %v4751_v16, 0.0  ;;  %13365 = vmatmul.mubr.msk.bf16.gmra.mrb[0].mxu1 %vm4240_vm2, %v15347_v6 }
 0x288   : > { %v5703_v61 = vmax.f32 %v4743_v13, 0.0  ;;  %13368 = vmatprep.mubr.msk.bf16.mxu1 %vm4240_vm2, %v15374_v40 }
 0x289   : > { %v5949_v50 = vpack.c.bf16 %v5705_v7, %v5704_v63 }
 0x28a   : > { %v5948_v14 = vpack.c.bf16 %v5703_v61, %v5702_v62  ;;  %v13262_v43 = vpop.f32.mrb[152].mxu1 }
 0x28b   : > { %v4764_v51 = vadd.f32 %v13262_v43, %v16006_v55  ;;  %v4755_v25 = vpop.f32.mrb[153].mxu1 }
 0x28c   : > { %v4756_v53 = vadd.f32 %v16006_v55, %v4755_v25  ;;  %v13263_v59 = vpop.f32.mrb[154].mxu1  ;;  %13520 = vmatprep.mubr.msk.bf16.mxu0 %vm4240_vm2, %v5948_v14 }
 0x28d   : > { %v4767_v6 = vadd.f32 %v13263_v59, %v16006_v55  ;;  %v4758_v52 = vpop.f32.mrb[155].mxu1  ;;  %13521 = vmatmul.mubr.msk.bf16.gmra.mrb[148].mxu0 %vm4240_vm2, %v5949_v50  ;;  %v5708_v54 = vmax.f32 %v4764_v51, 0.0 }
 0x28e   : > { %v4759_v40 = vadd.f32 %v16006_v55, %v4758_v52  ;;  %v5706_v47 = vmax.f32 %v4756_v53, 0.0 }
 0x28f   : > { %v5709_v0 = vmax.f32 %v4767_v6, 0.0  ;;  %13369 = vmatmul.mubr.msk.bf16.gmra.mrb[4].mxu1 %vm4240_vm2, %v15367_v37 }
 0x290   : > { %v5707_v56 = vmax.f32 %v4759_v40, 0.0  ;;  %13372 = vmatprep.mubr.msk.bf16.mxu1 %vm4240_vm2, %v15398_v11 }
 0x291   : > { %v5951_v3 = vpack.c.bf16 %v5709_v0, %v5708_v54 }
 0x292   : > { %v5950_v39 = vpack.c.bf16 %v5707_v56, %v5706_v47  ;;  %v13266_v8 = vpop.f32.mrb[156].mxu1 }
 0x293   : > { %v4780_v31 = vadd.f32 %v13266_v8, %v16006_v55  ;;  %v4771_v34 = vpop.f32.mrb[157].mxu1 }
 0x294   : > { %v4772_v38 = vadd.f32 %v16006_v55, %v4771_v34  ;;  %v13267_v5 = vpop.f32.mrb[158].mxu1  ;;  %13524 = vmatprep.mubr.msk.bf16.mxu0 %vm4240_vm2, %v5950_v39 }
 0x295   : > { %v4783_v17 = vadd.f32 %v13267_v5, %v16006_v55  ;;  %v4774_v15 = vpop.f32.mrb[159].mxu1  ;;  %13525 = vmatmul.mubr.msk.bf16.gmra.mrb[152].mxu0 %vm4240_vm2, %v5951_v3  ;;  %v5712_v35 = vmax.f32 %v4780_v31, 0.0 }
 0x296   : > { %v4775_v37 = vadd.f32 %v16006_v55, %v4774_v15  ;;  %v5710_v16 = vmax.f32 %v4772_v38, 0.0  ;;  %v14526_v38 = vld [vmem:[%s18038_s9 + $0x18] sm:$0xff]  }
 0x297   : > { %v5713_v11 = vmax.f32 %v4783_v17, 0.0  ;;  %13373 = vmatmul.mubr.msk.bf16.gmra.mrb[8].mxu1 %vm4240_vm2, %v15394_v9  ;;  %14026 = vmatprep.subr.bf16.mxu0 %v14526_v38 }
 0x298   : > { %v5711_v30 = vmax.f32 %v4775_v37, 0.0  ;;  %13376 = vmatprep.mubr.msk.bf16.mxu1 %vm4240_vm2, %v15422_v48  ;;  %14027 = vmatpush3.bf16.msra.mxu0 %v14526_v38 }
 0x299   : > { %v5953_v13 = vpack.c.bf16 %v5713_v11, %v5712_v35 }
 0x29a   : > { %v5952_v63 = vpack.c.bf16 %v5711_v30, %v5710_v16  ;;  %v13270_v7 = vpop.f32.mrb[160].mxu1 }
 0x29b   : > { %v4796_v62 = vadd.f32 %v13270_v7, %v16006_v55  ;;  %v4787_v61 = vpop.f32.mrb[161].mxu1 }
 0x29c   : > { %v4788_v50 = vadd.f32 %v16006_v55, %v4787_v61  ;;  %v13271_v14 = vpop.f32.mrb[162].mxu1  ;;  %13528 = vmatprep.mubr.msk.bf16.mxu0 %vm4240_vm2, %v5952_v63 }
 0x29d   : > { %v4799_v43 = vadd.f32 %v13271_v14, %v16006_v55  ;;  %v4790_v45 = vpop.f32.mrb[163].mxu1  ;;  %13529 = vmatmul.mubr.msk.bf16.gmra.mrb[156].mxu0 %vm4240_vm2, %v5953_v13  ;;  %v5716_v51 = vmax.f32 %v4796_v62, 0.0 }
 0x29e   : > { %v4791_v9 = vadd.f32 %v16006_v55, %v4790_v45  ;;  %v5714_v25 = vmax.f32 %v4788_v50, 0.0 }
 0x29f   : > { %v5717_v48 = vmax.f32 %v4799_v43, 0.0  ;;  %13377 = vmatmul.mubr.msk.bf16.gmra.mrb[12].mxu1 %vm4240_vm2, %v15418_v46 }
 0x2a0   : > { %v5715_v53 = vmax.f32 %v4791_v9, 0.0  ;;  %13380 = vmatprep.mubr.msk.bf16.mxu1 %vm4240_vm2, %v15446_v23 }
 0x2a1   : > { %v5955_v59 = vpack.c.bf16 %v5717_v48, %v5716_v51 }
 0x2a2   : > { %v5954_v6 = vpack.c.bf16 %v5715_v53, %v5714_v25  ;;  %v13274_v52 = vpop.f32.mrb[164].mxu1 }
 0x2a3   : > { %v4812_v40 = vadd.f32 %v13274_v52, %v16006_v55  ;;  %v4803_v54 = vpop.f32.mrb[165].mxu1 }
 0x2a4   : > { %v4804_v0 = vadd.f32 %v16006_v55, %v4803_v54  ;;  %v13275_v47 = vpop.f32.mrb[166].mxu1  ;;  %13532 = vmatprep.mubr.msk.bf16.mxu0 %vm4240_vm2, %v5954_v6 }
 0x2a5   : > { %v4815_v56 = vadd.f32 %v13275_v47, %v16006_v55  ;;  %v4806_v3 = vpop.f32.mrb[167].mxu1  ;;  %13533 = vmatmul.mubr.msk.bf16.gmra.mrb[160].mxu0 %vm4240_vm2, %v5955_v59  ;;  %v5720_v39 = vmax.f32 %v4812_v40, 0.0 }
 0x2a6   : > { %v4807_v46 = vadd.f32 %v16006_v55, %v4806_v3  ;;  %v5718_v8 = vmax.f32 %v4804_v0, 0.0 }
 0x2a7   : > { %v5721_v23 = vmax.f32 %v4815_v56, 0.0  ;;  %13381 = vmatmul.mubr.msk.bf16.gmra.mrb[16].mxu1 %vm4240_vm2, %v15442_v21 }
 0x2a8   : > { %v5719_v31 = vmax.f32 %v4807_v46, 0.0  ;;  %13384 = vmatprep.mubr.msk.bf16.mxu1 %vm4240_vm2, %v15469_v60 }
 0x2a9   : > { %v5957_v34 = vpack.c.bf16 %v5721_v23, %v5720_v39 }
 0x2aa   : > { %v5956_v5 = vpack.c.bf16 %v5719_v31, %v5718_v8  ;;  %v13278_v17 = vpop.f32.mrb[168].mxu1 }
 0x2ab   : > { %v4828_v15 = vadd.f32 %v13278_v17, %v16006_v55  ;;  %v4819_v37 = vpop.f32.mrb[169].mxu1 }
 0x2ac   : > { %v4820_v35 = vadd.f32 %v16006_v55, %v4819_v37  ;;  %v13279_v11 = vpop.f32.mrb[170].mxu1  ;;  %13536 = vmatprep.mubr.msk.bf16.mxu0 %vm4240_vm2, %v5956_v5 }
 0x2ad   : > { %v4831_v21 = vadd.f32 %v13279_v11, %v16006_v55  ;;  %v4822_v60 = vpop.f32.mrb[171].mxu1  ;;  %13537 = vmatmul.mubr.msk.bf16.gmra.mrb[164].mxu0 %vm4240_vm2, %v5957_v34  ;;  %v5724_v30 = vmax.f32 %v4828_v15, 0.0 }
 0x2ae   : > { %v4823_v16 = vadd.f32 %v16006_v55, %v4822_v60  ;;  %v5722_v63 = vmax.f32 %v4820_v35, 0.0 }
 0x2af   : > { %v5725_v13 = vmax.f32 %v4831_v21, 0.0  ;;  %13385 = vmatmul.mubr.msk.bf16.gmra.mrb[20].mxu1 %vm4240_vm2, %v15465_v58 }
 0x2b0   : > { %v5723_v7 = vmax.f32 %v4823_v16, 0.0  ;;  %13388 = vmatprep.mubr.msk.bf16.mxu1 %vm4240_vm2, %v15492_v32 }
 0x2b1   : > { %v5959_v62 = vpack.c.bf16 %v5725_v13, %v5724_v30 }
 0x2b2   : > { %v5958_v61 = vpack.c.bf16 %v5723_v7, %v5722_v63  ;;  %v13282_v50 = vpop.f32.mrb[172].mxu1 }
 0x2b3   : > { %v4844_v14 = vadd.f32 %v13282_v50, %v16006_v55  ;;  %v4835_v43 = vpop.f32.mrb[173].mxu1 }
 0x2b4   : > { %v4836_v45 = vadd.f32 %v16006_v55, %v4835_v43  ;;  %v13283_v9 = vpop.f32.mrb[174].mxu1  ;;  %13540 = vmatprep.mubr.msk.bf16.mxu0 %vm4240_vm2, %v5958_v61 }
 0x2b5   : > { %v4847_v51 = vadd.f32 %v13283_v9, %v16006_v55  ;;  %v4838_v48 = vpop.f32.mrb[175].mxu1  ;;  %13541 = vmatmul.mubr.msk.bf16.gmra.mrb[168].mxu0 %vm4240_vm2, %v5959_v62  ;;  %v5728_v25 = vmax.f32 %v4844_v14, 0.0 }
 0x2b6   : > { %v4839_v58 = vadd.f32 %v16006_v55, %v4838_v48  ;;  %v5726_v53 = vmax.f32 %v4836_v45, 0.0 }
 0x2b7   : > { %v5729_v32 = vmax.f32 %v4847_v51, 0.0  ;;  %13389 = vmatmul.mubr.msk.bf16.gmra.mrb[24].mxu1 %vm4240_vm2, %v15488_v42 }
 0x2b8   : > { %v5727_v59 = vmax.f32 %v4839_v58, 0.0  ;;  %13392 = vmatprep.mubr.msk.bf16.mxu1 %vm4240_vm2, %v15512_v4 }
 0x2b9   : > { %v5961_v6 = vpack.c.bf16 %v5729_v32, %v5728_v25 }
 0x2ba   : > { %v5960_v52 = vpack.c.bf16 %v5727_v59, %v5726_v53  ;;  %v13286_v40 = vpop.f32.mrb[176].mxu1 }
 0x2bb   : > { %v4860_v54 = vadd.f32 %v13286_v40, %v16006_v55  ;;  %v4851_v0 = vpop.f32.mrb[177].mxu1 }
 0x2bc   : > { %v4852_v47 = vadd.f32 %v16006_v55, %v4851_v0  ;;  %v13287_v56 = vpop.f32.mrb[178].mxu1  ;;  %13544 = vmatprep.mubr.msk.bf16.mxu0 %vm4240_vm2, %v5960_v52 }
 0x2bd   : > { %v4863_v3 = vadd.f32 %v13287_v56, %v16006_v55  ;;  %v4854_v46 = vpop.f32.mrb[179].mxu1  ;;  %13545 = vmatmul.mubr.msk.bf16.gmra.mrb[172].mxu0 %vm4240_vm2, %v5961_v6  ;;  %v5732_v39 = vmax.f32 %v4860_v54, 0.0 }
 0x2be   : > { %v4855_v42 = vadd.f32 %v16006_v55, %v4854_v46  ;;  %v5730_v23 = vmax.f32 %v4852_v47, 0.0 }
 0x2bf   : > { %v5733_v4 = vmax.f32 %v4863_v3, 0.0  ;;  %13393 = vmatmul.mubr.msk.bf16.gmra.mrb[28].mxu1 %vm4240_vm2, %v15508_v2 }
 0x2c0   : > { %v5731_v8 = vmax.f32 %v4855_v42, 0.0  ;;  %13396 = vmatprep.mubr.msk.bf16.mxu1 %vm4240_vm2, %v15532_v49 }
 0x2c1   : > { %v5963_v31 = vpack.c.bf16 %v5733_v4, %v5732_v39 }
 0x2c2   : > { %v5962_v34 = vpack.c.bf16 %v5731_v8, %v5730_v23  ;;  %v13290_v38 = vpop.f32.mrb[180].mxu1 }
 0x2c3   : > { %v4876_v5 = vadd.f32 %v13290_v38, %v16006_v55  ;;  %v4867_v17 = vpop.f32.mrb[181].mxu1 }
 0x2c4   : > { %v4868_v15 = vadd.f32 %v16006_v55, %v4867_v17  ;;  %v13291_v37 = vpop.f32.mrb[182].mxu1  ;;  %13548 = vmatprep.mubr.msk.bf16.mxu0 %vm4240_vm2, %v5962_v34 }
 0x2c5   : > { %v4879_v35 = vadd.f32 %v13291_v37, %v16006_v55  ;;  %v4870_v11 = vpop.f32.mrb[183].mxu1  ;;  %13549 = vmatmul.mubr.msk.bf16.gmra.mrb[176].mxu0 %vm4240_vm2, %v5963_v31  ;;  %v5736_v21 = vmax.f32 %v4876_v5, 0.0 }
 0x2c6   : > { %v4871_v2 = vadd.f32 %v16006_v55, %v4870_v11  ;;  %v5734_v60 = vmax.f32 %v4868_v15, 0.0 }
 0x2c7   : > { %v5737_v49 = vmax.f32 %v4879_v35, 0.0  ;;  %13397 = vmatmul.mubr.msk.bf16.gmra.mrb[32].mxu1 %vm4240_vm2, %v15528_v44 }
 0x2c8   : > { %v5735_v16 = vmax.f32 %v4871_v2, 0.0  ;;  %13400 = vmatprep.mubr.msk.bf16.mxu1 %vm4240_vm2, %v15555_v28 }
 0x2c9   : > { %v5965_v30 = vpack.c.bf16 %v5737_v49, %v5736_v21 }
 0x2ca   : > { %v5964_v13 = vpack.c.bf16 %v5735_v16, %v5734_v60  ;;  %v13294_v63 = vpop.f32.mrb[184].mxu1 }
 0x2cb   : > { %v4892_v7 = vadd.f32 %v13294_v63, %v16006_v55  ;;  %v4883_v62 = vpop.f32.mrb[185].mxu1 }
 0x2cc   : > { %v4884_v61 = vadd.f32 %v16006_v55, %v4883_v62  ;;  %v13295_v50 = vpop.f32.mrb[186].mxu1  ;;  %13552 = vmatprep.mubr.msk.bf16.mxu0 %vm4240_vm2, %v5964_v13 }
 0x2cd   : > { %v4895_v14 = vadd.f32 %v13295_v50, %v16006_v55  ;;  %v4886_v43 = vpop.f32.mrb[187].mxu1  ;;  %13553 = vmatmul.mubr.msk.bf16.gmra.mrb[180].mxu0 %vm4240_vm2, %v5965_v30  ;;  %v5740_v45 = vmax.f32 %v4892_v7, 0.0  ;;  %v14527_v7 = vld [vmem:[%s18038_s9 + $0x20] sm:$0xff]  }
 0x2ce   : > { %v4887_v44 = vadd.f32 %v16006_v55, %v4886_v43  ;;  %v5738_v9 = vmax.f32 %v4884_v61, 0.0  ;;  %14028 = vmatprep.subr.bf16.mxu0 %v14527_v7 }
 0x2cf   : > { %v5741_v28 = vmax.f32 %v4895_v14, 0.0  ;;  %13401 = vmatmul.mubr.msk.bf16.gmra.mrb[36].mxu1 %vm4240_vm2, %v15548_v24  ;;  %14029 = vmatpush3.bf16.msra.mxu0 %v14527_v7 }
 0x2d0   : > { %v5739_v51 = vmax.f32 %v4887_v44, 0.0  ;;  %13404 = vmatprep.mubr.msk.bf16.mxu1 %vm4240_vm2, %v15575_v12 }
 0x2d1   : > { %v5967_v48 = vpack.c.bf16 %v5741_v28, %v5740_v45 }
 0x2d2   : > { %v5966_v58 = vpack.c.bf16 %v5739_v51, %v5738_v9  ;;  %v13298_v25 = vpop.f32.mrb[188].mxu1 }
 0x2d3   : > { %v4908_v32 = vadd.f32 %v13298_v25, %v16006_v55  ;;  %v4899_v53 = vpop.f32.mrb[189].mxu1 }
 0x2d4   : > { %v4900_v59 = vadd.f32 %v16006_v55, %v4899_v53  ;;  %v13299_v6 = vpop.f32.mrb[190].mxu1  ;;  %13556 = vmatprep.mubr.msk.bf16.mxu0 %vm4240_vm2, %v5966_v58 }
 0x2d5   : > { %v4911_v52 = vadd.f32 %v13299_v6, %v16006_v55  ;;  %v4902_v40 = vpop.f32.mrb[191].mxu1  ;;  %13557 = vmatmul.mubr.msk.bf16.gmra.mrb[184].mxu0 %vm4240_vm2, %v5967_v48  ;;  %v5744_v54 = vmax.f32 %v4908_v32, 0.0 }
 0x2d6   : > { %v4903_v24 = vadd.f32 %v16006_v55, %v4902_v40  ;;  %v5742_v0 = vmax.f32 %v4900_v59, 0.0 }
 0x2d7   : > { %v5745_v12 = vmax.f32 %v4911_v52, 0.0  ;;  %13405 = vmatmul.mubr.msk.bf16.gmra.mrb[40].mxu1 %vm4240_vm2, %v15571_v1 }
 0x2d8   : > { %v5743_v47 = vmax.f32 %v4903_v24, 0.0  ;;  %13408 = vmatprep.mubr.msk.bf16.mxu1 %vm4240_vm2, %v15595_v57 }
 0x2d9   : > { %v5969_v56 = vpack.c.bf16 %v5745_v12, %v5744_v54 }
 0x2da   : > { %v5968_v3 = vpack.c.bf16 %v5743_v47, %v5742_v0  ;;  %v13302_v46 = vpop.f32.mrb[192].mxu1 }
 0x2db   : > { %v4924_v42 = vadd.f32 %v13302_v46, %v16006_v55  ;;  %v4915_v39 = vpop.f32.mrb[193].mxu1 }
 0x2dc   : > { %v4916_v4 = vadd.f32 %v16006_v55, %v4915_v39  ;;  %v13303_v23 = vpop.f32.mrb[194].mxu1  ;;  %13560 = vmatprep.mubr.msk.bf16.mxu0 %vm4240_vm2, %v5968_v3 }
 0x2dd   : > { %v4927_v8 = vadd.f32 %v13303_v23, %v16006_v55  ;;  %v4918_v31 = vpop.f32.mrb[195].mxu1  ;;  %13561 = vmatmul.mubr.msk.bf16.gmra.mrb[188].mxu0 %vm4240_vm2, %v5969_v56  ;;  %v5748_v34 = vmax.f32 %v4924_v42, 0.0 }
 0x2de   : > { %v4919_v1 = vadd.f32 %v16006_v55, %v4918_v31  ;;  %v5746_v38 = vmax.f32 %v4916_v4, 0.0 }
 0x2df   : > { %v5749_v57 = vmax.f32 %v4927_v8, 0.0  ;;  %13409 = vmatmul.mubr.msk.bf16.gmra.mrb[44].mxu1 %vm4240_vm2, %v15591_v22 }
 0x2e0   : > { %v5747_v5 = vmax.f32 %v4919_v1, 0.0  ;;  %13412 = vmatprep.mubr.msk.bf16.mxu1 %vm4240_vm2, %v15615_v41 }
 0x2e1   : > { %v5971_v17 = vpack.c.bf16 %v5749_v57, %v5748_v34 }
 0x2e2   : > { %v5970_v15 = vpack.c.bf16 %v5747_v5, %v5746_v38  ;;  %v13306_v37 = vpop.f32.mrb[196].mxu1 }
 0x2e3   : > { %v4940_v35 = vadd.f32 %v13306_v37, %v16006_v55  ;;  %v4931_v11 = vpop.f32.mrb[197].mxu1 }
 0x2e4   : > { %v4932_v2 = vadd.f32 %v16006_v55, %v4931_v11  ;;  %v13307_v21 = vpop.f32.mrb[198].mxu1  ;;  %13564 = vmatprep.mubr.msk.bf16.mxu0 %vm4240_vm2, %v5970_v15 }
 0x2e5   : > { %v4943_v49 = vadd.f32 %v13307_v21, %v16006_v55  ;;  %v4934_v60 = vpop.f32.mrb[199].mxu1  ;;  %13565 = vmatmul.mubr.msk.bf16.gmra.mrb[192].mxu0 %vm4240_vm2, %v5971_v17  ;;  %v5752_v16 = vmax.f32 %v4940_v35, 0.0 }
 0x2e6   : > { %v4935_v22 = vadd.f32 %v16006_v55, %v4934_v60  ;;  %v5750_v30 = vmax.f32 %v4932_v2, 0.0 }
 0x2e7   : > { %v5753_v41 = vmax.f32 %v4943_v49, 0.0  ;;  %13413 = vmatmul.mubr.msk.bf16.gmra.mrb[48].mxu1 %vm4240_vm2, %v15611_v10 }
 0x2e8   : > { %v5751_v13 = vmax.f32 %v4935_v22, 0.0  ;;  %13416 = vmatprep.mubr.msk.bf16.mxu1 %vm4240_vm2, %v15635_v33  ;;  %v18094_v22 = vld [vmem:[#allocation13_spill] sm:$0xff] }
 0x2e9   : > { %v5973_v63 = vpack.c.bf16 %v5753_v41, %v5752_v16 }
 0x2ea   : > { %v5972_v62 = vpack.c.bf16 %v5751_v13, %v5750_v30  ;;  %v13310_v61 = vpop.f32.mrb[200].mxu1 }
 0x2eb   : > { %v4956_v50 = vadd.f32 %v13310_v61, %v16006_v55  ;;  %v4947_v14 = vpop.f32.mrb[201].mxu1 }
 0x2ec   : > { %v4948_v43 = vadd.f32 %v16006_v55, %v4947_v14  ;;  %v13311_v44 = vpop.f32.mrb[202].mxu1  ;;  %13568 = vmatprep.mubr.msk.bf16.mxu0 %vm4240_vm2, %v5972_v62 }
 0x2ed   : > { %v4959_v10 = vadd.f32 %v13311_v44, %v16006_v55  ;;  %v4950_v33 = vpop.f32.mrb[203].mxu1  ;;  %13569 = vmatmul.mubr.msk.bf16.gmra.mrb[196].mxu0 %vm4240_vm2, %v5973_v63  ;;  %v5756_v28 = vmax.f32 %v4956_v50, 0.0  ;;  %v18095_v44 = vld [vmem:[#allocation12_spill] sm:$0xff] }
 0x2ee   : > { %v4951_v45 = vadd.f32 %v16006_v55, %v4950_v33  ;;  %v5754_v51 = vmax.f32 %v4948_v43, 0.0 }
 0x2ef   : > { %v5757_v9 = vmax.f32 %v4959_v10, 0.0  ;;  %13417 = vmatmul.mubr.msk.bf16.gmra.mrb[52].mxu1 %vm4240_vm2, %v15631_v29 }
 0x2f0   : > { %v5755_v48 = vmax.f32 %v4951_v45, 0.0  ;;  %13420 = vmatprep.mubr.msk.bf16.mxu1 %vm4240_vm2, %v15655_v20  ;;  %v18096_v45 = vld [vmem:[#allocation15_spill] sm:$0xff] }
 0x2f1   : > { %v5975_v58 = vpack.c.bf16 %v5757_v9, %v5756_v28 }
 0x2f2   : > { %v5974_v25 = vpack.c.bf16 %v5755_v48, %v5754_v51  ;;  %v13314_v32 = vpop.f32.mrb[204].mxu1 }
 0x2f3   : > { %v4972_v53 = vadd.f32 %v13314_v32, %v16006_v55  ;;  %v4963_v59 = vpop.f32.mrb[205].mxu1 }
 0x2f4   : > { %v4964_v6 = vadd.f32 %v16006_v55, %v4963_v59  ;;  %v13315_v52 = vpop.f32.mrb[206].mxu1  ;;  %13572 = vmatprep.mubr.msk.bf16.mxu0 %vm4240_vm2, %v5974_v25 }
 0x2f5   : > { %v4975_v40 = vadd.f32 %v13315_v52, %v16006_v55  ;;  %v4966_v24 = vpop.f32.mrb[207].mxu1  ;;  %13573 = vmatmul.mubr.msk.bf16.gmra.mrb[200].mxu0 %vm4240_vm2, %v5975_v58  ;;  %v5760_v54 = vmax.f32 %v4972_v53, 0.0 }
 0x2f6   : > { %v4967_v29 = vadd.f32 %v16006_v55, %v4966_v24  ;;  %v5758_v12 = vmax.f32 %v4964_v6, 0.0  ;;  %v18097_v24 = vld [vmem:[#allocation14_spill] sm:$0xff] }
 0x2f7   : > { %v5761_v20 = vmax.f32 %v4975_v40, 0.0  ;;  %13421 = vmatmul.mubr.msk.bf16.gmra.mrb[56].mxu1 %vm4240_vm2, %v15651_v19 }
 0x2f8   : > { %v5759_v0 = vmax.f32 %v4967_v29, 0.0  ;;  %13424 = vmatprep.mubr.msk.bf16.mxu1 %vm4240_vm2, %v15675_v27 }
 0x2f9   : > { %v5977_v47 = vpack.c.bf16 %v5761_v20, %v5760_v54  ;;  %v18098_v20 = vld [vmem:[#allocation17_spill] sm:$0xff] }
 0x2fa   : > { %v5976_v56 = vpack.c.bf16 %v5759_v0, %v5758_v12  ;;  %v13318_v3 = vpop.f32.mrb[208].mxu1 }
 0x2fb   : > { %v4988_v46 = vadd.f32 %v13318_v3, %v16006_v55  ;;  %v4979_v42 = vpop.f32.mrb[209].mxu1 }
 0x2fc   : > { %v4980_v39 = vadd.f32 %v16006_v55, %v4979_v42  ;;  %v13319_v4 = vpop.f32.mrb[210].mxu1  ;;  %13576 = vmatprep.mubr.msk.bf16.mxu0 %vm4240_vm2, %v5976_v56 }
 0x2fd   : > { %v4991_v23 = vadd.f32 %v13319_v4, %v16006_v55  ;;  %v4982_v8 = vpop.f32.mrb[211].mxu1  ;;  %13577 = vmatmul.mubr.msk.bf16.gmra.mrb[204].mxu0 %vm4240_vm2, %v5977_v47  ;;  %v5764_v31 = vmax.f32 %v4988_v46, 0.0 }
 0x2fe   : > { %v4983_v19 = vadd.f32 %v16006_v55, %v4982_v8  ;;  %v5762_v1 = vmax.f32 %v4980_v39, 0.0 }
 0x2ff   : > { %v5765_v27 = vmax.f32 %v4991_v23, 0.0  ;;  %13425 = vmatmul.mubr.msk.bf16.gmra.mrb[60].mxu1 %vm4240_vm2, %v15671_v18 }
 0x300   : > { %v5763_v34 = vmax.f32 %v4983_v19, 0.0  ;;  %13428 = vmatprep.mubr.msk.bf16.mxu1 %vm4240_vm2, %v15700_v26 }
 0x301   : > { %v5979_v57 = vpack.c.bf16 %v5765_v27, %v5764_v31  ;;  %v18099_v31 = vld [vmem:[#allocation16_spill] sm:$0xff] }
 0x302   : > { %v5978_v38 = vpack.c.bf16 %v5763_v34, %v5762_v1  ;;  %v13322_v5 = vpop.f32.mrb[212].mxu1  ;;  %v18100_v34 = vld [vmem:[#allocation19_spill] sm:$0xff] }
 0x303   : > { %v5004_v17 = vadd.f32 %v13322_v5, %v16006_v55  ;;  %v4995_v15 = vpop.f32.mrb[213].mxu1 }
 0x304   : > { %v4996_v37 = vadd.f32 %v16006_v55, %v4995_v15  ;;  %v13323_v35 = vpop.f32.mrb[214].mxu1  ;;  %13580 = vmatprep.mubr.msk.bf16.mxu0 %vm4240_vm2, %v5978_v38 }
 0x305   : > { %v5007_v11 = vadd.f32 %v13323_v35, %v16006_v55  ;;  %v4998_v2 = vpop.f32.mrb[215].mxu1  ;;  %13581 = vmatmul.mubr.msk.bf16.gmra.mrb[208].mxu0 %vm4240_vm2, %v5979_v57  ;;  %v5768_v21 = vmax.f32 %v5004_v17, 0.0 }
 0x306   : > { %v4999_v18 = vadd.f32 %v16006_v55, %v4998_v2  ;;  %v5766_v49 = vmax.f32 %v4996_v37, 0.0 }
 0x307   : > { %v5769_v26 = vmax.f32 %v5007_v11, 0.0  ;;  %13429 = vmatmul.mubr.msk.bf16.gmra.mrb[64].mxu1 %vm4240_vm2, %v15696_v36 }
 0x308   : > { %v5767_v60 = vmax.f32 %v4999_v18, 0.0  ;;  %13432 = vmatprep.mubr.msk.bf16.mxu1 %vm4240_vm2, %v18094_v22 }
 0x309   : > { %v5981_v16 = vpack.c.bf16 %v5769_v26, %v5768_v21 }
 0x30a   : > { %v5980_v41 = vpack.c.bf16 %v5767_v60, %v5766_v49  ;;  %v13326_v30 = vpop.f32.mrb[216].mxu1  ;;  %v18101_v49 = vld [vmem:[#allocation18_spill] sm:$0xff] }
 0x30b   : > { %v5020_v13 = vadd.f32 %v13326_v30, %v16006_v55  ;;  %v5011_v63 = vpop.f32.mrb[217].mxu1  ;;  %v14528_v30 = vld [vmem:[%s18038_s9 + $0x28] sm:$0xff]  }
 0x30c   : > { %v5012_v7 = vadd.f32 %v16006_v55, %v5011_v63  ;;  %v13327_v62 = vpop.f32.mrb[218].mxu1  ;;  %13584 = vmatprep.mubr.msk.bf16.mxu0 %vm4240_vm2, %v5980_v41  ;;  %14030 = vmatprep.subr.bf16.mxu0 %v14528_v30 }
 0x30d   : > { %v5023_v61 = vadd.f32 %v13327_v62, %v16006_v55  ;;  %v5014_v50 = vpop.f32.mrb[219].mxu1  ;;  %13585 = vmatmul.mubr.msk.bf16.gmra.mrb[212].mxu0 %vm4240_vm2, %v5981_v16  ;;  %v5772_v14 = vmax.f32 %v5020_v13, 0.0  ;;  %v18102_v16 = vld [vmem:[#allocation21_spill] sm:$0xff] }
 0x30e   : > { %v5015_v36 = vadd.f32 %v16006_v55, %v5014_v50  ;;  %v5770_v10 = vmax.f32 %v5012_v7, 0.0  ;;  %14031 = vmatpush3.bf16.msra.mxu0 %v14528_v30 }
 0x30f   : > { %v5773_v43 = vmax.f32 %v5023_v61, 0.0  ;;  %13433 = vmatmul.mubr.msk.bf16.gmra.mrb[68].mxu1 %vm4240_vm2, %v18095_v44 }
 0x310   : > { %v5771_v33 = vmax.f32 %v5015_v36, 0.0  ;;  %13436 = vmatprep.mubr.msk.bf16.mxu1 %vm4240_vm2, %v18096_v45  ;;  %v16306_v36 = vld [vmem:[%s18033_s4] ss:$0 sm:$0xff]  ;;  %v18103_v45 = vld [vmem:[#allocation20_spill] sm:$0xff] }
 0x311   : > { %v5983_v28 = vpack.c.bf16 %v5773_v43, %v5772_v14 }
 0x312   : > { %v5982_v9 = vpack.c.bf16 %v5771_v33, %v5770_v10  ;;  %v13330_v51 = vpop.f32.mrb[220].mxu1 }
 0x313   : > { %v5036_v48 = vadd.f32 %v13330_v51, %v16006_v55  ;;  %v5027_v58 = vpop.f32.mrb[221].mxu1 }
 0x314   : > { %v5028_v25 = vadd.f32 %v16006_v55, %v5027_v58  ;;  %v13331_v32 = vpop.f32.mrb[222].mxu1  ;;  %13588 = vmatprep.mubr.msk.bf16.mxu0 %vm4240_vm2, %v5982_v9  ;;  %v18104_v9 = vld [vmem:[#allocation23_spill] sm:$0xff] }
 0x315   : > { %v5039_v53 = vadd.f32 %v13331_v32, %v16006_v55  ;;  %v5030_v59 = vpop.f32.mrb[223].mxu1  ;;  %13589 = vmatmul.mubr.msk.bf16.gmra.mrb[216].mxu0 %vm4240_vm2, %v5983_v28  ;;  %v5776_v52 = vmax.f32 %v5036_v48, 0.0 }
 0x316   : > { %v5031_v6 = vadd.f32 %v16006_v55, %v5030_v59  ;;  %v5774_v29 = vmax.f32 %v5028_v25, 0.0 }
 0x317   : > { %v5777_v40 = vmax.f32 %v5039_v53, 0.0  ;;  %13437 = vmatmul.mubr.msk.bf16.gmra.mrb[72].mxu1 %vm4240_vm2, %v18097_v24  ;;  %v16324_v24 = vld [vmem:[%s18035_s6] ss:$0 sm:$0xff] }
 0x318   : > { %v5775_v54 = vmax.f32 %v5031_v6, 0.0  ;;  %13440 = vmatprep.mubr.msk.bf16.mxu1 %vm4240_vm2, %v18098_v20  ;;  %v18105_v20 = vld [vmem:[#allocation22_spill] sm:$0xff] }
 0x319   : > { %v5985_v12 = vpack.c.bf16 %v5777_v40, %v5776_v52 }
 0x31a   : > { %v5984_v0 = vpack.c.bf16 %v5775_v54, %v5774_v29  ;;  %v13334_v47 = vpop.f32.mrb[224].mxu1 }
 0x31b   : > { %v5052_v56 = vadd.f32 %v13334_v47, %v16006_v55  ;;  %v5043_v3 = vpop.f32.mrb[225].mxu1  ;;  %v18106_v47 = vld [vmem:[#allocation25_spill] sm:$0xff] }
 0x31c   : > { %v5044_v46 = vadd.f32 %v16006_v55, %v5043_v3  ;;  %v13335_v42 = vpop.f32.mrb[226].mxu1  ;;  %13592 = vmatprep.mubr.msk.bf16.mxu0 %vm4240_vm2, %v5984_v0 }
 0x31d   : > { %v5055_v39 = vadd.f32 %v13335_v42, %v16006_v55  ;;  %v5046_v4 = vpop.f32.mrb[227].mxu1  ;;  %13593 = vmatmul.mubr.msk.bf16.gmra.mrb[220].mxu0 %vm4240_vm2, %v5985_v12  ;;  %v5780_v8 = vmax.f32 %v5052_v56, 0.0 }
 0x31e   : > { %v5047_v23 = vadd.f32 %v16006_v55, %v5046_v4  ;;  %v5778_v27 = vmax.f32 %v5044_v46, 0.0 }
 0x31f   : > { %v5781_v19 = vmax.f32 %v5055_v39, 0.0  ;;  %13441 = vmatmul.mubr.msk.bf16.gmra.mrb[76].mxu1 %vm4240_vm2, %v18099_v31 }
 0x320   : > { %v5779_v1 = vmax.f32 %v5047_v23, 0.0  ;;  %13444 = vmatprep.mubr.msk.bf16.mxu1 %vm4240_vm2, %v18100_v34 }
 0x321   : > { %v5987_v57 = vpack.c.bf16 %v5781_v19, %v5780_v8 }
 0x322   : > { %v5986_v38 = vpack.c.bf16 %v5779_v1, %v5778_v27  ;;  %v13338_v5 = vpop.f32.mrb[228].mxu1 }
 0x323   : > { %v5068_v17 = vadd.f32 %v13338_v5, %v16006_v55  ;;  %v5059_v15 = vpop.f32.mrb[229].mxu1 }
 0x324   : > { %v5060_v37 = vadd.f32 %v16006_v55, %v5059_v15  ;;  %v13339_v35 = vpop.f32.mrb[230].mxu1  ;;  %13596 = vmatprep.mubr.msk.bf16.mxu0 %vm4240_vm2, %v5986_v38 }
 0x325   : > { %v5071_v11 = vadd.f32 %v13339_v35, %v16006_v55  ;;  %v5062_v2 = vpop.f32.mrb[231].mxu1  ;;  %13597 = vmatmul.mubr.msk.bf16.gmra.mrb[224].mxu0 %vm4240_vm2, %v5987_v57  ;;  %v5784_v21 = vmax.f32 %v5068_v17, 0.0 }
 0x326   : > { %v5063_v18 = vadd.f32 %v16006_v55, %v5062_v2  ;;  %v5782_v60 = vmax.f32 %v5060_v37, 0.0 }
 0x327   : > { %v5785_v26 = vmax.f32 %v5071_v11, 0.0  ;;  %13445 = vmatmul.mubr.msk.bf16.gmra.mrb[80].mxu1 %vm4240_vm2, %v18101_v49  ;;  %v18107_v49 = vld [vmem:[#allocation24_spill] sm:$0xff] }
 0x328   : > { %v5783_v22 = vmax.f32 %v5063_v18, 0.0  ;;  %13448 = vmatprep.mubr.msk.bf16.mxu1 %vm4240_vm2, %v18102_v16 }
 0x329   : > { %v5989_v41 = vpack.c.bf16 %v5785_v26, %v5784_v21 }
 0x32a   : > { %v5988_v13 = vpack.c.bf16 %v5783_v22, %v5782_v60  ;;  %v13342_v63 = vpop.f32.mrb[232].mxu1 }
 0x32b   : > { %v5084_v7 = vadd.f32 %v13342_v63, %v16006_v55  ;;  %v5075_v62 = vpop.f32.mrb[233].mxu1 }
 0x32c   : > { %v5076_v61 = vadd.f32 %v16006_v55, %v5075_v62  ;;  %v13343_v50 = vpop.f32.mrb[234].mxu1  ;;  %13600 = vmatprep.mubr.msk.bf16.mxu0 %vm4240_vm2, %v5988_v13 }
 0x32d   : > { %v5087_v14 = vadd.f32 %v16306_v36, %v13343_v50  ;;  %v5078_v43 = vpop.f32.mrb[235].mxu1  ;;  %13601 = vmatmul.mubr.msk.bf16.gmra.mrb[228].mxu0 %vm4240_vm2, %v5989_v41  ;;  %v5788_v10 = vmax.f32 %v5084_v7, 0.0  ;;  %v18108_v41 = vld [vmem:[#allocation27_spill] sm:$0xff] }
 0x32e   : > { %v5079_v44 = vadd.f32 %v16306_v36, %v5078_v43  ;;  %v5786_v55 = vmax.f32 %v5076_v61, 0.0 }
 0x32f   : > { %v5789_v33 = vmax.f32 %v5087_v14, 0.0  ;;  %13449 = vmatmul.mubr.msk.bf16.gmra.mrb[84].mxu1 %vm4240_vm2, %v18103_v45 }
 0x330   : > { %v5787_v28 = vmax.f32 %v5079_v44, 0.0  ;;  %13452 = vmatprep.mubr.msk.bf16.mxu1 %vm4240_vm2, %v18104_v9 }
 0x331   : > { %v5991_v51 = vpack.c.bf16 %v5789_v33, %v5788_v10 }
 0x332   : > { %v5990_v48 = vpack.c.bf16 %v5787_v28, %v5786_v55  ;;  %v13346_v58 = vpop.f32.mrb[236].mxu1 }
 0x333   : > { %v5100_v25 = vadd.f32 %v16306_v36, %v13346_v58  ;;  %v5091_v32 = vpop.f32.mrb[237].mxu1 }
 0x334   : > { %v5092_v53 = vadd.f32 %v16306_v36, %v5091_v32  ;;  %v13347_v59 = vpop.f32.mrb[238].mxu1  ;;  %13604 = vmatprep.mubr.msk.bf16.mxu0 %vm4240_vm2, %v5990_v48 }
 0x335   : > { %v5103_v6 = vadd.f32 %v16306_v36, %v13347_v59  ;;  %v5094_v52 = vpop.f32.mrb[239].mxu1  ;;  %13605 = vmatmul.mubr.msk.bf16.gmra.mrb[232].mxu0 %vm4240_vm2, %v5991_v51  ;;  %v5792_v29 = vmax.f32 %v5100_v25, 0.0 }
 0x336   : > { %v5095_v40 = vadd.f32 %v16306_v36, %v5094_v52  ;;  %v5790_v12 = vmax.f32 %v5092_v53, 0.0 }
 0x337   : > { %v5793_v54 = vmax.f32 %v5103_v6, 0.0  ;;  %13453 = vmatmul.mubr.msk.bf16.gmra.mrb[88].mxu1 %vm4240_vm2, %v18105_v20 }
 0x338   : > { %v5791_v0 = vmax.f32 %v5095_v40, 0.0  ;;  %13456 = vmatprep.mubr.msk.bf16.mxu1 %vm4240_vm2, %v18106_v47  ;;  %v13502_v56 = vpop.f32.mrb[128].mxu0  ;;  %v18109_v40 = vld [vmem:[#allocation26_spill] sm:$0xff] }
 0x339   : > { %v5993_v3 = vpack.c.bf16 %v5793_v54, %v5792_v29  ;;  %v6532_v46 = vadd.f32 %v13502_v56, %v16324_v24  ;;  %v6523_v42 = vpop.f32.mrb[129].mxu0 }
 0x33a   : > { %v5992_v39 = vpack.c.bf16 %v5791_v0, %v5790_v12  ;;  %v6524_v4 = vadd.f32 %v16324_v24, %v6523_v42  ;;  %v13350_v23 = vpop.f32.mrb[240].mxu1  ;;  %v13503_v8 = vpop.f32.mrb[130].mxu0  ;;  %v18110_v12 = vld [vmem:[#allocation29_spill] sm:$0xff] }
 0x33b   : > { %v5116_v19 = vadd.f32 %v16306_v36, %v13350_v23  ;;  %v6535_v31 = vadd.f32 %v13503_v8, %v16324_v24  ;;  %v5107_v27 = vpop.f32.mrb[241].mxu1  ;;  %v6526_v1 = vpop.f32.mrb[131].mxu0  ;;  %v7548_v5 = vmax.f32 %v6532_v46, 0.0 }
 0x33c   : > { %v5108_v34 = vadd.f32 %v16306_v36, %v5107_v27  ;;  %v6527_v57 = vadd.f32 %v16324_v24, %v6526_v1  ;;  %v13351_v38 = vpop.f32.mrb[242].mxu1  ;;  %13608 = vmatprep.mubr.msk.bf16.mxu0 %vm4240_vm2, %v5992_v39  ;;  %v7546_v35 = vmax.f32 %v6524_v4, 0.0 }
 0x33d   : > { %v7549_v17 = vmax.f32 %v6535_v31, 0.0  ;;  %v5119_v15 = vadd.f32 %v16306_v36, %v13351_v38  ;;  %v5110_v37 = vpop.f32.mrb[243].mxu1  ;;  %13609 = vmatmul.mubr.msk.bf16.gmra.mrb[236].mxu0 %vm4240_vm2, %v5993_v3  ;;  %v5796_v18 = vmax.f32 %v5116_v19, 0.0 }
 0x33e   : > { %v7547_v11 = vmax.f32 %v6527_v57, 0.0  ;;  %v5111_v2 = vadd.f32 %v16306_v36, %v5110_v37  ;;  %v5794_v60 = vmax.f32 %v5108_v34, 0.0 }
 0x33f   : > { %v16340_v21 = vpack.c.bf16 %v7549_v17, %v7548_v5  ;;  %v5797_v26 = vmax.f32 %v5119_v15, 0.0  ;;  %13457 = vmatmul.mubr.msk.bf16.gmra.mrb[92].mxu1 %vm4240_vm2, %v18107_v49 }
 0x340   : > { %v16344_v22 = vpack.c.bf16 %v7547_v11, %v7546_v35  ;;  %v5795_v16 = vmax.f32 %v5111_v2, 0.0  ;;  %13460 = vmatprep.mubr.msk.bf16.mxu1 %vm4240_vm2, %v18108_v41  ;;  %v13506_v30 = vpop.f32.mrb[132].mxu0  ;;  %v18112_v41 = vld [vmem:[#allocation31_spill] sm:$0xff] }
 0x341   : > { %v5995_v13 = vpack.c.bf16 %v5797_v26, %v5796_v18  ;;  %v6548_v63 = vadd.f32 %v13506_v30, %v16324_v24  ;;  %v6539_v7 = vpop.f32.mrb[133].mxu0  ;;  %v18111_v26 = vld [vmem:[#allocation28_spill] sm:$0xff] }
 0x342   : > { %v5994_v62 = vpack.c.bf16 %v5795_v16, %v5794_v60  ;;  %v6540_v61 = vadd.f32 %v16324_v24, %v6539_v7  ;;  %v13354_v50 = vpop.f32.mrb[244].mxu1  ;;  %v13507_v14 = vpop.f32.mrb[134].mxu0 }
 0x343   : > { %v5132_v43 = vadd.f32 %v16306_v36, %v13354_v50  ;;  %v6551_v44 = vadd.f32 %v13507_v14, %v16324_v24  ;;  %v5123_v10 = vpop.f32.mrb[245].mxu1  ;;  %v6542_v33 = vpop.f32.mrb[135].mxu0  ;;  %v7552_v9 = vmax.f32 %v6548_v63, 0.0 }
 0x344   : > { %v5124_v45 = vadd.f32 %v16306_v36, %v5123_v10  ;;  %v6543_v55 = vadd.f32 %v16324_v24, %v6542_v33  ;;  %v13355_v28 = vpop.f32.mrb[246].mxu1  ;;  %13612 = vmatprep.mubr.msk.bf16.mxu0 %vm4240_vm2, %v5994_v62  ;;  %v7550_v25 = vmax.f32 %v6540_v61, 0.0 }
 0x345   : > { %v7553_v51 = vmax.f32 %v6551_v44, 0.0  ;;  %v5135_v48 = vadd.f32 %v16306_v36, %v13355_v28  ;;  %v5126_v58 = vpop.f32.mrb[247].mxu1  ;;  %13613 = vmatmul.mubr.msk.bf16.gmra.mrb[240].mxu0 %vm4240_vm2, %v5995_v13  ;;  %v5800_v59 = vmax.f32 %v5132_v43, 0.0 }
 0x346   : > { %v7551_v32 = vmax.f32 %v6543_v55, 0.0  ;;  %v5127_v53 = vadd.f32 %v16306_v36, %v5126_v58  ;;  %v5798_v29 = vmax.f32 %v5124_v45, 0.0 }
 0x347   : > { %v16358_v6 = vpack.c.bf16 %v7553_v51, %v7552_v9  ;;  %v5801_v52 = vmax.f32 %v5135_v48, 0.0  ;;  %13461 = vmatmul.mubr.msk.bf16.gmra.mrb[96].mxu1 %vm4240_vm2, %v18109_v40 }
 0x348   : > { %v16362_v54 = vpack.c.bf16 %v7551_v32, %v7550_v25  ;;  %v5799_v20 = vmax.f32 %v5127_v53, 0.0  ;;  %13464 = vmatprep.mubr.msk.bf16.mxu1 %vm4240_vm2, %v18110_v12  ;;  %v13510_v0 = vpop.f32.mrb[136].mxu0 }
 0x349   : > { %v5997_v47 = vpack.c.bf16 %v5801_v52, %v5800_v59  ;;  %v6564_v56 = vadd.f32 %v13510_v0, %v16324_v24  ;;  %v6555_v3 = vpop.f32.mrb[137].mxu0 }
 0x34a   : > { %v5996_v46 = vpack.c.bf16 %v5799_v20, %v5798_v29  ;;  %v6556_v42 = vadd.f32 %v16324_v24, %v6555_v3  ;;  %v13358_v39 = vpop.f32.mrb[248].mxu1  ;;  %v13511_v4 = vpop.f32.mrb[138].mxu0  ;;  %v18113_v29 = vld [vmem:[#allocation30_spill] sm:$0xff] }
 0x34b   : > { %v5148_v23 = vadd.f32 %v16306_v36, %v13358_v39  ;;  %v6567_v8 = vadd.f32 %v13511_v4, %v16324_v24  ;;  %v5139_v19 = vpop.f32.mrb[249].mxu1  ;;  %v6558_v31 = vpop.f32.mrb[139].mxu0  ;;  %v7556_v57 = vmax.f32 %v6564_v56, 0.0 }
 0x34c   : > { %v5140_v27 = vadd.f32 %v16306_v36, %v5139_v19  ;;  %v6559_v1 = vadd.f32 %v16324_v24, %v6558_v31  ;;  %v13359_v34 = vpop.f32.mrb[250].mxu1  ;;  %13616 = vmatprep.mubr.msk.bf16.mxu0 %vm4240_vm2, %v5996_v46  ;;  %v7554_v15 = vmax.f32 %v6556_v42, 0.0 }
 0x34d   : > { %v7557_v38 = vmax.f32 %v6567_v8, 0.0  ;;  %v5151_v5 = vadd.f32 %v16306_v36, %v13359_v34  ;;  %v5142_v17 = vpop.f32.mrb[251].mxu1  ;;  %13617 = vmatmul.mubr.msk.bf16.gmra.mrb[244].mxu0 %vm4240_vm2, %v5997_v47  ;;  %v5804_v11 = vmax.f32 %v5148_v23, 0.0  ;;  %v18114_v47 = vld [vmem:[#allocation33_spill] sm:$0xff] }
 0x34e   : > { %v7555_v37 = vmax.f32 %v6559_v1, 0.0  ;;  %v5143_v35 = vadd.f32 %v16306_v36, %v5142_v17  ;;  %v5802_v49 = vmax.f32 %v5140_v27, 0.0 }
 0x34f   : > { %v16376_v2 = vpack.c.bf16 %v7557_v38, %v7556_v57  ;;  %v5805_v18 = vmax.f32 %v5151_v5, 0.0  ;;  %13465 = vmatmul.mubr.msk.bf16.gmra.mrb[100].mxu1 %vm4240_vm2, %v18111_v26 }
 0x350   : > { %v16380_v60 = vpack.c.bf16 %v7555_v37, %v7554_v15  ;;  %v5803_v16 = vmax.f32 %v5143_v35, 0.0  ;;  %13468 = vmatprep.mubr.msk.bf16.mxu1 %vm4240_vm2, %v18112_v41  ;;  %v13514_v30 = vpop.f32.mrb[140].mxu0  ;;  %v18115_v41 = vld [vmem:[#allocation32_spill] sm:$0xff] }
 0x351   : > { %v5999_v13 = vpack.c.bf16 %v5805_v18, %v5804_v11  ;;  %v6580_v63 = vadd.f32 %v13514_v30, %v16324_v24  ;;  %v6571_v7 = vpop.f32.mrb[141].mxu0 }
 0x352   : > { %v5998_v62 = vpack.c.bf16 %v5803_v16, %v5802_v49  ;;  %v6572_v61 = vadd.f32 %v16324_v24, %v6571_v7  ;;  %v13362_v50 = vpop.f32.mrb[252].mxu1  ;;  %v13515_v14 = vpop.f32.mrb[142].mxu0  ;;  %v18116_v7 = vld [vmem:[#allocation35_spill] sm:$0xff] }
 0x353   : > { %v5164_v43 = vadd.f32 %v16306_v36, %v13362_v50  ;;  %v6583_v44 = vadd.f32 %v13515_v14, %v16324_v24  ;;  %v5155_v10 = vpop.f32.mrb[253].mxu1  ;;  %v6574_v33 = vpop.f32.mrb[143].mxu0  ;;  %v7560_v9 = vmax.f32 %v6580_v63, 0.0 }
 0x354   : > { %v5156_v45 = vadd.f32 %v16306_v36, %v5155_v10  ;;  %v6575_v55 = vadd.f32 %v16324_v24, %v6574_v33  ;;  %v13363_v28 = vpop.f32.mrb[254].mxu1  ;;  %13620 = vmatprep.mubr.msk.bf16.mxu0 %vm4240_vm2, %v5998_v62  ;;  %v7558_v25 = vmax.f32 %v6572_v61, 0.0 }
 0x355   : > { %v7561_v51 = vmax.f32 %v6583_v44, 0.0  ;;  %v5167_v48 = vadd.f32 %v16306_v36, %v13363_v28  ;;  %v5158_v58 = vpop.f32.mrb[255].mxu1  ;;  %13621 = vmatmul.mubr.msk.bf16.gmra.mrb[248].mxu0 %vm4240_vm2, %v5999_v13  ;;  %v5808_v59 = vmax.f32 %v5164_v43, 0.0 }
 0x356   : > { %v7559_v32 = vmax.f32 %v6575_v55, 0.0  ;;  %v5159_v53 = vadd.f32 %v16306_v36, %v5158_v58  ;;  %v5806_v20 = vmax.f32 %v5156_v45, 0.0 }
 0x357   : > { %v16394_v52 = vpack.c.bf16 %v7561_v51, %v7560_v9  ;;  %v5809_v40 = vmax.f32 %v5167_v48, 0.0  ;;  %13469 = vmatmul.mubr.msk.bf16.gmra.mrb[104].mxu1 %vm4240_vm2, %v18113_v29 }
 0x358   : > { %v16398_v12 = vpack.c.bf16 %v7559_v32, %v7558_v25  ;;  %v5807_v0 = vmax.f32 %v5159_v53, 0.0  ;;  %13472 = vmatprep.mubr.msk.bf16.mxu1 %vm4240_vm2, %v18114_v47  ;;  %v13518_v56 = vpop.f32.mrb[144].mxu0 }
 0x359   : > { %v6001_v3 = vpack.c.bf16 %v5809_v40, %v5808_v59  ;;  %v6596_v46 = vadd.f32 %v13518_v56, %v16324_v24  ;;  %v6587_v42 = vpop.f32.mrb[145].mxu0 }
 0x35a   : > { %v6000_v39 = vpack.c.bf16 %v5807_v0, %v5806_v20  ;;  %v6588_v4 = vadd.f32 %v16324_v24, %v6587_v42  ;;  %v13366_v23 = vpop.f32.mrb[0].mxu1  ;;  %v13519_v8 = vpop.f32.mrb[146].mxu0 }
 0x35b   : > { %v5180_v19 = vadd.f32 %v16306_v36, %v13366_v23  ;;  %v6599_v31 = vadd.f32 %v13519_v8, %v16324_v24  ;;  %v5171_v27 = vpop.f32.mrb[1].mxu1  ;;  %v6590_v1 = vpop.f32.mrb[147].mxu0  ;;  %v7564_v5 = vmax.f32 %v6596_v46, 0.0 }
 0x35c   : > { %v5172_v34 = vadd.f32 %v16306_v36, %v5171_v27  ;;  %v6591_v57 = vadd.f32 %v16324_v24, %v6590_v1  ;;  %v13367_v38 = vpop.f32.mrb[2].mxu1  ;;  %13624 = vmatprep.mubr.msk.bf16.mxu0 %vm4240_vm2, %v6000_v39  ;;  %v7562_v35 = vmax.f32 %v6588_v4, 0.0  ;;  %v18118_v4 = vld [vmem:[#allocation37_spill] sm:$0xff]  ;;  %v14529_v27 = vld [vmem:[%s18038_s9 + $0x30] sm:$0xff]  }
 0x35d   : > { %v7565_v17 = vmax.f32 %v6599_v31, 0.0  ;;  %v5183_v15 = vadd.f32 %v16306_v36, %v13367_v38  ;;  %v5174_v37 = vpop.f32.mrb[3].mxu1  ;;  %13625 = vmatmul.mubr.msk.bf16.gmra.mrb[252].mxu0 %vm4240_vm2, %v6001_v3  ;;  %v5812_v26 = vmax.f32 %v5180_v19, 0.0  ;;  %v18117_v3 = vld [vmem:[#allocation34_spill] sm:$0xff]  ;;  %14032 = vmatprep.subr.bf16.mxu0 %v14529_v27 }
 0x35e   : > { %v7563_v11 = vmax.f32 %v6591_v57, 0.0  ;;  %v5175_v18 = vadd.f32 %v16306_v36, %v5174_v37  ;;  %v5810_v30 = vmax.f32 %v5172_v34, 0.0  ;;  %14033 = vmatpush3.bf16.msra.mxu0 %v14529_v27 }
 0x35f   : > { %v16412_v49 = vpack.c.bf16 %v7565_v17, %v7564_v5  ;;  %v5813_v16 = vmax.f32 %v5183_v15, 0.0  ;;  %13473 = vmatmul.mubr.msk.bf16.gmra.mrb[108].mxu1 %vm4240_vm2, %v18115_v41 }
 0x360   : > { %v16416_v13 = vpack.c.bf16 %v7563_v11, %v7562_v35  ;;  %v5811_v63 = vmax.f32 %v5175_v18, 0.0  ;;  %13476 = vmatprep.mubr.msk.bf16.mxu1 %vm4240_vm2, %v18116_v7  ;;  %v13522_v62 = vpop.f32.mrb[148].mxu0 }
 0x361   : > { %v6003_v61 = vpack.c.bf16 %v5813_v16, %v5812_v26  ;;  %v6612_v50 = vadd.f32 %v13522_v62, %v16324_v24  ;;  %v6603_v14 = vpop.f32.mrb[149].mxu0 }
 0x362   : > { %v6002_v43 = vpack.c.bf16 %v5811_v63, %v5810_v30  ;;  %v6604_v44 = vadd.f32 %v16324_v24, %v6603_v14  ;;  %v13370_v10 = vpop.f32.mrb[4].mxu1  ;;  %v13523_v33 = vpop.f32.mrb[150].mxu0 }
 0x363   : > { %v5196_v45 = vadd.f32 %v16306_v36, %v13370_v10  ;;  %v6615_v55 = vadd.f32 %v13523_v33, %v16324_v24  ;;  %v5187_v28 = vpop.f32.mrb[5].mxu1  ;;  %v6606_v9 = vpop.f32.mrb[151].mxu0  ;;  %v7568_v25 = vmax.f32 %v6612_v50, 0.0 }
 0x364   : > { %v5188_v51 = vadd.f32 %v16306_v36, %v5187_v28  ;;  %v6607_v48 = vadd.f32 %v16324_v24, %v6606_v9  ;;  %v13371_v58 = vpop.f32.mrb[6].mxu1  ;;  %13628 = vmatprep.mubr.msk.bf16.mxu0 %vm4240_vm2, %v6002_v43  ;;  %v7566_v40 = vmax.f32 %v6604_v44, 0.0  ;;  %v18119_v43 = vld [vmem:[#allocation36_spill] sm:$0xff] }
 0x365   : > { %v7569_v32 = vmax.f32 %v6615_v55, 0.0  ;;  %v5199_v53 = vadd.f32 %v16306_v36, %v13371_v58  ;;  %v5190_v59 = vpop.f32.mrb[7].mxu1  ;;  %13629 = vmatmul.mubr.msk.bf16.gmra.mrb[0].mxu0 %vm4240_vm2, %v6003_v61  ;;  %v5816_v0 = vmax.f32 %v5196_v45, 0.0  ;;  %v18120_v45 = vld [vmem:[#allocation39_spill] sm:$0xff] }
 0x366   : > { %v7567_v29 = vmax.f32 %v6607_v48, 0.0  ;;  %v5191_v20 = vadd.f32 %v16306_v36, %v5190_v59  ;;  %v5814_v46 = vmax.f32 %v5188_v51, 0.0 }
 0x367   : > { %v16430_v47 = vpack.c.bf16 %v7569_v32, %v7568_v25  ;;  %v5817_v56 = vmax.f32 %v5199_v53, 0.0  ;;  %13477 = vmatmul.mubr.msk.bf16.gmra.mrb[112].mxu1 %vm4240_vm2, %v18117_v3 }
 0x368   : > { %v16434_v42 = vpack.c.bf16 %v7567_v29, %v7566_v40  ;;  %v5815_v39 = vmax.f32 %v5191_v20, 0.0  ;;  %13480 = vmatprep.mubr.msk.bf16.mxu1 %vm4240_vm2, %v18118_v4  ;;  %v13526_v23 = vpop.f32.mrb[152].mxu0 }
 0x369   : > { %v6005_v8 = vpack.c.bf16 %v5817_v56, %v5816_v0  ;;  %v6628_v19 = vadd.f32 %v13526_v23, %v16324_v24  ;;  %v6619_v31 = vpop.f32.mrb[153].mxu0 }
 0x36a   : > { %v6004_v1 = vpack.c.bf16 %v5815_v39, %v5814_v46  ;;  %v6620_v34 = vadd.f32 %v16324_v24, %v6619_v31  ;;  %v13374_v57 = vpop.f32.mrb[8].mxu1  ;;  %v13527_v38 = vpop.f32.mrb[154].mxu0 }
 0x36b   : > { %v5212_v5 = vadd.f32 %v16306_v36, %v13374_v57  ;;  %v6631_v17 = vadd.f32 %v13527_v38, %v16324_v24  ;;  %v5203_v15 = vpop.f32.mrb[9].mxu1  ;;  %v6622_v37 = vpop.f32.mrb[155].mxu0  ;;  %v7572_v26 = vmax.f32 %v6628_v19, 0.0 }
 0x36c   : > { %v5204_v35 = vadd.f32 %v16306_v36, %v5203_v15  ;;  %v6623_v11 = vadd.f32 %v16324_v24, %v6622_v37  ;;  %v13375_v18 = vpop.f32.mrb[10].mxu1  ;;  %13632 = vmatprep.mubr.msk.bf16.mxu0 %vm4240_vm2, %v6004_v1  ;;  %v7570_v63 = vmax.f32 %v6620_v34, 0.0  ;;  %v18121_v34 = vld [vmem:[#allocation38_spill] sm:$0xff] }
 0x36d   : > { %v7573_v16 = vmax.f32 %v6631_v17, 0.0  ;;  %v5215_v41 = vadd.f32 %v16306_v36, %v13375_v18  ;;  %v5206_v30 = vpop.f32.mrb[11].mxu1  ;;  %13633 = vmatmul.mubr.msk.bf16.gmra.mrb[4].mxu0 %vm4240_vm2, %v6005_v8  ;;  %v5820_v61 = vmax.f32 %v5212_v5, 0.0  ;;  %v18122_v17 = vld [vmem:[#allocation41_spill] sm:$0xff] }
 0x36e   : > { %v7571_v7 = vmax.f32 %v6623_v11, 0.0  ;;  %v5207_v62 = vadd.f32 %v16306_v36, %v5206_v30  ;;  %v5818_v44 = vmax.f32 %v5204_v35, 0.0 }
 0x36f   : > { %v16451_v50 = vpack.c.bf16 %v7573_v16, %v7572_v26  ;;  %v5821_v14 = vmax.f32 %v5215_v41, 0.0  ;;  %13481 = vmatmul.mubr.msk.bf16.gmra.mrb[116].mxu1 %vm4240_vm2, %v18119_v43 }
 0x370   : > { %v16455_v10 = vpack.c.bf16 %v7571_v7, %v7570_v63  ;;  %v5819_v33 = vmax.f32 %v5207_v62, 0.0  ;;  %13484 = vmatprep.mubr.msk.bf16.mxu1 %vm4240_vm2, %v18120_v45  ;;  %v13530_v55 = vpop.f32.mrb[156].mxu0 }
 0x371   : > { %v6007_v28 = vpack.c.bf16 %v5821_v14, %v5820_v61  ;;  %v6644_v9 = vadd.f32 %v13530_v55, %v16324_v24  ;;  %v6635_v51 = vpop.f32.mrb[157].mxu0 }
 0x372   : > { %v6006_v48 = vpack.c.bf16 %v5819_v33, %v5818_v44  ;;  %v6636_v58 = vadd.f32 %v16324_v24, %v6635_v51  ;;  %v13378_v25 = vpop.f32.mrb[12].mxu1  ;;  %v13531_v32 = vpop.f32.mrb[158].mxu0 }
 0x373   : > { %v5228_v53 = vadd.f32 %v16306_v36, %v13378_v25  ;;  %v6647_v59 = vadd.f32 %v13531_v32, %v16324_v24  ;;  %v5219_v40 = vpop.f32.mrb[13].mxu1  ;;  %v6638_v29 = vpop.f32.mrb[159].mxu0  ;;  %v7576_v3 = vmax.f32 %v6644_v9, 0.0  ;;  %v18123_v32 = vld [vmem:[#allocation40_spill] sm:$0xff] }
 0x374   : > { %v5220_v20 = vadd.f32 %v16306_v36, %v5219_v40  ;;  %v6639_v0 = vadd.f32 %v16324_v24, %v6638_v29  ;;  %v13379_v56 = vpop.f32.mrb[14].mxu1  ;;  %13636 = vmatprep.mubr.msk.bf16.mxu0 %vm4240_vm2, %v6006_v48  ;;  %v7574_v23 = vmax.f32 %v6636_v58, 0.0 }
 0x375   : > { %v7577_v46 = vmax.f32 %v6647_v59, 0.0  ;;  %v5231_v39 = vadd.f32 %v16306_v36, %v13379_v56  ;;  %v5222_v4 = vpop.f32.mrb[15].mxu1  ;;  %13637 = vmatmul.mubr.msk.bf16.gmra.mrb[8].mxu0 %vm4240_vm2, %v6007_v28  ;;  %v5824_v31 = vmax.f32 %v5228_v53, 0.0 }
 0x376   : > { %v7575_v8 = vmax.f32 %v6639_v0, 0.0  ;;  %v5223_v19 = vadd.f32 %v16306_v36, %v5222_v4  ;;  %v5822_v57 = vmax.f32 %v5220_v20, 0.0 }
 0x377   : > { %v16469_v27 = vpack.c.bf16 %v7577_v46, %v7576_v3  ;;  %v5825_v1 = vmax.f32 %v5231_v39, 0.0  ;;  %13485 = vmatmul.mubr.msk.bf16.gmra.mrb[120].mxu1 %vm4240_vm2, %v18121_v34 }
 0x378   : > { %v16473_v38 = vpack.c.bf16 %v7575_v8, %v7574_v23  ;;  %v5823_v5 = vmax.f32 %v5223_v19, 0.0  ;;  %13488 = vmatprep.mubr.msk.bf16.mxu1 %vm4240_vm2, %v18122_v17  ;;  %v13534_v15 = vpop.f32.mrb[160].mxu0 }
 0x379   : > { %v6009_v37 = vpack.c.bf16 %v5825_v1, %v5824_v31  ;;  %v6660_v35 = vadd.f32 %v13534_v15, %v16324_v24  ;;  %v6651_v11 = vpop.f32.mrb[161].mxu0 }
 0x37a   : > { %v6008_v18 = vpack.c.bf16 %v5823_v5, %v5822_v57  ;;  %v6652_v26 = vadd.f32 %v16324_v24, %v6651_v11  ;;  %v13382_v16 = vpop.f32.mrb[16].mxu1  ;;  %v13535_v41 = vpop.f32.mrb[162].mxu0 }
 0x37b   : > { %v5244_v30 = vadd.f32 %v16306_v36, %v13382_v16  ;;  %v6663_v63 = vadd.f32 %v13535_v41, %v16324_v24  ;;  %v5235_v7 = vpop.f32.mrb[17].mxu1  ;;  %v6654_v62 = vpop.f32.mrb[163].mxu0  ;;  %v7580_v44 = vmax.f32 %v6660_v35, 0.0 }
 0x37c   : > { %v5236_v61 = vadd.f32 %v16306_v36, %v5235_v7  ;;  %v6655_v14 = vadd.f32 %v16324_v24, %v6654_v62  ;;  %v13383_v43 = vpop.f32.mrb[18].mxu1  ;;  %13640 = vmatprep.mubr.msk.bf16.mxu0 %vm4240_vm2, %v6008_v18  ;;  %v7578_v28 = vmax.f32 %v6652_v26, 0.0 }
 0x37d   : > { %v7581_v33 = vmax.f32 %v6663_v63, 0.0  ;;  %v5247_v45 = vadd.f32 %v16306_v36, %v13383_v43  ;;  %v5238_v55 = vpop.f32.mrb[19].mxu1  ;;  %13641 = vmatmul.mubr.msk.bf16.gmra.mrb[12].mxu0 %vm4240_vm2, %v6009_v37  ;;  %v5828_v48 = vmax.f32 %v5244_v30, 0.0 }
 0x37e   : > { %v7579_v9 = vmax.f32 %v6655_v14, 0.0  ;;  %v5239_v51 = vadd.f32 %v16306_v36, %v5238_v55  ;;  %v5826_v53 = vmax.f32 %v5236_v61, 0.0 }
 0x37f   : > { %v16487_v58 = vpack.c.bf16 %v7581_v33, %v7580_v44  ;;  %v5829_v25 = vmax.f32 %v5247_v45, 0.0  ;;  %13489 = vmatmul.mubr.msk.bf16.gmra.mrb[124].mxu1 %vm4240_vm2, %v18123_v32 }
 0x380   : > { %v16491_v59 = vpack.c.bf16 %v7579_v9, %v7578_v28  ;;  %v5827_v40 = vmax.f32 %v5239_v51, 0.0  ;;  %v13538_v29 = vpop.f32.mrb[164].mxu0  ;;  %13764 = vmatprep.mubr.msk.bf16.mxu1 %vm4240_vm2, %v16344_v22 }
 0x381   : > { %v6011_v20 = vpack.c.bf16 %v5829_v25, %v5828_v48  ;;  %v6676_v0 = vadd.f32 %v13538_v29, %v16324_v24  ;;  %v6667_v56 = vpop.f32.mrb[165].mxu0 }
 0x382   : > { %v6010_v3 = vpack.c.bf16 %v5827_v40, %v5826_v53  ;;  %v6668_v46 = vadd.f32 %v16324_v24, %v6667_v56  ;;  %v13386_v39 = vpop.f32.mrb[20].mxu1  ;;  %v13539_v4 = vpop.f32.mrb[166].mxu0 }
 0x383   : > { %v5260_v23 = vadd.f32 %v16306_v36, %v13386_v39  ;;  %v6679_v8 = vadd.f32 %v13539_v4, %v16324_v24  ;;  %v5251_v19 = vpop.f32.mrb[21].mxu1  ;;  %v6670_v31 = vpop.f32.mrb[167].mxu0  ;;  %v7584_v57 = vmax.f32 %v6676_v0, 0.0 }
 0x384   : > { %v5252_v1 = vadd.f32 %v16306_v36, %v5251_v19  ;;  %v6671_v34 = vadd.f32 %v16324_v24, %v6670_v31  ;;  %v13387_v22 = vpop.f32.mrb[22].mxu1  ;;  %13644 = vmatprep.mubr.msk.bf16.mxu0 %vm4240_vm2, %v6010_v3  ;;  %v7582_v37 = vmax.f32 %v6668_v46, 0.0 }
 0x385   : > { %v7585_v5 = vmax.f32 %v6679_v8, 0.0  ;;  %v5263_v17 = vadd.f32 %v16306_v36, %v13387_v22  ;;  %v5254_v15 = vpop.f32.mrb[23].mxu1  ;;  %13645 = vmatmul.mubr.msk.bf16.gmra.mrb[16].mxu0 %vm4240_vm2, %v6011_v20  ;;  %v5832_v18 = vmax.f32 %v5260_v23, 0.0 }
 0x386   : > { %v7583_v35 = vmax.f32 %v6671_v34, 0.0  ;;  %v5255_v11 = vadd.f32 %v16306_v36, %v5254_v15  ;;  %v5830_v41 = vmax.f32 %v5252_v1, 0.0 }
 0x387   : > { %v16505_v26 = vpack.c.bf16 %v7585_v5, %v7584_v57  ;;  %v5833_v16 = vmax.f32 %v5263_v17, 0.0  ;;  %13765 = vmatmul.mubr.msk.bf16.vlgmr.msra.gmra.mrb[128].mxu1 %vm4240_vm2, %v16340_v21 }
 0x388   : > { %v16509_v30 = vpack.c.bf16 %v7583_v35, %v7582_v37  ;;  %v5831_v63 = vmax.f32 %v5255_v11, 0.0  ;;  %v13542_v7 = vpop.f32.mrb[168].mxu0  ;;  %13768 = vmatprep.mubr.msk.bf16.mxu1 %vm4240_vm2, %v16362_v54 }
 0x389   : > { %v6013_v62 = vpack.c.bf16 %v5833_v16, %v5832_v18  ;;  %v6692_v61 = vadd.f32 %v13542_v7, %v16324_v24  ;;  %v6683_v14 = vpop.f32.mrb[169].mxu0 }
 0x38a   : > { %v6012_v43 = vpack.c.bf16 %v5831_v63, %v5830_v41  ;;  %v6684_v44 = vadd.f32 %v16324_v24, %v6683_v14  ;;  %v13390_v33 = vpop.f32.mrb[24].mxu1  ;;  %v13543_v45 = vpop.f32.mrb[170].mxu0 }
 0x38b   : > { %v5276_v55 = vadd.f32 %v16306_v36, %v13390_v33  ;;  %v6695_v21 = vadd.f32 %v13543_v45, %v16324_v24  ;;  %v5267_v28 = vpop.f32.mrb[25].mxu1  ;;  %v6686_v9 = vpop.f32.mrb[171].mxu0  ;;  %v7588_v25 = vmax.f32 %v6692_v61, 0.0 }
 0x38c   : > { %v5268_v51 = vadd.f32 %v16306_v36, %v5267_v28  ;;  %v6687_v48 = vadd.f32 %v16324_v24, %v6686_v9  ;;  %v13391_v54 = vpop.f32.mrb[26].mxu1  ;;  %13648 = vmatprep.mubr.msk.bf16.mxu0 %vm4240_vm2, %v6012_v43  ;;  %v7586_v29 = vmax.f32 %v6684_v44, 0.0 }
 0x38d   : > { %v7589_v32 = vmax.f32 %v6695_v21, 0.0  ;;  %v5279_v53 = vadd.f32 %v16306_v36, %v13391_v54  ;;  %v5270_v40 = vpop.f32.mrb[27].mxu1  ;;  %13649 = vmatmul.mubr.msk.bf16.gmra.mrb[20].mxu0 %vm4240_vm2, %v6013_v62  ;;  %v5836_v56 = vmax.f32 %v5276_v55, 0.0 }
 0x38e   : > { %v7587_v20 = vmax.f32 %v6687_v48, 0.0  ;;  %v5271_v0 = vadd.f32 %v16306_v36, %v5270_v40  ;;  %v5834_v39 = vmax.f32 %v5268_v51, 0.0 }
 0x38f   : > { %v16523_v3 = vpack.c.bf16 %v7589_v32, %v7588_v25  ;;  %v5837_v46 = vmax.f32 %v5279_v53, 0.0  ;;  %13769 = vmatmul.mubr.msk.bf16.gmra.mrb[132].mxu1 %vm4240_vm2, %v16358_v6 }
 0x390   : > { %v16527_v4 = vpack.c.bf16 %v7587_v20, %v7586_v29  ;;  %v5835_v23 = vmax.f32 %v5271_v0, 0.0  ;;  %v13546_v8 = vpop.f32.mrb[172].mxu0  ;;  %13772 = vmatprep.mubr.msk.bf16.mxu1 %vm4240_vm2, %v16380_v60 }
 0x391   : > { %v6015_v19 = vpack.c.bf16 %v5837_v46, %v5836_v56  ;;  %v6708_v31 = vadd.f32 %v13546_v8, %v16324_v24  ;;  %v6699_v1 = vpop.f32.mrb[173].mxu0 }
 0x392   : > { %v6014_v34 = vpack.c.bf16 %v5835_v23, %v5834_v39  ;;  %v6700_v22 = vadd.f32 %v16324_v24, %v6699_v1  ;;  %v13394_v57 = vpop.f32.mrb[28].mxu1  ;;  %v13547_v5 = vpop.f32.mrb[174].mxu0 }
 0x393   : > { %v5292_v17 = vadd.f32 %v16306_v36, %v13394_v57  ;;  %v6711_v6 = vadd.f32 %v13547_v5, %v16324_v24  ;;  %v5283_v15 = vpop.f32.mrb[29].mxu1  ;;  %v6702_v37 = vpop.f32.mrb[175].mxu0  ;;  %v7592_v18 = vmax.f32 %v6708_v31, 0.0 }
 0x394   : > { %v5284_v35 = vadd.f32 %v16306_v36, %v5283_v15  ;;  %v6703_v11 = vadd.f32 %v16324_v24, %v6702_v37  ;;  %v13395_v60 = vpop.f32.mrb[30].mxu1  ;;  %13652 = vmatprep.mubr.msk.bf16.mxu0 %vm4240_vm2, %v6014_v34  ;;  %v7590_v7 = vmax.f32 %v6700_v22, 0.0 }
 0x395   : > { %v7593_v16 = vmax.f32 %v6711_v6, 0.0  ;;  %v5295_v41 = vadd.f32 %v16306_v36, %v13395_v60  ;;  %v5286_v63 = vpop.f32.mrb[31].mxu1  ;;  %13653 = vmatmul.mubr.msk.bf16.gmra.mrb[24].mxu0 %vm4240_vm2, %v6015_v19  ;;  %v5840_v14 = vmax.f32 %v5292_v17, 0.0 }
 0x396   : > { %v7591_v62 = vmax.f32 %v6703_v11, 0.0  ;;  %v5287_v61 = vadd.f32 %v16306_v36, %v5286_v63  ;;  %v5838_v33 = vmax.f32 %v5284_v35, 0.0 }
 0x397   : > { %v16541_v43 = vpack.c.bf16 %v7593_v16, %v7592_v18  ;;  %v5841_v44 = vmax.f32 %v5295_v41, 0.0  ;;  %13773 = vmatmul.mubr.msk.bf16.gmra.mrb[136].mxu1 %vm4240_vm2, %v16376_v2 }
 0x398   : > { %v16545_v45 = vpack.c.bf16 %v7591_v62, %v7590_v7  ;;  %v5839_v55 = vmax.f32 %v5287_v61, 0.0  ;;  %v13550_v21 = vpop.f32.mrb[176].mxu0  ;;  %13776 = vmatprep.mubr.msk.bf16.mxu1 %vm4240_vm2, %v16398_v12 }
 0x399   : > { %v6017_v28 = vpack.c.bf16 %v5841_v44, %v5840_v14  ;;  %v6724_v9 = vadd.f32 %v13550_v21, %v16324_v24  ;;  %v6715_v51 = vpop.f32.mrb[177].mxu0 }
 0x39a   : > { %v6016_v48 = vpack.c.bf16 %v5839_v55, %v5838_v33  ;;  %v6716_v54 = vadd.f32 %v16324_v24, %v6715_v51  ;;  %v13398_v25 = vpop.f32.mrb[32].mxu1  ;;  %v13551_v32 = vpop.f32.mrb[178].mxu0 }
 0x39b   : > { %v5308_v53 = vadd.f32 %v16306_v36, %v13398_v25  ;;  %v6727_v2 = vadd.f32 %v13551_v32, %v16324_v24  ;;  %v5299_v40 = vpop.f32.mrb[33].mxu1  ;;  %v6718_v29 = vpop.f32.mrb[179].mxu0  ;;  %v7596_v56 = vmax.f32 %v6724_v9, 0.0 }
 0x39c   : > { %v5300_v20 = vadd.f32 %v16306_v36, %v5299_v40  ;;  %v6719_v0 = vadd.f32 %v16324_v24, %v6718_v29  ;;  %v13399_v12 = vpop.f32.mrb[34].mxu1  ;;  %13656 = vmatprep.mubr.msk.bf16.mxu0 %vm4240_vm2, %v6016_v48  ;;  %v7594_v8 = vmax.f32 %v6716_v54, 0.0 }
 0x39d   : > { %v7597_v46 = vmax.f32 %v6727_v2, 0.0  ;;  %v5311_v39 = vadd.f32 %v16306_v36, %v13399_v12  ;;  %v5302_v23 = vpop.f32.mrb[35].mxu1  ;;  %13657 = vmatmul.mubr.msk.bf16.gmra.mrb[28].mxu0 %vm4240_vm2, %v6017_v28  ;;  %v5844_v1 = vmax.f32 %v5308_v53, 0.0 }
 0x39e   : > { %v7595_v19 = vmax.f32 %v6719_v0, 0.0  ;;  %v5303_v31 = vadd.f32 %v16306_v36, %v5302_v23  ;;  %v5842_v57 = vmax.f32 %v5300_v20, 0.0  ;;  %v14530_v0 = vld [vmem:[%s18038_s9 + $0x38] sm:$0xff]  }
 0x39f   : > { %v16559_v34 = vpack.c.bf16 %v7597_v46, %v7596_v56  ;;  %v5845_v22 = vmax.f32 %v5311_v39, 0.0  ;;  %13777 = vmatmul.mubr.msk.bf16.gmra.mrb[140].mxu1 %vm4240_vm2, %v16394_v52  ;;  %14034 = vmatprep.subr.bf16.mxu0 %v14530_v0 }
 0x3a0   : > { %v16563_v5 = vpack.c.bf16 %v7595_v19, %v7594_v8  ;;  %v5843_v17 = vmax.f32 %v5303_v31, 0.0  ;;  %v13554_v6 = vpop.f32.mrb[180].mxu0  ;;  %13780 = vmatprep.mubr.msk.bf16.mxu1 %vm4240_vm2, %v16416_v13  ;;  %14035 = vmatpush3.bf16.msra.mxu0 %v14530_v0 }
 0x3a1   : > { %v6019_v15 = vpack.c.bf16 %v5845_v22, %v5844_v1  ;;  %v6740_v37 = vadd.f32 %v13554_v6, %v16324_v24  ;;  %v6731_v35 = vpop.f32.mrb[181].mxu0 }
 0x3a2   : > { %v6018_v11 = vpack.c.bf16 %v5843_v17, %v5842_v57  ;;  %v6732_v60 = vadd.f32 %v16324_v24, %v6731_v35  ;;  %v13402_v18 = vpop.f32.mrb[36].mxu1  ;;  %v13555_v16 = vpop.f32.mrb[182].mxu0 }
 0x3a3   : > { %v5324_v41 = vadd.f32 %v16306_v36, %v13402_v18  ;;  %v6743_v52 = vadd.f32 %v13555_v16, %v16324_v24  ;;  %v5315_v63 = vpop.f32.mrb[37].mxu1  ;;  %v6734_v7 = vpop.f32.mrb[183].mxu0  ;;  %v7600_v14 = vmax.f32 %v6740_v37, 0.0 }
 0x3a4   : > { %v5316_v62 = vadd.f32 %v16306_v36, %v5315_v63  ;;  %v6735_v61 = vadd.f32 %v16324_v24, %v6734_v7  ;;  %v13403_v13 = vpop.f32.mrb[38].mxu1  ;;  %13660 = vmatprep.mubr.msk.bf16.mxu0 %vm4240_vm2, %v6018_v11  ;;  %v7598_v21 = vmax.f32 %v6732_v60, 0.0 }
 0x3a5   : > { %v7601_v44 = vmax.f32 %v6743_v52, 0.0  ;;  %v5327_v33 = vadd.f32 %v16306_v36, %v13403_v13  ;;  %v5318_v55 = vpop.f32.mrb[39].mxu1  ;;  %13661 = vmatmul.mubr.msk.bf16.gmra.mrb[32].mxu0 %vm4240_vm2, %v6019_v15  ;;  %v5848_v51 = vmax.f32 %v5324_v41, 0.0 }
 0x3a6   : > { %v7599_v28 = vmax.f32 %v6735_v61, 0.0  ;;  %v5319_v9 = vadd.f32 %v16306_v36, %v5318_v55  ;;  %v5846_v25 = vmax.f32 %v5316_v62, 0.0 }
 0x3a7   : > { %v16577_v48 = vpack.c.bf16 %v7601_v44, %v7600_v14  ;;  %v5849_v54 = vmax.f32 %v5327_v33, 0.0  ;;  %13781 = vmatmul.mubr.msk.bf16.gmra.mrb[144].mxu1 %vm4240_vm2, %v16412_v49 }
 0x3a8   : > { %v16581_v32 = vpack.c.bf16 %v7599_v28, %v7598_v21  ;;  %v5847_v53 = vmax.f32 %v5319_v9, 0.0  ;;  %v13558_v2 = vpop.f32.mrb[184].mxu0  ;;  %13784 = vmatprep.mubr.msk.bf16.mxu1 %vm4240_vm2, %v16434_v42 }
 0x3a9   : > { %v6021_v40 = vpack.c.bf16 %v5849_v54, %v5848_v51  ;;  %v6756_v29 = vadd.f32 %v13558_v2, %v16324_v24  ;;  %v6747_v20 = vpop.f32.mrb[185].mxu0 }
 0x3aa   : > { %v6020_v12 = vpack.c.bf16 %v5847_v53, %v5846_v25  ;;  %v6748_v56 = vadd.f32 %v16324_v24, %v6747_v20  ;;  %v13406_v49 = vpop.f32.mrb[40].mxu1  ;;  %v13559_v46 = vpop.f32.mrb[186].mxu0 }
 0x3ab   : > { %v5340_v39 = vadd.f32 %v16306_v36, %v13406_v49  ;;  %v6759_v23 = vadd.f32 %v13559_v46, %v16324_v24  ;;  %v5331_v8 = vpop.f32.mrb[41].mxu1  ;;  %v6750_v19 = vpop.f32.mrb[187].mxu0  ;;  %v7604_v22 = vmax.f32 %v6756_v29, 0.0 }
 0x3ac   : > { %v5332_v42 = vadd.f32 %v16306_v36, %v5331_v8  ;;  %v6751_v31 = vadd.f32 %v16324_v24, %v6750_v19  ;;  %v13407_v1 = vpop.f32.mrb[42].mxu1  ;;  %13664 = vmatprep.mubr.msk.bf16.mxu0 %vm4240_vm2, %v6020_v12  ;;  %v7602_v15 = vmax.f32 %v6748_v56, 0.0  ;;  %v16632_v8 = vld [vmem:[%s18035_s6] ss:$0 sm:$0xff] }
 0x3ad   : > { %v7605_v57 = vmax.f32 %v6759_v23, 0.0  ;;  %v5343_v17 = vadd.f32 %v16306_v36, %v13407_v1  ;;  %v5334_v6 = vpop.f32.mrb[43].mxu1  ;;  %13665 = vmatmul.mubr.msk.bf16.gmra.mrb[36].mxu0 %vm4240_vm2, %v6021_v40  ;;  %v5852_v11 = vmax.f32 %v5340_v39, 0.0 }
 0x3ae   : > { %v7603_v37 = vmax.f32 %v6751_v31, 0.0  ;;  %v5335_v35 = vadd.f32 %v16306_v36, %v5334_v6  ;;  %v5850_v16 = vmax.f32 %v5332_v42, 0.0 }
 0x3af   : > { %v16598_v60 = vpack.c.bf16 %v7605_v57, %v7604_v22  ;;  %v5853_v18 = vmax.f32 %v5343_v17, 0.0  ;;  %13785 = vmatmul.mubr.msk.bf16.gmra.mrb[148].mxu1 %vm4240_vm2, %v16430_v47  ;;  %v16611_v47 = vld [vmem:[%s18033_s4] ss:$0 sm:$0xff] }
 0x3b0   : > { %v16602_v41 = vpack.c.bf16 %v7603_v37, %v7602_v15  ;;  %v5851_v52 = vmax.f32 %v5335_v35, 0.0  ;;  %v13562_v63 = vpop.f32.mrb[188].mxu0  ;;  %13788 = vmatprep.mubr.msk.bf16.mxu1 %vm4240_vm2, %v16455_v10 }
 0x3b1   : > { %v6023_v7 = vpack.c.bf16 %v5853_v18, %v5852_v11  ;;  %v6772_v62 = vadd.f32 %v13562_v63, %v16324_v24  ;;  %v6763_v61 = vpop.f32.mrb[189].mxu0 }
 0x3b2   : > { %v6022_v36 = vpack.c.bf16 %v5851_v52, %v5850_v16  ;;  %v6764_v13 = vadd.f32 %v16324_v24, %v6763_v61  ;;  %v13410_v14 = vpop.f32.mrb[44].mxu1  ;;  %v13563_v44 = vpop.f32.mrb[190].mxu0 }
 0x3b3   : > { %v5356_v33 = vadd.f32 %v16611_v47, %v13410_v14  ;;  %v6775_v55 = vadd.f32 %v13563_v44, %v16324_v24  ;;  %v5347_v21 = vpop.f32.mrb[45].mxu1  ;;  %v6766_v10 = vpop.f32.mrb[191].mxu0  ;;  %v7608_v54 = vmax.f32 %v6772_v62, 0.0 }
 0x3b4   : > { %v5348_v28 = vadd.f32 %v16611_v47, %v5347_v21  ;;  %v6767_v9 = vadd.f32 %v16324_v24, %v6766_v10  ;;  %v13411_v51 = vpop.f32.mrb[46].mxu1  ;;  %13668 = vmatprep.mubr.msk.bf16.mxu0 %vm4240_vm2, %v6022_v36  ;;  %v7606_v40 = vmax.f32 %v6764_v13, 0.0 }
 0x3b5   : > { %v7609_v25 = vmax.f32 %v6775_v55, 0.0  ;;  %v5359_v53 = vadd.f32 %v16611_v47, %v13411_v51  ;;  %v5350_v2 = vpop.f32.mrb[47].mxu1  ;;  %13669 = vmatmul.mubr.msk.bf16.gmra.mrb[40].mxu0 %vm4240_vm2, %v6023_v7  ;;  %v5856_v0 = vmax.f32 %v5356_v33, 0.0 }
 0x3b6   : > { %v7607_v29 = vmax.f32 %v6767_v9, 0.0  ;;  %v5351_v20 = vadd.f32 %v16611_v47, %v5350_v2  ;;  %v5854_v24 = vmax.f32 %v5348_v28, 0.0 }
 0x3b7   : > { %v16621_v12 = vpack.c.bf16 %v7609_v25, %v7608_v54  ;;  %v5857_v56 = vmax.f32 %v5359_v53, 0.0  ;;  %13789 = vmatmul.mubr.msk.bf16.gmra.mrb[152].mxu1 %vm4240_vm2, %v16451_v50 }
 0x3b8   : > { %v16625_v49 = vpack.c.bf16 %v7607_v29, %v7606_v40  ;;  %v5855_v46 = vmax.f32 %v5351_v20, 0.0  ;;  %v13566_v39 = vpop.f32.mrb[192].mxu0  ;;  %13792 = vmatprep.mubr.msk.bf16.mxu1 %vm4240_vm2, %v16473_v38 }
 0x3b9   : > { %v6025_v23 = vpack.c.bf16 %v5857_v56, %v5856_v0  ;;  %v6788_v19 = vadd.f32 %v16632_v8, %v13566_v39  ;;  %v6779_v42 = vpop.f32.mrb[193].mxu0 }
 0x3ba   : > { %v6024_v31 = vpack.c.bf16 %v5855_v46, %v5854_v24  ;;  %v6780_v50 = vadd.f32 %v16632_v8, %v6779_v42  ;;  %v13414_v1 = vpop.f32.mrb[48].mxu1  ;;  %v13567_v22 = vpop.f32.mrb[194].mxu0 }
 0x3bb   : > { %v5372_v57 = vadd.f32 %v16611_v47, %v13414_v1  ;;  %v6791_v17 = vadd.f32 %v16632_v8, %v13567_v22  ;;  %v5363_v6 = vpop.f32.mrb[49].mxu1  ;;  %v6782_v38 = vpop.f32.mrb[195].mxu0  ;;  %v7612_v11 = vmax.f32 %v6788_v19, 0.0 }
 0x3bc   : > { %v5364_v15 = vadd.f32 %v16611_v47, %v5363_v6  ;;  %v6783_v37 = vadd.f32 %v16632_v8, %v6782_v38  ;;  %v13415_v35 = vpop.f32.mrb[50].mxu1  ;;  %13672 = vmatprep.mubr.msk.bf16.mxu0 %vm4240_vm2, %v6024_v31  ;;  %v7610_v63 = vmax.f32 %v6780_v50, 0.0 }
 0x3bd   : > { %v7613_v18 = vmax.f32 %v6791_v17, 0.0  ;;  %v5375_v16 = vadd.f32 %v16611_v47, %v13415_v35  ;;  %v5366_v52 = vpop.f32.mrb[51].mxu1  ;;  %13673 = vmatmul.mubr.msk.bf16.gmra.mrb[44].mxu0 %vm4240_vm2, %v6025_v23  ;;  %v5860_v61 = vmax.f32 %v5372_v57, 0.0 }
 0x3be   : > { %v7611_v7 = vmax.f32 %v6783_v37, 0.0  ;;  %v5367_v62 = vadd.f32 %v16611_v47, %v5366_v52  ;;  %v5858_v14 = vmax.f32 %v5364_v15, 0.0 }
 0x3bf   : > { %v16644_v36 = vpack.c.bf16 %v7613_v18, %v7612_v11  ;;  %v5861_v13 = vmax.f32 %v5375_v16, 0.0  ;;  %13793 = vmatmul.mubr.msk.bf16.gmra.mrb[156].mxu1 %vm4240_vm2, %v16469_v27 }
 0x3c0   : > { %v16648_v44 = vpack.c.bf16 %v7611_v7, %v7610_v63  ;;  %v5859_v33 = vmax.f32 %v5367_v62, 0.0  ;;  %v13570_v55 = vpop.f32.mrb[196].mxu0  ;;  %13796 = vmatprep.mubr.msk.bf16.mxu1 %vm4240_vm2, %v16491_v59 }
 0x3c1   : > { %v6027_v21 = vpack.c.bf16 %v5861_v13, %v5860_v61  ;;  %v6804_v10 = vadd.f32 %v16632_v8, %v13570_v55  ;;  %v6795_v28 = vpop.f32.mrb[197].mxu0 }
 0x3c2   : > { %v6026_v9 = vpack.c.bf16 %v5859_v33, %v5858_v14  ;;  %v6796_v51 = vadd.f32 %v16632_v8, %v6795_v28  ;;  %v13418_v54 = vpop.f32.mrb[52].mxu1  ;;  %v13571_v25 = vpop.f32.mrb[198].mxu0 }
 0x3c3   : > { %v5388_v53 = vadd.f32 %v16611_v47, %v13418_v54  ;;  %v6807_v27 = vadd.f32 %v16632_v8, %v13571_v25  ;;  %v5379_v2 = vpop.f32.mrb[53].mxu1  ;;  %v6798_v40 = vpop.f32.mrb[199].mxu0  ;;  %v7616_v0 = vmax.f32 %v6804_v10, 0.0 }
 0x3c4   : > { %v5380_v29 = vadd.f32 %v16611_v47, %v5379_v2  ;;  %v6799_v20 = vadd.f32 %v16632_v8, %v6798_v40  ;;  %v13419_v59 = vpop.f32.mrb[54].mxu1  ;;  %13676 = vmatprep.mubr.msk.bf16.mxu0 %vm4240_vm2, %v6026_v9  ;;  %v7614_v39 = vmax.f32 %v6796_v51, 0.0 }
 0x3c5   : > { %v7617_v56 = vmax.f32 %v6807_v27, 0.0  ;;  %v5391_v24 = vadd.f32 %v16611_v47, %v13419_v59  ;;  %v5382_v46 = vpop.f32.mrb[55].mxu1  ;;  %13677 = vmatmul.mubr.msk.bf16.gmra.mrb[48].mxu0 %vm4240_vm2, %v6027_v21  ;;  %v5864_v42 = vmax.f32 %v5388_v53, 0.0 }
 0x3c6   : > { %v7615_v23 = vmax.f32 %v6799_v20, 0.0  ;;  %v5383_v19 = vadd.f32 %v16611_v47, %v5382_v46  ;;  %v5862_v1 = vmax.f32 %v5380_v29, 0.0 }
 0x3c7   : > { %v16662_v31 = vpack.c.bf16 %v7617_v56, %v7616_v0  ;;  %v5865_v50 = vmax.f32 %v5391_v24, 0.0  ;;  %13797 = vmatmul.mubr.msk.bf16.gmra.mrb[160].mxu1 %vm4240_vm2, %v16487_v58 }
 0x3c8   : > { %v16666_v22 = vpack.c.bf16 %v7615_v23, %v7614_v39  ;;  %v5863_v57 = vmax.f32 %v5383_v19, 0.0  ;;  %v13574_v17 = vpop.f32.mrb[200].mxu0  ;;  %13800 = vmatprep.mubr.msk.bf16.mxu1 %vm4240_vm2, %v16509_v30 }
 0x3c9   : > { %v6029_v6 = vpack.c.bf16 %v5865_v50, %v5864_v42  ;;  %v6820_v38 = vadd.f32 %v16632_v8, %v13574_v17  ;;  %v6811_v15 = vpop.f32.mrb[201].mxu0 }
 0x3ca   : > { %v6028_v37 = vpack.c.bf16 %v5863_v57, %v5862_v1  ;;  %v6812_v35 = vadd.f32 %v16632_v8, %v6811_v15  ;;  %v13422_v11 = vpop.f32.mrb[56].mxu1  ;;  %v13575_v18 = vpop.f32.mrb[202].mxu0 }
 0x3cb   : > { %v5404_v16 = vadd.f32 %v16611_v47, %v13422_v11  ;;  %v6823_v58 = vadd.f32 %v16632_v8, %v13575_v18  ;;  %v5395_v52 = vpop.f32.mrb[57].mxu1  ;;  %v6814_v63 = vpop.f32.mrb[203].mxu0  ;;  %v7620_v61 = vmax.f32 %v6820_v38, 0.0 }
 0x3cc   : > { %v5396_v7 = vadd.f32 %v16611_v47, %v5395_v52  ;;  %v6815_v62 = vadd.f32 %v16632_v8, %v6814_v63  ;;  %v13423_v30 = vpop.f32.mrb[58].mxu1  ;;  %13680 = vmatprep.mubr.msk.bf16.mxu0 %vm4240_vm2, %v6028_v37  ;;  %v7618_v55 = vmax.f32 %v6812_v35, 0.0 }
 0x3cd   : > { %v7621_v13 = vmax.f32 %v6823_v58, 0.0  ;;  %v5407_v14 = vadd.f32 %v16611_v47, %v13423_v30  ;;  %v5398_v33 = vpop.f32.mrb[59].mxu1  ;;  %13681 = vmatmul.mubr.msk.bf16.gmra.mrb[52].mxu0 %vm4240_vm2, %v6029_v6  ;;  %v5868_v28 = vmax.f32 %v5404_v16, 0.0 }
 0x3ce   : > { %v7619_v21 = vmax.f32 %v6815_v62, 0.0  ;;  %v5399_v10 = vadd.f32 %v16611_v47, %v5398_v33  ;;  %v5866_v54 = vmax.f32 %v5396_v7, 0.0 }
 0x3cf   : > { %v16680_v9 = vpack.c.bf16 %v7621_v13, %v7620_v61  ;;  %v5869_v51 = vmax.f32 %v5407_v14, 0.0  ;;  %13801 = vmatmul.mubr.msk.bf16.gmra.mrb[164].mxu1 %vm4240_vm2, %v16505_v26 }
 0x3d0   : > { %v16684_v25 = vpack.c.bf16 %v7619_v21, %v7618_v55  ;;  %v5867_v53 = vmax.f32 %v5399_v10, 0.0  ;;  %v13578_v27 = vpop.f32.mrb[204].mxu0  ;;  %13804 = vmatprep.mubr.msk.bf16.mxu1 %vm4240_vm2, %v16527_v4 }
 0x3d1   : > { %v6031_v2 = vpack.c.bf16 %v5869_v51, %v5868_v28  ;;  %v6836_v40 = vadd.f32 %v16632_v8, %v13578_v27  ;;  %v6827_v29 = vpop.f32.mrb[205].mxu0 }
 0x3d2   : > { %v6030_v20 = vpack.c.bf16 %v5867_v53, %v5866_v54  ;;  %v6828_v59 = vadd.f32 %v16632_v8, %v6827_v29  ;;  %v13426_v0 = vpop.f32.mrb[60].mxu1  ;;  %v13579_v56 = vpop.f32.mrb[206].mxu0 }
 0x3d3   : > { %v5420_v24 = vadd.f32 %v16611_v47, %v13426_v0  ;;  %v6839_v26 = vadd.f32 %v16632_v8, %v13579_v56  ;;  %v5411_v46 = vpop.f32.mrb[61].mxu1  ;;  %v6830_v39 = vpop.f32.mrb[207].mxu0  ;;  %v7624_v42 = vmax.f32 %v6836_v40, 0.0 }
 0x3d4   : > { %v5412_v23 = vadd.f32 %v16611_v47, %v5411_v46  ;;  %v6831_v19 = vadd.f32 %v16632_v8, %v6830_v39  ;;  %v13427_v4 = vpop.f32.mrb[62].mxu1  ;;  %13684 = vmatprep.mubr.msk.bf16.mxu0 %vm4240_vm2, %v6030_v20  ;;  %v7622_v17 = vmax.f32 %v6828_v59, 0.0 }
 0x3d5   : > { %v7625_v50 = vmax.f32 %v6839_v26, 0.0  ;;  %v5423_v1 = vadd.f32 %v16611_v47, %v13427_v4  ;;  %v5414_v57 = vpop.f32.mrb[63].mxu1  ;;  %13685 = vmatmul.mubr.msk.bf16.gmra.mrb[56].mxu0 %vm4240_vm2, %v6031_v2  ;;  %v5872_v15 = vmax.f32 %v5420_v24, 0.0 }
 0x3d6   : > { %v7623_v6 = vmax.f32 %v6831_v19, 0.0  ;;  %v5415_v38 = vadd.f32 %v16611_v47, %v5414_v57  ;;  %v5870_v11 = vmax.f32 %v5412_v23, 0.0 }
 0x3d7   : > { %v16698_v37 = vpack.c.bf16 %v7625_v50, %v7624_v42  ;;  %v5873_v35 = vmax.f32 %v5423_v1, 0.0  ;;  %13805 = vmatmul.mubr.msk.bf16.gmra.mrb[168].mxu1 %vm4240_vm2, %v16523_v3 }
 0x3d8   : > { %v16702_v18 = vpack.c.bf16 %v7623_v6, %v7622_v17  ;;  %v5871_v16 = vmax.f32 %v5415_v38, 0.0  ;;  %v13582_v58 = vpop.f32.mrb[208].mxu0  ;;  %13808 = vmatprep.mubr.msk.bf16.mxu1 %vm4240_vm2, %v16545_v45 }
 0x3d9   : > { %v6033_v52 = vpack.c.bf16 %v5873_v35, %v5872_v15  ;;  %v6852_v63 = vadd.f32 %v16632_v8, %v13582_v58  ;;  %v6843_v7 = vpop.f32.mrb[209].mxu0 }
 0x3da   : > { %v6032_v62 = vpack.c.bf16 %v5871_v16, %v5870_v11  ;;  %v6844_v30 = vadd.f32 %v16632_v8, %v6843_v7  ;;  %v13430_v61 = vpop.f32.mrb[64].mxu1  ;;  %v13583_v13 = vpop.f32.mrb[210].mxu0 }
 0x3db   : > { %v5436_v14 = vadd.f32 %v16611_v47, %v13430_v61  ;;  %v6855_v3 = vadd.f32 %v16632_v8, %v13583_v13  ;;  %v5427_v33 = vpop.f32.mrb[65].mxu1  ;;  %v6846_v55 = vpop.f32.mrb[211].mxu0  ;;  %v7628_v28 = vmax.f32 %v6852_v63, 0.0 }
 0x3dc   : > { %v5428_v21 = vadd.f32 %v16611_v47, %v5427_v33  ;;  %v6847_v10 = vadd.f32 %v16632_v8, %v6846_v55  ;;  %v13431_v45 = vpop.f32.mrb[66].mxu1  ;;  %13688 = vmatprep.mubr.msk.bf16.mxu0 %vm4240_vm2, %v6032_v62  ;;  %v7626_v27 = vmax.f32 %v6844_v30, 0.0 }
 0x3dd   : > { %v7629_v51 = vmax.f32 %v6855_v3, 0.0  ;;  %v5439_v54 = vadd.f32 %v16611_v47, %v13431_v45  ;;  %v5430_v53 = vpop.f32.mrb[67].mxu1  ;;  %13689 = vmatmul.mubr.msk.bf16.gmra.mrb[60].mxu0 %vm4240_vm2, %v6033_v52  ;;  %v5876_v29 = vmax.f32 %v5436_v14, 0.0 }
 0x3de   : > { %v7627_v2 = vmax.f32 %v6847_v10, 0.0  ;;  %v5431_v40 = vadd.f32 %v16611_v47, %v5430_v53  ;;  %v5874_v0 = vmax.f32 %v5428_v21, 0.0 }
 0x3df   : > { %v16716_v20 = vpack.c.bf16 %v7629_v51, %v7628_v28  ;;  %v5877_v59 = vmax.f32 %v5439_v54, 0.0  ;;  %13809 = vmatmul.mubr.msk.bf16.gmra.mrb[172].mxu1 %vm4240_vm2, %v16541_v43 }
 0x3e0   : > { %v16720_v56 = vpack.c.bf16 %v7627_v2, %v7626_v27  ;;  %v5875_v24 = vmax.f32 %v5431_v40, 0.0  ;;  %v13586_v26 = vpop.f32.mrb[212].mxu0  ;;  %13812 = vmatprep.mubr.msk.bf16.mxu1 %vm4240_vm2, %v16563_v5 }
 0x3e1   : > { %v6035_v46 = vpack.c.bf16 %v5877_v59, %v5876_v29  ;;  %v6868_v39 = vadd.f32 %v16632_v8, %v13586_v26  ;;  %v6859_v23 = vpop.f32.mrb[213].mxu0 }
 0x3e2   : > { %v6034_v19 = vpack.c.bf16 %v5875_v24, %v5874_v0  ;;  %v6860_v4 = vadd.f32 %v16632_v8, %v6859_v23  ;;  %v13434_v42 = vpop.f32.mrb[68].mxu1  ;;  %v13587_v50 = vpop.f32.mrb[214].mxu0 }
 0x3e3   : > { %v5452_v1 = vadd.f32 %v16611_v47, %v13434_v42  ;;  %v6871_v43 = vadd.f32 %v16632_v8, %v13587_v50  ;;  %v5443_v57 = vpop.f32.mrb[69].mxu1  ;;  %v6862_v17 = vpop.f32.mrb[215].mxu0  ;;  %v7632_v15 = vmax.f32 %v6868_v39, 0.0 }
 0x3e4   : > { %v5444_v6 = vadd.f32 %v16611_v47, %v5443_v57  ;;  %v6863_v38 = vadd.f32 %v16632_v8, %v6862_v17  ;;  %v13435_v5 = vpop.f32.mrb[70].mxu1  ;;  %13692 = vmatprep.mubr.msk.bf16.mxu0 %vm4240_vm2, %v6034_v19  ;;  %v7630_v58 = vmax.f32 %v6860_v4, 0.0 }
 0x3e5   : > { %v7633_v35 = vmax.f32 %v6871_v43, 0.0  ;;  %v5455_v11 = vadd.f32 %v16611_v47, %v13435_v5  ;;  %v5446_v16 = vpop.f32.mrb[71].mxu1  ;;  %13693 = vmatmul.mubr.msk.bf16.gmra.mrb[64].mxu0 %vm4240_vm2, %v6035_v46  ;;  %v5880_v7 = vmax.f32 %v5452_v1, 0.0 }
 0x3e6   : > { %v7631_v52 = vmax.f32 %v6863_v38, 0.0  ;;  %v5447_v63 = vadd.f32 %v16611_v47, %v5446_v16  ;;  %v5878_v61 = vmax.f32 %v5444_v6, 0.0 }
 0x3e7   : > { %v16734_v62 = vpack.c.bf16 %v7633_v35, %v7632_v15  ;;  %v5881_v30 = vmax.f32 %v5455_v11, 0.0  ;;  %13813 = vmatmul.mubr.msk.bf16.gmra.mrb[176].mxu1 %vm4240_vm2, %v16559_v34 }
 0x3e8   : > { %v16738_v13 = vpack.c.bf16 %v7631_v52, %v7630_v58  ;;  %v5879_v14 = vmax.f32 %v5447_v63, 0.0  ;;  %v13590_v3 = vpop.f32.mrb[216].mxu0  ;;  %13816 = vmatprep.mubr.msk.bf16.mxu1 %vm4240_vm2, %v16581_v32 }
 0x3e9   : > { %v6037_v33 = vpack.c.bf16 %v5881_v30, %v5880_v7  ;;  %v6884_v55 = vadd.f32 %v16632_v8, %v13590_v3  ;;  %v6875_v21 = vpop.f32.mrb[217].mxu0 }
 0x3ea   : > { %v6036_v10 = vpack.c.bf16 %v5879_v14, %v5878_v61  ;;  %v6876_v45 = vadd.f32 %v16632_v8, %v6875_v21  ;;  %v13438_v28 = vpop.f32.mrb[72].mxu1  ;;  %v13591_v51 = vpop.f32.mrb[218].mxu0 }
 0x3eb   : > { %v5468_v54 = vadd.f32 %v16611_v47, %v13438_v28  ;;  %v6887_v34 = vadd.f32 %v16632_v8, %v13591_v51  ;;  %v5459_v53 = vpop.f32.mrb[73].mxu1  ;;  %v6878_v27 = vpop.f32.mrb[219].mxu0  ;;  %v7636_v29 = vmax.f32 %v6884_v55, 0.0 }
 0x3ec   : > { %v5460_v2 = vadd.f32 %v16611_v47, %v5459_v53  ;;  %v6879_v40 = vadd.f32 %v16632_v8, %v6878_v27  ;;  %v13439_v32 = vpop.f32.mrb[74].mxu1  ;;  %13696 = vmatprep.mubr.msk.bf16.mxu0 %vm4240_vm2, %v6036_v10  ;;  %v7634_v26 = vmax.f32 %v6876_v45, 0.0 }
 0x3ed   : > { %v7637_v59 = vmax.f32 %v6887_v34, 0.0  ;;  %v5471_v0 = vadd.f32 %v16611_v47, %v13439_v32  ;;  %v5462_v24 = vpop.f32.mrb[75].mxu1  ;;  %13697 = vmatmul.mubr.msk.bf16.gmra.mrb[68].mxu0 %vm4240_vm2, %v6037_v33  ;;  %v5884_v23 = vmax.f32 %v5468_v54, 0.0 }
 0x3ee   : > { %v7635_v46 = vmax.f32 %v6879_v40, 0.0  ;;  %v5463_v39 = vadd.f32 %v16611_v47, %v5462_v24  ;;  %v5882_v42 = vmax.f32 %v5460_v2, 0.0 }
 0x3ef   : > { %v16752_v19 = vpack.c.bf16 %v7637_v59, %v7636_v29  ;;  %v5885_v4 = vmax.f32 %v5471_v0, 0.0  ;;  %13817 = vmatmul.mubr.msk.bf16.gmra.mrb[180].mxu1 %vm4240_vm2, %v16577_v48 }
 0x3f0   : > { %v16756_v50 = vpack.c.bf16 %v7635_v46, %v7634_v26  ;;  %v5883_v1 = vmax.f32 %v5463_v39, 0.0  ;;  %v13594_v43 = vpop.f32.mrb[220].mxu0  ;;  %13820 = vmatprep.mubr.msk.bf16.mxu1 %vm4240_vm2, %v16602_v41 }
 0x3f1   : > { %v6039_v57 = vpack.c.bf16 %v5885_v4, %v5884_v23  ;;  %v6900_v17 = vadd.f32 %v16632_v8, %v13594_v43  ;;  %v6891_v6 = vpop.f32.mrb[221].mxu0 }
 0x3f2   : > { %v6038_v38 = vpack.c.bf16 %v5883_v1, %v5882_v42  ;;  %v6892_v5 = vadd.f32 %v16632_v8, %v6891_v6  ;;  %v13442_v15 = vpop.f32.mrb[76].mxu1  ;;  %v13595_v35 = vpop.f32.mrb[222].mxu0 }
 0x3f3   : > { %v5484_v11 = vadd.f32 %v16611_v47, %v13442_v15  ;;  %v6903_v48 = vadd.f32 %v16632_v8, %v13595_v35  ;;  %v5475_v16 = vpop.f32.mrb[77].mxu1  ;;  %v6894_v58 = vpop.f32.mrb[223].mxu0  ;;  %v7640_v7 = vmax.f32 %v6900_v17, 0.0 }
 0x3f4   : > { %v5476_v52 = vadd.f32 %v16611_v47, %v5475_v16  ;;  %v6895_v63 = vadd.f32 %v16632_v8, %v6894_v58  ;;  %v13443_v41 = vpop.f32.mrb[78].mxu1  ;;  %13700 = vmatprep.mubr.msk.bf16.mxu0 %vm4240_vm2, %v6038_v38  ;;  %v7638_v3 = vmax.f32 %v6892_v5, 0.0 }
 0x3f5   : > { %v7641_v30 = vmax.f32 %v6903_v48, 0.0  ;;  %v5487_v61 = vadd.f32 %v16611_v47, %v13443_v41  ;;  %v5478_v14 = vpop.f32.mrb[79].mxu1  ;;  %13701 = vmatmul.mubr.msk.bf16.gmra.mrb[72].mxu0 %vm4240_vm2, %v6039_v57  ;;  %v5888_v21 = vmax.f32 %v5484_v11, 0.0 }
 0x3f6   : > { %v7639_v33 = vmax.f32 %v6895_v63, 0.0  ;;  %v5479_v55 = vadd.f32 %v16611_v47, %v5478_v14  ;;  %v5886_v28 = vmax.f32 %v5476_v52, 0.0 }
 0x3f7   : > { %v16770_v10 = vpack.c.bf16 %v7641_v30, %v7640_v7  ;;  %v5889_v45 = vmax.f32 %v5487_v61, 0.0  ;;  %13821 = vmatmul.mubr.msk.bf16.gmra.mrb[184].mxu1 %vm4240_vm2, %v16598_v60 }
 0x3f8   : > { %v16774_v51 = vpack.c.bf16 %v7639_v33, %v7638_v3  ;;  %v5887_v54 = vmax.f32 %v5479_v55, 0.0  ;;  %v13598_v34 = vpop.f32.mrb[224].mxu0  ;;  %13824 = vmatprep.mubr.msk.bf16.mxu1 %vm4240_vm2, %v16625_v49 }
 0x3f9   : > { %v6041_v53 = vpack.c.bf16 %v5889_v45, %v5888_v21  ;;  %v6916_v27 = vadd.f32 %v16632_v8, %v13598_v34  ;;  %v6907_v2 = vpop.f32.mrb[225].mxu0 }
 0x3fa   : > { %v6040_v40 = vpack.c.bf16 %v5887_v54, %v5886_v28  ;;  %v6908_v32 = vadd.f32 %v16632_v8, %v6907_v2  ;;  %v13446_v29 = vpop.f32.mrb[80].mxu1  ;;  %v13599_v59 = vpop.f32.mrb[226].mxu0 }
 0x3fb   : > { %v5500_v0 = vadd.f32 %v16611_v47, %v13446_v29  ;;  %v6919_v60 = vadd.f32 %v16632_v8, %v13599_v59  ;;  %v5491_v24 = vpop.f32.mrb[81].mxu1  ;;  %v6910_v26 = vpop.f32.mrb[227].mxu0  ;;  %v7644_v23 = vmax.f32 %v6916_v27, 0.0 }
 0x3fc   : > { %v5492_v46 = vadd.f32 %v16611_v47, %v5491_v24  ;;  %v6911_v39 = vadd.f32 %v16632_v8, %v6910_v26  ;;  %v13447_v49 = vpop.f32.mrb[82].mxu1  ;;  %13704 = vmatprep.mubr.msk.bf16.mxu0 %vm4240_vm2, %v6040_v40  ;;  %v7642_v43 = vmax.f32 %v6908_v32, 0.0 }
 0x3fd   : > { %v7645_v4 = vmax.f32 %v6919_v60, 0.0  ;;  %v5503_v42 = vadd.f32 %v16611_v47, %v13447_v49  ;;  %v5494_v1 = vpop.f32.mrb[83].mxu1  ;;  %13705 = vmatmul.mubr.msk.bf16.gmra.mrb[76].mxu0 %vm4240_vm2, %v6041_v53  ;;  %v5892_v6 = vmax.f32 %v5500_v0, 0.0 }
 0x3fe   : > { %v7643_v57 = vmax.f32 %v6911_v39, 0.0  ;;  %v5495_v17 = vadd.f32 %v16611_v47, %v5494_v1  ;;  %v5890_v15 = vmax.f32 %v5492_v46, 0.0 }
 0x3ff   : > { %v16788_v38 = vpack.c.bf16 %v7645_v4, %v7644_v23  ;;  %v5893_v5 = vmax.f32 %v5503_v42, 0.0  ;;  %13825 = vmatmul.mubr.msk.bf16.gmra.mrb[188].mxu1 %vm4240_vm2, %v16621_v12 }
 0x400   : > { %v16792_v35 = vpack.c.bf16 %v7643_v57, %v7642_v43  ;;  %v5891_v11 = vmax.f32 %v5495_v17, 0.0  ;;  %v13602_v48 = vpop.f32.mrb[228].mxu0  ;;  %13828 = vmatprep.mubr.msk.bf16.mxu1 %vm4240_vm2, %v16648_v44 }
 0x401   : > { %v6043_v16 = vpack.c.bf16 %v5893_v5, %v5892_v6  ;;  %v6932_v58 = vadd.f32 %v16632_v8, %v13602_v48  ;;  %v6923_v52 = vpop.f32.mrb[229].mxu0 }
 0x402   : > { %v6042_v63 = vpack.c.bf16 %v5891_v11, %v5890_v15  ;;  %v6924_v41 = vadd.f32 %v16632_v8, %v6923_v52  ;;  %v13450_v7 = vpop.f32.mrb[84].mxu1  ;;  %v13603_v30 = vpop.f32.mrb[230].mxu0 }
 0x403   : > { %v5516_v61 = vadd.f32 %v16611_v47, %v13450_v7  ;;  %v6935_v12 = vadd.f32 %v16632_v8, %v13603_v30  ;;  %v5507_v14 = vpop.f32.mrb[85].mxu1  ;;  %v6926_v3 = vpop.f32.mrb[231].mxu0  ;;  %v7648_v21 = vmax.f32 %v6932_v58, 0.0 }
 0x404   : > { %v5508_v33 = vadd.f32 %v16611_v47, %v5507_v14  ;;  %v6927_v55 = vadd.f32 %v16632_v8, %v6926_v3  ;;  %v13451_v44 = vpop.f32.mrb[86].mxu1  ;;  %13708 = vmatprep.mubr.msk.bf16.mxu0 %vm4240_vm2, %v6042_v63  ;;  %v7646_v34 = vmax.f32 %v6924_v41, 0.0 }
 0x405   : > { %v7649_v45 = vmax.f32 %v6935_v12, 0.0  ;;  %v5519_v28 = vadd.f32 %v16611_v47, %v13451_v44  ;;  %v5510_v54 = vpop.f32.mrb[87].mxu1  ;;  %13709 = vmatmul.mubr.msk.bf16.gmra.mrb[80].mxu0 %vm4240_vm2, %v6043_v16  ;;  %v5896_v2 = vmax.f32 %v5516_v61, 0.0 }
 0x406   : > { %v7647_v53 = vmax.f32 %v6927_v55, 0.0  ;;  %v5511_v27 = vadd.f32 %v16611_v47, %v5510_v54  ;;  %v5894_v29 = vmax.f32 %v5508_v33, 0.0 }
 0x407   : > { %v16806_v40 = vpack.c.bf16 %v7649_v45, %v7648_v21  ;;  %v5897_v32 = vmax.f32 %v5519_v28, 0.0  ;;  %13829 = vmatmul.mubr.msk.bf16.gmra.mrb[192].mxu1 %vm4240_vm2, %v16644_v36 }
 0x408   : > { %v16810_v59 = vpack.c.bf16 %v7647_v53, %v7646_v34  ;;  %v5895_v0 = vmax.f32 %v5511_v27, 0.0  ;;  %v13606_v60 = vpop.f32.mrb[232].mxu0  ;;  %13832 = vmatprep.mubr.msk.bf16.mxu1 %vm4240_vm2, %v16666_v22 }
 0x409   : > { %v6045_v24 = vpack.c.bf16 %v5897_v32, %v5896_v2  ;;  %v6948_v26 = vadd.f32 %v16632_v8, %v13606_v60  ;;  %v6939_v46 = vpop.f32.mrb[233].mxu0 }
 0x40a   : > { %v6044_v39 = vpack.c.bf16 %v5895_v0, %v5894_v29  ;;  %v6940_v49 = vadd.f32 %v16632_v8, %v6939_v46  ;;  %v13454_v23 = vpop.f32.mrb[88].mxu1  ;;  %v13607_v4 = vpop.f32.mrb[234].mxu0 }
 0x40b   : > { %v5532_v42 = vadd.f32 %v16611_v47, %v13454_v23  ;;  %v6951_v36 = vadd.f32 %v16632_v8, %v13607_v4  ;;  %v5523_v1 = vpop.f32.mrb[89].mxu1  ;;  %v6942_v43 = vpop.f32.mrb[235].mxu0  ;;  %v7652_v6 = vmax.f32 %v6948_v26, 0.0 }
 0x40c   : > { %v5524_v57 = vadd.f32 %v16611_v47, %v5523_v1  ;;  %v6943_v17 = vadd.f32 %v16632_v8, %v6942_v43  ;;  %v13455_v22 = vpop.f32.mrb[90].mxu1  ;;  %13712 = vmatprep.mubr.msk.bf16.mxu0 %vm4240_vm2, %v6044_v39  ;;  %v7650_v48 = vmax.f32 %v6940_v49, 0.0 }
 0x40d   : > { %v7653_v5 = vmax.f32 %v6951_v36, 0.0  ;;  %v5535_v15 = vadd.f32 %v16611_v47, %v13455_v22  ;;  %v5526_v11 = vpop.f32.mrb[91].mxu1  ;;  %13713 = vmatmul.mubr.msk.bf16.gmra.mrb[84].mxu0 %vm4240_vm2, %v6045_v24  ;;  %v5900_v52 = vmax.f32 %v5532_v42, 0.0 }
 0x40e   : > { %v7651_v16 = vmax.f32 %v6943_v17, 0.0  ;;  %v5527_v58 = vadd.f32 %v16611_v47, %v5526_v11  ;;  %v5898_v7 = vmax.f32 %v5524_v57, 0.0 }
 0x40f   : > { %v16824_v63 = vpack.c.bf16 %v7653_v5, %v7652_v6  ;;  %v5901_v41 = vmax.f32 %v5535_v15, 0.0  ;;  %13833 = vmatmul.mubr.msk.bf16.gmra.mrb[196].mxu1 %vm4240_vm2, %v16662_v31 }
 0x410   : > { %v16828_v30 = vpack.c.bf16 %v7651_v16, %v7650_v48  ;;  %v5899_v61 = vmax.f32 %v5527_v58, 0.0  ;;  %v13610_v12 = vpop.f32.mrb[236].mxu0  ;;  %13836 = vmatprep.mubr.msk.bf16.mxu1 %vm4240_vm2, %v16684_v25 }
 0x411   : > { %v6047_v14 = vpack.c.bf16 %v5901_v41, %v5900_v52  ;;  %v6964_v3 = vadd.f32 %v16632_v8, %v13610_v12  ;;  %v6955_v33 = vpop.f32.mrb[237].mxu0 }
 0x412   : > { %v6046_v55 = vpack.c.bf16 %v5899_v61, %v5898_v7  ;;  %v6956_v44 = vadd.f32 %v16632_v8, %v6955_v33  ;;  %v13458_v21 = vpop.f32.mrb[92].mxu1  ;;  %v13611_v45 = vpop.f32.mrb[238].mxu0 }
 0x413   : > { %v5548_v28 = vadd.f32 %v16611_v47, %v13458_v21  ;;  %v6967_v31 = vadd.f32 %v16632_v8, %v13611_v45  ;;  %v5539_v54 = vpop.f32.mrb[93].mxu1  ;;  %v6958_v34 = vpop.f32.mrb[239].mxu0  ;;  %v7656_v2 = vmax.f32 %v6964_v3, 0.0 }
 0x414   : > { %v5540_v53 = vadd.f32 %v16611_v47, %v5539_v54  ;;  %v6959_v27 = vadd.f32 %v16632_v8, %v6958_v34  ;;  %v13459_v25 = vpop.f32.mrb[94].mxu1  ;;  %13716 = vmatprep.mubr.msk.bf16.mxu0 %vm4240_vm2, %v6046_v55  ;;  %v7654_v60 = vmax.f32 %v6956_v44, 0.0 }
 0x415   : > { %v7657_v32 = vmax.f32 %v6967_v31, 0.0  ;;  %v5551_v29 = vadd.f32 %v16611_v47, %v13459_v25  ;;  %v5542_v0 = vpop.f32.mrb[95].mxu1  ;;  %13717 = vmatmul.mubr.msk.bf16.gmra.mrb[88].mxu0 %vm4240_vm2, %v6047_v14  ;;  %v5904_v46 = vmax.f32 %v5548_v28, 0.0 }
 0x416   : > { %v7655_v24 = vmax.f32 %v6959_v27, 0.0  ;;  %v5543_v26 = vadd.f32 %v16611_v47, %v5542_v0  ;;  %v5902_v23 = vmax.f32 %v5540_v53, 0.0 }
 0x417   : > { %v16842_v39 = vpack.c.bf16 %v7657_v32, %v7656_v2  ;;  %v5905_v49 = vmax.f32 %v5551_v29, 0.0  ;;  %13837 = vmatmul.mubr.msk.bf16.gmra.mrb[200].mxu1 %vm4240_vm2, %v16680_v9 }
 0x418   : > { %v16846_v4 = vpack.c.bf16 %v7655_v24, %v7654_v60  ;;  %v5903_v42 = vmax.f32 %v5543_v26, 0.0  ;;  %v13614_v36 = vpop.f32.mrb[240].mxu0  ;;  %13840 = vmatprep.mubr.msk.bf16.mxu1 %vm4240_vm2, %v16702_v18 }
 0x419   : > { %v6049_v1 = vpack.c.bf16 %v5905_v49, %v5904_v46  ;;  %v6980_v43 = vadd.f32 %v16632_v8, %v13614_v36  ;;  %v6971_v57 = vpop.f32.mrb[241].mxu0 }
 0x41a   : > { %v6048_v17 = vpack.c.bf16 %v5903_v42, %v5902_v23  ;;  %v6972_v22 = vadd.f32 %v16632_v8, %v6971_v57  ;;  %v13462_v6 = vpop.f32.mrb[96].mxu1  ;;  %v13615_v5 = vpop.f32.mrb[242].mxu0 }
 0x41b   : > { %v5564_v15 = vadd.f32 %v16611_v47, %v13462_v6  ;;  %v6983_v9 = vadd.f32 %v16632_v8, %v13615_v5  ;;  %v5555_v11 = vpop.f32.mrb[97].mxu1  ;;  %v6974_v48 = vpop.f32.mrb[243].mxu0  ;;  %v7660_v52 = vmax.f32 %v6980_v43, 0.0 }
 0x41c   : > { %v5556_v16 = vadd.f32 %v16611_v47, %v5555_v11  ;;  %v6975_v58 = vadd.f32 %v16632_v8, %v6974_v48  ;;  %v13463_v18 = vpop.f32.mrb[98].mxu1  ;;  %13720 = vmatprep.mubr.msk.bf16.mxu0 %vm4240_vm2, %v6048_v17  ;;  %v7658_v12 = vmax.f32 %v6972_v22, 0.0 }
 0x41d   : > { %v7661_v41 = vmax.f32 %v6983_v9, 0.0  ;;  %v5567_v7 = vadd.f32 %v16611_v47, %v13463_v18  ;;  %v5558_v61 = vpop.f32.mrb[99].mxu1  ;;  %13721 = vmatmul.mubr.msk.bf16.gmra.mrb[92].mxu0 %vm4240_vm2, %v6049_v1  ;;  %v5908_v33 = vmax.f32 %v5564_v15, 0.0 }
 0x41e   : > { %v7659_v14 = vmax.f32 %v6975_v58, 0.0  ;;  %v5559_v3 = vadd.f32 %v16611_v47, %v5558_v61  ;;  %v5906_v21 = vmax.f32 %v5556_v16, 0.0 }
 0x41f   : > { %v16860_v55 = vpack.c.bf16 %v7661_v41, %v7660_v52  ;;  %v5909_v44 = vmax.f32 %v5567_v7, 0.0  ;;  %13841 = vmatmul.mubr.msk.bf16.gmra.mrb[204].mxu1 %vm4240_vm2, %v16698_v37 }
 0x420   : > { %v16864_v45 = vpack.c.bf16 %v7659_v14, %v7658_v12  ;;  %v5907_v28 = vmax.f32 %v5559_v3, 0.0  ;;  %v13618_v31 = vpop.f32.mrb[244].mxu0  ;;  %13844 = vmatprep.mubr.msk.bf16.mxu1 %vm4240_vm2, %v16720_v56 }
 0x421   : > { %v6051_v54 = vpack.c.bf16 %v5909_v44, %v5908_v33  ;;  %v6996_v34 = vadd.f32 %v16632_v8, %v13618_v31  ;;  %v6987_v53 = vpop.f32.mrb[245].mxu0 }
 0x422   : > { %v6050_v27 = vpack.c.bf16 %v5907_v28, %v5906_v21  ;;  %v6988_v25 = vadd.f32 %v16632_v8, %v6987_v53  ;;  %v13466_v2 = vpop.f32.mrb[100].mxu1  ;;  %v13619_v32 = vpop.f32.mrb[246].mxu0 }
 0x423   : > { %v5580_v29 = vadd.f32 %v16611_v47, %v13466_v2  ;;  %v6999_v37 = vadd.f32 %v16632_v8, %v13619_v32  ;;  %v5571_v0 = vpop.f32.mrb[101].mxu1  ;;  %v6990_v60 = vpop.f32.mrb[247].mxu0  ;;  %v7664_v46 = vmax.f32 %v6996_v34, 0.0 }
 0x424   : > { %v5572_v24 = vadd.f32 %v16611_v47, %v5571_v0  ;;  %v6991_v26 = vadd.f32 %v16632_v8, %v6990_v60  ;;  %v13467_v56 = vpop.f32.mrb[102].mxu1  ;;  %13724 = vmatprep.mubr.msk.bf16.mxu0 %vm4240_vm2, %v6050_v27  ;;  %v7662_v36 = vmax.f32 %v6988_v25, 0.0 }
 0x425   : > { %v7665_v49 = vmax.f32 %v6999_v37, 0.0  ;;  %v5583_v23 = vadd.f32 %v16611_v47, %v13467_v56  ;;  %v5574_v42 = vpop.f32.mrb[103].mxu1  ;;  %13725 = vmatmul.mubr.msk.bf16.gmra.mrb[96].mxu0 %vm4240_vm2, %v6051_v54  ;;  %v5912_v57 = vmax.f32 %v5580_v29, 0.0 }
 0x426   : > { %v7663_v1 = vmax.f32 %v6991_v26, 0.0  ;;  %v5575_v43 = vadd.f32 %v16611_v47, %v5574_v42  ;;  %v5910_v6 = vmax.f32 %v5572_v24, 0.0 }
 0x427   : > { %v16878_v17 = vpack.c.bf16 %v7665_v49, %v7664_v46  ;;  %v5913_v22 = vmax.f32 %v5583_v23, 0.0  ;;  %13845 = vmatmul.mubr.msk.bf16.gmra.mrb[208].mxu1 %vm4240_vm2, %v16716_v20 }
 0x428   : > { %v16882_v5 = vpack.c.bf16 %v7663_v1, %v7662_v36  ;;  %v5911_v15 = vmax.f32 %v5575_v43, 0.0  ;;  %v13622_v9 = vpop.f32.mrb[248].mxu0  ;;  %13848 = vmatprep.mubr.msk.bf16.mxu1 %vm4240_vm2, %v16738_v13 }
 0x429   : > { %v6053_v11 = vpack.c.bf16 %v5913_v22, %v5912_v57  ;;  %v7012_v48 = vadd.f32 %v16632_v8, %v13622_v9  ;;  %v7003_v16 = vpop.f32.mrb[249].mxu0 }
 0x42a   : > { %v6052_v58 = vpack.c.bf16 %v5911_v15, %v5910_v6  ;;  %v7004_v18 = vadd.f32 %v16632_v8, %v7003_v16  ;;  %v13470_v52 = vpop.f32.mrb[104].mxu1  ;;  %v13623_v41 = vpop.f32.mrb[250].mxu0 }
 0x42b   : > { %v5596_v7 = vadd.f32 %v16611_v47, %v13470_v52  ;;  %v7015_v20 = vadd.f32 %v16632_v8, %v13623_v41  ;;  %v5587_v61 = vpop.f32.mrb[105].mxu1  ;;  %v7006_v12 = vpop.f32.mrb[251].mxu0  ;;  %v7668_v33 = vmax.f32 %v7012_v48, 0.0 }
 0x42c   : > { %v5588_v14 = vadd.f32 %v16611_v47, %v5587_v61  ;;  %v7007_v3 = vadd.f32 %v16632_v8, %v7006_v12  ;;  %v13471_v13 = vpop.f32.mrb[106].mxu1  ;;  %13728 = vmatprep.mubr.msk.bf16.mxu0 %vm4240_vm2, %v6052_v58  ;;  %v7666_v31 = vmax.f32 %v7004_v18, 0.0  ;;  %v16930_v61 = vld [vmem:[%s18035_s6] ss:$0 sm:$0xff] }
 0x42d   : > { %v7669_v44 = vmax.f32 %v7015_v20, 0.0  ;;  %v5599_v21 = vadd.f32 %v16611_v47, %v13471_v13  ;;  %v5590_v28 = vpop.f32.mrb[107].mxu1  ;;  %13729 = vmatmul.mubr.msk.bf16.gmra.mrb[100].mxu0 %vm4240_vm2, %v6053_v11  ;;  %v5916_v53 = vmax.f32 %v5596_v7, 0.0 }
 0x42e   : > { %v7667_v54 = vmax.f32 %v7007_v3, 0.0  ;;  %v5591_v34 = vadd.f32 %v16611_v47, %v5590_v28  ;;  %v5914_v2 = vmax.f32 %v5588_v14, 0.0 }
 0x42f   : > { %v16896_v27 = vpack.c.bf16 %v7669_v44, %v7668_v33  ;;  %v5917_v25 = vmax.f32 %v5599_v21, 0.0  ;;  %13849 = vmatmul.mubr.msk.bf16.gmra.mrb[212].mxu1 %vm4240_vm2, %v16734_v62  ;;  %v16909_v62 = vld [vmem:[%s18033_s4] ss:$0 sm:$0xff] }
 0x430   : > { %v16900_v32 = vpack.c.bf16 %v7667_v54, %v7666_v31  ;;  %v5915_v29 = vmax.f32 %v5591_v34, 0.0  ;;  %v13626_v37 = vpop.f32.mrb[252].mxu0  ;;  %13852 = vmatprep.mubr.msk.bf16.mxu1 %vm4240_vm2, %v16756_v50 }
 0x431   : > { %v6055_v0 = vpack.c.bf16 %v5917_v25, %v5916_v53  ;;  %v7028_v60 = vadd.f32 %v16632_v8, %v13626_v37  ;;  %v7019_v24 = vpop.f32.mrb[253].mxu0 }
 0x432   : > { %v6054_v47 = vpack.c.bf16 %v5915_v29, %v5914_v2  ;;  %v7020_v26 = vadd.f32 %v16632_v8, %v7019_v24  ;;  %v13474_v56 = vpop.f32.mrb[108].mxu1  ;;  %v13627_v46 = vpop.f32.mrb[254].mxu0 }
 0x433   : > { %v5612_v49 = vadd.f32 %v16909_v62, %v13474_v56  ;;  %v7031_v23 = vadd.f32 %v16632_v8, %v13627_v46  ;;  %v5603_v42 = vpop.f32.mrb[109].mxu1  ;;  %v7022_v50 = vpop.f32.mrb[255].mxu0  ;;  %v7672_v57 = vmax.f32 %v7028_v60, 0.0 }
 0x434   : > { %v5604_v36 = vadd.f32 %v16909_v62, %v5603_v42  ;;  %v7023_v1 = vadd.f32 %v16632_v8, %v7022_v50  ;;  %v13475_v43 = vpop.f32.mrb[110].mxu1  ;;  %13732 = vmatprep.mubr.msk.bf16.mxu0 %vm4240_vm2, %v6054_v47  ;;  %v7670_v9 = vmax.f32 %v7020_v26, 0.0 }
 0x435   : > { %v7673_v22 = vmax.f32 %v7031_v23, 0.0  ;;  %v5615_v6 = vadd.f32 %v16909_v62, %v13475_v43  ;;  %v5606_v15 = vpop.f32.mrb[111].mxu1  ;;  %13733 = vmatmul.mubr.msk.bf16.gmra.mrb[104].mxu0 %vm4240_vm2, %v6055_v0  ;;  %v5920_v16 = vmax.f32 %v5612_v49, 0.0 }
 0x436   : > { %v7671_v11 = vmax.f32 %v7023_v1, 0.0  ;;  %v5607_v48 = vadd.f32 %v16909_v62, %v5606_v15  ;;  %v5918_v8 = vmax.f32 %v5604_v36, 0.0 }
 0x437   : > { %v16919_v58 = vpack.c.bf16 %v7673_v22, %v7672_v57  ;;  %v5921_v18 = vmax.f32 %v5615_v6, 0.0  ;;  %13853 = vmatmul.mubr.msk.bf16.gmra.mrb[216].mxu1 %vm4240_vm2, %v16752_v19 }
 0x438   : > { %v16923_v52 = vpack.c.bf16 %v7671_v11, %v7670_v9  ;;  %v5919_v41 = vmax.f32 %v5607_v48, 0.0  ;;  %v13630_v7 = vpop.f32.mrb[0].mxu0  ;;  %13856 = vmatprep.mubr.msk.bf16.mxu1 %vm4240_vm2, %v16774_v51 }
 0x439   : > { %v6057_v20 = vpack.c.bf16 %v5921_v18, %v5920_v16  ;;  %v7044_v12 = vadd.f32 %v16930_v61, %v13630_v7  ;;  %v7035_v14 = vpop.f32.mrb[1].mxu0 }
 0x43a   : > { %v6056_v3 = vpack.c.bf16 %v5919_v41, %v5918_v8  ;;  %v7036_v19 = vadd.f32 %v16930_v61, %v7035_v14  ;;  %v13478_v13 = vpop.f32.mrb[112].mxu1  ;;  %v13631_v33 = vpop.f32.mrb[2].mxu0 }
 0x43b   : > { %v5628_v44 = vadd.f32 %v16909_v62, %v13478_v13  ;;  %v7047_v21 = vadd.f32 %v16930_v61, %v13631_v33  ;;  %v5619_v28 = vpop.f32.mrb[113].mxu1  ;;  %v7038_v51 = vpop.f32.mrb[3].mxu0  ;;  %v7676_v53 = vmax.f32 %v7044_v12, 0.0 }
 0x43c   : > { %v5620_v31 = vadd.f32 %v16909_v62, %v5619_v28  ;;  %v7039_v54 = vadd.f32 %v16930_v61, %v7038_v51  ;;  %v13479_v34 = vpop.f32.mrb[114].mxu1  ;;  %13736 = vmatprep.mubr.msk.bf16.mxu0 %vm4240_vm2, %v6056_v3  ;;  %v7674_v37 = vmax.f32 %v7036_v19, 0.0 }
 0x43d   : > { %v7677_v25 = vmax.f32 %v7047_v21, 0.0  ;;  %v5631_v2 = vadd.f32 %v16909_v62, %v13479_v34  ;;  %v5622_v29 = vpop.f32.mrb[115].mxu1  ;;  %13737 = vmatmul.mubr.msk.bf16.gmra.mrb[108].mxu0 %vm4240_vm2, %v6057_v20  ;;  %v5924_v24 = vmax.f32 %v5628_v44, 0.0 }
 0x43e   : > { %v7675_v0 = vmax.f32 %v7039_v54, 0.0  ;;  %v5623_v60 = vadd.f32 %v16909_v62, %v5622_v29  ;;  %v5922_v56 = vmax.f32 %v5620_v31, 0.0 }
 0x43f   : > { %v16942_v47 = vpack.c.bf16 %v7677_v25, %v7676_v53  ;;  %v5925_v26 = vmax.f32 %v5631_v2, 0.0  ;;  %13857 = vmatmul.mubr.msk.bf16.gmra.mrb[220].mxu1 %vm4240_vm2, %v16770_v10 }
 0x440   : > { %v16946_v46 = vpack.c.bf16 %v7675_v0, %v7674_v37  ;;  %v5923_v49 = vmax.f32 %v5623_v60, 0.0  ;;  %v13634_v23 = vpop.f32.mrb[4].mxu0  ;;  %13860 = vmatprep.mubr.msk.bf16.mxu1 %vm4240_vm2, %v16792_v35 }
 0x441   : > { %v6059_v42 = vpack.c.bf16 %v5925_v26, %v5924_v24  ;;  %v7060_v50 = vadd.f32 %v16930_v61, %v13634_v23  ;;  %v7051_v36 = vpop.f32.mrb[5].mxu0 }
 0x442   : > { %v6058_v1 = vpack.c.bf16 %v5923_v49, %v5922_v56  ;;  %v7052_v43 = vadd.f32 %v16930_v61, %v7051_v36  ;;  %v13482_v57 = vpop.f32.mrb[116].mxu1  ;;  %v13635_v22 = vpop.f32.mrb[6].mxu0 }
 0x443   : > { %v5644_v6 = vadd.f32 %v16909_v62, %v13482_v57  ;;  %v7063_v10 = vadd.f32 %v16930_v61, %v13635_v22  ;;  %v5635_v15 = vpop.f32.mrb[117].mxu1  ;;  %v7054_v9 = vpop.f32.mrb[7].mxu0  ;;  %v7680_v16 = vmax.f32 %v7060_v50, 0.0 }
 0x444   : > { %v5636_v11 = vadd.f32 %v16909_v62, %v5635_v15  ;;  %v7055_v48 = vadd.f32 %v16930_v61, %v7054_v9  ;;  %v13483_v35 = vpop.f32.mrb[118].mxu1  ;;  %13740 = vmatprep.mubr.msk.bf16.mxu0 %vm4240_vm2, %v6058_v1  ;;  %v7678_v7 = vmax.f32 %v7052_v43, 0.0 }
 0x445   : > { %v7681_v18 = vmax.f32 %v7063_v10, 0.0  ;;  %v5647_v8 = vadd.f32 %v16909_v62, %v13483_v35  ;;  %v5638_v41 = vpop.f32.mrb[119].mxu1  ;;  %13741 = vmatmul.mubr.msk.bf16.gmra.mrb[112].mxu0 %vm4240_vm2, %v6059_v42  ;;  %v5928_v14 = vmax.f32 %v5644_v6, 0.0 }
 0x446   : > { %v7679_v20 = vmax.f32 %v7055_v48, 0.0  ;;  %v5639_v12 = vadd.f32 %v16909_v62, %v5638_v41  ;;  %v5926_v13 = vmax.f32 %v5636_v11, 0.0 }
 0x447   : > { %v16960_v3 = vpack.c.bf16 %v7681_v18, %v7680_v16  ;;  %v5929_v19 = vmax.f32 %v5647_v8, 0.0  ;;  %13861 = vmatmul.mubr.msk.bf16.gmra.mrb[224].mxu1 %vm4240_vm2, %v16788_v38 }
 0x448   : > { %v16964_v33 = vpack.c.bf16 %v7679_v20, %v7678_v7  ;;  %v5927_v44 = vmax.f32 %v5639_v12, 0.0  ;;  %v13638_v21 = vpop.f32.mrb[8].mxu0  ;;  %13864 = vmatprep.mubr.msk.bf16.mxu1 %vm4240_vm2, %v16810_v59 }
 0x449   : > { %v6061_v28 = vpack.c.bf16 %v5929_v19, %v5928_v14  ;;  %v7076_v51 = vadd.f32 %v16930_v61, %v13638_v21  ;;  %v7067_v31 = vpop.f32.mrb[9].mxu0 }
 0x44a   : > { %v6060_v54 = vpack.c.bf16 %v5927_v44, %v5926_v13  ;;  %v7068_v34 = vadd.f32 %v16930_v61, %v7067_v31  ;;  %v13486_v53 = vpop.f32.mrb[120].mxu1  ;;  %v13639_v25 = vpop.f32.mrb[10].mxu0 }
 0x44b   : > { %v5660_v2 = vadd.f32 %v16909_v62, %v13486_v53  ;;  %v7079_v38 = vadd.f32 %v16930_v61, %v13639_v25  ;;  %v5651_v29 = vpop.f32.mrb[121].mxu1  ;;  %v7070_v37 = vpop.f32.mrb[11].mxu0  ;;  %v7684_v24 = vmax.f32 %v7076_v51, 0.0 }
 0x44c   : > { %v5652_v0 = vadd.f32 %v16909_v62, %v5651_v29  ;;  %v7071_v60 = vadd.f32 %v16930_v61, %v7070_v37  ;;  %v13487_v59 = vpop.f32.mrb[122].mxu1  ;;  %13744 = vmatprep.mubr.msk.bf16.mxu0 %vm4240_vm2, %v6060_v54  ;;  %v7682_v23 = vmax.f32 %v7068_v34, 0.0  ;;  %v17007_v29 = vld [vmem:[%s18037_s8] ss:$0 sm:$0xff] }
 0x44d   : > { %v7685_v26 = vmax.f32 %v7079_v38, 0.0  ;;  %v5663_v56 = vadd.f32 %v16909_v62, %v13487_v59  ;;  %v5654_v49 = vpop.f32.mrb[123].mxu1  ;;  %13745 = vmatmul.mubr.msk.bf16.gmra.mrb[116].mxu0 %vm4240_vm2, %v6061_v28  ;;  %v5932_v36 = vmax.f32 %v5660_v2, 0.0 }
 0x44e   : > { %v7683_v42 = vmax.f32 %v7071_v60, 0.0  ;;  %v5655_v50 = vadd.f32 %v16909_v62, %v5654_v49  ;;  %v5930_v57 = vmax.f32 %v5652_v0, 0.0 }
 0x44f   : > { %v16978_v1 = vpack.c.bf16 %v7685_v26, %v7684_v24  ;;  %v5933_v43 = vmax.f32 %v5663_v56, 0.0  ;;  %13865 = vmatmul.mubr.msk.bf16.gmra.mrb[228].mxu1 %vm4240_vm2, %v16806_v40 }
 0x450   : > { %v16982_v22 = vpack.c.bf16 %v7683_v42, %v7682_v23  ;;  %v5931_v6 = vmax.f32 %v5655_v50, 0.0  ;;  %v13642_v10 = vpop.f32.mrb[12].mxu0  ;;  %13868 = vmatprep.mubr.msk.bf16.mxu1 %vm4240_vm2, %v16828_v30 }
 0x451   : > { %v6063_v15 = vpack.c.bf16 %v5933_v43, %v5932_v36  ;;  %v7092_v9 = vadd.f32 %v16930_v61, %v13642_v10  ;;  %v7083_v11 = vpop.f32.mrb[13].mxu0 }
 0x452   : > { %v6062_v48 = vpack.c.bf16 %v5931_v6, %v5930_v57  ;;  %v7084_v35 = vadd.f32 %v16930_v61, %v7083_v11  ;;  %v13490_v16 = vpop.f32.mrb[124].mxu1  ;;  %v13643_v18 = vpop.f32.mrb[14].mxu0 }
 0x453   : > { %v5676_v8 = vadd.f32 %v16909_v62, %v13490_v16  ;;  %v7095_v40 = vadd.f32 %v16930_v61, %v13643_v18  ;;  %v5667_v41 = vpop.f32.mrb[125].mxu1  ;;  %v7086_v7 = vpop.f32.mrb[15].mxu0  ;;  %v7688_v14 = vmax.f32 %v7092_v9, 0.0 }
 0x454   : > { %v5668_v20 = vadd.f32 %v16909_v62, %v5667_v41  ;;  %v7087_v12 = vadd.f32 %v16930_v61, %v7086_v7  ;;  %v13491_v30 = vpop.f32.mrb[126].mxu1  ;;  %13748 = vmatprep.mubr.msk.bf16.mxu0 %vm4240_vm2, %v6062_v48  ;;  %v7686_v21 = vmax.f32 %v7084_v35, 0.0 }
 0x455   : > { %v7689_v19 = vmax.f32 %v7095_v40, 0.0  ;;  %v5679_v13 = vadd.f32 %v16909_v62, %v13491_v30  ;;  %v5670_v44 = vpop.f32.mrb[127].mxu1  ;;  %13749 = vmatmul.mubr.msk.bf16.gmra.mrb[120].mxu0 %vm4240_vm2, %v6063_v15  ;;  %v5936_v31 = vmax.f32 %v5676_v8, 0.0 }
 0x456   : > { %v7687_v28 = vmax.f32 %v7087_v12, 0.0  ;;  %v5671_v51 = vadd.f32 %v16909_v62, %v5670_v44  ;;  %v5934_v53 = vmax.f32 %v5668_v20, 0.0 }
 0x457   : > { %v16996_v54 = vpack.c.bf16 %v7689_v19, %v7688_v14  ;;  %v5937_v34 = vmax.f32 %v5679_v13, 0.0  ;;  %13869 = vmatmul.mubr.msk.bf16.gmra.mrb[232].mxu1 %vm4240_vm2, %v16824_v63 }
 0x458   : > { %v17000_v25 = vpack.c.bf16 %v7687_v28, %v7686_v21  ;;  %v5935_v2 = vmax.f32 %v5671_v51, 0.0  ;;  %v13646_v38 = vpop.f32.mrb[16].mxu0  ;;  %13872 = vmatprep.mubr.msk.bf16.mxu1 %vm4240_vm2, %v16846_v4 }
 0x459   : > { %v6065_v62 = vpack.c.bf16 %v5937_v34, %v5936_v31  ;;  %v7108_v37 = vadd.f32 %v16930_v61, %v13646_v38  ;;  %v7099_v0 = vpop.f32.mrb[17].mxu0 }
 0x45a   : > { %v6064_v60 = vpack.c.bf16 %v5935_v2, %v5934_v53  ;;  %v7100_v63 = vadd.f32 %v16930_v61, %v7099_v0  ;;  %v13647_v59 = vpop.f32.mrb[18].mxu0  ;;  %v13766_v24 = vpop.f32.mrb[128].mxu1 }
 0x45b   : > { %v7111_v26 = vadd.f32 %v16930_v61, %v13647_v59  ;;  %v8396_v56 = vadd.f32 %v13766_v24, %v17007_v29  ;;  %v7102_v49 = vpop.f32.mrb[19].mxu0  ;;  %v8387_v4 = vpop.f32.mrb[129].mxu1  ;;  %v7692_v36 = vmax.f32 %v7108_v37, 0.0 }
 0x45c   : > { %v7103_v23 = vadd.f32 %v16930_v61, %v7102_v49  ;;  %v8388_v42 = vadd.f32 %v17007_v29, %v8387_v4  ;;  %13752 = vmatprep.mubr.msk.bf16.mxu0 %vm4240_vm2, %v6064_v60  ;;  %v13767_v50 = vpop.f32.mrb[130].mxu1  ;;  %v7690_v10 = vmax.f32 %v7100_v63, 0.0 }
 0x45d   : > { %v7693_v43 = vmax.f32 %v7111_v26, 0.0  ;;  %v8399_v57 = vadd.f32 %v13767_v50, %v17007_v29  ;;  %13753 = vmatmul.mubr.msk.bf16.gmra.mrb[124].mxu0 %vm4240_vm2, %v6065_v62  ;;  %v8390_v6 = vpop.f32.mrb[131].mxu1  ;;  %v9412_v48 = vmax.f32 %v8396_v56, 0.0 }
 0x45e   : > { %v7691_v15 = vmax.f32 %v7103_v23, 0.0  ;;  %v8391_v9 = vadd.f32 %v17007_v29, %v8390_v6  ;;  %v9410_v18 = vmax.f32 %v8388_v42, 0.0 }
 0x45f   : > { %v17019_v11 = vpack.c.bf16 %v7693_v43, %v7692_v36  ;;  %v9413_v35 = vmax.f32 %v8399_v57, 0.0  ;;  %13873 = vmatmul.mubr.msk.bf16.gmra.mrb[236].mxu1 %vm4240_vm2, %v16842_v39 }
 0x460   : > { %v17023_v16 = vpack.c.bf16 %v7691_v15, %v7690_v10  ;;  %v9411_v8 = vmax.f32 %v8391_v9, 0.0  ;;  %v13650_v40 = vpop.f32.mrb[20].mxu0  ;;  %13876 = vmatprep.mubr.msk.bf16.mxu1 %vm4240_vm2, %v16864_v45 }
 0x461   : > { %v9667_v41 = vpack.c.bf16 %v9413_v35, %v9412_v48  ;;  %v7124_v7 = vadd.f32 %v16930_v61, %v13650_v40  ;;  %v7115_v20 = vpop.f32.mrb[21].mxu0 }
 0x462   : > { %v9666_v12 = vpack.c.bf16 %v9411_v8, %v9410_v18  ;;  %v7116_v30 = vadd.f32 %v16930_v61, %v7115_v20  ;;  %v13651_v14 = vpop.f32.mrb[22].mxu0  ;;  %v13770_v19 = vpop.f32.mrb[132].mxu1 }
 0x463   : > { %v7127_v13 = vadd.f32 %v16930_v61, %v13651_v14  ;;  %v8412_v39 = vadd.f32 %v13770_v19, %v17007_v29  ;;  %v7118_v44 = vpop.f32.mrb[23].mxu0  ;;  %v8403_v21 = vpop.f32.mrb[133].mxu1  ;;  %v7696_v31 = vmax.f32 %v7124_v7, 0.0 }
 0x464   : > { %v7119_v28 = vadd.f32 %v16930_v61, %v7118_v44  ;;  %v8404_v51 = vadd.f32 %v17007_v29, %v8403_v21  ;;  %v13771_v45 = vpop.f32.mrb[134].mxu1  ;;  %14036 = vmatprep.mubr.bf16.mxu0 %v9666_v12  ;;  %v7694_v38 = vmax.f32 %v7116_v30, 0.0 }
 0x465   : > { %v7697_v34 = vmax.f32 %v7127_v13, 0.0  ;;  %v8415_v53 = vadd.f32 %v13771_v45, %v17007_v29  ;;  %v8406_v2 = vpop.f32.mrb[135].mxu1  ;;  %14037 = vmatmul.mubr.bf16.vlgmr.msra.gmra.mrb[128].mxu0 %v9667_v41  ;;  %v9416_v60 = vmax.f32 %v8412_v39, 0.0 }
 0x466   : > { %v7695_v62 = vmax.f32 %v7119_v28, 0.0  ;;  %v8407_v37 = vadd.f32 %v17007_v29, %v8406_v2  ;;  %v9414_v24 = vmax.f32 %v8404_v51, 0.0 }
 0x467   : > { %v17035_v0 = vpack.c.bf16 %v7697_v34, %v7696_v31  ;;  %v9417_v63 = vmax.f32 %v8415_v53, 0.0  ;;  %13877 = vmatmul.mubr.msk.bf16.gmra.mrb[240].mxu1 %vm4240_vm2, %v16860_v55 }
 0x468   : > { %v17039_v59 = vpack.c.bf16 %v7695_v62, %v7694_v38  ;;  %v9415_v26 = vmax.f32 %v8407_v37, 0.0  ;;  %v13654_v56 = vpop.f32.mrb[24].mxu0  ;;  %13880 = vmatprep.mubr.msk.bf16.mxu1 %vm4240_vm2, %v16882_v5 }
 0x469   : > { %v9669_v49 = vpack.c.bf16 %v9417_v63, %v9416_v60  ;;  %v7140_v4 = vadd.f32 %v16930_v61, %v13654_v56  ;;  %v7131_v23 = vpop.f32.mrb[25].mxu0 }
 0x46a   : > { %v9668_v42 = vpack.c.bf16 %v9415_v26, %v9414_v24  ;;  %v7132_v50 = vadd.f32 %v16930_v61, %v7131_v23  ;;  %v13655_v36 = vpop.f32.mrb[26].mxu0  ;;  %v13774_v43 = vpop.f32.mrb[136].mxu1 }
 0x46b   : > { %v7143_v57 = vadd.f32 %v16930_v61, %v13655_v36  ;;  %v8428_v55 = vadd.f32 %v13774_v43, %v17007_v29  ;;  %v7134_v6 = vpop.f32.mrb[27].mxu0  ;;  %v8419_v10 = vpop.f32.mrb[137].mxu1  ;;  %v7700_v48 = vmax.f32 %v7140_v4, 0.0 }
 0x46c   : > { %v7135_v15 = vadd.f32 %v16930_v61, %v7134_v6  ;;  %v8420_v9 = vadd.f32 %v17007_v29, %v8419_v10  ;;  %v13775_v5 = vpop.f32.mrb[138].mxu1  ;;  %14040 = vmatprep.mubr.bf16.mxu0 %v9668_v42  ;;  %v7698_v40 = vmax.f32 %v7132_v50, 0.0 }
 0x46d   : > { %v7701_v35 = vmax.f32 %v7143_v57, 0.0  ;;  %v8431_v18 = vadd.f32 %v13775_v5, %v17007_v29  ;;  %v8422_v8 = vpop.f32.mrb[139].mxu1  ;;  %14041 = vmatmul.mubr.bf16.gmra.mrb[132].mxu0 %v9669_v49  ;;  %v9420_v12 = vmax.f32 %v8428_v55, 0.0 }
 0x46e   : > { %v7699_v41 = vmax.f32 %v7135_v15, 0.0  ;;  %v8423_v7 = vadd.f32 %v17007_v29, %v8422_v8  ;;  %v9418_v19 = vmax.f32 %v8420_v9, 0.0 }
 0x46f   : > { %v17051_v20 = vpack.c.bf16 %v7701_v35, %v7700_v48  ;;  %v9421_v30 = vmax.f32 %v8431_v18, 0.0  ;;  %13881 = vmatmul.mubr.msk.bf16.gmra.mrb[244].mxu1 %vm4240_vm2, %v16878_v17 }
 0x470   : > { %v17055_v14 = vpack.c.bf16 %v7699_v41, %v7698_v40  ;;  %v9419_v13 = vmax.f32 %v8423_v7, 0.0  ;;  %v13658_v39 = vpop.f32.mrb[28].mxu0  ;;  %13884 = vmatprep.mubr.msk.bf16.mxu1 %vm4240_vm2, %v16900_v32 }
 0x471   : > { %v9671_v44 = vpack.c.bf16 %v9421_v30, %v9420_v12  ;;  %v7156_v21 = vadd.f32 %v16930_v61, %v13658_v39  ;;  %v7147_v28 = vpop.f32.mrb[29].mxu0 }
 0x472   : > { %v9670_v51 = vpack.c.bf16 %v9419_v13, %v9418_v19  ;;  %v7148_v45 = vadd.f32 %v16930_v61, %v7147_v28  ;;  %v13659_v31 = vpop.f32.mrb[30].mxu0  ;;  %v13778_v34 = vpop.f32.mrb[140].mxu1 }
 0x473   : > { %v7159_v53 = vadd.f32 %v16930_v61, %v13659_v31  ;;  %v8444_v17 = vadd.f32 %v13778_v34, %v17007_v29  ;;  %v7150_v2 = vpop.f32.mrb[31].mxu0  ;;  %v8435_v38 = vpop.f32.mrb[141].mxu1  ;;  %v7704_v60 = vmax.f32 %v7156_v21, 0.0 }
 0x474   : > { %v7151_v62 = vadd.f32 %v16930_v61, %v7150_v2  ;;  %v8436_v37 = vadd.f32 %v17007_v29, %v8435_v38  ;;  %v13779_v32 = vpop.f32.mrb[142].mxu1  ;;  %14044 = vmatprep.mubr.bf16.mxu0 %v9670_v51  ;;  %v7702_v56 = vmax.f32 %v7148_v45, 0.0 }
 0x475   : > { %v7705_v63 = vmax.f32 %v7159_v53, 0.0  ;;  %v8447_v24 = vadd.f32 %v13779_v32, %v17007_v29  ;;  %v8438_v26 = vpop.f32.mrb[143].mxu1  ;;  %14045 = vmatmul.mubr.bf16.gmra.mrb[136].mxu0 %v9671_v44  ;;  %v9424_v42 = vmax.f32 %v8444_v17, 0.0 }
 0x476   : > { %v7703_v49 = vmax.f32 %v7151_v62, 0.0  ;;  %v8439_v4 = vadd.f32 %v17007_v29, %v8438_v26  ;;  %v9422_v43 = vmax.f32 %v8436_v37, 0.0 }
 0x477   : > { %v17067_v23 = vpack.c.bf16 %v7705_v63, %v7704_v60  ;;  %v9425_v50 = vmax.f32 %v8447_v24, 0.0  ;;  %13885 = vmatmul.mubr.msk.bf16.gmra.mrb[248].mxu1 %vm4240_vm2, %v16896_v27 }
 0x478   : > { %v17071_v36 = vpack.c.bf16 %v7703_v49, %v7702_v56  ;;  %v9423_v57 = vmax.f32 %v8439_v4, 0.0  ;;  %v13662_v55 = vpop.f32.mrb[32].mxu0  ;;  %13888 = vmatprep.mubr.msk.bf16.mxu1 %vm4240_vm2, %v16923_v52 }
 0x479   : > { %v9673_v6 = vpack.c.bf16 %v9425_v50, %v9424_v42  ;;  %v7172_v10 = vadd.f32 %v16930_v61, %v13662_v55  ;;  %v7163_v15 = vpop.f32.mrb[33].mxu0 }
 0x47a   : > { %v9672_v9 = vpack.c.bf16 %v9423_v57, %v9422_v43  ;;  %v7164_v5 = vadd.f32 %v16930_v61, %v7163_v15  ;;  %v13663_v48 = vpop.f32.mrb[34].mxu0  ;;  %v13782_v35 = vpop.f32.mrb[144].mxu1 }
 0x47b   : > { %v7175_v18 = vadd.f32 %v16930_v61, %v13663_v48  ;;  %v8460_v27 = vadd.f32 %v13782_v35, %v17007_v29  ;;  %v7166_v8 = vpop.f32.mrb[35].mxu0  ;;  %v8451_v40 = vpop.f32.mrb[145].mxu1  ;;  %v7708_v12 = vmax.f32 %v7172_v10, 0.0 }
 0x47c   : > { %v7167_v41 = vadd.f32 %v16930_v61, %v7166_v8  ;;  %v8452_v7 = vadd.f32 %v17007_v29, %v8451_v40  ;;  %v13783_v52 = vpop.f32.mrb[146].mxu1  ;;  %14048 = vmatprep.mubr.bf16.mxu0 %v9672_v9  ;;  %v7706_v39 = vmax.f32 %v7164_v5, 0.0 }
 0x47d   : > { %v7709_v30 = vmax.f32 %v7175_v18, 0.0  ;;  %v8463_v19 = vadd.f32 %v13783_v52, %v17007_v29  ;;  %v8454_v13 = vpop.f32.mrb[147].mxu1  ;;  %14049 = vmatmul.mubr.bf16.gmra.mrb[140].mxu0 %v9673_v6  ;;  %v9428_v51 = vmax.f32 %v8460_v27, 0.0 }
 0x47e   : > { %v7707_v44 = vmax.f32 %v7167_v41, 0.0  ;;  %v8455_v21 = vadd.f32 %v17007_v29, %v8454_v13  ;;  %v9426_v34 = vmax.f32 %v8452_v7, 0.0 }
 0x47f   : > { %v17083_v28 = vpack.c.bf16 %v7709_v30, %v7708_v12  ;;  %v9429_v45 = vmax.f32 %v8463_v19, 0.0  ;;  %13889 = vmatmul.mubr.msk.bf16.gmra.mrb[252].mxu1 %vm4240_vm2, %v16919_v58 }
 0x480   : > { %v17087_v31 = vpack.c.bf16 %v7707_v44, %v7706_v39  ;;  %v9427_v53 = vmax.f32 %v8455_v21, 0.0  ;;  %v13666_v17 = vpop.f32.mrb[36].mxu0  ;;  %13892 = vmatprep.mubr.msk.bf16.mxu1 %vm4240_vm2, %v16946_v46 }
 0x481   : > { %v9675_v2 = vpack.c.bf16 %v9429_v45, %v9428_v51  ;;  %v7188_v38 = vadd.f32 %v16930_v61, %v13666_v17  ;;  %v7179_v62 = vpop.f32.mrb[37].mxu0 }
 0x482   : > { %v9674_v37 = vpack.c.bf16 %v9427_v53, %v9426_v34  ;;  %v7180_v32 = vadd.f32 %v16930_v61, %v7179_v62  ;;  %v13667_v60 = vpop.f32.mrb[38].mxu0  ;;  %v13786_v63 = vpop.f32.mrb[148].mxu1 }
 0x483   : > { %v7191_v24 = vadd.f32 %v16930_v61, %v13667_v60  ;;  %v8476_v58 = vadd.f32 %v13786_v63, %v17007_v29  ;;  %v7182_v26 = vpop.f32.mrb[39].mxu0  ;;  %v8467_v56 = vpop.f32.mrb[149].mxu1  ;;  %v7712_v42 = vmax.f32 %v7188_v38, 0.0 }
 0x484   : > { %v7183_v49 = vadd.f32 %v16930_v61, %v7182_v26  ;;  %v8468_v4 = vadd.f32 %v17007_v29, %v8467_v56  ;;  %v13787_v46 = vpop.f32.mrb[150].mxu1  ;;  %14052 = vmatprep.mubr.bf16.mxu0 %v9674_v37  ;;  %v7710_v55 = vmax.f32 %v7180_v32, 0.0 }
 0x485   : > { %v7713_v50 = vmax.f32 %v7191_v24, 0.0  ;;  %v8479_v43 = vadd.f32 %v13787_v46, %v17007_v29  ;;  %v8470_v57 = vpop.f32.mrb[151].mxu1  ;;  %14053 = vmatmul.mubr.bf16.gmra.mrb[144].mxu0 %v9675_v2  ;;  %v9432_v9 = vmax.f32 %v8476_v58, 0.0 }
 0x486   : > { %v7711_v6 = vmax.f32 %v7183_v49, 0.0  ;;  %v8471_v10 = vadd.f32 %v17007_v29, %v8470_v57  ;;  %v9430_v35 = vmax.f32 %v8468_v4, 0.0 }
 0x487   : > { %v17099_v15 = vpack.c.bf16 %v7713_v50, %v7712_v42  ;;  %v9433_v5 = vmax.f32 %v8479_v43, 0.0  ;;  %13893 = vmatmul.mubr.msk.bf16.gmra.mrb[0].mxu1 %vm4240_vm2, %v16942_v47 }
 0x488   : > { %v17103_v48 = vpack.c.bf16 %v7711_v6, %v7710_v55  ;;  %v9431_v18 = vmax.f32 %v8471_v10, 0.0  ;;  %v13670_v27 = vpop.f32.mrb[40].mxu0  ;;  %13896 = vmatprep.mubr.msk.bf16.mxu1 %vm4240_vm2, %v16964_v33 }
 0x489   : > { %v9677_v8 = vpack.c.bf16 %v9433_v5, %v9432_v9  ;;  %v7204_v40 = vadd.f32 %v16930_v61, %v13670_v27  ;;  %v7195_v41 = vpop.f32.mrb[41].mxu0 }
 0x48a   : > { %v9676_v7 = vpack.c.bf16 %v9431_v18, %v9430_v35  ;;  %v7196_v52 = vadd.f32 %v16930_v61, %v7195_v41  ;;  %v13671_v12 = vpop.f32.mrb[42].mxu0  ;;  %v13790_v30 = vpop.f32.mrb[152].mxu1 }
 0x48b   : > { %v7207_v19 = vadd.f32 %v16930_v61, %v13671_v12  ;;  %v8492_v47 = vadd.f32 %v13790_v30, %v17007_v29  ;;  %v7198_v13 = vpop.f32.mrb[43].mxu0  ;;  %v8483_v39 = vpop.f32.mrb[153].mxu1  ;;  %v7716_v51 = vmax.f32 %v7204_v40, 0.0 }
 0x48c   : > { %v7199_v44 = vadd.f32 %v16930_v61, %v7198_v13  ;;  %v8484_v21 = vadd.f32 %v17007_v29, %v8483_v39  ;;  %v13791_v33 = vpop.f32.mrb[154].mxu1  ;;  %14056 = vmatprep.mubr.bf16.mxu0 %v9676_v7  ;;  %v7714_v17 = vmax.f32 %v7196_v52, 0.0 }
 0x48d   : > { %v7717_v45 = vmax.f32 %v7207_v19, 0.0  ;;  %v8495_v34 = vadd.f32 %v13791_v33, %v17007_v29  ;;  %v8486_v53 = vpop.f32.mrb[155].mxu1  ;;  %14057 = vmatmul.mubr.bf16.gmra.mrb[148].mxu0 %v9677_v8  ;;  %v9436_v37 = vmax.f32 %v8492_v47, 0.0 }
 0x48e   : > { %v7715_v2 = vmax.f32 %v7199_v44, 0.0  ;;  %v8487_v38 = vadd.f32 %v17007_v29, %v8486_v53  ;;  %v9434_v63 = vmax.f32 %v8484_v21, 0.0 }
 0x48f   : > { %v17115_v62 = vpack.c.bf16 %v7717_v45, %v7716_v51  ;;  %v9437_v32 = vmax.f32 %v8495_v34, 0.0  ;;  %13897 = vmatmul.mubr.msk.bf16.gmra.mrb[4].mxu1 %vm4240_vm2, %v16960_v3 }
 0x490   : > { %v17119_v60 = vpack.c.bf16 %v7715_v2, %v7714_v17  ;;  %v9435_v24 = vmax.f32 %v8487_v38, 0.0  ;;  %v13674_v58 = vpop.f32.mrb[44].mxu0  ;;  %13900 = vmatprep.mubr.msk.bf16.mxu1 %vm4240_vm2, %v16982_v22 }
 0x491   : > { %v9679_v26 = vpack.c.bf16 %v9437_v32, %v9436_v37  ;;  %v7220_v56 = vadd.f32 %v16930_v61, %v13674_v58  ;;  %v7211_v49 = vpop.f32.mrb[45].mxu0 }
 0x492   : > { %v9678_v4 = vpack.c.bf16 %v9435_v24, %v9434_v63  ;;  %v7212_v46 = vadd.f32 %v16930_v61, %v7211_v49  ;;  %v13675_v42 = vpop.f32.mrb[46].mxu0  ;;  %v13794_v50 = vpop.f32.mrb[156].mxu1 }
 0x493   : > { %v7223_v43 = vadd.f32 %v16930_v61, %v13675_v42  ;;  %v8508_v3 = vadd.f32 %v13794_v50, %v17007_v29  ;;  %v7214_v57 = vpop.f32.mrb[47].mxu0  ;;  %v8499_v55 = vpop.f32.mrb[157].mxu1  ;;  %v7720_v9 = vmax.f32 %v7220_v56, 0.0 }
 0x494   : > { %v7215_v6 = vadd.f32 %v16930_v61, %v7214_v57  ;;  %v8500_v10 = vadd.f32 %v17007_v29, %v8499_v55  ;;  %v13795_v22 = vpop.f32.mrb[158].mxu1  ;;  %14060 = vmatprep.mubr.bf16.mxu0 %v9678_v4  ;;  %v7718_v27 = vmax.f32 %v7212_v46, 0.0 }
 0x495   : > { %v7721_v5 = vmax.f32 %v7223_v43, 0.0  ;;  %v8511_v35 = vadd.f32 %v13795_v22, %v17007_v29  ;;  %v8502_v18 = vpop.f32.mrb[159].mxu1  ;;  %14061 = vmatmul.mubr.bf16.gmra.mrb[152].mxu0 %v9679_v26  ;;  %v9440_v7 = vmax.f32 %v8508_v3, 0.0 }
 0x496   : > { %v7719_v8 = vmax.f32 %v7215_v6, 0.0  ;;  %v8503_v40 = vadd.f32 %v17007_v29, %v8502_v18  ;;  %v9438_v30 = vmax.f32 %v8500_v10, 0.0 }
 0x497   : > { %v17131_v41 = vpack.c.bf16 %v7721_v5, %v7720_v9  ;;  %v9441_v52 = vmax.f32 %v8511_v35, 0.0  ;;  %13901 = vmatmul.mubr.msk.bf16.gmra.mrb[8].mxu1 %vm4240_vm2, %v16978_v1 }
 0x498   : > { %v17135_v12 = vpack.c.bf16 %v7719_v8, %v7718_v27  ;;  %v9439_v19 = vmax.f32 %v8503_v40, 0.0  ;;  %v13678_v47 = vpop.f32.mrb[48].mxu0  ;;  %13904 = vmatprep.mubr.msk.bf16.mxu1 %vm4240_vm2, %v17000_v25 }
 0x499   : > { %v9681_v13 = vpack.c.bf16 %v9441_v52, %v9440_v7  ;;  %v7236_v39 = vadd.f32 %v16930_v61, %v13678_v47  ;;  %v7227_v44 = vpop.f32.mrb[49].mxu0 }
 0x49a   : > { %v9680_v21 = vpack.c.bf16 %v9439_v19, %v9438_v30  ;;  %v7228_v33 = vadd.f32 %v16930_v61, %v7227_v44  ;;  %v13679_v51 = vpop.f32.mrb[50].mxu0  ;;  %v13798_v45 = vpop.f32.mrb[160].mxu1 }
 0x49b   : > { %v7239_v34 = vadd.f32 %v16930_v61, %v13679_v51  ;;  %v8524_v1 = vadd.f32 %v13798_v45, %v17007_v29  ;;  %v7230_v53 = vpop.f32.mrb[51].mxu0  ;;  %v8515_v17 = vpop.f32.mrb[161].mxu1  ;;  %v7724_v37 = vmax.f32 %v7236_v39, 0.0 }
 0x49c   : > { %v7231_v2 = vadd.f32 %v16930_v61, %v7230_v53  ;;  %v8516_v38 = vadd.f32 %v17007_v29, %v8515_v17  ;;  %v13799_v25 = vpop.f32.mrb[162].mxu1  ;;  %14064 = vmatprep.mubr.bf16.mxu0 %v9680_v21  ;;  %v7722_v58 = vmax.f32 %v7228_v33, 0.0 }
 0x49d   : > { %v7725_v32 = vmax.f32 %v7239_v34, 0.0  ;;  %v8527_v63 = vadd.f32 %v13799_v25, %v17007_v29  ;;  %v8518_v24 = vpop.f32.mrb[163].mxu1  ;;  %14065 = vmatmul.mubr.bf16.gmra.mrb[156].mxu0 %v9681_v13  ;;  %v9444_v4 = vmax.f32 %v8524_v1, 0.0 }
 0x49e   : > { %v7723_v26 = vmax.f32 %v7231_v2, 0.0  ;;  %v8519_v56 = vadd.f32 %v17007_v29, %v8518_v24  ;;  %v9442_v50 = vmax.f32 %v8516_v38, 0.0 }
 0x49f   : > { %v17147_v49 = vpack.c.bf16 %v7725_v32, %v7724_v37  ;;  %v9445_v46 = vmax.f32 %v8527_v63, 0.0  ;;  %13905 = vmatmul.mubr.msk.bf16.gmra.mrb[12].mxu1 %vm4240_vm2, %v16996_v54 }
 0x4a0   : > { %v17151_v42 = vpack.c.bf16 %v7723_v26, %v7722_v58  ;;  %v9443_v43 = vmax.f32 %v8519_v56, 0.0  ;;  %v13682_v3 = vpop.f32.mrb[52].mxu0  ;;  %13908 = vmatprep.mubr.msk.bf16.mxu1 %vm4240_vm2, %v17023_v16 }
 0x4a1   : > { %v9683_v57 = vpack.c.bf16 %v9445_v46, %v9444_v4  ;;  %v7252_v55 = vadd.f32 %v16930_v61, %v13682_v3  ;;  %v7243_v6 = vpop.f32.mrb[53].mxu0 }
 0x4a2   : > { %v9682_v10 = vpack.c.bf16 %v9443_v43, %v9442_v50  ;;  %v7244_v22 = vadd.f32 %v16930_v61, %v7243_v6  ;;  %v13683_v9 = vpop.f32.mrb[54].mxu0  ;;  %v13802_v5 = vpop.f32.mrb[164].mxu1 }
 0x4a3   : > { %v7255_v35 = vadd.f32 %v16930_v61, %v13683_v9  ;;  %v8540_v54 = vadd.f32 %v13802_v5, %v17007_v29  ;;  %v7246_v18 = vpop.f32.mrb[55].mxu0  ;;  %v8531_v27 = vpop.f32.mrb[165].mxu1  ;;  %v7728_v7 = vmax.f32 %v7252_v55, 0.0 }
 0x4a4   : > { %v7247_v8 = vadd.f32 %v16930_v61, %v7246_v18  ;;  %v8532_v40 = vadd.f32 %v17007_v29, %v8531_v27  ;;  %v13803_v16 = vpop.f32.mrb[166].mxu1  ;;  %14068 = vmatprep.mubr.bf16.mxu0 %v9682_v10  ;;  %v7726_v47 = vmax.f32 %v7244_v22, 0.0 }
 0x4a5   : > { %v7729_v52 = vmax.f32 %v7255_v35, 0.0  ;;  %v8543_v30 = vadd.f32 %v13803_v16, %v17007_v29  ;;  %v8534_v19 = vpop.f32.mrb[167].mxu1  ;;  %14069 = vmatmul.mubr.bf16.gmra.mrb[160].mxu0 %v9683_v57  ;;  %v9448_v21 = vmax.f32 %v8540_v54, 0.0 }
 0x4a6   : > { %v7727_v13 = vmax.f32 %v7247_v8, 0.0  ;;  %v8535_v39 = vadd.f32 %v17007_v29, %v8534_v19  ;;  %v9446_v45 = vmax.f32 %v8532_v40, 0.0 }
 0x4a7   : > { %v17163_v44 = vpack.c.bf16 %v7729_v52, %v7728_v7  ;;  %v9449_v33 = vmax.f32 %v8543_v30, 0.0  ;;  %13909 = vmatmul.mubr.msk.bf16.gmra.mrb[16].mxu1 %vm4240_vm2, %v17019_v11 }
 0x4a8   : > { %v17167_v51 = vpack.c.bf16 %v7727_v13, %v7726_v47  ;;  %v9447_v34 = vmax.f32 %v8535_v39, 0.0  ;;  %v13686_v1 = vpop.f32.mrb[56].mxu0  ;;  %13912 = vmatprep.mubr.msk.bf16.mxu1 %vm4240_vm2, %v17039_v59 }
 0x4a9   : > { %v9685_v53 = vpack.c.bf16 %v9449_v33, %v9448_v21  ;;  %v7268_v17 = vadd.f32 %v16930_v61, %v13686_v1  ;;  %v7259_v2 = vpop.f32.mrb[57].mxu0 }
 0x4aa   : > { %v9684_v38 = vpack.c.bf16 %v9447_v34, %v9446_v45  ;;  %v7260_v25 = vadd.f32 %v16930_v61, %v7259_v2  ;;  %v13687_v37 = vpop.f32.mrb[58].mxu0  ;;  %v13806_v32 = vpop.f32.mrb[168].mxu1 }
 0x4ab   : > { %v7271_v63 = vadd.f32 %v16930_v61, %v13687_v37  ;;  %v8556_v11 = vadd.f32 %v13806_v32, %v17007_v29  ;;  %v7262_v24 = vpop.f32.mrb[59].mxu0  ;;  %v8547_v58 = vpop.f32.mrb[169].mxu1  ;;  %v7732_v4 = vmax.f32 %v7268_v17, 0.0 }
 0x4ac   : > { %v7263_v26 = vadd.f32 %v16930_v61, %v7262_v24  ;;  %v8548_v56 = vadd.f32 %v17007_v29, %v8547_v58  ;;  %v13807_v59 = vpop.f32.mrb[170].mxu1  ;;  %14072 = vmatprep.mubr.bf16.mxu0 %v9684_v38  ;;  %v7730_v3 = vmax.f32 %v7260_v25, 0.0  ;;  %v17206_v24 = vld [vmem:[%s18035_s6] ss:$0 sm:$0xff] }
 0x4ad   : > { %v7733_v46 = vmax.f32 %v7271_v63, 0.0  ;;  %v8559_v50 = vadd.f32 %v13807_v59, %v17007_v29  ;;  %v8550_v43 = vpop.f32.mrb[171].mxu1  ;;  %14073 = vmatmul.mubr.bf16.gmra.mrb[164].mxu0 %v9685_v53  ;;  %v9452_v10 = vmax.f32 %v8556_v11, 0.0 }
 0x4ae   : > { %v7731_v57 = vmax.f32 %v7263_v26, 0.0  ;;  %v8551_v55 = vadd.f32 %v17007_v29, %v8550_v43  ;;  %v9450_v5 = vmax.f32 %v8548_v56, 0.0 }
 0x4af   : > { %v17179_v6 = vpack.c.bf16 %v7733_v46, %v7732_v4  ;;  %v9453_v22 = vmax.f32 %v8559_v50, 0.0  ;;  %13913 = vmatmul.mubr.msk.bf16.gmra.mrb[20].mxu1 %vm4240_vm2, %v17035_v0 }
 0x4b0   : > { %v17183_v9 = vpack.c.bf16 %v7731_v57, %v7730_v3  ;;  %v9451_v35 = vmax.f32 %v8551_v55, 0.0  ;;  %v13690_v54 = vpop.f32.mrb[60].mxu0  ;;  %13916 = vmatprep.mubr.msk.bf16.mxu1 %vm4240_vm2, %v17055_v14 }
 0x4b1   : > { %v9687_v18 = vpack.c.bf16 %v9453_v22, %v9452_v10  ;;  %v7284_v27 = vadd.f32 %v16930_v61, %v13690_v54  ;;  %v7275_v8 = vpop.f32.mrb[61].mxu0 }
 0x4b2   : > { %v9686_v40 = vpack.c.bf16 %v9451_v35, %v9450_v5  ;;  %v7276_v16 = vadd.f32 %v16930_v61, %v7275_v8  ;;  %v13691_v7 = vpop.f32.mrb[62].mxu0  ;;  %v13810_v52 = vpop.f32.mrb[172].mxu1 }
 0x4b3   : > { %v7287_v30 = vadd.f32 %v16930_v61, %v13691_v7  ;;  %v8572_v0 = vadd.f32 %v13810_v52, %v17007_v29  ;;  %v7278_v19 = vpop.f32.mrb[63].mxu0  ;;  %v8563_v47 = vpop.f32.mrb[173].mxu1  ;;  %v7736_v21 = vmax.f32 %v7284_v27, 0.0 }
 0x4b4   : > { %v7279_v13 = vadd.f32 %v16930_v61, %v7278_v19  ;;  %v8564_v39 = vadd.f32 %v17007_v29, %v8563_v47  ;;  %v13811_v14 = vpop.f32.mrb[174].mxu1  ;;  %14076 = vmatprep.mubr.bf16.mxu0 %v9686_v40  ;;  %v7734_v1 = vmax.f32 %v7276_v16, 0.0 }
 0x4b5   : > { %v7737_v33 = vmax.f32 %v7287_v30, 0.0  ;;  %v8575_v45 = vadd.f32 %v13811_v14, %v17007_v29  ;;  %v8566_v34 = vpop.f32.mrb[175].mxu1  ;;  %14077 = vmatmul.mubr.bf16.gmra.mrb[168].mxu0 %v9687_v18  ;;  %v9456_v38 = vmax.f32 %v8572_v0, 0.0 }
 0x4b6   : > { %v7735_v53 = vmax.f32 %v7279_v13, 0.0  ;;  %v8567_v17 = vadd.f32 %v17007_v29, %v8566_v34  ;;  %v9454_v37 = vmax.f32 %v8564_v39, 0.0 }
 0x4b7   : > { %v17195_v2 = vpack.c.bf16 %v7737_v33, %v7736_v21  ;;  %v9457_v25 = vmax.f32 %v8575_v45, 0.0  ;;  %13917 = vmatmul.mubr.msk.bf16.gmra.mrb[24].mxu1 %vm4240_vm2, %v17051_v20 }
 0x4b8   : > { %v17199_v61 = vpack.c.bf16 %v7735_v53, %v7734_v1  ;;  %v9455_v32 = vmax.f32 %v8567_v17, 0.0  ;;  %v13694_v63 = vpop.f32.mrb[64].mxu0  ;;  %13920 = vmatprep.mubr.msk.bf16.mxu1 %vm4240_vm2, %v17071_v36 }
 0x4b9   : > { %v9689_v11 = vpack.c.bf16 %v9457_v25, %v9456_v38  ;;  %v7300_v58 = vadd.f32 %v17206_v24, %v13694_v63  ;;  %v7291_v26 = vpop.f32.mrb[65].mxu0 }
 0x4ba   : > { %v9688_v56 = vpack.c.bf16 %v9455_v32, %v9454_v37  ;;  %v7292_v20 = vadd.f32 %v17206_v24, %v7291_v26  ;;  %v13695_v59 = vpop.f32.mrb[66].mxu0  ;;  %v13814_v4 = vpop.f32.mrb[176].mxu1 }
 0x4bb   : > { %v7303_v46 = vadd.f32 %v17206_v24, %v13695_v59  ;;  %v8588_v50 = vadd.f32 %v13814_v4, %v17007_v29  ;;  %v7294_v43 = vpop.f32.mrb[67].mxu0  ;;  %v8579_v36 = vpop.f32.mrb[177].mxu1  ;;  %v7740_v10 = vmax.f32 %v7300_v58, 0.0 }
 0x4bc   : > { %v7295_v3 = vadd.f32 %v17206_v24, %v7294_v43  ;;  %v8580_v57 = vadd.f32 %v17007_v29, %v8579_v36  ;;  %v13815_v55 = vpop.f32.mrb[178].mxu1  ;;  %14080 = vmatprep.mubr.bf16.mxu0 %v9688_v56  ;;  %v7738_v54 = vmax.f32 %v7292_v20, 0.0 }
 0x4bd   : > { %v7741_v22 = vmax.f32 %v7303_v46, 0.0  ;;  %v8591_v5 = vadd.f32 %v13815_v55, %v17007_v29  ;;  %v8582_v35 = vpop.f32.mrb[179].mxu1  ;;  %14081 = vmatmul.mubr.bf16.gmra.mrb[172].mxu0 %v9689_v11  ;;  %v9460_v40 = vmax.f32 %v8588_v50, 0.0 }
 0x4be   : > { %v7739_v18 = vmax.f32 %v7295_v3, 0.0  ;;  %v8583_v27 = vadd.f32 %v17007_v29, %v8582_v35  ;;  %v9458_v52 = vmax.f32 %v8580_v57, 0.0 }
 0x4bf   : > { %v17216_v8 = vpack.c.bf16 %v7741_v22, %v7740_v10  ;;  %v9461_v16 = vmax.f32 %v8591_v5, 0.0  ;;  %13921 = vmatmul.mubr.msk.bf16.gmra.mrb[28].mxu1 %vm4240_vm2, %v17067_v23 }
 0x4c0   : > { %v17220_v7 = vpack.c.bf16 %v7739_v18, %v7738_v54  ;;  %v9459_v30 = vmax.f32 %v8583_v27, 0.0  ;;  %v13698_v0 = vpop.f32.mrb[68].mxu0  ;;  %13924 = vmatprep.mubr.msk.bf16.mxu1 %vm4240_vm2, %v17087_v31 }
 0x4c1   : > { %v9691_v19 = vpack.c.bf16 %v9461_v16, %v9460_v40  ;;  %v7316_v47 = vadd.f32 %v17206_v24, %v13698_v0  ;;  %v7307_v13 = vpop.f32.mrb[69].mxu0 }
 0x4c2   : > { %v9690_v39 = vpack.c.bf16 %v9459_v30, %v9458_v52  ;;  %v7308_v14 = vadd.f32 %v17206_v24, %v7307_v13  ;;  %v13699_v21 = vpop.f32.mrb[70].mxu0  ;;  %v13818_v33 = vpop.f32.mrb[180].mxu1 }
 0x4c3   : > { %v7319_v45 = vadd.f32 %v17206_v24, %v13699_v21  ;;  %v8604_v23 = vadd.f32 %v13818_v33, %v17007_v29  ;;  %v7310_v34 = vpop.f32.mrb[71].mxu0  ;;  %v8595_v1 = vpop.f32.mrb[181].mxu1  ;;  %v7744_v38 = vmax.f32 %v7316_v47, 0.0 }
 0x4c4   : > { %v7311_v53 = vadd.f32 %v17206_v24, %v7310_v34  ;;  %v8596_v17 = vadd.f32 %v17007_v29, %v8595_v1  ;;  %v13819_v31 = vpop.f32.mrb[182].mxu1  ;;  %14084 = vmatprep.mubr.bf16.mxu0 %v9690_v39  ;;  %v7742_v63 = vmax.f32 %v7308_v14, 0.0 }
 0x4c5   : > { %v7745_v25 = vmax.f32 %v7319_v45, 0.0  ;;  %v8607_v37 = vadd.f32 %v13819_v31, %v17007_v29  ;;  %v8598_v32 = vpop.f32.mrb[183].mxu1  ;;  %14085 = vmatmul.mubr.bf16.gmra.mrb[176].mxu0 %v9691_v19  ;;  %v9464_v56 = vmax.f32 %v8604_v23, 0.0 }
 0x4c6   : > { %v7743_v11 = vmax.f32 %v7311_v53, 0.0  ;;  %v8599_v58 = vadd.f32 %v17007_v29, %v8598_v32  ;;  %v9462_v4 = vmax.f32 %v8596_v17, 0.0 }
 0x4c7   : > { %v17232_v26 = vpack.c.bf16 %v7745_v25, %v7744_v38  ;;  %v9465_v20 = vmax.f32 %v8607_v37, 0.0  ;;  %13925 = vmatmul.mubr.msk.bf16.gmra.mrb[32].mxu1 %vm4240_vm2, %v17083_v28 }
 0x4c8   : > { %v17236_v59 = vpack.c.bf16 %v7743_v11, %v7742_v63  ;;  %v9463_v46 = vmax.f32 %v8599_v58, 0.0  ;;  %v13702_v50 = vpop.f32.mrb[72].mxu0  ;;  %13928 = vmatprep.mubr.msk.bf16.mxu1 %vm4240_vm2, %v17103_v48 }
 0x4c9   : > { %v9693_v43 = vpack.c.bf16 %v9465_v20, %v9464_v56  ;;  %v7332_v36 = vadd.f32 %v17206_v24, %v13702_v50  ;;  %v7323_v3 = vpop.f32.mrb[73].mxu0 }
 0x4ca   : > { %v9692_v57 = vpack.c.bf16 %v9463_v46, %v9462_v4  ;;  %v7324_v55 = vadd.f32 %v17206_v24, %v7323_v3  ;;  %v13703_v10 = vpop.f32.mrb[74].mxu0  ;;  %v13822_v22 = vpop.f32.mrb[184].mxu1 }
 0x4cb   : > { %v7335_v5 = vadd.f32 %v17206_v24, %v13703_v10  ;;  %v8620_v28 = vadd.f32 %v13822_v22, %v17007_v29  ;;  %v7326_v35 = vpop.f32.mrb[75].mxu0  ;;  %v8611_v54 = vpop.f32.mrb[185].mxu1  ;;  %v7748_v40 = vmax.f32 %v7332_v36, 0.0 }
 0x4cc   : > { %v7327_v18 = vadd.f32 %v17206_v24, %v7326_v35  ;;  %v8612_v27 = vadd.f32 %v17007_v29, %v8611_v54  ;;  %v13823_v48 = vpop.f32.mrb[186].mxu1  ;;  %14088 = vmatprep.mubr.bf16.mxu0 %v9692_v57  ;;  %v7746_v0 = vmax.f32 %v7324_v55, 0.0 }
 0x4cd   : > { %v7749_v16 = vmax.f32 %v7335_v5, 0.0  ;;  %v8623_v52 = vadd.f32 %v13823_v48, %v17007_v29  ;;  %v8614_v30 = vpop.f32.mrb[187].mxu1  ;;  %14089 = vmatmul.mubr.bf16.gmra.mrb[180].mxu0 %v9693_v43  ;;  %v9468_v39 = vmax.f32 %v8620_v28, 0.0 }
 0x4ce   : > { %v7747_v19 = vmax.f32 %v7327_v18, 0.0  ;;  %v8615_v47 = vadd.f32 %v17007_v29, %v8614_v30  ;;  %v9466_v33 = vmax.f32 %v8612_v27, 0.0 }
 0x4cf   : > { %v17248_v13 = vpack.c.bf16 %v7749_v16, %v7748_v40  ;;  %v9469_v14 = vmax.f32 %v8623_v52, 0.0  ;;  %13929 = vmatmul.mubr.msk.bf16.gmra.mrb[36].mxu1 %vm4240_vm2, %v17099_v15 }
 0x4d0   : > { %v17252_v21 = vpack.c.bf16 %v7747_v19, %v7746_v0  ;;  %v9467_v45 = vmax.f32 %v8615_v47, 0.0  ;;  %v13706_v23 = vpop.f32.mrb[76].mxu0  ;;  %13932 = vmatprep.mubr.msk.bf16.mxu1 %vm4240_vm2, %v17119_v60 }
 0x4d1   : > { %v9695_v34 = vpack.c.bf16 %v9469_v14, %v9468_v39  ;;  %v7348_v1 = vadd.f32 %v17206_v24, %v13706_v23  ;;  %v7339_v53 = vpop.f32.mrb[77].mxu0 }
 0x4d2   : > { %v9694_v17 = vpack.c.bf16 %v9467_v45, %v9466_v33  ;;  %v7340_v31 = vadd.f32 %v17206_v24, %v7339_v53  ;;  %v13707_v38 = vpop.f32.mrb[78].mxu0  ;;  %v13826_v25 = vpop.f32.mrb[188].mxu1 }
 0x4d3   : > { %v7351_v37 = vadd.f32 %v17206_v24, %v13707_v38  ;;  %v8636_v15 = vadd.f32 %v13826_v25, %v17007_v29  ;;  %v7342_v32 = vpop.f32.mrb[79].mxu0  ;;  %v8627_v63 = vpop.f32.mrb[189].mxu1  ;;  %v7752_v56 = vmax.f32 %v7348_v1, 0.0 }
 0x4d4   : > { %v7343_v11 = vadd.f32 %v17206_v24, %v7342_v32  ;;  %v8628_v58 = vadd.f32 %v17007_v29, %v8627_v63  ;;  %v13827_v60 = vpop.f32.mrb[190].mxu1  ;;  %14092 = vmatprep.mubr.bf16.mxu0 %v9694_v17  ;;  %v7750_v50 = vmax.f32 %v7340_v31, 0.0 }
 0x4d5   : > { %v7753_v20 = vmax.f32 %v7351_v37, 0.0  ;;  %v8639_v4 = vadd.f32 %v13827_v60, %v17007_v29  ;;  %v8630_v46 = vpop.f32.mrb[191].mxu1  ;;  %14093 = vmatmul.mubr.bf16.gmra.mrb[184].mxu0 %v9695_v34  ;;  %v9472_v57 = vmax.f32 %v8636_v15, 0.0 }
 0x4d6   : > { %v7751_v43 = vmax.f32 %v7343_v11, 0.0  ;;  %v8631_v36 = vadd.f32 %v17007_v29, %v8630_v46  ;;  %v9470_v22 = vmax.f32 %v8628_v58, 0.0 }
 0x4d7   : > { %v17264_v3 = vpack.c.bf16 %v7753_v20, %v7752_v56  ;;  %v9473_v55 = vmax.f32 %v8639_v4, 0.0  ;;  %13933 = vmatmul.mubr.msk.bf16.gmra.mrb[40].mxu1 %vm4240_vm2, %v17115_v62  ;;  %v17278_v62 = vld [vmem:[%s18037_s8] ss:$0 sm:$0xff] }
 0x4d8   : > { %v17268_v10 = vpack.c.bf16 %v7751_v43, %v7750_v50  ;;  %v9471_v5 = vmax.f32 %v8631_v36, 0.0  ;;  %v13710_v28 = vpop.f32.mrb[80].mxu0  ;;  %13936 = vmatprep.mubr.msk.bf16.mxu1 %vm4240_vm2, %v17135_v12 }
 0x4d9   : > { %v9697_v35 = vpack.c.bf16 %v9473_v55, %v9472_v57  ;;  %v7364_v54 = vadd.f32 %v17206_v24, %v13710_v28  ;;  %v7355_v18 = vpop.f32.mrb[81].mxu0 }
 0x4da   : > { %v9696_v29 = vpack.c.bf16 %v9471_v5, %v9470_v22  ;;  %v7356_v27 = vadd.f32 %v17206_v24, %v7355_v18  ;;  %v13711_v48 = vpop.f32.mrb[82].mxu0  ;;  %v13830_v40 = vpop.f32.mrb[192].mxu1 }
 0x4db   : > { %v7367_v16 = vadd.f32 %v17206_v24, %v13711_v48  ;;  %v8652_v52 = vadd.f32 %v17278_v62, %v13830_v40  ;;  %v7358_v30 = vpop.f32.mrb[83].mxu0  ;;  %v8643_v12 = vpop.f32.mrb[193].mxu1  ;;  %v7756_v39 = vmax.f32 %v7364_v54, 0.0 }
 0x4dc   : > { %v7359_v0 = vadd.f32 %v17206_v24, %v7358_v30  ;;  %v8644_v19 = vadd.f32 %v17278_v62, %v8643_v12  ;;  %v13831_v47 = vpop.f32.mrb[194].mxu1  ;;  %14096 = vmatprep.mubr.bf16.mxu0 %v9696_v29  ;;  %v7754_v23 = vmax.f32 %v7356_v27, 0.0 }
 0x4dd   : > { %v7757_v14 = vmax.f32 %v7367_v16, 0.0  ;;  %v8655_v33 = vadd.f32 %v17278_v62, %v13831_v47  ;;  %v8646_v45 = vpop.f32.mrb[195].mxu1  ;;  %14097 = vmatmul.mubr.bf16.gmra.mrb[188].mxu0 %v9697_v35  ;;  %v9476_v17 = vmax.f32 %v8652_v52, 0.0 }
 0x4de   : > { %v7755_v34 = vmax.f32 %v7359_v0, 0.0  ;;  %v8647_v1 = vadd.f32 %v17278_v62, %v8646_v45  ;;  %v9474_v25 = vmax.f32 %v8644_v19, 0.0 }
 0x4df   : > { %v17285_v53 = vpack.c.bf16 %v7757_v14, %v7756_v39  ;;  %v9477_v31 = vmax.f32 %v8655_v33, 0.0  ;;  %13937 = vmatmul.mubr.msk.bf16.gmra.mrb[44].mxu1 %vm4240_vm2, %v17131_v41 }
 0x4e0   : > { %v17289_v38 = vpack.c.bf16 %v7755_v34, %v7754_v23  ;;  %v9475_v37 = vmax.f32 %v8647_v1, 0.0  ;;  %v13714_v15 = vpop.f32.mrb[84].mxu0  ;;  %13940 = vmatprep.mubr.msk.bf16.mxu1 %vm4240_vm2, %v17151_v42 }
 0x4e1   : > { %v9699_v32 = vpack.c.bf16 %v9477_v31, %v9476_v17  ;;  %v7380_v63 = vadd.f32 %v17206_v24, %v13714_v15  ;;  %v7371_v11 = vpop.f32.mrb[85].mxu0 }
 0x4e2   : > { %v9698_v58 = vpack.c.bf16 %v9475_v37, %v9474_v25  ;;  %v7372_v60 = vadd.f32 %v17206_v24, %v7371_v11  ;;  %v13715_v56 = vpop.f32.mrb[86].mxu0  ;;  %v13834_v20 = vpop.f32.mrb[196].mxu1 }
 0x4e3   : > { %v7383_v4 = vadd.f32 %v17206_v24, %v13715_v56  ;;  %v8668_v41 = vadd.f32 %v17278_v62, %v13834_v20  ;;  %v7374_v46 = vpop.f32.mrb[87].mxu0  ;;  %v8659_v50 = vpop.f32.mrb[197].mxu1  ;;  %v7760_v57 = vmax.f32 %v7380_v63, 0.0 }
 0x4e4   : > { %v7375_v43 = vadd.f32 %v17206_v24, %v7374_v46  ;;  %v8660_v36 = vadd.f32 %v17278_v62, %v8659_v50  ;;  %v13835_v42 = vpop.f32.mrb[198].mxu1  ;;  %14100 = vmatprep.mubr.bf16.mxu0 %v9698_v58  ;;  %v7758_v28 = vmax.f32 %v7372_v60, 0.0 }
 0x4e5   : > { %v7761_v55 = vmax.f32 %v7383_v4, 0.0  ;;  %v8671_v22 = vadd.f32 %v17278_v62, %v13835_v42  ;;  %v8662_v5 = vpop.f32.mrb[199].mxu1  ;;  %14101 = vmatmul.mubr.bf16.gmra.mrb[192].mxu0 %v9699_v32  ;;  %v9480_v29 = vmax.f32 %v8668_v41, 0.0 }
 0x4e6   : > { %v7759_v35 = vmax.f32 %v7375_v43, 0.0  ;;  %v8663_v54 = vadd.f32 %v17278_v62, %v8662_v5  ;;  %v9478_v40 = vmax.f32 %v8660_v36, 0.0 }
 0x4e7   : > { %v17301_v18 = vpack.c.bf16 %v7761_v55, %v7760_v57  ;;  %v9481_v27 = vmax.f32 %v8671_v22, 0.0  ;;  %13941 = vmatmul.mubr.msk.bf16.gmra.mrb[48].mxu1 %vm4240_vm2, %v17147_v49 }
 0x4e8   : > { %v17305_v48 = vpack.c.bf16 %v7759_v35, %v7758_v28  ;;  %v9479_v16 = vmax.f32 %v8663_v54, 0.0  ;;  %v13718_v52 = vpop.f32.mrb[88].mxu0  ;;  %13944 = vmatprep.mubr.msk.bf16.mxu1 %vm4240_vm2, %v17167_v51 }
 0x4e9   : > { %v9701_v30 = vpack.c.bf16 %v9481_v27, %v9480_v29  ;;  %v7396_v12 = vadd.f32 %v17206_v24, %v13718_v52  ;;  %v7387_v0 = vpop.f32.mrb[89].mxu0 }
 0x4ea   : > { %v9700_v19 = vpack.c.bf16 %v9479_v16, %v9478_v40  ;;  %v7388_v47 = vadd.f32 %v17206_v24, %v7387_v0  ;;  %v13719_v39 = vpop.f32.mrb[90].mxu0  ;;  %v13838_v14 = vpop.f32.mrb[200].mxu1 }
 0x4eb   : > { %v7399_v33 = vadd.f32 %v17206_v24, %v13719_v39  ;;  %v8684_v49 = vadd.f32 %v17278_v62, %v13838_v14  ;;  %v7390_v45 = vpop.f32.mrb[91].mxu0  ;;  %v8675_v23 = vpop.f32.mrb[201].mxu1  ;;  %v7764_v17 = vmax.f32 %v7396_v12, 0.0 }
 0x4ec   : > { %v7391_v34 = vadd.f32 %v17206_v24, %v7390_v45  ;;  %v8676_v1 = vadd.f32 %v17278_v62, %v8675_v23  ;;  %v13839_v51 = vpop.f32.mrb[202].mxu1  ;;  %14104 = vmatprep.mubr.bf16.mxu0 %v9700_v19  ;;  %v7762_v15 = vmax.f32 %v7388_v47, 0.0 }
 0x4ed   : > { %v7765_v31 = vmax.f32 %v7399_v33, 0.0  ;;  %v8687_v25 = vadd.f32 %v17278_v62, %v13839_v51  ;;  %v8678_v37 = vpop.f32.mrb[203].mxu1  ;;  %14105 = vmatmul.mubr.bf16.gmra.mrb[196].mxu0 %v9701_v30  ;;  %v9484_v58 = vmax.f32 %v8684_v49, 0.0 }
 0x4ee   : > { %v7763_v32 = vmax.f32 %v7391_v34, 0.0  ;;  %v8679_v63 = vadd.f32 %v17278_v62, %v8678_v37  ;;  %v9482_v20 = vmax.f32 %v8676_v1, 0.0 }
 0x4ef   : > { %v17317_v11 = vpack.c.bf16 %v7765_v31, %v7764_v17  ;;  %v9485_v60 = vmax.f32 %v8687_v25, 0.0  ;;  %13945 = vmatmul.mubr.msk.bf16.gmra.mrb[52].mxu1 %vm4240_vm2, %v17163_v44 }
 0x4f0   : > { %v17321_v56 = vpack.c.bf16 %v7763_v32, %v7762_v15  ;;  %v9483_v4 = vmax.f32 %v8679_v63, 0.0  ;;  %v13722_v41 = vpop.f32.mrb[92].mxu0  ;;  %13948 = vmatprep.mubr.msk.bf16.mxu1 %vm4240_vm2, %v17183_v9 }
 0x4f1   : > { %v9703_v46 = vpack.c.bf16 %v9485_v60, %v9484_v58  ;;  %v7412_v50 = vadd.f32 %v17206_v24, %v13722_v41  ;;  %v7403_v43 = vpop.f32.mrb[93].mxu0 }
 0x4f2   : > { %v9702_v36 = vpack.c.bf16 %v9483_v4, %v9482_v20  ;;  %v7404_v42 = vadd.f32 %v17206_v24, %v7403_v43  ;;  %v13723_v57 = vpop.f32.mrb[94].mxu0  ;;  %v13842_v55 = vpop.f32.mrb[204].mxu1 }
 0x4f3   : > { %v7415_v22 = vadd.f32 %v17206_v24, %v13723_v57  ;;  %v8700_v44 = vadd.f32 %v17278_v62, %v13842_v55  ;;  %v7406_v5 = vpop.f32.mrb[95].mxu0  ;;  %v8691_v28 = vpop.f32.mrb[205].mxu1  ;;  %v7768_v29 = vmax.f32 %v7412_v50, 0.0 }
 0x4f4   : > { %v7407_v35 = vadd.f32 %v17206_v24, %v7406_v5  ;;  %v8692_v54 = vadd.f32 %v17278_v62, %v8691_v28  ;;  %v13843_v9 = vpop.f32.mrb[206].mxu1  ;;  %14108 = vmatprep.mubr.bf16.mxu0 %v9702_v36  ;;  %v7766_v52 = vmax.f32 %v7404_v42, 0.0 }
 0x4f5   : > { %v7769_v27 = vmax.f32 %v7415_v22, 0.0  ;;  %v8703_v40 = vadd.f32 %v17278_v62, %v13843_v9  ;;  %v8694_v16 = vpop.f32.mrb[207].mxu1  ;;  %14109 = vmatmul.mubr.bf16.gmra.mrb[200].mxu0 %v9703_v46  ;;  %v9488_v19 = vmax.f32 %v8700_v44, 0.0 }
 0x4f6   : > { %v7767_v30 = vmax.f32 %v7407_v35, 0.0  ;;  %v8695_v12 = vadd.f32 %v17278_v62, %v8694_v16  ;;  %v9486_v14 = vmax.f32 %v8692_v54, 0.0 }
 0x4f7   : > { %v17333_v0 = vpack.c.bf16 %v7769_v27, %v7768_v29  ;;  %v9489_v47 = vmax.f32 %v8703_v40, 0.0  ;;  %13949 = vmatmul.mubr.msk.bf16.gmra.mrb[56].mxu1 %vm4240_vm2, %v17179_v6 }
 0x4f8   : > { %v17337_v39 = vpack.c.bf16 %v7767_v30, %v7766_v52  ;;  %v9487_v33 = vmax.f32 %v8695_v12, 0.0  ;;  %v13726_v49 = vpop.f32.mrb[96].mxu0  ;;  %13952 = vmatprep.mubr.msk.bf16.mxu1 %vm4240_vm2, %v17199_v61 }
 0x4f9   : > { %v9705_v45 = vpack.c.bf16 %v9489_v47, %v9488_v19  ;;  %v7428_v23 = vadd.f32 %v17206_v24, %v13726_v49  ;;  %v7419_v34 = vpop.f32.mrb[97].mxu0 }
 0x4fa   : > { %v9704_v1 = vpack.c.bf16 %v9487_v33, %v9486_v14  ;;  %v7420_v51 = vadd.f32 %v17206_v24, %v7419_v34  ;;  %v13727_v17 = vpop.f32.mrb[98].mxu0  ;;  %v13846_v31 = vpop.f32.mrb[208].mxu1 }
 0x4fb   : > { %v7431_v25 = vadd.f32 %v17206_v24, %v13727_v17  ;;  %v8716_v6 = vadd.f32 %v17278_v62, %v13846_v31  ;;  %v7422_v37 = vpop.f32.mrb[99].mxu0  ;;  %v8707_v15 = vpop.f32.mrb[209].mxu1  ;;  %v7772_v58 = vmax.f32 %v7428_v23, 0.0 }
 0x4fc   : > { %v7423_v32 = vadd.f32 %v17206_v24, %v7422_v37  ;;  %v8708_v63 = vadd.f32 %v17278_v62, %v8707_v15  ;;  %v13847_v61 = vpop.f32.mrb[210].mxu1  ;;  %14112 = vmatprep.mubr.bf16.mxu0 %v9704_v1  ;;  %v7770_v41 = vmax.f32 %v7420_v51, 0.0 }
 0x4fd   : > { %v7773_v60 = vmax.f32 %v7431_v25, 0.0  ;;  %v8719_v20 = vadd.f32 %v17278_v62, %v13847_v61  ;;  %v8710_v4 = vpop.f32.mrb[211].mxu1  ;;  %14113 = vmatmul.mubr.bf16.gmra.mrb[204].mxu0 %v9705_v45  ;;  %v9492_v36 = vmax.f32 %v8716_v6, 0.0 }
 0x4fe   : > { %v7771_v46 = vmax.f32 %v7423_v32, 0.0  ;;  %v8711_v50 = vadd.f32 %v17278_v62, %v8710_v4  ;;  %v9490_v55 = vmax.f32 %v8708_v63, 0.0 }
 0x4ff   : > { %v17349_v43 = vpack.c.bf16 %v7773_v60, %v7772_v58  ;;  %v9493_v42 = vmax.f32 %v8719_v20, 0.0  ;;  %13953 = vmatmul.mubr.msk.bf16.gmra.mrb[60].mxu1 %vm4240_vm2, %v17195_v2 }
 0x500   : > { %v17353_v57 = vpack.c.bf16 %v7771_v46, %v7770_v41  ;;  %v9491_v22 = vmax.f32 %v8711_v50, 0.0  ;;  %v13730_v44 = vpop.f32.mrb[100].mxu0  ;;  %13956 = vmatprep.mubr.msk.bf16.mxu1 %vm4240_vm2, %v17220_v7 }
 0x501   : > { %v9707_v5 = vpack.c.bf16 %v9493_v42, %v9492_v36  ;;  %v7444_v28 = vadd.f32 %v17206_v24, %v13730_v44  ;;  %v7435_v35 = vpop.f32.mrb[101].mxu0 }
 0x502   : > { %v9706_v54 = vpack.c.bf16 %v9491_v22, %v9490_v55  ;;  %v7436_v9 = vadd.f32 %v17206_v24, %v7435_v35  ;;  %v13731_v29 = vpop.f32.mrb[102].mxu0  ;;  %v13850_v27 = vpop.f32.mrb[212].mxu1 }
 0x503   : > { %v7447_v40 = vadd.f32 %v17206_v24, %v13731_v29  ;;  %v8732_v2 = vadd.f32 %v17278_v62, %v13850_v27  ;;  %v7438_v16 = vpop.f32.mrb[103].mxu0  ;;  %v8723_v52 = vpop.f32.mrb[213].mxu1  ;;  %v7776_v19 = vmax.f32 %v7444_v28, 0.0 }
 0x504   : > { %v7439_v30 = vadd.f32 %v17206_v24, %v7438_v16  ;;  %v8724_v12 = vadd.f32 %v17278_v62, %v8723_v52  ;;  %v13851_v7 = vpop.f32.mrb[214].mxu1  ;;  %14116 = vmatprep.mubr.bf16.mxu0 %v9706_v54  ;;  %v7774_v49 = vmax.f32 %v7436_v9, 0.0 }
 0x505   : > { %v7777_v47 = vmax.f32 %v7447_v40, 0.0  ;;  %v8735_v14 = vadd.f32 %v17278_v62, %v13851_v7  ;;  %v8726_v33 = vpop.f32.mrb[215].mxu1  ;;  %14117 = vmatmul.mubr.bf16.gmra.mrb[208].mxu0 %v9707_v5  ;;  %v9496_v1 = vmax.f32 %v8732_v2, 0.0 }
 0x506   : > { %v7775_v45 = vmax.f32 %v7439_v30, 0.0  ;;  %v8727_v23 = vadd.f32 %v17278_v62, %v8726_v33  ;;  %v9494_v31 = vmax.f32 %v8724_v12, 0.0 }
 0x507   : > { %v17365_v34 = vpack.c.bf16 %v7777_v47, %v7776_v19  ;;  %v9497_v51 = vmax.f32 %v8735_v14, 0.0  ;;  %13957 = vmatmul.mubr.msk.bf16.gmra.mrb[64].mxu1 %vm4240_vm2, %v17216_v8 }
 0x508   : > { %v17369_v17 = vpack.c.bf16 %v7775_v45, %v7774_v49  ;;  %v9495_v25 = vmax.f32 %v8727_v23, 0.0  ;;  %v13734_v6 = vpop.f32.mrb[104].mxu0  ;;  %13960 = vmatprep.mubr.msk.bf16.mxu1 %vm4240_vm2, %v17236_v59 }
 0x509   : > { %v9709_v37 = vpack.c.bf16 %v9497_v51, %v9496_v1  ;;  %v7460_v15 = vadd.f32 %v17206_v24, %v13734_v6  ;;  %v7451_v32 = vpop.f32.mrb[105].mxu0 }
 0x50a   : > { %v9708_v63 = vpack.c.bf16 %v9495_v25, %v9494_v31  ;;  %v7452_v61 = vadd.f32 %v17206_v24, %v7451_v32  ;;  %v13735_v58 = vpop.f32.mrb[106].mxu0  ;;  %v13854_v60 = vpop.f32.mrb[216].mxu1 }
 0x50b   : > { %v7463_v20 = vadd.f32 %v17206_v24, %v13735_v58  ;;  %v8748_v8 = vadd.f32 %v17278_v62, %v13854_v60  ;;  %v7454_v4 = vpop.f32.mrb[107].mxu0  ;;  %v8739_v41 = vpop.f32.mrb[217].mxu1  ;;  %v7780_v36 = vmax.f32 %v7460_v15, 0.0 }
 0x50c   : > { %v7455_v46 = vadd.f32 %v17206_v24, %v7454_v4  ;;  %v8740_v50 = vadd.f32 %v17278_v62, %v8739_v41  ;;  %v13855_v59 = vpop.f32.mrb[218].mxu1  ;;  %14120 = vmatprep.mubr.bf16.mxu0 %v9708_v63  ;;  %v7778_v44 = vmax.f32 %v7452_v61, 0.0 }
 0x50d   : > { %v7781_v42 = vmax.f32 %v7463_v20, 0.0  ;;  %v8751_v55 = vadd.f32 %v17278_v62, %v13855_v59  ;;  %v8742_v22 = vpop.f32.mrb[219].mxu1  ;;  %14121 = vmatmul.mubr.bf16.gmra.mrb[212].mxu0 %v9709_v37  ;;  %v9500_v54 = vmax.f32 %v8748_v8, 0.0 }
 0x50e   : > { %v7779_v5 = vmax.f32 %v7455_v46, 0.0  ;;  %v8743_v28 = vadd.f32 %v17278_v62, %v8742_v22  ;;  %v9498_v27 = vmax.f32 %v8740_v50, 0.0 }
 0x50f   : > { %v17381_v35 = vpack.c.bf16 %v7781_v42, %v7780_v36  ;;  %v9501_v9 = vmax.f32 %v8751_v55, 0.0  ;;  %13961 = vmatmul.mubr.msk.bf16.gmra.mrb[68].mxu1 %vm4240_vm2, %v17232_v26 }
 0x510   : > { %v17385_v29 = vpack.c.bf16 %v7779_v5, %v7778_v44  ;;  %v9499_v40 = vmax.f32 %v8743_v28, 0.0  ;;  %v13738_v2 = vpop.f32.mrb[108].mxu0  ;;  %13964 = vmatprep.mubr.msk.bf16.mxu1 %vm4240_vm2, %v17252_v21 }
 0x511   : > { %v9711_v16 = vpack.c.bf16 %v9501_v9, %v9500_v54  ;;  %v7476_v52 = vadd.f32 %v17206_v24, %v13738_v2  ;;  %v7467_v30 = vpop.f32.mrb[109].mxu0 }
 0x512   : > { %v9710_v12 = vpack.c.bf16 %v9499_v40, %v9498_v27  ;;  %v7468_v7 = vadd.f32 %v17206_v24, %v7467_v30  ;;  %v13739_v19 = vpop.f32.mrb[110].mxu0  ;;  %v13858_v47 = vpop.f32.mrb[220].mxu1 }
 0x513   : > { %v7479_v14 = vadd.f32 %v17206_v24, %v13739_v19  ;;  %v8764_v26 = vadd.f32 %v17278_v62, %v13858_v47  ;;  %v7470_v33 = vpop.f32.mrb[111].mxu0  ;;  %v8755_v49 = vpop.f32.mrb[221].mxu1  ;;  %v7784_v1 = vmax.f32 %v7476_v52, 0.0 }
 0x514   : > { %v7471_v45 = vadd.f32 %v17206_v24, %v7470_v33  ;;  %v8756_v23 = vadd.f32 %v17278_v62, %v8755_v49  ;;  %v13859_v21 = vpop.f32.mrb[222].mxu1  ;;  %14124 = vmatprep.mubr.bf16.mxu0 %v9710_v12  ;;  %v7782_v6 = vmax.f32 %v7468_v7, 0.0 }
 0x515   : > { %v7785_v51 = vmax.f32 %v7479_v14, 0.0  ;;  %v8767_v31 = vadd.f32 %v17278_v62, %v13859_v21  ;;  %v8758_v25 = vpop.f32.mrb[223].mxu1  ;;  %14125 = vmatmul.mubr.bf16.gmra.mrb[216].mxu0 %v9711_v16  ;;  %v9504_v63 = vmax.f32 %v8764_v26, 0.0 }
 0x516   : > { %v7783_v37 = vmax.f32 %v7471_v45, 0.0  ;;  %v8759_v15 = vadd.f32 %v17278_v62, %v8758_v25  ;;  %v9502_v60 = vmax.f32 %v8756_v23, 0.0 }
 0x517   : > { %v17397_v32 = vpack.c.bf16 %v7785_v51, %v7784_v1  ;;  %v9505_v61 = vmax.f32 %v8767_v31, 0.0  ;;  %13965 = vmatmul.mubr.msk.bf16.gmra.mrb[72].mxu1 %vm4240_vm2, %v17248_v13 }
 0x518   : > { %v17401_v58 = vpack.c.bf16 %v7783_v37, %v7782_v6  ;;  %v9503_v20 = vmax.f32 %v8759_v15, 0.0  ;;  %v13742_v8 = vpop.f32.mrb[112].mxu0  ;;  %13968 = vmatprep.mubr.msk.bf16.mxu1 %vm4240_vm2, %v17268_v10 }
 0x519   : > { %v9713_v4 = vpack.c.bf16 %v9505_v61, %v9504_v63  ;;  %v7492_v41 = vadd.f32 %v17206_v24, %v13742_v8  ;;  %v7483_v46 = vpop.f32.mrb[113].mxu0 }
 0x51a   : > { %v9712_v50 = vpack.c.bf16 %v9503_v20, %v9502_v60  ;;  %v7484_v59 = vadd.f32 %v17206_v24, %v7483_v46  ;;  %v13743_v36 = vpop.f32.mrb[114].mxu0  ;;  %v13862_v42 = vpop.f32.mrb[224].mxu1 }
 0x51b   : > { %v7495_v55 = vadd.f32 %v17206_v24, %v13743_v36  ;;  %v8780_v13 = vadd.f32 %v17278_v62, %v13862_v42  ;;  %v7486_v22 = vpop.f32.mrb[115].mxu0  ;;  %v8771_v44 = vpop.f32.mrb[225].mxu1  ;;  %v7788_v54 = vmax.f32 %v7492_v41, 0.0 }
 0x51c   : > { %v7487_v5 = vadd.f32 %v17206_v24, %v7486_v22  ;;  %v8772_v28 = vadd.f32 %v17278_v62, %v8771_v44  ;;  %v13863_v10 = vpop.f32.mrb[226].mxu1  ;;  %14128 = vmatprep.mubr.bf16.mxu0 %v9712_v50  ;;  %v7786_v2 = vmax.f32 %v7484_v59, 0.0 }
 0x51d   : > { %v7789_v9 = vmax.f32 %v7495_v55, 0.0  ;;  %v8783_v27 = vadd.f32 %v17278_v62, %v13863_v10  ;;  %v8774_v40 = vpop.f32.mrb[227].mxu1  ;;  %14129 = vmatmul.mubr.bf16.gmra.mrb[220].mxu0 %v9713_v4  ;;  %v9508_v12 = vmax.f32 %v8780_v13, 0.0 }
 0x51e   : > { %v7787_v16 = vmax.f32 %v7487_v5, 0.0  ;;  %v8775_v52 = vadd.f32 %v17278_v62, %v8774_v40  ;;  %v9506_v47 = vmax.f32 %v8772_v28, 0.0 }
 0x51f   : > { %v17413_v30 = vpack.c.bf16 %v7789_v9, %v7788_v54  ;;  %v9509_v7 = vmax.f32 %v8783_v27, 0.0  ;;  %13969 = vmatmul.mubr.msk.bf16.gmra.mrb[76].mxu1 %vm4240_vm2, %v17264_v3 }
 0x520   : > { %v17417_v19 = vpack.c.bf16 %v7787_v16, %v7786_v2  ;;  %v9507_v14 = vmax.f32 %v8775_v52, 0.0  ;;  %v13746_v26 = vpop.f32.mrb[116].mxu0  ;;  %13972 = vmatprep.mubr.msk.bf16.mxu1 %vm4240_vm2, %v17289_v38 }
 0x521   : > { %v9715_v33 = vpack.c.bf16 %v9509_v7, %v9508_v12  ;;  %v7508_v49 = vadd.f32 %v17206_v24, %v13746_v26  ;;  %v7499_v45 = vpop.f32.mrb[117].mxu0 }
 0x522   : > { %v9714_v23 = vpack.c.bf16 %v9507_v14, %v9506_v47  ;;  %v7500_v21 = vadd.f32 %v17206_v24, %v7499_v45  ;;  %v13747_v1 = vpop.f32.mrb[118].mxu0  ;;  %v13866_v51 = vpop.f32.mrb[228].mxu1 }
 0x523   : > { %v7511_v31 = vadd.f32 %v17206_v24, %v13747_v1  ;;  %v8796_v3 = vadd.f32 %v17278_v62, %v13866_v51  ;;  %v7502_v25 = vpop.f32.mrb[119].mxu0  ;;  %v8787_v6 = vpop.f32.mrb[229].mxu1  ;;  %v7792_v63 = vmax.f32 %v7508_v49, 0.0 }
 0x524   : > { %v7503_v37 = vadd.f32 %v17206_v24, %v7502_v25  ;;  %v8788_v15 = vadd.f32 %v17278_v62, %v8787_v6  ;;  %v13867_v38 = vpop.f32.mrb[230].mxu1  ;;  %14132 = vmatprep.mubr.bf16.mxu0 %v9714_v23  ;;  %v7790_v8 = vmax.f32 %v7500_v21, 0.0 }
 0x525   : > { %v7793_v61 = vmax.f32 %v7511_v31, 0.0  ;;  %v8799_v60 = vadd.f32 %v17278_v62, %v13867_v38  ;;  %v8790_v20 = vpop.f32.mrb[231].mxu1  ;;  %14133 = vmatmul.mubr.bf16.gmra.mrb[224].mxu0 %v9715_v33  ;;  %v9512_v50 = vmax.f32 %v8796_v3, 0.0 }
 0x526   : > { %v7791_v4 = vmax.f32 %v7503_v37, 0.0  ;;  %v8791_v41 = vadd.f32 %v17278_v62, %v8790_v20  ;;  %v9510_v42 = vmax.f32 %v8788_v15, 0.0 }
 0x527   : > { %v17429_v46 = vpack.c.bf16 %v7793_v61, %v7792_v63  ;;  %v9513_v59 = vmax.f32 %v8799_v60, 0.0  ;;  %13973 = vmatmul.mubr.msk.bf16.gmra.mrb[80].mxu1 %vm4240_vm2, %v17285_v53 }
 0x528   : > { %v17433_v36 = vpack.c.bf16 %v7791_v4, %v7790_v8  ;;  %v9511_v55 = vmax.f32 %v8791_v41, 0.0  ;;  %v13750_v13 = vpop.f32.mrb[120].mxu0  ;;  %13976 = vmatprep.mubr.msk.bf16.mxu1 %vm4240_vm2, %v17305_v48 }
 0x529   : > { %v9717_v22 = vpack.c.bf16 %v9513_v59, %v9512_v50  ;;  %v7524_v44 = vadd.f32 %v17206_v24, %v13750_v13  ;;  %v7515_v5 = vpop.f32.mrb[121].mxu0 }
 0x52a   : > { %v9716_v28 = vpack.c.bf16 %v9511_v55, %v9510_v42  ;;  %v7516_v10 = vadd.f32 %v17206_v24, %v7515_v5  ;;  %v13751_v54 = vpop.f32.mrb[122].mxu0  ;;  %v13870_v9 = vpop.f32.mrb[232].mxu1 }
 0x52b   : > { %v7527_v27 = vadd.f32 %v17206_v24, %v13751_v54  ;;  %v8812_v53 = vadd.f32 %v17278_v62, %v13870_v9  ;;  %v7518_v40 = vpop.f32.mrb[123].mxu0  ;;  %v8803_v2 = vpop.f32.mrb[233].mxu1  ;;  %v7796_v12 = vmax.f32 %v7524_v44, 0.0 }
 0x52c   : > { %v7519_v16 = vadd.f32 %v17206_v24, %v7518_v40  ;;  %v8804_v52 = vadd.f32 %v17278_v62, %v8803_v2  ;;  %v13871_v48 = vpop.f32.mrb[234].mxu1  ;;  %14136 = vmatprep.mubr.bf16.mxu0 %v9716_v28  ;;  %v7794_v26 = vmax.f32 %v7516_v10, 0.0 }
 0x52d   : > { %v7797_v7 = vmax.f32 %v7527_v27, 0.0  ;;  %v8815_v47 = vadd.f32 %v17278_v62, %v13871_v48  ;;  %v8806_v14 = vpop.f32.mrb[235].mxu1  ;;  %14137 = vmatmul.mubr.bf16.gmra.mrb[228].mxu0 %v9717_v22  ;;  %v9516_v23 = vmax.f32 %v8812_v53, 0.0 }
 0x52e   : > { %v7795_v33 = vmax.f32 %v7519_v16, 0.0  ;;  %v8807_v49 = vadd.f32 %v17278_v62, %v8806_v14  ;;  %v9514_v51 = vmax.f32 %v8804_v52, 0.0 }
 0x52f   : > { %v17445_v45 = vpack.c.bf16 %v7797_v7, %v7796_v12  ;;  %v9517_v21 = vmax.f32 %v8815_v47, 0.0  ;;  %13977 = vmatmul.mubr.msk.bf16.gmra.mrb[84].mxu1 %vm4240_vm2, %v17301_v18 }
 0x530   : > { %v17449_v1 = vpack.c.bf16 %v7795_v33, %v7794_v26  ;;  %v9515_v31 = vmax.f32 %v8807_v49, 0.0  ;;  %v13754_v3 = vpop.f32.mrb[124].mxu0  ;;  %13980 = vmatprep.mubr.msk.bf16.mxu1 %vm4240_vm2, %v17321_v56 }
 0x531   : > { %v9719_v25 = vpack.c.bf16 %v9517_v21, %v9516_v23  ;;  %v7540_v6 = vadd.f32 %v17206_v24, %v13754_v3  ;;  %v7531_v37 = vpop.f32.mrb[125].mxu0 }
 0x532   : > { %v9718_v15 = vpack.c.bf16 %v9515_v31, %v9514_v51  ;;  %v7532_v38 = vadd.f32 %v17206_v24, %v7531_v37  ;;  %v13755_v63 = vpop.f32.mrb[126].mxu0  ;;  %v13874_v61 = vpop.f32.mrb[236].mxu1 }
 0x533   : > { %v7543_v60 = vadd.f32 %v17206_v24, %v13755_v63  ;;  %v8828_v18 = vadd.f32 %v17278_v62, %v13874_v61  ;;  %v7534_v20 = vpop.f32.mrb[127].mxu0  ;;  %v8819_v8 = vpop.f32.mrb[237].mxu1  ;;  %v7800_v50 = vmax.f32 %v7540_v6, 0.0 }
 0x534   : > { %v7535_v4 = vadd.f32 %v17206_v24, %v7534_v20  ;;  %v8820_v41 = vadd.f32 %v17278_v62, %v8819_v8  ;;  %v13875_v56 = vpop.f32.mrb[238].mxu1  ;;  %14140 = vmatprep.mubr.bf16.mxu0 %v9718_v15  ;;  %v7798_v13 = vmax.f32 %v7532_v38, 0.0  ;;  %v17468_v24 = vld [vmem:[%s18039_s10] ss:$0 sm:$0xff] }
 0x535   : > { %v7801_v59 = vmax.f32 %v7543_v60, 0.0  ;;  %v8831_v42 = vadd.f32 %v17278_v62, %v13875_v56  ;;  %v8822_v55 = vpop.f32.mrb[239].mxu1  ;;  %14141 = vmatmul.mubr.bf16.gmra.mrb[232].mxu0 %v9719_v25  ;;  %v9520_v28 = vmax.f32 %v8828_v18, 0.0 }
 0x536   : > { %v7799_v22 = vmax.f32 %v7535_v4, 0.0  ;;  %v8823_v44 = vadd.f32 %v17278_v62, %v8822_v55  ;;  %v9518_v9 = vmax.f32 %v8820_v41, 0.0 }
 0x537   : > { %v17461_v5 = vpack.c.bf16 %v7801_v59, %v7800_v50  ;;  %v9521_v10 = vmax.f32 %v8831_v42, 0.0  ;;  %13981 = vmatmul.mubr.msk.bf16.gmra.mrb[88].mxu1 %vm4240_vm2, %v17317_v11 }
 0x538   : > { %v17470_v54 = vpack.c.bf16 %v7799_v22, %v7798_v13  ;;  %v9519_v27 = vmax.f32 %v8823_v44, 0.0  ;;  %13984 = vmatprep.mubr.msk.bf16.mxu1 %vm4240_vm2, %v17337_v39  ;;  %v14038_v53 = vpop.f32.mrb[128].mxu0 }
 0x539   : > { %v9721_v40 = vpack.c.bf16 %v9521_v10, %v9520_v28  ;;  %v9899_v2 = vpop.f32.mrb[129].mxu0  ;;  %v9908_v14 = vadd.f32 %v14038_v53, %v17468_v24 }
 0x53a   : > { %v9720_v16 = vpack.c.bf16 %v9519_v27, %v9518_v9  ;;  %v9900_v52 = vadd.f32 %v17468_v24, %v9899_v2  ;;  %v13878_v48 = vpop.f32.mrb[240].mxu1  ;;  %v14039_v11 = vpop.f32.mrb[130].mxu0 }
 0x53b   : > { %v8844_v12 = vadd.f32 %v17278_v62, %v13878_v48  ;;  %v8835_v7 = vpop.f32.mrb[241].mxu1  ;;  %v9902_v47 = vpop.f32.mrb[131].mxu0  ;;  %v9911_v51 = vadd.f32 %v14039_v11, %v17468_v24  ;;  %v10924_v37 = vmax.f32 %v9908_v14, 0.0 }
 0x53c   : > { %v8836_v26 = vadd.f32 %v17278_v62, %v8835_v7  ;;  %v9903_v33 = vadd.f32 %v17468_v24, %v9902_v47  ;;  %v13879_v49 = vpop.f32.mrb[242].mxu1  ;;  %14144 = vmatprep.mubr.bf16.mxu0 %v9720_v16  ;;  %v10922_v21 = vmax.f32 %v9900_v52, 0.0 }
 0x53d   : > { %v8847_v39 = vadd.f32 %v17278_v62, %v13879_v49  ;;  %v8838_v23 = vpop.f32.mrb[243].mxu1  ;;  %14145 = vmatmul.mubr.bf16.gmra.mrb[236].mxu0 %v9721_v40  ;;  %v9524_v25 = vmax.f32 %v8844_v12, 0.0  ;;  %v10925_v20 = vmax.f32 %v9911_v51, 0.0 }
 0x53e   : > { %v10923_v31 = vmax.f32 %v9903_v33, 0.0  ;;  %v8839_v3 = vadd.f32 %v17278_v62, %v8838_v23  ;;  %v9522_v15 = vmax.f32 %v8836_v26, 0.0 }
 0x53f   : > { %v9525_v6 = vmax.f32 %v8847_v39, 0.0  ;;  %13985 = vmatmul.mubr.msk.bf16.gmra.mrb[92].mxu1 %vm4240_vm2, %v17333_v0 }
 0x540   : > { %v11178_v38 = vmax.f32 %v10922_v21, %v10923_v31  ;;  %v9523_v63 = vmax.f32 %v8839_v3, 0.0  ;;  %13988 = vmatprep.mubr.msk.bf16.mxu1 %vm4240_vm2, %v17353_v57  ;;  %v14042_v61 = vpop.f32.mrb[132].mxu0 }
 0x541   : > { %v9723_v60 = vpack.c.bf16 %v9525_v6, %v9524_v25  ;;  %v9915_v18 = vpop.f32.mrb[133].mxu0  ;;  %v9924_v59 = vadd.f32 %v14042_v61, %v17468_v24 }
 0x542   : > { %v11179_v8 = vmax.f32 %v11178_v38, %v10924_v37  ;;  %v9722_v4 = vpack.c.bf16 %v9523_v63, %v9522_v15  ;;  %v9916_v41 = vadd.f32 %v17468_v24, %v9915_v18  ;;  %v13882_v56 = vpop.f32.mrb[244].mxu1  ;;  %v14043_v50 = vpop.f32.mrb[134].mxu0 }
 0x543   : > { %v8860_v0 = vadd.f32 %v17278_v62, %v13882_v56  ;;  %v8851_v42 = vpop.f32.mrb[245].mxu1  ;;  %v9918_v55 = vpop.f32.mrb[135].mxu0  ;;  %v9927_v53 = vadd.f32 %v14043_v50, %v17468_v24  ;;  %v10928_v48 = vmax.f32 %v9924_v59, 0.0 }
 0x544   : > { %v10926_v13 = vmax.f32 %v9916_v41, 0.0  ;;  %v11180_v22 = vmax.f32 %v11179_v8, %v10925_v20  ;;  %v8852_v57 = vadd.f32 %v17278_v62, %v8851_v42  ;;  %v9919_v44 = vadd.f32 %v17468_v24, %v9918_v55  ;;  %v13883_v28 = vpop.f32.mrb[246].mxu1  ;;  %14148 = vmatprep.mubr.bf16.mxu0 %v9722_v4 }
 0x545   : > { %v8863_v10 = vadd.f32 %v17278_v62, %v13883_v28  ;;  %v8854_v9 = vpop.f32.mrb[247].mxu1  ;;  %14149 = vmatmul.mubr.bf16.gmra.mrb[240].mxu0 %v9723_v60  ;;  %v9528_v16 = vmax.f32 %v8860_v0, 0.0  ;;  %v10929_v33 = vmax.f32 %v9927_v53, 0.0 }
 0x546   : > { %v11181_v27 = vmax.f32 %v11180_v22, %v10926_v13  ;;  %v10927_v40 = vmax.f32 %v9919_v44, 0.0  ;;  %v8855_v2 = vadd.f32 %v17278_v62, %v8854_v9  ;;  %v9526_v11 = vmax.f32 %v8852_v57, 0.0 }
 0x547   : > { %v9529_v52 = vmax.f32 %v8863_v10, 0.0  ;;  %13989 = vmatmul.mubr.msk.bf16.gmra.mrb[96].mxu1 %vm4240_vm2, %v17349_v43 }
 0x548   : > { %v11182_v12 = vmax.f32 %v11181_v27, %v10927_v40  ;;  %v9527_v7 = vmax.f32 %v8855_v2, 0.0  ;;  %13992 = vmatprep.mubr.msk.bf16.mxu1 %vm4240_vm2, %v17369_v17  ;;  %v14046_v47 = vpop.f32.mrb[136].mxu0 }
 0x549   : > { %v9725_v14 = vpack.c.bf16 %v9529_v52, %v9528_v16  ;;  %v9931_v26 = vpop.f32.mrb[137].mxu0  ;;  %v9940_v31 = vadd.f32 %v14046_v47, %v17468_v24 }
 0x54a   : > { %v11183_v49 = vmax.f32 %v11182_v12, %v10928_v48  ;;  %v9724_v39 = vpack.c.bf16 %v9527_v7, %v9526_v11  ;;  %v9932_v23 = vadd.f32 %v17468_v24, %v9931_v26  ;;  %v13886_v21 = vpop.f32.mrb[248].mxu1  ;;  %v14047_v51 = vpop.f32.mrb[138].mxu0 }
 0x54b   : > { %v8876_v43 = vadd.f32 %v17278_v62, %v13886_v21  ;;  %v8867_v3 = vpop.f32.mrb[249].mxu1  ;;  %v9934_v25 = vpop.f32.mrb[139].mxu0  ;;  %v9943_v18 = vadd.f32 %v14047_v51, %v17468_v24  ;;  %v10932_v56 = vmax.f32 %v9940_v31, 0.0 }
 0x54c   : > { %v10930_v6 = vmax.f32 %v9932_v23, 0.0  ;;  %v11184_v37 = vmax.f32 %v11183_v49, %v10929_v33  ;;  %v8868_v17 = vadd.f32 %v17278_v62, %v8867_v3  ;;  %v9935_v15 = vadd.f32 %v17468_v24, %v9934_v25  ;;  %v13887_v38 = vpop.f32.mrb[250].mxu1  ;;  %14152 = vmatprep.mubr.bf16.mxu0 %v9724_v39 }
 0x54d   : > { %v8879_v63 = vadd.f32 %v17278_v62, %v13887_v38  ;;  %v8870_v61 = vpop.f32.mrb[251].mxu1  ;;  %14153 = vmatmul.mubr.bf16.gmra.mrb[244].mxu0 %v9725_v14  ;;  %v9532_v4 = vmax.f32 %v8876_v43, 0.0  ;;  %v10933_v22 = vmax.f32 %v9943_v18, 0.0 }
 0x54e   : > { %v11185_v60 = vmax.f32 %v11184_v37, %v10930_v6  ;;  %v10931_v20 = vmax.f32 %v9935_v15, 0.0  ;;  %v8871_v8 = vadd.f32 %v17278_v62, %v8870_v61  ;;  %v9530_v50 = vmax.f32 %v8868_v17, 0.0 }
 0x54f   : > { %v9533_v41 = vmax.f32 %v8879_v63, 0.0  ;;  %13993 = vmatmul.mubr.msk.bf16.gmra.mrb[100].mxu1 %vm4240_vm2, %v17365_v34 }
 0x550   : > { %v11186_v59 = vmax.f32 %v11185_v60, %v10931_v20  ;;  %v9531_v0 = vmax.f32 %v8871_v8, 0.0  ;;  %13996 = vmatprep.mubr.msk.bf16.mxu1 %vm4240_vm2, %v17385_v29  ;;  %v14050_v42 = vpop.f32.mrb[140].mxu0 }
 0x551   : > { %v9727_v55 = vpack.c.bf16 %v9533_v41, %v9532_v4  ;;  %v9947_v13 = vpop.f32.mrb[141].mxu0  ;;  %v9956_v27 = vadd.f32 %v14050_v42, %v17468_v24 }
 0x552   : > { %v11187_v57 = vmax.f32 %v11186_v59, %v10932_v56  ;;  %v9726_v44 = vpack.c.bf16 %v9531_v0, %v9530_v50  ;;  %v9948_v28 = vadd.f32 %v17468_v24, %v9947_v13  ;;  %v13890_v10 = vpop.f32.mrb[252].mxu1  ;;  %v14051_v9 = vpop.f32.mrb[142].mxu0 }
 0x553   : > { %v8892_v34 = vadd.f32 %v17278_v62, %v13890_v10  ;;  %v8883_v53 = vpop.f32.mrb[253].mxu1  ;;  %v9950_v40 = vpop.f32.mrb[143].mxu0  ;;  %v9959_v47 = vadd.f32 %v14051_v9, %v17468_v24  ;;  %v10936_v39 = vmax.f32 %v9956_v27, 0.0 }
 0x554   : > { %v10934_v2 = vmax.f32 %v9948_v28, 0.0  ;;  %v11188_v16 = vmax.f32 %v11187_v57, %v10933_v22  ;;  %v8884_v29 = vadd.f32 %v17278_v62, %v8883_v53  ;;  %v9951_v52 = vadd.f32 %v17468_v24, %v9950_v40  ;;  %v13891_v48 = vpop.f32.mrb[254].mxu1  ;;  %14156 = vmatprep.mubr.bf16.mxu0 %v9726_v44 }
 0x555   : > { %v8895_v11 = vadd.f32 %v17278_v62, %v13891_v48  ;;  %v8886_v12 = vpop.f32.mrb[255].mxu1  ;;  %14157 = vmatmul.mubr.bf16.gmra.mrb[248].mxu0 %v9727_v55  ;;  %v9536_v33 = vmax.f32 %v8892_v34, 0.0  ;;  %v10937_v25 = vmax.f32 %v9959_v47, 0.0 }
 0x556   : > { %v11189_v7 = vmax.f32 %v11188_v16, %v10934_v2  ;;  %v10935_v14 = vmax.f32 %v9951_v52, 0.0  ;;  %v8887_v26 = vadd.f32 %v17278_v62, %v8886_v12  ;;  %v9534_v23 = vmax.f32 %v8884_v29, 0.0 }
 0x557   : > { %v9537_v49 = vmax.f32 %v8895_v11, 0.0  ;;  %13997 = vmatmul.mubr.msk.bf16.gmra.mrb[104].mxu1 %vm4240_vm2, %v17381_v35  ;;  %v17527_v35 = vld [vmem:[%s18037_s8] ss:$0 sm:$0xff] }
 0x558   : > { %v11190_v21 = vmax.f32 %v11189_v7, %v10935_v14  ;;  %v9535_v51 = vmax.f32 %v8887_v26, 0.0  ;;  %14000 = vmatprep.mubr.msk.bf16.mxu1 %vm4240_vm2, %v17401_v58  ;;  %v14054_v31 = vpop.f32.mrb[144].mxu0 }
 0x559   : > { %v9729_v43 = vpack.c.bf16 %v9537_v49, %v9536_v33  ;;  %v9963_v3 = vpop.f32.mrb[145].mxu0  ;;  %v9972_v38 = vadd.f32 %v14054_v31, %v17468_v24 }
 0x55a   : > { %v11191_v6 = vmax.f32 %v11190_v21, %v10936_v39  ;;  %v9728_v37 = vpack.c.bf16 %v9535_v51, %v9534_v23  ;;  %v9964_v62 = vadd.f32 %v17468_v24, %v9963_v3  ;;  %v13894_v17 = vpop.f32.mrb[0].mxu1  ;;  %v14055_v15 = vpop.f32.mrb[146].mxu0 }
 0x55b   : > { %v8908_v63 = vadd.f32 %v17527_v35, %v13894_v17  ;;  %v8899_v58 = vpop.f32.mrb[1].mxu1  ;;  %v9966_v61 = vpop.f32.mrb[147].mxu0  ;;  %v9975_v59 = vadd.f32 %v14055_v15, %v17468_v24  ;;  %v10940_v22 = vmax.f32 %v9972_v38, 0.0 }
 0x55c   : > { %v10938_v60 = vmax.f32 %v9964_v62, 0.0  ;;  %v11192_v18 = vmax.f32 %v11191_v6, %v10937_v25  ;;  %v8900_v20 = vadd.f32 %v17527_v35, %v8899_v58  ;;  %v9967_v8 = vadd.f32 %v17468_v24, %v9966_v61  ;;  %v13895_v4 = vpop.f32.mrb[2].mxu1  ;;  %14160 = vmatprep.mubr.bf16.mxu0 %v9728_v37 }
 0x55d   : > { %v8911_v41 = vadd.f32 %v17527_v35, %v13895_v4  ;;  %v8902_v56 = vpop.f32.mrb[3].mxu1  ;;  %14161 = vmatmul.mubr.bf16.gmra.mrb[252].mxu0 %v9729_v43  ;;  %v9540_v55 = vmax.f32 %v8908_v63, 0.0  ;;  %v10941_v34 = vmax.f32 %v9975_v59, 0.0 }
 0x55e   : > { %v11193_v50 = vmax.f32 %v11192_v18, %v10938_v60  ;;  %v10939_v0 = vmax.f32 %v9967_v8, 0.0  ;;  %v8903_v42 = vadd.f32 %v17527_v35, %v8902_v56  ;;  %v9538_v57 = vmax.f32 %v8900_v20, 0.0 }
 0x55f   : > { %v9541_v13 = vmax.f32 %v8911_v41, 0.0  ;;  %14001 = vmatmul.mubr.msk.bf16.gmra.mrb[108].mxu1 %vm4240_vm2, %v17397_v32 }
 0x560   : > { %v11194_v44 = vmax.f32 %v11193_v50, %v10939_v0  ;;  %v9539_v28 = vmax.f32 %v8903_v42, 0.0  ;;  %14004 = vmatprep.mubr.msk.bf16.mxu1 %vm4240_vm2, %v17417_v19  ;;  %v14058_v10 = vpop.f32.mrb[148].mxu0 }
 0x561   : > { %v9731_v9 = vpack.c.bf16 %v9541_v13, %v9540_v55  ;;  %v9979_v27 = vpop.f32.mrb[149].mxu0  ;;  %v9988_v52 = vadd.f32 %v14058_v10, %v17468_v24 }
 0x562   : > { %v11195_v53 = vmax.f32 %v11194_v44, %v10940_v22  ;;  %v9730_v40 = vpack.c.bf16 %v9539_v28, %v9538_v57  ;;  %v9980_v2 = vadd.f32 %v17468_v24, %v9979_v27  ;;  %v13898_v16 = vpop.f32.mrb[4].mxu1  ;;  %v14059_v29 = vpop.f32.mrb[150].mxu0 }
 0x563   : > { %v8924_v32 = vadd.f32 %v17527_v35, %v13898_v16  ;;  %v8915_v48 = vpop.f32.mrb[5].mxu1  ;;  %v9982_v11 = vpop.f32.mrb[151].mxu0  ;;  %v9991_v39 = vadd.f32 %v14059_v29, %v17468_v24  ;;  %v10944_v43 = vmax.f32 %v9988_v52, 0.0 }
 0x564   : > { %v10942_v12 = vmax.f32 %v9980_v2, 0.0  ;;  %v11196_v7 = vmax.f32 %v11195_v53, %v10941_v34  ;;  %v8916_v19 = vadd.f32 %v17527_v35, %v8915_v48  ;;  %v9983_v47 = vadd.f32 %v17468_v24, %v9982_v11  ;;  %v13899_v14 = vpop.f32.mrb[6].mxu1  ;;  %14164 = vmatprep.mubr.bf16.mxu0 %v9730_v40 }
 0x565   : > { %v8927_v26 = vadd.f32 %v17527_v35, %v13899_v14  ;;  %v8918_v33 = vpop.f32.mrb[7].mxu1  ;;  %14165 = vmatmul.mubr.bf16.gmra.mrb[0].mxu0 %v9731_v9  ;;  %v9544_v51 = vmax.f32 %v8924_v32, 0.0  ;;  %v10945_v15 = vmax.f32 %v9991_v39, 0.0 }
 0x566   : > { %v11197_v49 = vmax.f32 %v11196_v7, %v10942_v12  ;;  %v10943_v23 = vmax.f32 %v9983_v47, 0.0  ;;  %v8919_v21 = vadd.f32 %v17527_v35, %v8918_v33  ;;  %v9542_v3 = vmax.f32 %v8916_v19, 0.0 }
 0x567   : > { %v9545_v31 = vmax.f32 %v8927_v26, 0.0  ;;  %14005 = vmatmul.mubr.msk.bf16.gmra.mrb[112].mxu1 %vm4240_vm2, %v17413_v30 }
 0x568   : > { %v11198_v25 = vmax.f32 %v11197_v49, %v10943_v23  ;;  %v9543_v6 = vmax.f32 %v8919_v21, 0.0  ;;  %14008 = vmatprep.mubr.msk.bf16.mxu1 %vm4240_vm2, %v17433_v36  ;;  %v14062_v37 = vpop.f32.mrb[152].mxu0 }
 0x569   : > { %v9733_v62 = vpack.c.bf16 %v9545_v31, %v9544_v51  ;;  %v9995_v17 = vpop.f32.mrb[153].mxu0  ;;  %v10004_v18 = vadd.f32 %v14062_v37, %v17468_v24 }
 0x56a   : > { %v11199_v38 = vmax.f32 %v11198_v25, %v10944_v43  ;;  %v9732_v63 = vpack.c.bf16 %v9543_v6, %v9542_v3  ;;  %v9996_v58 = vadd.f32 %v17468_v24, %v9995_v17  ;;  %v13902_v61 = vpop.f32.mrb[8].mxu1  ;;  %v14063_v60 = vpop.f32.mrb[154].mxu0 }
 0x56b   : > { %v8940_v30 = vadd.f32 %v17527_v35, %v13902_v61  ;;  %v8931_v20 = vpop.f32.mrb[9].mxu1  ;;  %v9998_v8 = vpop.f32.mrb[155].mxu0  ;;  %v10007_v55 = vadd.f32 %v14063_v60, %v17468_v24  ;;  %v10948_v28 = vmax.f32 %v10004_v18, 0.0 }
 0x56c   : > { %v10946_v4 = vmax.f32 %v9996_v58, 0.0  ;;  %v11200_v41 = vmax.f32 %v11199_v38, %v10945_v15  ;;  %v8932_v36 = vadd.f32 %v17527_v35, %v8931_v20  ;;  %v9999_v56 = vadd.f32 %v17468_v24, %v9998_v8  ;;  %v13903_v50 = vpop.f32.mrb[10].mxu1  ;;  %14168 = vmatprep.mubr.bf16.mxu0 %v9732_v63 }
 0x56d   : > { %v8943_v59 = vadd.f32 %v17527_v35, %v13903_v50  ;;  %v8934_v0 = vpop.f32.mrb[11].mxu1  ;;  %14169 = vmatmul.mubr.bf16.gmra.mrb[4].mxu0 %v9733_v62  ;;  %v9548_v57 = vmax.f32 %v8940_v30, 0.0  ;;  %v10949_v2 = vmax.f32 %v10007_v55, 0.0 }
 0x56e   : > { %v11201_v42 = vmax.f32 %v11200_v41, %v10946_v4  ;;  %v10947_v13 = vmax.f32 %v9999_v56, 0.0  ;;  %v8935_v22 = vadd.f32 %v17527_v35, %v8934_v0  ;;  %v9546_v10 = vmax.f32 %v8932_v36, 0.0 }
 0x56f   : > { %v9549_v44 = vmax.f32 %v8943_v59, 0.0  ;;  %14009 = vmatmul.mubr.msk.bf16.gmra.mrb[116].mxu1 %vm4240_vm2, %v17429_v46 }
 0x570   : > { %v11202_v9 = vmax.f32 %v11201_v42, %v10947_v13  ;;  %v9547_v27 = vmax.f32 %v8935_v22, 0.0  ;;  %14012 = vmatprep.mubr.msk.bf16.mxu1 %vm4240_vm2, %v17449_v1  ;;  %v14066_v34 = vpop.f32.mrb[156].mxu0 }
 0x571   : > { %v9735_v53 = vpack.c.bf16 %v9549_v44, %v9548_v57  ;;  %v10011_v40 = vpop.f32.mrb[157].mxu0  ;;  %v10020_v11 = vadd.f32 %v14066_v34, %v17468_v24 }
 0x572   : > { %v11203_v16 = vmax.f32 %v11202_v9, %v10948_v28  ;;  %v9734_v29 = vpack.c.bf16 %v9547_v27, %v9546_v10  ;;  %v10012_v52 = vadd.f32 %v17468_v24, %v10011_v40  ;;  %v13906_v32 = vpop.f32.mrb[12].mxu1  ;;  %v14067_v48 = vpop.f32.mrb[158].mxu0 }
 0x573   : > { %v8956_v46 = vadd.f32 %v17527_v35, %v13906_v32  ;;  %v8947_v12 = vpop.f32.mrb[13].mxu1  ;;  %v10014_v7 = vpop.f32.mrb[159].mxu0  ;;  %v10023_v23 = vadd.f32 %v14067_v48, %v17468_v24  ;;  %v10952_v3 = vmax.f32 %v10020_v11, 0.0 }
 0x574   : > { %v10950_v19 = vmax.f32 %v10012_v52, 0.0  ;;  %v11204_v47 = vmax.f32 %v11203_v16, %v10949_v2  ;;  %v8948_v1 = vadd.f32 %v17527_v35, %v8947_v12  ;;  %v10015_v14 = vadd.f32 %v17468_v24, %v10014_v7  ;;  %v13907_v26 = vpop.f32.mrb[14].mxu1  ;;  %14172 = vmatprep.mubr.bf16.mxu0 %v9734_v29 }
 0x575   : > { %v8959_v33 = vadd.f32 %v17527_v35, %v13907_v26  ;;  %v8950_v49 = vpop.f32.mrb[15].mxu1  ;;  %14173 = vmatmul.mubr.bf16.gmra.mrb[8].mxu0 %v9735_v53  ;;  %v9552_v31 = vmax.f32 %v8956_v46, 0.0  ;;  %v10953_v38 = vmax.f32 %v10023_v23, 0.0 }
 0x576   : > { %v11205_v39 = vmax.f32 %v11204_v47, %v10950_v19  ;;  %v10951_v21 = vmax.f32 %v10015_v14, 0.0  ;;  %v8951_v51 = vadd.f32 %v17527_v35, %v8950_v49  ;;  %v9550_v25 = vmax.f32 %v8948_v1, 0.0 }
 0x577   : > { %v9553_v43 = vmax.f32 %v8959_v33, 0.0  ;;  %14013 = vmatmul.mubr.msk.bf16.gmra.mrb[120].mxu1 %vm4240_vm2, %v17445_v45 }
 0x578   : > { %v11206_v6 = vmax.f32 %v11205_v39, %v10951_v21  ;;  %v9551_v37 = vmax.f32 %v8951_v51, 0.0  ;;  %14016 = vmatprep.mubr.msk.bf16.mxu1 %vm4240_vm2, %v17470_v54  ;;  %v14070_v62 = vpop.f32.mrb[160].mxu0 }
 0x579   : > { %v9737_v17 = vpack.c.bf16 %v9553_v43, %v9552_v31  ;;  %v10027_v15 = vpop.f32.mrb[161].mxu0  ;;  %v10036_v30 = vadd.f32 %v14070_v62, %v17468_v24 }
 0x57a   : > { %v11207_v63 = vmax.f32 %v11206_v6, %v10952_v3  ;;  %v9736_v58 = vpack.c.bf16 %v9551_v37, %v9550_v25  ;;  %v10028_v61 = vadd.f32 %v17468_v24, %v10027_v15  ;;  %v13910_v60 = vpop.f32.mrb[16].mxu1  ;;  %v14071_v18 = vpop.f32.mrb[162].mxu0 }
 0x57b   : > { %v8972_v45 = vadd.f32 %v17527_v35, %v13910_v60  ;;  %v8963_v20 = vpop.f32.mrb[17].mxu1  ;;  %v10030_v8 = vpop.f32.mrb[163].mxu0  ;;  %v10039_v56 = vadd.f32 %v14071_v18, %v17468_v24  ;;  %v10956_v22 = vmax.f32 %v10036_v30, 0.0 }
 0x57c   : > { %v11208_v4 = vmax.f32 %v11207_v63, %v10953_v38  ;;  %v8964_v41 = vadd.f32 %v17527_v35, %v8963_v20  ;;  %v10031_v54 = vadd.f32 %v17468_v24, %v10030_v8  ;;  %v13911_v36 = vpop.f32.mrb[18].mxu1  ;;  %14176 = vmatprep.mubr.bf16.mxu0 %v9736_v58  ;;  %v10954_v42 = vmax.f32 %v10028_v61, 0.0 }
 0x57d   : > { %v8975_v50 = vadd.f32 %v17527_v35, %v13911_v36  ;;  %v8966_v59 = vpop.f32.mrb[19].mxu1  ;;  %14177 = vmatmul.mubr.bf16.gmra.mrb[12].mxu0 %v9737_v17  ;;  %v9556_v57 = vmax.f32 %v8972_v45, 0.0  ;;  %v10957_v53 = vmax.f32 %v10039_v56, 0.0 }
 0x57e   : > { %v11209_v0 = vrot.slane %v11208_v4, 4  ;;  %v10955_v55 = vmax.f32 %v10031_v54, 0.0  ;;  %v8967_v13 = vadd.f32 %v17527_v35, %v8966_v59  ;;  %v9554_v10 = vmax.f32 %v8964_v41, 0.0 }
 0x57f   : > { %v9557_v44 = vmax.f32 %v8975_v50, 0.0  ;;  %14017 = vmatmul.mubr.msk.bf16.gmra.mrb[124].mxu1 %vm4240_vm2, %v17461_v5 }
 0x580   : > { %v11210_v28 = vmax.f32 %v11208_v4, %v11209_v0  ;;  %v11215_v9 = vmax.f32 %v10954_v42, %v10955_v55  ;;  %v9555_v27 = vmax.f32 %v8967_v13, 0.0  ;;  %v14074_v34 = vpop.f32.mrb[164].mxu0 }
 0x581   : > { %v9739_v40 = vpack.c.bf16 %v9557_v44, %v9556_v57  ;;  %v10043_v2 = vpop.f32.mrb[165].mxu0  ;;  %v10052_v26 = vadd.f32 %v14074_v34, %v17468_v24 }
 0x582   : > { %v11211_v16 = vrot.slane %v11210_v28, 2  ;;  %v11216_v29 = vmax.f32 %v11215_v9, %v10956_v22  ;;  %v9738_v52 = vpack.c.bf16 %v9555_v27, %v9554_v10  ;;  %v10044_v32 = vadd.f32 %v17468_v24, %v10043_v2  ;;  %v13914_v48 = vpop.f32.mrb[20].mxu1  ;;  %v14075_v11 = vpop.f32.mrb[166].mxu0 }
 0x583   : > { %v8988_v46 = vadd.f32 %v17527_v35, %v13914_v48  ;;  %v8979_v12 = vpop.f32.mrb[21].mxu1  ;;  %v10046_v7 = vpop.f32.mrb[167].mxu0  ;;  %v10055_v43 = vadd.f32 %v14075_v11, %v17468_v24  ;;  %v10960_v15 = vmax.f32 %v10052_v26, 0.0 }
 0x584   : > { %v11212_v5 = vmax.f32 %v11210_v28, %v11211_v16  ;;  %v10958_v19 = vmax.f32 %v10044_v32, 0.0  ;;  %v11217_v47 = vmax.f32 %v11216_v29, %v10957_v53  ;;  %v8980_v1 = vadd.f32 %v17527_v35, %v8979_v12  ;;  %v13915_v14 = vpop.f32.mrb[22].mxu1  ;;  %14180 = vmatprep.mubr.bf16.mxu0 %v9738_v52 }
 0x585   : > { %v10047_v33 = vadd.f32 %v17468_v24, %v10046_v7  ;;  %v8991_v49 = vadd.f32 %v17527_v35, %v13915_v14  ;;  %v8982_v39 = vpop.f32.mrb[23].mxu1  ;;  %14181 = vmatmul.mubr.bf16.gmra.mrb[16].mxu0 %v9739_v40  ;;  %v9560_v31 = vmax.f32 %v8988_v46, 0.0  ;;  %v10961_v45 = vmax.f32 %v10055_v43, 0.0 }
 0x586   : > { %v11213_v23 = vrot.slane %v11212_v5, 1  ;;  %v11218_v21 = vmax.f32 %v11217_v47, %v10958_v19  ;;  %v8983_v51 = vadd.f32 %v17527_v35, %v8982_v39  ;;  %v9558_v37 = vmax.f32 %v8980_v1, 0.0 }
 0x587   : > { %v10959_v3 = vmax.f32 %v10047_v33, 0.0  ;;  %v9561_v25 = vmax.f32 %v8991_v49, 0.0 }
 0x588   : > { %v17593_v6 = vmax.f32 %v11212_v5, %v11213_v23  ;;  %v9559_v62 = vmax.f32 %v8983_v51, 0.0  ;;  %v14078_v17 = vpop.f32.mrb[168].mxu0 }
 0x589   : > { %v11219_v38 = vmax.f32 %v11218_v21, %v10959_v3  ;;  %v9741_v63 = vpack.c.bf16 %v9561_v25, %v9560_v31  ;;  %v10059_v58 = vpop.f32.mrb[169].mxu0  ;;  %v10068_v59 = vadd.f32 %v14078_v17, %v17468_v24 }
 0x58a   : > { %v9740_v61 = vpack.c.bf16 %v9559_v62, %v9558_v37  ;;  %v10060_v60 = vadd.f32 %v17468_v24, %v10059_v58  ;;  %v13918_v18 = vpop.f32.mrb[24].mxu1  ;;  %v14079_v30 = vpop.f32.mrb[170].mxu0 }
 0x58b   : > { %v11220_v20 = vmax.f32 %v11219_v38, %v10960_v15  ;;  %v9004_v8 = vadd.f32 %v17527_v35, %v13918_v18  ;;  %v8995_v4 = vpop.f32.mrb[25].mxu1  ;;  %v10062_v41 = vpop.f32.mrb[171].mxu0  ;;  %v10071_v28 = vadd.f32 %v14079_v30, %v17468_v24  ;;  %v10964_v53 = vmax.f32 %v10068_v59, 0.0 }
 0x58c   : > { %v10962_v54 = vmax.f32 %v10060_v60, 0.0  ;;  %v8996_v36 = vadd.f32 %v17527_v35, %v8995_v4  ;;  %v10063_v56 = vadd.f32 %v17468_v24, %v10062_v41  ;;  %v13919_v50 = vpop.f32.mrb[26].mxu1  ;;  %14184 = vmatprep.mubr.bf16.mxu0 %v9740_v61 }
 0x58d   : > { %v11221_v0 = vmax.f32 %v11220_v20, %v10961_v45  ;;  %v9007_v42 = vadd.f32 %v17527_v35, %v13919_v50  ;;  %v8998_v55 = vpop.f32.mrb[27].mxu1  ;;  %14185 = vmatmul.mubr.bf16.gmra.mrb[20].mxu0 %v9741_v63  ;;  %v9564_v44 = vmax.f32 %v9004_v8, 0.0  ;;  %v10965_v11 = vmax.f32 %v10071_v28, 0.0 }
 0x58e   : > { %v10963_v13 = vmax.f32 %v10063_v56, 0.0  ;;  %v8999_v22 = vadd.f32 %v17527_v35, %v8998_v55  ;;  %v9562_v9 = vmax.f32 %v8996_v36, 0.0 }
 0x58f   : > { %v11222_v57 = vmax.f32 %v11221_v0, %v10962_v54  ;;  %v9565_v10 = vmax.f32 %v9007_v42, 0.0 }
 0x590   : > { %v9563_v27 = vmax.f32 %v8999_v22, 0.0  ;;  %v14082_v34 = vpop.f32.mrb[172].mxu0 }
 0x591   : > { %v11223_v40 = vmax.f32 %v11222_v57, %v10963_v13  ;;  %v9743_v2 = vpack.c.bf16 %v9565_v10, %v9564_v44  ;;  %v10075_v16 = vpop.f32.mrb[173].mxu0  ;;  %v10084_v26 = vadd.f32 %v14082_v34, %v17468_v24 }
 0x592   : > { %v9742_v29 = vpack.c.bf16 %v9563_v27, %v9562_v9  ;;  %v10076_v52 = vadd.f32 %v17468_v24, %v10075_v16  ;;  %v13922_v32 = vpop.f32.mrb[28].mxu1  ;;  %v14083_v48 = vpop.f32.mrb[174].mxu0 }
 0x593   : > { %v11224_v46 = vmax.f32 %v11223_v40, %v10964_v53  ;;  %v9020_v12 = vadd.f32 %v17527_v35, %v13922_v32  ;;  %v9011_v7 = vpop.f32.mrb[29].mxu1  ;;  %v10078_v5 = vpop.f32.mrb[175].mxu0  ;;  %v10087_v43 = vadd.f32 %v14083_v48, %v17468_v24  ;;  %v10968_v17 = vmax.f32 %v10084_v26, 0.0 }
 0x594   : > { %v10966_v19 = vmax.f32 %v10076_v52, 0.0  ;;  %v9012_v47 = vadd.f32 %v17527_v35, %v9011_v7  ;;  %v10079_v1 = vadd.f32 %v17468_v24, %v10078_v5  ;;  %v13923_v14 = vpop.f32.mrb[30].mxu1  ;;  %14188 = vmatprep.mubr.bf16.mxu0 %v9742_v29 }
 0x595   : > { %v11225_v33 = vmax.f32 %v11224_v46, %v10965_v11  ;;  %v9023_v49 = vadd.f32 %v17527_v35, %v13923_v14  ;;  %v9014_v39 = vpop.f32.mrb[31].mxu1  ;;  %14189 = vmatmul.mubr.bf16.gmra.mrb[24].mxu0 %v9743_v2  ;;  %v9568_v31 = vmax.f32 %v9020_v12, 0.0  ;;  %v10969_v30 = vmax.f32 %v10087_v43, 0.0 }
 0x596   : > { %v10967_v23 = vmax.f32 %v10079_v1, 0.0  ;;  %v9015_v21 = vadd.f32 %v17527_v35, %v9014_v39  ;;  %v9566_v25 = vmax.f32 %v9012_v47, 0.0 }
 0x597   : > { %v11226_v51 = vmax.f32 %v11225_v33, %v10966_v19  ;;  %v9569_v3 = vmax.f32 %v9023_v49, 0.0 }
 0x598   : > { %v9567_v37 = vmax.f32 %v9015_v21, 0.0  ;;  %v14086_v62 = vpop.f32.mrb[176].mxu0 }
 0x599   : > { %v11227_v15 = vmax.f32 %v11226_v51, %v10967_v23  ;;  %v9745_v38 = vpack.c.bf16 %v9569_v3, %v9568_v31  ;;  %v10091_v63 = vpop.f32.mrb[177].mxu0  ;;  %v10100_v50 = vadd.f32 %v14086_v62, %v17468_v24 }
 0x59a   : > { %v9744_v58 = vpack.c.bf16 %v9567_v37, %v9566_v25  ;;  %v10092_v61 = vadd.f32 %v17468_v24, %v10091_v63  ;;  %v13926_v60 = vpop.f32.mrb[32].mxu1  ;;  %v14087_v18 = vpop.f32.mrb[178].mxu0 }
 0x59b   : > { %v11228_v45 = vmax.f32 %v11227_v15, %v10968_v17  ;;  %v9036_v20 = vadd.f32 %v17527_v35, %v13926_v60  ;;  %v9027_v8 = vpop.f32.mrb[33].mxu1  ;;  %v10094_v4 = vpop.f32.mrb[179].mxu0  ;;  %v10103_v44 = vadd.f32 %v14087_v18, %v17468_v24  ;;  %v10972_v34 = vmax.f32 %v10100_v50, 0.0 }
 0x59c   : > { %v10970_v41 = vmax.f32 %v10092_v61, 0.0  ;;  %v9028_v54 = vadd.f32 %v17527_v35, %v9027_v8  ;;  %v10095_v36 = vadd.f32 %v17468_v24, %v10094_v4  ;;  %v13927_v56 = vpop.f32.mrb[34].mxu1  ;;  %14192 = vmatprep.mubr.bf16.mxu0 %v9744_v58 }
 0x59d   : > { %v11229_v59 = vmax.f32 %v11228_v45, %v10969_v30  ;;  %v9039_v0 = vadd.f32 %v17527_v35, %v13927_v56  ;;  %v9030_v42 = vpop.f32.mrb[35].mxu1  ;;  %14193 = vmatmul.mubr.bf16.gmra.mrb[28].mxu0 %v9745_v38  ;;  %v9572_v57 = vmax.f32 %v9036_v20, 0.0  ;;  %v10973_v48 = vmax.f32 %v10103_v44, 0.0 }
 0x59e   : > { %v10971_v55 = vmax.f32 %v10095_v36, 0.0  ;;  %v9031_v13 = vadd.f32 %v17527_v35, %v9030_v42  ;;  %v9570_v10 = vmax.f32 %v9028_v54, 0.0 }
 0x59f   : > { %v11230_v22 = vmax.f32 %v11229_v59, %v10970_v41  ;;  %v9573_v28 = vmax.f32 %v9039_v0, 0.0 }
 0x5a0   : > { %v9571_v9 = vmax.f32 %v9031_v13, 0.0  ;;  %v14090_v27 = vpop.f32.mrb[180].mxu0 }
 0x5a1   : > { %v11231_v53 = vmax.f32 %v11230_v22, %v10971_v55  ;;  %v9747_v40 = vpack.c.bf16 %v9573_v28, %v9572_v57  ;;  %v10107_v2 = vpop.f32.mrb[181].mxu0  ;;  %v10116_v14 = vadd.f32 %v14090_v27, %v17468_v24 }
 0x5a2   : > { %v9746_v16 = vpack.c.bf16 %v9571_v9, %v9570_v10  ;;  %v10108_v29 = vadd.f32 %v17468_v24, %v10107_v2  ;;  %v13930_v52 = vpop.f32.mrb[36].mxu1  ;;  %v14091_v32 = vpop.f32.mrb[182].mxu0 }
 0x5a3   : > { %v11232_v11 = vmax.f32 %v11231_v53, %v10972_v34  ;;  %v9052_v46 = vadd.f32 %v17527_v35, %v13930_v52  ;;  %v9043_v12 = vpop.f32.mrb[37].mxu1  ;;  %v10110_v7 = vpop.f32.mrb[183].mxu0  ;;  %v10119_v31 = vadd.f32 %v14091_v32, %v17468_v24  ;;  %v10976_v62 = vmax.f32 %v10116_v14, 0.0 }
 0x5a4   : > { %v10974_v5 = vmax.f32 %v10108_v29, 0.0  ;;  %v9044_v19 = vadd.f32 %v17527_v35, %v9043_v12  ;;  %v10111_v47 = vadd.f32 %v17468_v24, %v10110_v7  ;;  %v13931_v1 = vpop.f32.mrb[38].mxu1  ;;  %14196 = vmatprep.mubr.bf16.mxu0 %v9746_v16 }
 0x5a5   : > { %v11233_v26 = vmax.f32 %v11232_v11, %v10973_v48  ;;  %v9055_v33 = vadd.f32 %v17527_v35, %v13931_v1  ;;  %v9046_v49 = vpop.f32.mrb[39].mxu1  ;;  %14197 = vmatmul.mubr.bf16.gmra.mrb[32].mxu0 %v9747_v40  ;;  %v9576_v51 = vmax.f32 %v9052_v46, 0.0  ;;  %v10977_v18 = vmax.f32 %v10119_v31, 0.0 }
 0x5a6   : > { %v10975_v39 = vmax.f32 %v10111_v47, 0.0  ;;  %v9047_v23 = vadd.f32 %v17527_v35, %v9046_v49  ;;  %v9574_v3 = vmax.f32 %v9044_v19, 0.0  ;;  %v17641_v19 = vld [vmem:[%s18039_s10] ss:$0 sm:$0xff] }
 0x5a7   : > { %v11234_v21 = vmax.f32 %v11233_v26, %v10974_v5  ;;  %v9577_v43 = vmax.f32 %v9055_v33, 0.0 }
 0x5a8   : > { %v9575_v25 = vmax.f32 %v9047_v23, 0.0  ;;  %v14094_v37 = vpop.f32.mrb[184].mxu0 }
 0x5a9   : > { %v11235_v17 = vmax.f32 %v11234_v21, %v10975_v39  ;;  %v9749_v15 = vpack.c.bf16 %v9577_v43, %v9576_v51  ;;  %v10123_v38 = vpop.f32.mrb[185].mxu0  ;;  %v10132_v56 = vadd.f32 %v14094_v37, %v17468_v24 }
 0x5aa   : > { %v9748_v63 = vpack.c.bf16 %v9575_v25, %v9574_v3  ;;  %v10124_v58 = vadd.f32 %v17468_v24, %v10123_v38  ;;  %v13934_v61 = vpop.f32.mrb[40].mxu1  ;;  %v14095_v60 = vpop.f32.mrb[186].mxu0 }
 0x5ab   : > { %v11236_v30 = vmax.f32 %v11235_v17, %v10976_v62  ;;  %v9068_v45 = vadd.f32 %v17527_v35, %v13934_v61  ;;  %v9059_v20 = vpop.f32.mrb[41].mxu1  ;;  %v10126_v8 = vpop.f32.mrb[187].mxu0  ;;  %v10135_v57 = vadd.f32 %v14095_v60, %v17468_v24  ;;  %v10980_v27 = vmax.f32 %v10132_v56, 0.0 }
 0x5ac   : > { %v10978_v4 = vmax.f32 %v10124_v58, 0.0  ;;  %v9060_v41 = vadd.f32 %v17527_v35, %v9059_v20  ;;  %v10127_v54 = vadd.f32 %v17468_v24, %v10126_v8  ;;  %v13935_v36 = vpop.f32.mrb[42].mxu1  ;;  %14200 = vmatprep.mubr.bf16.mxu0 %v9748_v63 }
 0x5ad   : > { %v11237_v50 = vmax.f32 %v11236_v30, %v10977_v18  ;;  %v9071_v59 = vadd.f32 %v17527_v35, %v13935_v36  ;;  %v9062_v0 = vpop.f32.mrb[43].mxu1  ;;  %14201 = vmatmul.mubr.bf16.gmra.mrb[36].mxu0 %v9749_v15  ;;  %v9580_v22 = vmax.f32 %v9068_v45, 0.0  ;;  %v10981_v32 = vmax.f32 %v10135_v57, 0.0 }
 0x5ae   : > { %v10979_v42 = vmax.f32 %v10127_v54, 0.0  ;;  %v9063_v55 = vadd.f32 %v17527_v35, %v9062_v0  ;;  %v9578_v28 = vmax.f32 %v9060_v41, 0.0 }
 0x5af   : > { %v11238_v13 = vmax.f32 %v11237_v50, %v10978_v4  ;;  %v9581_v44 = vmax.f32 %v9071_v59, 0.0 }
 0x5b0   : > { %v9579_v10 = vmax.f32 %v9063_v55, 0.0  ;;  %v14098_v9 = vpop.f32.mrb[188].mxu0 }
 0x5b1   : > { %v11239_v34 = vmax.f32 %v11238_v13, %v10979_v42  ;;  %v9751_v53 = vpack.c.bf16 %v9581_v44, %v9580_v22  ;;  %v10139_v40 = vpop.f32.mrb[189].mxu0 }
 0x5b2   : > { %v9750_v2 = vpack.c.bf16 %v9579_v10, %v9578_v28  ;;  %v10140_v16 = vadd.f32 %v17468_v24, %v10139_v40  ;;  %v13938_v29 = vpop.f32.mrb[44].mxu1  ;;  %v14099_v52 = vpop.f32.mrb[190].mxu0  ;;  %v10148_v24 = vadd.f32 %v17641_v19, %v14098_v9 }
 0x5b3   : > { %v11240_v48 = vmax.f32 %v11239_v34, %v10980_v27  ;;  %v9084_v11 = vadd.f32 %v17527_v35, %v13938_v29  ;;  %v9075_v46 = vpop.f32.mrb[45].mxu1  ;;  %v10142_v12 = vpop.f32.mrb[191].mxu0  ;;  %v10151_v51 = vadd.f32 %v17641_v19, %v14099_v52 }
 0x5b4   : > { %v10982_v7 = vmax.f32 %v10140_v16, 0.0  ;;  %v9076_v5 = vadd.f32 %v17527_v35, %v9075_v46  ;;  %v10143_v47 = vadd.f32 %v17641_v19, %v10142_v12  ;;  %v13939_v1 = vpop.f32.mrb[46].mxu1  ;;  %14204 = vmatprep.mubr.bf16.mxu0 %v9750_v2  ;;  %v10984_v37 = vmax.f32 %v10148_v24, 0.0 }
 0x5b5   : > { %v11241_v14 = vmax.f32 %v11240_v48, %v10981_v32  ;;  %v9087_v26 = vadd.f32 %v17527_v35, %v13939_v1  ;;  %v9078_v33 = vpop.f32.mrb[47].mxu1  ;;  %14205 = vmatmul.mubr.bf16.gmra.mrb[40].mxu0 %v9751_v53  ;;  %v9584_v21 = vmax.f32 %v9084_v11, 0.0  ;;  %v10985_v60 = vmax.f32 %v10151_v51, 0.0 }
 0x5b6   : > { %v10983_v49 = vmax.f32 %v10143_v47, 0.0  ;;  %v9079_v39 = vadd.f32 %v17527_v35, %v9078_v33  ;;  %v9582_v43 = vmax.f32 %v9076_v5, 0.0 }
 0x5b7   : > { %v11242_v23 = vmax.f32 %v11241_v14, %v10982_v7  ;;  %v9585_v31 = vmax.f32 %v9087_v26, 0.0 }
 0x5b8   : > { %v9583_v3 = vmax.f32 %v9079_v39, 0.0  ;;  %v14102_v25 = vpop.f32.mrb[192].mxu0 }
 0x5b9   : > { %v11243_v62 = vmax.f32 %v11242_v23, %v10983_v49  ;;  %v9753_v17 = vpack.c.bf16 %v9585_v31, %v9584_v21  ;;  %v10155_v15 = vpop.f32.mrb[193].mxu0  ;;  %v10164_v8 = vadd.f32 %v17641_v19, %v14102_v25 }
 0x5ba   : > { %v9752_v38 = vpack.c.bf16 %v9583_v3, %v9582_v43  ;;  %v10156_v63 = vadd.f32 %v17641_v19, %v10155_v15  ;;  %v13942_v58 = vpop.f32.mrb[48].mxu1  ;;  %v14103_v61 = vpop.f32.mrb[194].mxu0 }
 0x5bb   : > { %v11244_v18 = vmax.f32 %v11243_v62, %v10984_v37  ;;  %v9100_v30 = vadd.f32 %v17527_v35, %v13942_v58  ;;  %v9091_v45 = vpop.f32.mrb[49].mxu1  ;;  %v10158_v20 = vpop.f32.mrb[195].mxu0  ;;  %v10167_v0 = vadd.f32 %v17641_v19, %v14103_v61  ;;  %v10988_v44 = vmax.f32 %v10164_v8, 0.0 }
 0x5bc   : > { %v9092_v4 = vadd.f32 %v17527_v35, %v9091_v45  ;;  %v10159_v41 = vadd.f32 %v17641_v19, %v10158_v20  ;;  %v13943_v54 = vpop.f32.mrb[50].mxu1  ;;  %14208 = vmatprep.mubr.bf16.mxu0 %v9752_v38  ;;  %v10986_v59 = vmax.f32 %v10156_v63, 0.0 }
 0x5bd   : > { %v11245_v36 = vmax.f32 %v11244_v18, %v10985_v60  ;;  %v9103_v56 = vadd.f32 %v17527_v35, %v13943_v54  ;;  %v9094_v50 = vpop.f32.mrb[51].mxu1  ;;  %14209 = vmatmul.mubr.bf16.gmra.mrb[44].mxu0 %v9753_v17  ;;  %v9588_v22 = vmax.f32 %v9100_v30, 0.0  ;;  %v10989_v2 = vmax.f32 %v10167_v0, 0.0 }
 0x5be   : > { %v10987_v42 = vmax.f32 %v10159_v41, 0.0  ;;  %v9095_v55 = vadd.f32 %v17527_v35, %v9094_v50  ;;  %v9586_v28 = vmax.f32 %v9092_v4, 0.0 }
 0x5bf   : > { %v11246_v13 = vrot.slane %v11245_v36, 4  ;;  %v9589_v57 = vmax.f32 %v9103_v56, 0.0 }
 0x5c0   : > { %v11252_v10 = vmax.f32 %v10986_v59, %v10987_v42  ;;  %v9587_v9 = vmax.f32 %v9095_v55, 0.0  ;;  %v14106_v27 = vpop.f32.mrb[196].mxu0 }
 0x5c1   : > { %v11247_v34 = vmax.f32 %v11245_v36, %v11246_v13  ;;  %v9755_v53 = vpack.c.bf16 %v9589_v57, %v9588_v22  ;;  %v10171_v40 = vpop.f32.mrb[197].mxu0  ;;  %v10180_v46 = vadd.f32 %v17641_v19, %v14106_v27 }
 0x5c2   : > { %v11253_v16 = vmax.f32 %v11252_v10, %v10988_v44  ;;  %v9754_v29 = vpack.c.bf16 %v9587_v9, %v9586_v28  ;;  %v10172_v52 = vadd.f32 %v17641_v19, %v10171_v40  ;;  %v13946_v32 = vpop.f32.mrb[52].mxu1  ;;  %v14107_v48 = vpop.f32.mrb[198].mxu0 }
 0x5c3   : > { %v11248_v11 = vrot.slane %v11247_v34, 2  ;;  %v9116_v12 = vadd.f32 %v17527_v35, %v13946_v32  ;;  %v9107_v7 = vpop.f32.mrb[53].mxu1  ;;  %v10174_v5 = vpop.f32.mrb[199].mxu0  ;;  %v10183_v21 = vadd.f32 %v17641_v19, %v14107_v48  ;;  %v10992_v37 = vmax.f32 %v10180_v46, 0.0 }
 0x5c4   : > { %v10990_v47 = vmax.f32 %v10172_v52, 0.0  ;;  %v11254_v1 = vmax.f32 %v11253_v16, %v10989_v2  ;;  %v9108_v24 = vadd.f32 %v17527_v35, %v9107_v7  ;;  %v10175_v14 = vadd.f32 %v17641_v19, %v10174_v5  ;;  %v13947_v26 = vpop.f32.mrb[54].mxu1  ;;  %14212 = vmatprep.mubr.bf16.mxu0 %v9754_v29 }
 0x5c5   : > { %v11249_v33 = vmax.f32 %v11247_v34, %v11248_v11  ;;  %v9119_v49 = vadd.f32 %v17527_v35, %v13947_v26  ;;  %v9110_v39 = vpop.f32.mrb[55].mxu1  ;;  %14213 = vmatmul.mubr.bf16.gmra.mrb[48].mxu0 %v9755_v53  ;;  %v9592_v3 = vmax.f32 %v9116_v12, 0.0  ;;  %v10993_v60 = vmax.f32 %v10183_v21, 0.0 }
 0x5c6   : > { %v11255_v23 = vmax.f32 %v11254_v1, %v10990_v47  ;;  %v10991_v51 = vmax.f32 %v10175_v14, 0.0  ;;  %v9111_v31 = vadd.f32 %v17527_v35, %v9110_v39  ;;  %v9590_v62 = vmax.f32 %v9108_v24, 0.0 }
 0x5c7   : > { %v11250_v43 = vrot.slane %v11249_v33, 1  ;;  %v9593_v25 = vmax.f32 %v9119_v49, 0.0 }
 0x5c8   : > { %v11256_v17 = vmax.f32 %v11255_v23, %v10991_v51  ;;  %v9591_v15 = vmax.f32 %v9111_v31, 0.0  ;;  %v14110_v38 = vpop.f32.mrb[200].mxu0 }
 0x5c9   : > { %v17664_v63 = vmax.f32 %v11249_v33, %v11250_v43  ;;  %v9757_v58 = vpack.c.bf16 %v9593_v25, %v9592_v3  ;;  %v10187_v61 = vpop.f32.mrb[201].mxu0  ;;  %v10196_v4 = vadd.f32 %v17641_v19, %v14110_v38  ;;  %v17684_v43 = vld [vmem:[%s18037_s8] ss:$0 sm:$0xff] }
 0x5ca   : > { %v11257_v18 = vmax.f32 %v11256_v17, %v10992_v37  ;;  %v9756_v30 = vpack.c.bf16 %v9591_v15, %v9590_v62  ;;  %v10188_v45 = vadd.f32 %v17641_v19, %v10187_v61  ;;  %v13950_v20 = vpop.f32.mrb[56].mxu1  ;;  %v14111_v8 = vpop.f32.mrb[202].mxu0 }
 0x5cb   : > { %v9132_v41 = vadd.f32 %v17527_v35, %v13950_v20  ;;  %v9123_v54 = vpop.f32.mrb[57].mxu1  ;;  %v10190_v36 = vpop.f32.mrb[203].mxu0  ;;  %v10199_v57 = vadd.f32 %v17641_v19, %v14111_v8  ;;  %v10996_v27 = vmax.f32 %v10196_v4, 0.0 }
 0x5cc   : > { %v10994_v56 = vmax.f32 %v10188_v45, 0.0  ;;  %v11258_v50 = vmax.f32 %v11257_v18, %v10993_v60  ;;  %v9124_v59 = vadd.f32 %v17527_v35, %v9123_v54  ;;  %v10191_v0 = vadd.f32 %v17641_v19, %v10190_v36  ;;  %v13951_v42 = vpop.f32.mrb[58].mxu1  ;;  %14216 = vmatprep.mubr.bf16.mxu0 %v9756_v30 }
 0x5cd   : > { %v9135_v55 = vadd.f32 %v17527_v35, %v13951_v42  ;;  %v9126_v13 = vpop.f32.mrb[59].mxu1  ;;  %14217 = vmatmul.mubr.bf16.gmra.mrb[52].mxu0 %v9757_v58  ;;  %v9596_v10 = vmax.f32 %v9132_v41, 0.0  ;;  %v10997_v52 = vmax.f32 %v10199_v57, 0.0 }
 0x5ce   : > { %v11259_v22 = vmax.f32 %v11258_v50, %v10994_v56  ;;  %v10995_v44 = vmax.f32 %v10191_v0, 0.0  ;;  %v9127_v28 = vadd.f32 %v17527_v35, %v9126_v13  ;;  %v9594_v34 = vmax.f32 %v9124_v59, 0.0 }
 0x5cf   : > { %v9597_v9 = vmax.f32 %v9135_v55, 0.0 }
 0x5d0   : > { %v11260_v53 = vmax.f32 %v11259_v22, %v10995_v44  ;;  %v9595_v40 = vmax.f32 %v9127_v28, 0.0  ;;  %v14114_v2 = vpop.f32.mrb[204].mxu0 }
 0x5d1   : > { %v9759_v16 = vpack.c.bf16 %v9597_v9, %v9596_v10  ;;  %v10203_v29 = vpop.f32.mrb[205].mxu0  ;;  %v10212_v7 = vadd.f32 %v17641_v19, %v14114_v2 }
 0x5d2   : > { %v11261_v32 = vmax.f32 %v11260_v53, %v10996_v27  ;;  %v9758_v48 = vpack.c.bf16 %v9595_v40, %v9594_v34  ;;  %v10204_v11 = vadd.f32 %v17641_v19, %v10203_v29  ;;  %v13954_v46 = vpop.f32.mrb[60].mxu1  ;;  %v14115_v12 = vpop.f32.mrb[206].mxu0 }
 0x5d3   : > { %v9148_v5 = vadd.f32 %v17527_v35, %v13954_v46  ;;  %v9139_v47 = vpop.f32.mrb[61].mxu1  ;;  %v10206_v1 = vpop.f32.mrb[207].mxu0  ;;  %v10215_v51 = vadd.f32 %v17641_v19, %v14115_v12  ;;  %v11000_v62 = vmax.f32 %v10212_v7, 0.0 }
 0x5d4   : > { %v10998_v24 = vmax.f32 %v10204_v11, 0.0  ;;  %v11262_v14 = vmax.f32 %v11261_v32, %v10997_v52  ;;  %v9140_v26 = vadd.f32 %v17527_v35, %v9139_v47  ;;  %v10207_v33 = vadd.f32 %v17641_v19, %v10206_v1  ;;  %v13955_v49 = vpop.f32.mrb[62].mxu1  ;;  %14220 = vmatprep.mubr.bf16.mxu0 %v9758_v48 }
 0x5d5   : > { %v9151_v39 = vadd.f32 %v17527_v35, %v13955_v49  ;;  %v9142_v23 = vpop.f32.mrb[63].mxu1  ;;  %14221 = vmatmul.mubr.bf16.gmra.mrb[56].mxu0 %v9759_v16  ;;  %v9600_v25 = vmax.f32 %v9148_v5, 0.0  ;;  %v11001_v60 = vmax.f32 %v10215_v51, 0.0 }
 0x5d6   : > { %v11263_v21 = vmax.f32 %v11262_v14, %v10998_v24  ;;  %v10999_v31 = vmax.f32 %v10207_v33, 0.0  ;;  %v9143_v3 = vadd.f32 %v17684_v43, %v9142_v23  ;;  %v9598_v17 = vmax.f32 %v9140_v26, 0.0 }
 0x5d7   : > { %v9601_v37 = vmax.f32 %v9151_v39, 0.0 }
 0x5d8   : > { %v11264_v15 = vmax.f32 %v11263_v21, %v10999_v31  ;;  %v9599_v38 = vmax.f32 %v9143_v3, 0.0  ;;  %v14118_v35 = vpop.f32.mrb[208].mxu0 }
 0x5d9   : > { %v9761_v58 = vpack.c.bf16 %v9601_v37, %v9600_v25  ;;  %v10219_v61 = vpop.f32.mrb[209].mxu0  ;;  %v10228_v4 = vadd.f32 %v17641_v19, %v14118_v35 }
 0x5da   : > { %v11265_v18 = vmax.f32 %v11264_v15, %v11000_v62  ;;  %v9760_v30 = vpack.c.bf16 %v9599_v38, %v9598_v17  ;;  %v10220_v45 = vadd.f32 %v17641_v19, %v10219_v61  ;;  %v13958_v20 = vpop.f32.mrb[64].mxu1  ;;  %v14119_v8 = vpop.f32.mrb[210].mxu0 }
 0x5db   : > { %v9164_v41 = vadd.f32 %v17684_v43, %v13958_v20  ;;  %v9155_v54 = vpop.f32.mrb[65].mxu1  ;;  %v10222_v36 = vpop.f32.mrb[211].mxu0  ;;  %v10231_v57 = vadd.f32 %v17641_v19, %v14119_v8  ;;  %v11004_v27 = vmax.f32 %v10228_v4, 0.0 }
 0x5dc   : > { %v11002_v56 = vmax.f32 %v10220_v45, 0.0  ;;  %v11266_v50 = vmax.f32 %v11265_v18, %v11001_v60  ;;  %v9156_v59 = vadd.f32 %v17684_v43, %v9155_v54  ;;  %v10223_v0 = vadd.f32 %v17641_v19, %v10222_v36  ;;  %v13959_v42 = vpop.f32.mrb[66].mxu1  ;;  %14224 = vmatprep.mubr.bf16.mxu0 %v9760_v30 }
 0x5dd   : > { %v9167_v55 = vadd.f32 %v17684_v43, %v13959_v42  ;;  %v9158_v13 = vpop.f32.mrb[67].mxu1  ;;  %14225 = vmatmul.mubr.bf16.gmra.mrb[60].mxu0 %v9761_v58  ;;  %v9604_v10 = vmax.f32 %v9164_v41, 0.0  ;;  %v11005_v52 = vmax.f32 %v10231_v57, 0.0 }
 0x5de   : > { %v11267_v22 = vmax.f32 %v11266_v50, %v11002_v56  ;;  %v11003_v44 = vmax.f32 %v10223_v0, 0.0  ;;  %v9159_v28 = vadd.f32 %v17684_v43, %v9158_v13  ;;  %v9602_v34 = vmax.f32 %v9156_v59, 0.0 }
 0x5df   : > { %v9605_v9 = vmax.f32 %v9167_v55, 0.0 }
 0x5e0   : > { %v11268_v53 = vmax.f32 %v11267_v22, %v11003_v44  ;;  %v9603_v40 = vmax.f32 %v9159_v28, 0.0  ;;  %v14122_v2 = vpop.f32.mrb[212].mxu0 }
 0x5e1   : > { %v9763_v16 = vpack.c.bf16 %v9605_v9, %v9604_v10  ;;  %v10235_v29 = vpop.f32.mrb[213].mxu0  ;;  %v10244_v7 = vadd.f32 %v17641_v19, %v14122_v2 }
 0x5e2   : > { %v11269_v32 = vmax.f32 %v11268_v53, %v11004_v27  ;;  %v9762_v48 = vpack.c.bf16 %v9603_v40, %v9602_v34  ;;  %v10236_v11 = vadd.f32 %v17641_v19, %v10235_v29  ;;  %v13962_v46 = vpop.f32.mrb[68].mxu1  ;;  %v14123_v12 = vpop.f32.mrb[214].mxu0 }
 0x5e3   : > { %v9180_v5 = vadd.f32 %v17684_v43, %v13962_v46  ;;  %v9171_v47 = vpop.f32.mrb[69].mxu1  ;;  %v10238_v1 = vpop.f32.mrb[215].mxu0  ;;  %v10247_v51 = vadd.f32 %v17641_v19, %v14123_v12  ;;  %v11008_v62 = vmax.f32 %v10244_v7, 0.0 }
 0x5e4   : > { %v11006_v24 = vmax.f32 %v10236_v11, 0.0  ;;  %v11270_v14 = vmax.f32 %v11269_v32, %v11005_v52  ;;  %v9172_v26 = vadd.f32 %v17684_v43, %v9171_v47  ;;  %v10239_v33 = vadd.f32 %v17641_v19, %v10238_v1  ;;  %v13963_v49 = vpop.f32.mrb[70].mxu1  ;;  %14228 = vmatprep.mubr.bf16.mxu0 %v9762_v48 }
 0x5e5   : > { %v9183_v39 = vadd.f32 %v17684_v43, %v13963_v49  ;;  %v9174_v23 = vpop.f32.mrb[71].mxu1  ;;  %14229 = vmatmul.mubr.bf16.gmra.mrb[64].mxu0 %v9763_v16  ;;  %v9608_v25 = vmax.f32 %v9180_v5, 0.0  ;;  %v11009_v60 = vmax.f32 %v10247_v51, 0.0 }
 0x5e6   : > { %v11271_v21 = vmax.f32 %v11270_v14, %v11006_v24  ;;  %v11007_v31 = vmax.f32 %v10239_v33, 0.0  ;;  %v9175_v3 = vadd.f32 %v17684_v43, %v9174_v23  ;;  %v9606_v17 = vmax.f32 %v9172_v26, 0.0 }
 0x5e7   : > { %v9609_v37 = vmax.f32 %v9183_v39, 0.0 }
 0x5e8   : > { %v11272_v15 = vmax.f32 %v11271_v21, %v11007_v31  ;;  %v9607_v38 = vmax.f32 %v9175_v3, 0.0  ;;  %v14126_v35 = vpop.f32.mrb[216].mxu0 }
 0x5e9   : > { %v9765_v58 = vpack.c.bf16 %v9609_v37, %v9608_v25  ;;  %v10251_v61 = vpop.f32.mrb[217].mxu0  ;;  %v10260_v4 = vadd.f32 %v17641_v19, %v14126_v35 }
 0x5ea   : > { %v11273_v18 = vmax.f32 %v11272_v15, %v11008_v62  ;;  %v9764_v30 = vpack.c.bf16 %v9607_v38, %v9606_v17  ;;  %v10252_v45 = vadd.f32 %v17641_v19, %v10251_v61  ;;  %v13966_v20 = vpop.f32.mrb[72].mxu1  ;;  %v14127_v8 = vpop.f32.mrb[218].mxu0 }
 0x5eb   : > { %v9196_v41 = vadd.f32 %v17684_v43, %v13966_v20  ;;  %v9187_v54 = vpop.f32.mrb[73].mxu1  ;;  %v10254_v36 = vpop.f32.mrb[219].mxu0  ;;  %v10263_v57 = vadd.f32 %v17641_v19, %v14127_v8  ;;  %v11012_v27 = vmax.f32 %v10260_v4, 0.0 }
 0x5ec   : > { %v11010_v56 = vmax.f32 %v10252_v45, 0.0  ;;  %v11274_v50 = vmax.f32 %v11273_v18, %v11009_v60  ;;  %v9188_v59 = vadd.f32 %v17684_v43, %v9187_v54  ;;  %v10255_v0 = vadd.f32 %v17641_v19, %v10254_v36  ;;  %v13967_v42 = vpop.f32.mrb[74].mxu1  ;;  %14232 = vmatprep.mubr.bf16.mxu0 %v9764_v30 }
 0x5ed   : > { %v9199_v55 = vadd.f32 %v17684_v43, %v13967_v42  ;;  %v9190_v13 = vpop.f32.mrb[75].mxu1  ;;  %14233 = vmatmul.mubr.bf16.gmra.mrb[68].mxu0 %v9765_v58  ;;  %v9612_v10 = vmax.f32 %v9196_v41, 0.0  ;;  %v11013_v52 = vmax.f32 %v10263_v57, 0.0 }
 0x5ee   : > { %v11275_v22 = vmax.f32 %v11274_v50, %v11010_v56  ;;  %v11011_v44 = vmax.f32 %v10255_v0, 0.0  ;;  %v9191_v28 = vadd.f32 %v17684_v43, %v9190_v13  ;;  %v9610_v34 = vmax.f32 %v9188_v59, 0.0 }
 0x5ef   : > { %v9613_v9 = vmax.f32 %v9199_v55, 0.0 }
 0x5f0   : > { %v11276_v53 = vmax.f32 %v11275_v22, %v11011_v44  ;;  %v9611_v40 = vmax.f32 %v9191_v28, 0.0  ;;  %v14130_v2 = vpop.f32.mrb[220].mxu0 }
 0x5f1   : > { %v9767_v16 = vpack.c.bf16 %v9613_v9, %v9612_v10  ;;  %v10267_v29 = vpop.f32.mrb[221].mxu0  ;;  %v10276_v7 = vadd.f32 %v17641_v19, %v14130_v2 }
 0x5f2   : > { %v11277_v32 = vmax.f32 %v11276_v53, %v11012_v27  ;;  %v9766_v48 = vpack.c.bf16 %v9611_v40, %v9610_v34  ;;  %v10268_v11 = vadd.f32 %v17641_v19, %v10267_v29  ;;  %v13970_v46 = vpop.f32.mrb[76].mxu1  ;;  %v14131_v12 = vpop.f32.mrb[222].mxu0 }
 0x5f3   : > { %v9212_v5 = vadd.f32 %v17684_v43, %v13970_v46  ;;  %v9203_v47 = vpop.f32.mrb[77].mxu1  ;;  %v10270_v1 = vpop.f32.mrb[223].mxu0  ;;  %v10279_v51 = vadd.f32 %v17641_v19, %v14131_v12  ;;  %v11016_v62 = vmax.f32 %v10276_v7, 0.0 }
 0x5f4   : > { %v11014_v24 = vmax.f32 %v10268_v11, 0.0  ;;  %v11278_v14 = vmax.f32 %v11277_v32, %v11013_v52  ;;  %v9204_v26 = vadd.f32 %v17684_v43, %v9203_v47  ;;  %v10271_v33 = vadd.f32 %v17641_v19, %v10270_v1  ;;  %v13971_v49 = vpop.f32.mrb[78].mxu1  ;;  %14236 = vmatprep.mubr.bf16.mxu0 %v9766_v48 }
 0x5f5   : > { %v9215_v39 = vadd.f32 %v17684_v43, %v13971_v49  ;;  %v9206_v23 = vpop.f32.mrb[79].mxu1  ;;  %14237 = vmatmul.mubr.bf16.gmra.mrb[72].mxu0 %v9767_v16  ;;  %v9616_v25 = vmax.f32 %v9212_v5, 0.0  ;;  %v11017_v60 = vmax.f32 %v10279_v51, 0.0 }
 0x5f6   : > { %v11279_v21 = vmax.f32 %v11278_v14, %v11014_v24  ;;  %v11015_v31 = vmax.f32 %v10271_v33, 0.0  ;;  %v9207_v3 = vadd.f32 %v17684_v43, %v9206_v23  ;;  %v9614_v17 = vmax.f32 %v9204_v26, 0.0 }
 0x5f7   : > { %v9617_v37 = vmax.f32 %v9215_v39, 0.0 }
 0x5f8   : > { %v11280_v15 = vmax.f32 %v11279_v21, %v11015_v31  ;;  %v9615_v38 = vmax.f32 %v9207_v3, 0.0  ;;  %v14134_v35 = vpop.f32.mrb[224].mxu0 }
 0x5f9   : > { %v9769_v58 = vpack.c.bf16 %v9617_v37, %v9616_v25  ;;  %v10283_v61 = vpop.f32.mrb[225].mxu0  ;;  %v10292_v4 = vadd.f32 %v17641_v19, %v14134_v35 }
 0x5fa   : > { %v11281_v18 = vmax.f32 %v11280_v15, %v11016_v62  ;;  %v9768_v30 = vpack.c.bf16 %v9615_v38, %v9614_v17  ;;  %v10284_v45 = vadd.f32 %v17641_v19, %v10283_v61  ;;  %v13974_v20 = vpop.f32.mrb[80].mxu1  ;;  %v14135_v8 = vpop.f32.mrb[226].mxu0 }
 0x5fb   : > { %v9228_v41 = vadd.f32 %v17684_v43, %v13974_v20  ;;  %v9219_v54 = vpop.f32.mrb[81].mxu1  ;;  %v10286_v36 = vpop.f32.mrb[227].mxu0  ;;  %v10295_v42 = vadd.f32 %v17641_v19, %v14135_v8  ;;  %v11020_v10 = vmax.f32 %v10292_v4, 0.0 }
 0x5fc   : > { %v11282_v56 = vmax.f32 %v11281_v18, %v11017_v60  ;;  %v9220_v50 = vadd.f32 %v17684_v43, %v9219_v54  ;;  %v10287_v59 = vadd.f32 %v17641_v19, %v10286_v36  ;;  %v13975_v0 = vpop.f32.mrb[82].mxu1  ;;  %14240 = vmatprep.mubr.bf16.mxu0 %v9768_v30  ;;  %v11018_v57 = vmax.f32 %v10284_v45, 0.0 }
 0x5fd   : > { %v9231_v55 = vadd.f32 %v17684_v43, %v13975_v0  ;;  %v9222_v13 = vpop.f32.mrb[83].mxu1  ;;  %14241 = vmatmul.mubr.bf16.gmra.mrb[76].mxu0 %v9769_v58  ;;  %v9620_v9 = vmax.f32 %v9228_v41, 0.0  ;;  %v11021_v29 = vmax.f32 %v10295_v42, 0.0 }
 0x5fe   : > { %v11283_v22 = vrot.slane %v11282_v56, 4  ;;  %v11019_v44 = vmax.f32 %v10287_v59, 0.0  ;;  %v9223_v28 = vadd.f32 %v17684_v43, %v9222_v13  ;;  %v9618_v53 = vmax.f32 %v9220_v50, 0.0 }
 0x5ff   : > { %v9621_v27 = vmax.f32 %v9231_v55, 0.0 }
 0x600   : > { %v11284_v34 = vmax.f32 %v11282_v56, %v11283_v22  ;;  %v11289_v40 = vmax.f32 %v11018_v57, %v11019_v44  ;;  %v9619_v2 = vmax.f32 %v9223_v28, 0.0  ;;  %v14138_v16 = vpop.f32.mrb[228].mxu0 }
 0x601   : > { %v9771_v52 = vpack.c.bf16 %v9621_v27, %v9620_v9  ;;  %v10299_v32 = vpop.f32.mrb[229].mxu0  ;;  %v10308_v23 = vadd.f32 %v17641_v19, %v14138_v16 }
 0x602   : > { %v11285_v48 = vrot.slane %v11284_v34, 2  ;;  %v11290_v11 = vmax.f32 %v11289_v40, %v11020_v10  ;;  %v9770_v46 = vpack.c.bf16 %v9619_v2, %v9618_v53  ;;  %v10300_v12 = vadd.f32 %v17641_v19, %v10299_v32  ;;  %v13978_v7 = vpop.f32.mrb[84].mxu1  ;;  %v14139_v5 = vpop.f32.mrb[230].mxu0 }
 0x603   : > { %v9244_v47 = vadd.f32 %v17684_v43, %v13978_v7  ;;  %v9235_v1 = vpop.f32.mrb[85].mxu1  ;;  %v10302_v24 = vpop.f32.mrb[231].mxu0  ;;  %v10311_v17 = vadd.f32 %v17641_v19, %v14139_v5  ;;  %v11024_v18 = vmax.f32 %v10308_v23, 0.0 }
 0x604   : > { %v11286_v14 = vmax.f32 %v11284_v34, %v11285_v48  ;;  %v11022_v26 = vmax.f32 %v10300_v12, 0.0  ;;  %v11291_v33 = vmax.f32 %v11290_v11, %v11021_v29  ;;  %v9236_v49 = vadd.f32 %v17684_v43, %v9235_v1  ;;  %v13979_v39 = vpop.f32.mrb[86].mxu1  ;;  %14244 = vmatprep.mubr.bf16.mxu0 %v9770_v46 }
 0x605   : > { %v10303_v21 = vadd.f32 %v17641_v19, %v10302_v24  ;;  %v9247_v51 = vadd.f32 %v17684_v43, %v13979_v39  ;;  %v9238_v31 = vpop.f32.mrb[87].mxu1  ;;  %14245 = vmatmul.mubr.bf16.gmra.mrb[80].mxu0 %v9771_v52  ;;  %v9624_v62 = vmax.f32 %v9244_v47, 0.0  ;;  %v11025_v36 = vmax.f32 %v10311_v17, 0.0 }
 0x606   : > { %v11287_v3 = vrot.slane %v11286_v14, 1  ;;  %v11292_v25 = vmax.f32 %v11291_v33, %v11022_v26  ;;  %v9239_v37 = vadd.f32 %v17684_v43, %v9238_v31  ;;  %v9622_v58 = vmax.f32 %v9236_v49, 0.0 }
 0x607   : > { %v11023_v15 = vmax.f32 %v10303_v21, 0.0  ;;  %v9625_v38 = vmax.f32 %v9247_v51, 0.0 }
 0x608   : > { %v17735_v35 = vmax.f32 %v11286_v14, %v11287_v3  ;;  %v9623_v61 = vmax.f32 %v9239_v37, 0.0  ;;  %v14142_v60 = vpop.f32.mrb[232].mxu0 }
 0x609   : > { %v11293_v30 = vmax.f32 %v11292_v25, %v11023_v15  ;;  %v9773_v45 = vpack.c.bf16 %v9625_v38, %v9624_v62  ;;  %v10315_v20 = vpop.f32.mrb[233].mxu0  ;;  %v10324_v57 = vadd.f32 %v17641_v19, %v14142_v60 }
 0x60a   : > { %v9772_v8 = vpack.c.bf16 %v9623_v61, %v9622_v58  ;;  %v10316_v4 = vadd.f32 %v17641_v19, %v10315_v20  ;;  %v13982_v41 = vpop.f32.mrb[88].mxu1  ;;  %v14143_v54 = vpop.f32.mrb[234].mxu0 }
 0x60b   : > { %v11294_v56 = vmax.f32 %v11293_v30, %v11024_v18  ;;  %v9260_v50 = vadd.f32 %v17684_v43, %v13982_v41  ;;  %v9251_v59 = vpop.f32.mrb[89].mxu1  ;;  %v10318_v0 = vpop.f32.mrb[235].mxu0  ;;  %v10327_v40 = vadd.f32 %v17641_v19, %v14143_v54  ;;  %v11028_v32 = vmax.f32 %v10324_v57, 0.0 }
 0x60c   : > { %v11026_v42 = vmax.f32 %v10316_v4, 0.0  ;;  %v9252_v55 = vadd.f32 %v17684_v43, %v9251_v59  ;;  %v10319_v13 = vadd.f32 %v17641_v19, %v10318_v0  ;;  %v13983_v22 = vpop.f32.mrb[90].mxu1  ;;  %14248 = vmatprep.mubr.bf16.mxu0 %v9772_v8 }
 0x60d   : > { %v11295_v44 = vmax.f32 %v11294_v56, %v11025_v36  ;;  %v9263_v28 = vadd.f32 %v17684_v43, %v13983_v22  ;;  %v9254_v10 = vpop.f32.mrb[91].mxu1  ;;  %14249 = vmatmul.mubr.bf16.gmra.mrb[84].mxu0 %v9773_v45  ;;  %v9628_v53 = vmax.f32 %v9260_v50, 0.0  ;;  %v11029_v1 = vmax.f32 %v10327_v40, 0.0 }
 0x60e   : > { %v11027_v9 = vmax.f32 %v10319_v13, 0.0  ;;  %v9255_v27 = vadd.f32 %v17684_v43, %v9254_v10  ;;  %v9626_v16 = vmax.f32 %v9252_v55, 0.0 }
 0x60f   : > { %v11296_v34 = vmax.f32 %v11295_v44, %v11026_v42  ;;  %v9629_v2 = vmax.f32 %v9263_v28, 0.0 }
 0x610   : > { %v9627_v29 = vmax.f32 %v9255_v27, 0.0  ;;  %v14146_v52 = vpop.f32.mrb[236].mxu0 }
 0x611   : > { %v11297_v48 = vmax.f32 %v11296_v34, %v11027_v9  ;;  %v9775_v11 = vpack.c.bf16 %v9629_v2, %v9628_v53  ;;  %v10331_v46 = vpop.f32.mrb[237].mxu0  ;;  %v10340_v51 = vadd.f32 %v17641_v19, %v14146_v52 }
 0x612   : > { %v9774_v12 = vpack.c.bf16 %v9627_v29, %v9626_v16  ;;  %v10332_v7 = vadd.f32 %v17641_v19, %v10331_v46  ;;  %v13986_v5 = vpop.f32.mrb[92].mxu1  ;;  %v14147_v47 = vpop.f32.mrb[238].mxu0 }
 0x613   : > { %v11298_v24 = vmax.f32 %v11297_v48, %v11028_v32  ;;  %v9276_v14 = vadd.f32 %v17684_v43, %v13986_v5  ;;  %v9267_v26 = vpop.f32.mrb[93].mxu1  ;;  %v10334_v33 = vpop.f32.mrb[239].mxu0  ;;  %v10343_v38 = vadd.f32 %v17641_v19, %v14147_v47  ;;  %v11032_v30 = vmax.f32 %v10340_v51, 0.0 }
 0x614   : > { %v11030_v49 = vmax.f32 %v10332_v7, 0.0  ;;  %v9268_v39 = vadd.f32 %v17684_v43, %v9267_v26  ;;  %v10335_v23 = vadd.f32 %v17641_v19, %v10334_v33  ;;  %v13987_v21 = vpop.f32.mrb[94].mxu1  ;;  %14252 = vmatprep.mubr.bf16.mxu0 %v9774_v12 }
 0x615   : > { %v11299_v31 = vmax.f32 %v11298_v24, %v11029_v1  ;;  %v9279_v3 = vadd.f32 %v17684_v43, %v13987_v21  ;;  %v9270_v25 = vpop.f32.mrb[95].mxu1  ;;  %14253 = vmatmul.mubr.bf16.gmra.mrb[88].mxu0 %v9775_v11  ;;  %v9632_v15 = vmax.f32 %v9276_v14, 0.0  ;;  %v11033_v56 = vmax.f32 %v10343_v38, 0.0 }
 0x616   : > { %v11031_v37 = vmax.f32 %v10335_v23, 0.0  ;;  %v9271_v62 = vadd.f32 %v17684_v43, %v9270_v25  ;;  %v9630_v61 = vmax.f32 %v9268_v39, 0.0 }
 0x617   : > { %v11300_v17 = vmax.f32 %v11299_v31, %v11030_v49  ;;  %v9633_v58 = vmax.f32 %v9279_v3, 0.0 }
 0x618   : > { %v9631_v60 = vmax.f32 %v9271_v62, 0.0  ;;  %v14150_v18 = vpop.f32.mrb[240].mxu0 }
 0x619   : > { %v11301_v45 = vmax.f32 %v11300_v17, %v11031_v37  ;;  %v9777_v20 = vpack.c.bf16 %v9633_v58, %v9632_v15  ;;  %v10347_v8 = vpop.f32.mrb[241].mxu0  ;;  %v10356_v44 = vadd.f32 %v17641_v19, %v14150_v18 }
 0x61a   : > { %v9776_v4 = vpack.c.bf16 %v9631_v60, %v9630_v61  ;;  %v10348_v41 = vadd.f32 %v17641_v19, %v10347_v8  ;;  %v13990_v54 = vpop.f32.mrb[96].mxu1  ;;  %v14151_v36 = vpop.f32.mrb[242].mxu0 }
 0x61b   : > { %v11302_v50 = vmax.f32 %v11301_v45, %v11032_v30  ;;  %v9292_v59 = vadd.f32 %v17684_v43, %v13990_v54  ;;  %v9283_v0 = vpop.f32.mrb[97].mxu1  ;;  %v10350_v42 = vpop.f32.mrb[243].mxu0  ;;  %v10359_v2 = vadd.f32 %v17641_v19, %v14151_v36  ;;  %v11036_v48 = vmax.f32 %v10356_v44, 0.0 }
 0x61c   : > { %v11034_v55 = vmax.f32 %v10348_v41, 0.0  ;;  %v9284_v13 = vadd.f32 %v17684_v43, %v9283_v0  ;;  %v10351_v22 = vadd.f32 %v17641_v19, %v10350_v42  ;;  %v13991_v57 = vpop.f32.mrb[98].mxu1  ;;  %14256 = vmatprep.mubr.bf16.mxu0 %v9776_v4 }
 0x61d   : > { %v11303_v28 = vmax.f32 %v11302_v50, %v11033_v56  ;;  %v9295_v10 = vadd.f32 %v17684_v43, %v13991_v57  ;;  %v9286_v9 = vpop.f32.mrb[99].mxu1  ;;  %14257 = vmatmul.mubr.bf16.gmra.mrb[92].mxu0 %v9777_v20  ;;  %v9636_v40 = vmax.f32 %v9292_v59, 0.0  ;;  %v11037_v24 = vmax.f32 %v10359_v2, 0.0 }
 0x61e   : > { %v11035_v27 = vmax.f32 %v10351_v22, 0.0  ;;  %v9287_v34 = vadd.f32 %v17684_v43, %v9286_v9  ;;  %v9634_v29 = vmax.f32 %v9284_v13, 0.0 }
 0x61f   : > { %v11304_v53 = vmax.f32 %v11303_v28, %v11034_v55  ;;  %v9637_v16 = vmax.f32 %v9295_v10, 0.0 }
 0x620   : > { %v9635_v52 = vmax.f32 %v9287_v34, 0.0  ;;  %v14154_v32 = vpop.f32.mrb[244].mxu0 }
 0x621   : > { %v11305_v11 = vmax.f32 %v11304_v53, %v11035_v27  ;;  %v9779_v46 = vpack.c.bf16 %v9637_v16, %v9636_v40  ;;  %v10363_v12 = vpop.f32.mrb[245].mxu0  ;;  %v10372_v31 = vadd.f32 %v17641_v19, %v14154_v32 }
 0x622   : > { %v9778_v7 = vpack.c.bf16 %v9635_v52, %v9634_v29  ;;  %v10364_v5 = vadd.f32 %v17641_v19, %v10363_v12  ;;  %v13994_v47 = vpop.f32.mrb[100].mxu1  ;;  %v14155_v1 = vpop.f32.mrb[246].mxu0 }
 0x623   : > { %v11306_v14 = vmax.f32 %v11305_v11, %v11036_v48  ;;  %v9308_v26 = vadd.f32 %v17684_v43, %v13994_v47  ;;  %v9299_v33 = vpop.f32.mrb[101].mxu1  ;;  %v10366_v49 = vpop.f32.mrb[247].mxu0  ;;  %v10375_v58 = vadd.f32 %v17641_v19, %v14155_v1  ;;  %v11040_v45 = vmax.f32 %v10372_v31, 0.0  ;;  %v17780_v47 = vld [vmem:[%s18039_s10] ss:$0 sm:$0xff] }
 0x624   : > { %v11038_v39 = vmax.f32 %v10364_v5, 0.0  ;;  %v9300_v23 = vadd.f32 %v17684_v43, %v9299_v33  ;;  %v10367_v21 = vadd.f32 %v17641_v19, %v10366_v49  ;;  %v13995_v51 = vpop.f32.mrb[102].mxu1  ;;  %14260 = vmatprep.mubr.bf16.mxu0 %v9778_v7 }
 0x625   : > { %v11307_v3 = vmax.f32 %v11306_v14, %v11037_v24  ;;  %v9311_v25 = vadd.f32 %v17684_v43, %v13995_v51  ;;  %v9302_v37 = vpop.f32.mrb[103].mxu1  ;;  %14261 = vmatmul.mubr.bf16.gmra.mrb[96].mxu0 %v9779_v46  ;;  %v9640_v38 = vmax.f32 %v9308_v26, 0.0  ;;  %v11041_v50 = vmax.f32 %v10375_v58, 0.0 }
 0x626   : > { %v11039_v62 = vmax.f32 %v10367_v21, 0.0  ;;  %v9303_v17 = vadd.f32 %v17684_v43, %v9302_v37  ;;  %v9638_v60 = vmax.f32 %v9300_v23, 0.0 }
 0x627   : > { %v11308_v15 = vmax.f32 %v11307_v3, %v11038_v39  ;;  %v9641_v61 = vmax.f32 %v9311_v25, 0.0 }
 0x628   : > { %v9639_v18 = vmax.f32 %v9303_v17, 0.0  ;;  %v14158_v30 = vpop.f32.mrb[248].mxu0 }
 0x629   : > { %v11309_v20 = vmax.f32 %v11308_v15, %v11039_v62  ;;  %v9781_v8 = vpack.c.bf16 %v9641_v61, %v9640_v38  ;;  %v10379_v4 = vpop.f32.mrb[249].mxu0  ;;  %v10388_v28 = vadd.f32 %v17641_v19, %v14158_v30 }
 0x62a   : > { %v9780_v41 = vpack.c.bf16 %v9639_v18, %v9638_v60  ;;  %v10380_v54 = vadd.f32 %v17641_v19, %v10379_v4  ;;  %v13998_v36 = vpop.f32.mrb[104].mxu1  ;;  %v14159_v56 = vpop.f32.mrb[250].mxu0 }
 0x62b   : > { %v11310_v59 = vmax.f32 %v11309_v20, %v11040_v45  ;;  %v9324_v0 = vadd.f32 %v17684_v43, %v13998_v36  ;;  %v9315_v42 = vpop.f32.mrb[105].mxu1  ;;  %v10382_v55 = vpop.f32.mrb[251].mxu0  ;;  %v10391_v16 = vadd.f32 %v17641_v19, %v14159_v56  ;;  %v11044_v11 = vmax.f32 %v10388_v28, 0.0 }
 0x62c   : > { %v11042_v13 = vmax.f32 %v10380_v54, 0.0  ;;  %v9316_v22 = vadd.f32 %v17684_v43, %v9315_v42  ;;  %v10383_v57 = vadd.f32 %v17641_v19, %v10382_v55  ;;  %v13999_v44 = vpop.f32.mrb[106].mxu1  ;;  %14264 = vmatprep.mubr.bf16.mxu0 %v9780_v41 }
 0x62d   : > { %v11311_v10 = vmax.f32 %v11310_v59, %v11041_v50  ;;  %v9327_v9 = vadd.f32 %v17684_v43, %v13999_v44  ;;  %v9318_v27 = vpop.f32.mrb[107].mxu1  ;;  %14265 = vmatmul.mubr.bf16.gmra.mrb[100].mxu0 %v9781_v8  ;;  %v9644_v2 = vmax.f32 %v9324_v0, 0.0  ;;  %v11045_v26 = vmax.f32 %v10391_v16, 0.0 }
 0x62e   : > { %v11043_v34 = vmax.f32 %v10383_v57, 0.0  ;;  %v9319_v53 = vadd.f32 %v17684_v43, %v9318_v27  ;;  %v9642_v52 = vmax.f32 %v9316_v22, 0.0 }
 0x62f   : > { %v11312_v40 = vmax.f32 %v11311_v10, %v11042_v13  ;;  %v9645_v29 = vmax.f32 %v9327_v9, 0.0 }
 0x630   : > { %v9643_v32 = vmax.f32 %v9319_v53, 0.0  ;;  %v14162_v48 = vpop.f32.mrb[252].mxu0 }
 0x631   : > { %v11313_v46 = vmax.f32 %v11312_v40, %v11043_v34  ;;  %v9783_v12 = vpack.c.bf16 %v9645_v29, %v9644_v2  ;;  %v10395_v7 = vpop.f32.mrb[253].mxu0  ;;  %v10404_v3 = vadd.f32 %v17780_v47, %v14162_v48 }
 0x632   : > { %v9782_v5 = vpack.c.bf16 %v9643_v32, %v9642_v52  ;;  %v10396_v1 = vadd.f32 %v17780_v47, %v10395_v7  ;;  %v14002_v24 = vpop.f32.mrb[108].mxu1  ;;  %v14163_v14 = vpop.f32.mrb[254].mxu0 }
 0x633   : > { %v11314_v19 = vmax.f32 %v11313_v46, %v11044_v11  ;;  %v9340_v33 = vadd.f32 %v17684_v43, %v14002_v24  ;;  %v9331_v49 = vpop.f32.mrb[109].mxu1  ;;  %v10398_v39 = vpop.f32.mrb[255].mxu0  ;;  %v10407_v61 = vadd.f32 %v17780_v47, %v14163_v14  ;;  %v11048_v20 = vmax.f32 %v10404_v3, 0.0 }
 0x634   : > { %v11046_v23 = vmax.f32 %v10396_v1, 0.0  ;;  %v9332_v21 = vadd.f32 %v17684_v43, %v9331_v49  ;;  %v10399_v51 = vadd.f32 %v17780_v47, %v10398_v39  ;;  %v14003_v31 = vpop.f32.mrb[110].mxu1  ;;  %14268 = vmatprep.mubr.bf16.mxu0 %v9782_v5 }
 0x635   : > { %v11315_v25 = vmax.f32 %v11314_v19, %v11045_v26  ;;  %v9343_v37 = vadd.f32 %v17684_v43, %v14003_v31  ;;  %v9334_v62 = vpop.f32.mrb[111].mxu1  ;;  %14269 = vmatmul.mubr.bf16.gmra.mrb[104].mxu0 %v9783_v12  ;;  %v9648_v58 = vmax.f32 %v9340_v33, 0.0  ;;  %v11049_v59 = vmax.f32 %v10407_v61, 0.0 }
 0x636   : > { %v11047_v17 = vmax.f32 %v10399_v51, 0.0  ;;  %v9335_v15 = vadd.f32 %v17684_v43, %v9334_v62  ;;  %v9646_v18 = vmax.f32 %v9332_v21, 0.0 }
 0x637   : > { %v11316_v38 = vmax.f32 %v11315_v25, %v11046_v23  ;;  %v9649_v60 = vmax.f32 %v9343_v37, 0.0 }
 0x638   : > { %v9647_v30 = vmax.f32 %v9335_v15, 0.0  ;;  %v14166_v45 = vpop.f32.mrb[0].mxu0 }
 0x639   : > { %v11317_v8 = vmax.f32 %v11316_v38, %v11047_v17  ;;  %v9785_v4 = vpack.c.bf16 %v9649_v60, %v9648_v58  ;;  %v10411_v41 = vpop.f32.mrb[1].mxu0  ;;  %v10420_v22 = vadd.f32 %v17780_v47, %v14166_v45 }
 0x63a   : > { %v9784_v54 = vpack.c.bf16 %v9647_v30, %v9646_v18  ;;  %v10412_v36 = vadd.f32 %v17780_v47, %v10411_v41  ;;  %v14006_v56 = vpop.f32.mrb[112].mxu1  ;;  %v14167_v50 = vpop.f32.mrb[2].mxu0 }
 0x63b   : > { %v11318_v0 = vmax.f32 %v11317_v8, %v11048_v20  ;;  %v9356_v42 = vadd.f32 %v17684_v43, %v14006_v56  ;;  %v9347_v55 = vpop.f32.mrb[113].mxu1  ;;  %v10414_v13 = vpop.f32.mrb[3].mxu0  ;;  %v10423_v53 = vadd.f32 %v17780_v47, %v14167_v50  ;;  %v11052_v32 = vmax.f32 %v10420_v22, 0.0 }
 0x63c   : > { %v9348_v57 = vadd.f32 %v17684_v43, %v9347_v55  ;;  %v10415_v44 = vadd.f32 %v17780_v47, %v10414_v13  ;;  %v14007_v28 = vpop.f32.mrb[114].mxu1  ;;  %14272 = vmatprep.mubr.bf16.mxu0 %v9784_v54  ;;  %v11050_v34 = vmax.f32 %v10412_v36, 0.0 }
 0x63d   : > { %v11319_v10 = vmax.f32 %v11318_v0, %v11049_v59  ;;  %v9359_v9 = vadd.f32 %v17684_v43, %v14007_v28  ;;  %v9350_v27 = vpop.f32.mrb[115].mxu1  ;;  %14273 = vmatmul.mubr.bf16.gmra.mrb[108].mxu0 %v9785_v4  ;;  %v9652_v29 = vmax.f32 %v9356_v42, 0.0  ;;  %v11053_v24 = vmax.f32 %v10423_v53, 0.0 }
 0x63e   : > { %v11051_v40 = vmax.f32 %v10415_v44, 0.0  ;;  %v9351_v2 = vadd.f32 %v17684_v43, %v9350_v27  ;;  %v9650_v48 = vmax.f32 %v9348_v57, 0.0 }
 0x63f   : > { %v11320_v16 = vrot.slane %v11319_v10, 4  ;;  %v9653_v52 = vmax.f32 %v9359_v9, 0.0 }
 0x640   : > { %v11326_v11 = vmax.f32 %v11050_v34, %v11051_v40  ;;  %v9651_v46 = vmax.f32 %v9351_v2, 0.0  ;;  %v14170_v12 = vpop.f32.mrb[4].mxu0 }
 0x641   : > { %v11321_v7 = vmax.f32 %v11319_v10, %v11320_v16  ;;  %v9787_v5 = vpack.c.bf16 %v9653_v52, %v9652_v29  ;;  %v10427_v1 = vpop.f32.mrb[5].mxu0  ;;  %v10436_v23 = vadd.f32 %v17780_v47, %v14170_v12 }
 0x642   : > { %v11327_v14 = vmax.f32 %v11326_v11, %v11052_v32  ;;  %v9786_v26 = vpack.c.bf16 %v9651_v46, %v9650_v48  ;;  %v10428_v19 = vadd.f32 %v17780_v47, %v10427_v1  ;;  %v14010_v33 = vpop.f32.mrb[116].mxu1  ;;  %v14171_v49 = vpop.f32.mrb[6].mxu0 }
 0x643   : > { %v11322_v39 = vrot.slane %v11321_v7, 2  ;;  %v9372_v21 = vadd.f32 %v17684_v43, %v14010_v33  ;;  %v9363_v51 = vpop.f32.mrb[117].mxu1  ;;  %v10430_v31 = vpop.f32.mrb[7].mxu0  ;;  %v10439_v60 = vadd.f32 %v17780_v47, %v14171_v49  ;;  %v11056_v4 = vmax.f32 %v10436_v23, 0.0 }
 0x644   : > { %v11054_v3 = vmax.f32 %v10428_v19, 0.0  ;;  %v11328_v25 = vmax.f32 %v11327_v14, %v11053_v24  ;;  %v9364_v37 = vadd.f32 %v17684_v43, %v9363_v51  ;;  %v10431_v62 = vadd.f32 %v17780_v47, %v10430_v31  ;;  %v14011_v17 = vpop.f32.mrb[118].mxu1  ;;  %14276 = vmatprep.mubr.bf16.mxu0 %v9786_v26 }
 0x645   : > { %v11323_v15 = vmax.f32 %v11321_v7, %v11322_v39  ;;  %v9375_v38 = vadd.f32 %v17684_v43, %v14011_v17  ;;  %v9366_v58 = vpop.f32.mrb[119].mxu1  ;;  %14277 = vmatmul.mubr.bf16.gmra.mrb[112].mxu0 %v9787_v5  ;;  %v9656_v20 = vmax.f32 %v9372_v21, 0.0  ;;  %v11057_v42 = vmax.f32 %v10439_v60, 0.0 }
 0x646   : > { %v11329_v61 = vmax.f32 %v11328_v25, %v11054_v3  ;;  %v11055_v18 = vmax.f32 %v10431_v62, 0.0  ;;  %v9367_v30 = vadd.f32 %v17684_v43, %v9366_v58  ;;  %v9654_v41 = vmax.f32 %v9364_v37, 0.0 }
 0x647   : > { %v11324_v45 = vrot.slane %v11323_v15, 1  ;;  %v9657_v8 = vmax.f32 %v9375_v38, 0.0  ;;  %v14543_v38 = vld [vmem:[%s18037_s8] ss:$0 sm:$0xff] }
 0x648   : > { %v11330_v54 = vmax.f32 %v11329_v61, %v11055_v18  ;;  %v9655_v36 = vmax.f32 %v9367_v30, 0.0  ;;  %v14174_v56 = vpop.f32.mrb[8].mxu0 }
 0x649   : > { %v17806_v50 = vmax.f32 %v11323_v15, %v11324_v45  ;;  %v9789_v59 = vpack.c.bf16 %v9657_v8, %v9656_v20  ;;  %v10443_v0 = vpop.f32.mrb[9].mxu0  ;;  %v10452_v28 = vadd.f32 %v17780_v47, %v14174_v56 }
 0x64a   : > { %v11331_v55 = vmax.f32 %v11330_v54, %v11056_v4  ;;  %v9788_v13 = vpack.c.bf16 %v9655_v36, %v9654_v41  ;;  %v10444_v22 = vadd.f32 %v17780_v47, %v10443_v0  ;;  %v14014_v57 = vpop.f32.mrb[120].mxu1  ;;  %v14175_v44 = vpop.f32.mrb[10].mxu0 }
 0x64b   : > { %v9388_v10 = vadd.f32 %v17684_v43, %v14014_v57  ;;  %v9379_v9 = vpop.f32.mrb[121].mxu1  ;;  %v10446_v27 = vpop.f32.mrb[11].mxu0  ;;  %v10455_v48 = vadd.f32 %v17780_v47, %v14175_v44  ;;  %v11060_v5 = vmax.f32 %v10452_v28, 0.0 }
 0x64c   : > { %v11058_v34 = vmax.f32 %v10444_v22, 0.0  ;;  %v11332_v53 = vmax.f32 %v11331_v55, %v11057_v42  ;;  %v9380_v40 = vadd.f32 %v17684_v43, %v9379_v9  ;;  %v10447_v2 = vadd.f32 %v17780_v47, %v10446_v27  ;;  %v14015_v16 = vpop.f32.mrb[122].mxu1  ;;  %14280 = vmatprep.mubr.bf16.mxu0 %v9788_v13 }
 0x64d   : > { %v9391_v29 = vadd.f32 %v17684_v43, %v14015_v16  ;;  %v9382_v52 = vpop.f32.mrb[123].mxu1  ;;  %14281 = vmatmul.mubr.bf16.gmra.mrb[116].mxu0 %v9789_v59  ;;  %v9660_v12 = vmax.f32 %v9388_v10, 0.0  ;;  %v11061_v49 = vmax.f32 %v10455_v48, 0.0 }
 0x64e   : > { %v11333_v32 = vmax.f32 %v11332_v53, %v11058_v34  ;;  %v11059_v11 = vmax.f32 %v10447_v2, 0.0  ;;  %v9383_v46 = vadd.f32 %v17684_v43, %v9382_v52  ;;  %v9658_v1 = vmax.f32 %v9380_v40, 0.0 }
 0x64f   : > { %v9661_v7 = vmax.f32 %v9391_v29, 0.0 }
 0x650   : > { %v11334_v24 = vmax.f32 %v11333_v32, %v11059_v11  ;;  %v9659_v14 = vmax.f32 %v9383_v46, 0.0  ;;  %v14178_v26 = vpop.f32.mrb[12].mxu0 }
 0x651   : > { %v9791_v19 = vpack.c.bf16 %v9661_v7, %v9660_v12  ;;  %v10459_v33 = vpop.f32.mrb[13].mxu0  ;;  %v10468_v3 = vadd.f32 %v17780_v47, %v14178_v26 }
 0x652   : > { %v11335_v39 = vmax.f32 %v11334_v24, %v11060_v5  ;;  %v9790_v23 = vpack.c.bf16 %v9659_v14, %v9658_v1  ;;  %v10460_v21 = vadd.f32 %v17780_v47, %v10459_v33  ;;  %v14018_v51 = vpop.f32.mrb[124].mxu1  ;;  %v14179_v31 = vpop.f32.mrb[14].mxu0 }
 0x653   : > { %v9404_v25 = vadd.f32 %v17684_v43, %v14018_v51  ;;  %v9395_v37 = vpop.f32.mrb[125].mxu1  ;;  %v10462_v62 = vpop.f32.mrb[15].mxu0  ;;  %v10471_v20 = vadd.f32 %v17780_v47, %v14179_v31  ;;  %v11064_v54 = vmax.f32 %v10468_v3, 0.0 }
 0x654   : > { %v11062_v17 = vmax.f32 %v10460_v21, 0.0  ;;  %v11336_v15 = vmax.f32 %v11335_v39, %v11061_v49  ;;  %v9396_v58 = vadd.f32 %v14543_v38, %v9395_v37  ;;  %v10463_v61 = vadd.f32 %v17780_v47, %v10462_v62  ;;  %v14019_v60 = vpop.f32.mrb[126].mxu1  ;;  %14284 = vmatprep.mubr.bf16.mxu0 %v9790_v23 }
 0x655   : > { %v9407_v18 = vadd.f32 %v14543_v38, %v14019_v60  ;;  %v9398_v30 = vpop.f32.mrb[127].mxu1  ;;  %14285 = vmatmul.mubr.bf16.gmra.mrb[120].mxu0 %v9791_v19  ;;  %v9664_v4 = vmax.f32 %v9404_v25, 0.0  ;;  %v11065_v13 = vmax.f32 %v10471_v20, 0.0 }
 0x656   : > { %v11337_v45 = vmax.f32 %v11336_v15, %v11062_v17  ;;  %v11063_v43 = vmax.f32 %v10463_v61, 0.0  ;;  %v9399_v8 = vadd.f32 %v14543_v38, %v9398_v30  ;;  %v9662_v36 = vmax.f32 %v9396_v58, 0.0 }
 0x657   : > { %v9665_v41 = vmax.f32 %v9407_v18, 0.0 }
 0x658   : > { %v11338_v56 = vmax.f32 %v11337_v45, %v11063_v43  ;;  %v9663_v59 = vmax.f32 %v9399_v8, 0.0  ;;  %v14182_v0 = vpop.f32.mrb[16].mxu0 }
 0x659   : > { %v9793_v42 = vpack.c.bf16 %v9665_v41, %v9664_v4  ;;  %v10475_v55 = vpop.f32.mrb[17].mxu0  ;;  %v10484_v9 = vadd.f32 %v17780_v47, %v14182_v0 }
 0x65a   : > { %v11339_v22 = vmax.f32 %v11338_v56, %v11064_v54  ;;  %v9792_v57 = vpack.c.bf16 %v9663_v59, %v9662_v36  ;;  %v10476_v44 = vadd.f32 %v17780_v47, %v10475_v55  ;;  %v14183_v28 = vpop.f32.mrb[18].mxu0 }
 0x65b   : > { %v10478_v10 = vpop.f32.mrb[19].mxu0  ;;  %v10487_v2 = vadd.f32 %v17780_v47, %v14183_v28  ;;  %v11068_v29 = vmax.f32 %v10484_v9, 0.0 }
 0x65c   : > { %v11066_v27 = vmax.f32 %v10476_v44, 0.0  ;;  %v11340_v34 = vmax.f32 %v11339_v22, %v11065_v13  ;;  %v10479_v53 = vadd.f32 %v17780_v47, %v10478_v10  ;;  %14288 = vmatprep.mubr.bf16.mxu0 %v9792_v57 }
 0x65d   : > { %14289 = vmatmul.mubr.bf16.gmra.mrb[124].mxu0 %v9793_v42  ;;  %v11069_v11 = vmax.f32 %v10487_v2, 0.0 }
 0x65e   : > { %v11341_v40 = vmax.f32 %v11340_v34, %v11066_v27  ;;  %v11067_v16 = vmax.f32 %v10479_v53, 0.0 }
 0x660   : > { %v11342_v52 = vmax.f32 %v11341_v40, %v11067_v16  ;;  %v14186_v32 = vpop.f32.mrb[20].mxu0 }
 0x661   : > { %v10491_v48 = vpop.f32.mrb[21].mxu0  ;;  %v10500_v1 = vadd.f32 %v17780_v47, %v14186_v32 }
 0x662   : > { %v11343_v46 = vmax.f32 %v11342_v52, %v11068_v29  ;;  %v10492_v12 = vadd.f32 %v17780_v47, %v10491_v48  ;;  %v14187_v7 = vpop.f32.mrb[22].mxu0 }
 0x663   : > { %v10494_v5 = vpop.f32.mrb[23].mxu0  ;;  %v10503_v33 = vadd.f32 %v17780_v47, %v14187_v7  ;;  %v11072_v39 = vmax.f32 %v10500_v1, 0.0 }
 0x664   : > { %v11070_v24 = vmax.f32 %v10492_v12, 0.0  ;;  %v11344_v14 = vmax.f32 %v11343_v46, %v11069_v11  ;;  %v10495_v26 = vadd.f32 %v17780_v47, %v10494_v5 }
 0x665   : > { %v11073_v31 = vmax.f32 %v10503_v33, 0.0 }
 0x666   : > { %v11345_v19 = vmax.f32 %v11344_v14, %v11070_v24  ;;  %v11071_v49 = vmax.f32 %v10495_v26, 0.0 }
 0x668   : > { %v11346_v23 = vmax.f32 %v11345_v19, %v11071_v49  ;;  %v14190_v21 = vpop.f32.mrb[24].mxu0 }
 0x669   : > { %v10507_v51 = vpop.f32.mrb[25].mxu0  ;;  %v10516_v17 = vadd.f32 %v17780_v47, %v14190_v21 }
 0x66a   : > { %v11347_v3 = vmax.f32 %v11346_v23, %v11072_v39  ;;  %v10508_v25 = vadd.f32 %v17780_v47, %v10507_v51  ;;  %v14191_v37 = vpop.f32.mrb[26].mxu0 }
 0x66b   : > { %v10510_v62 = vpop.f32.mrb[27].mxu0  ;;  %v10519_v60 = vadd.f32 %v17780_v47, %v14191_v37  ;;  %v11076_v30 = vmax.f32 %v10516_v17, 0.0 }
 0x66c   : > { %v11074_v15 = vmax.f32 %v10508_v25, 0.0  ;;  %v11348_v38 = vmax.f32 %v11347_v3, %v11073_v31  ;;  %v10511_v58 = vadd.f32 %v17780_v47, %v10510_v62 }
 0x66d   : > { %v11077_v8 = vmax.f32 %v10519_v60, 0.0 }
 0x66e   : > { %v11349_v61 = vmax.f32 %v11348_v38, %v11074_v15  ;;  %v11075_v18 = vmax.f32 %v10511_v58, 0.0 }
 0x670   : > { %v11350_v45 = vmax.f32 %v11349_v61, %v11075_v18  ;;  %v14194_v20 = vpop.f32.mrb[28].mxu0 }
 0x671   : > { %v10523_v43 = vpop.f32.mrb[29].mxu0  ;;  %v10532_v56 = vadd.f32 %v17780_v47, %v14194_v20 }
 0x672   : > { %v11351_v4 = vmax.f32 %v11350_v45, %v11076_v30  ;;  %v10524_v41 = vadd.f32 %v17780_v47, %v10523_v43  ;;  %v14195_v54 = vpop.f32.mrb[30].mxu0 }
 0x673   : > { %v10526_v36 = vpop.f32.mrb[31].mxu0  ;;  %v10535_v13 = vadd.f32 %v17780_v47, %v14195_v54  ;;  %v11080_v57 = vmax.f32 %v10532_v56, 0.0 }
 0x674   : > { %v11078_v59 = vmax.f32 %v10524_v41, 0.0  ;;  %v11352_v0 = vmax.f32 %v11351_v4, %v11077_v8  ;;  %v10527_v42 = vadd.f32 %v17780_v47, %v10526_v36 }
 0x675   : > { %v11081_v9 = vmax.f32 %v10535_v13, 0.0 }
 0x676   : > { %v11353_v55 = vmax.f32 %v11352_v0, %v11078_v59  ;;  %v11079_v22 = vmax.f32 %v10527_v42, 0.0 }
 0x678   : > { %v11354_v44 = vmax.f32 %v11353_v55, %v11079_v22  ;;  %v14198_v28 = vpop.f32.mrb[32].mxu0 }
 0x679   : > { %v10539_v10 = vpop.f32.mrb[33].mxu0  ;;  %v10548_v16 = vadd.f32 %v17780_v47, %v14198_v28 }
 0x67a   : > { %v11355_v27 = vmax.f32 %v11354_v44, %v11080_v57  ;;  %v10540_v34 = vadd.f32 %v17780_v47, %v10539_v10  ;;  %v14199_v53 = vpop.f32.mrb[34].mxu0 }
 0x67b   : > { %v10542_v40 = vpop.f32.mrb[35].mxu0  ;;  %v10551_v48 = vadd.f32 %v17780_v47, %v14199_v53  ;;  %v11084_v12 = vmax.f32 %v10548_v16, 0.0 }
 0x67c   : > { %v11356_v2 = vmax.f32 %v11355_v27, %v11081_v9  ;;  %v10543_v29 = vadd.f32 %v17780_v47, %v10542_v40  ;;  %v11082_v32 = vmax.f32 %v10540_v34, 0.0 }
 0x67d   : > { %v11085_v14 = vmax.f32 %v10551_v48, 0.0 }
 0x67e   : > { %v11357_v52 = vrot.slane %v11356_v2, 4  ;;  %v11083_v11 = vmax.f32 %v10543_v29, 0.0 }
 0x680   : > { %v11358_v46 = vmax.f32 %v11356_v2, %v11357_v52  ;;  %v11363_v7 = vmax.f32 %v11082_v32, %v11083_v11  ;;  %v14202_v5 = vpop.f32.mrb[36].mxu0 }
 0x681   : > { %v10555_v1 = vpop.f32.mrb[37].mxu0  ;;  %v10564_v49 = vadd.f32 %v17780_v47, %v14202_v5 }
 0x682   : > { %v11359_v24 = vrot.slane %v11358_v46, 2  ;;  %v11364_v26 = vmax.f32 %v11363_v7, %v11084_v12  ;;  %v10556_v19 = vadd.f32 %v17780_v47, %v10555_v1  ;;  %v14203_v33 = vpop.f32.mrb[38].mxu0 }
 0x683   : > { %v10558_v39 = vpop.f32.mrb[39].mxu0  ;;  %v10567_v37 = vadd.f32 %v17780_v47, %v14203_v33  ;;  %v11088_v15 = vmax.f32 %v10564_v49, 0.0 }
 0x684   : > { %v11360_v23 = vmax.f32 %v11358_v46, %v11359_v24  ;;  %v11086_v21 = vmax.f32 %v10556_v19, 0.0  ;;  %v11365_v51 = vmax.f32 %v11364_v26, %v11085_v14  ;;  %v10559_v31 = vadd.f32 %v17780_v47, %v10558_v39 }
 0x685   : > { %v11089_v60 = vmax.f32 %v10567_v37, 0.0 }
 0x686   : > { %v11361_v3 = vrot.slane %v11360_v23, 1  ;;  %v11366_v25 = vmax.f32 %v11365_v51, %v11086_v21  ;;  %v11087_v62 = vmax.f32 %v10559_v31, 0.0 }
 0x688   : > { %v17848_v17 = vmax.f32 %v11360_v23, %v11361_v3  ;;  %v11367_v38 = vmax.f32 %v11366_v25, %v11087_v62  ;;  %v14206_v58 = vpop.f32.mrb[40].mxu0 }
 0x689   : > { %v10571_v61 = vpop.f32.mrb[41].mxu0  ;;  %v10580_v43 = vadd.f32 %v17780_v47, %v14206_v58 }
 0x68a   : > { %v11368_v18 = vmax.f32 %v11367_v38, %v11088_v15  ;;  %v10572_v30 = vadd.f32 %v17780_v47, %v10571_v61  ;;  %v14207_v45 = vpop.f32.mrb[42].mxu0 }
 0x68b   : > { %v10574_v20 = vpop.f32.mrb[43].mxu0  ;;  %v10583_v36 = vadd.f32 %v17780_v47, %v14207_v45  ;;  %v11092_v59 = vmax.f32 %v10580_v43, 0.0 }
 0x68c   : > { %v11090_v8 = vmax.f32 %v10572_v30, 0.0  ;;  %v11369_v4 = vmax.f32 %v11368_v18, %v11089_v60  ;;  %v10575_v41 = vadd.f32 %v17780_v47, %v10574_v20 }
 0x68d   : > { %v11093_v13 = vmax.f32 %v10583_v36, 0.0 }
 0x68e   : > { %v11370_v54 = vmax.f32 %v11369_v4, %v11090_v8  ;;  %v11091_v56 = vmax.f32 %v10575_v41, 0.0 }
 0x690   : > { %v11371_v0 = vmax.f32 %v11370_v54, %v11091_v56  ;;  %v14210_v42 = vpop.f32.mrb[44].mxu0 }
 0x691   : > { %v10587_v55 = vpop.f32.mrb[45].mxu0  ;;  %v10596_v10 = vadd.f32 %v17780_v47, %v14210_v42 }
 0x692   : > { %v11372_v22 = vmax.f32 %v11371_v0, %v11092_v59  ;;  %v10588_v57 = vadd.f32 %v17780_v47, %v10587_v55  ;;  %v14211_v44 = vpop.f32.mrb[46].mxu0 }
 0x693   : > { %v10590_v28 = vpop.f32.mrb[47].mxu0  ;;  %v10599_v40 = vadd.f32 %v17780_v47, %v14211_v44  ;;  %v11096_v16 = vmax.f32 %v10596_v10, 0.0 }
 0x694   : > { %v11094_v9 = vmax.f32 %v10588_v57, 0.0  ;;  %v11373_v27 = vmax.f32 %v11372_v22, %v11093_v13  ;;  %v10591_v34 = vadd.f32 %v17780_v47, %v10590_v28 }
 0x695   : > { %v11097_v48 = vmax.f32 %v10599_v40, 0.0 }
 0x696   : > { %v11374_v53 = vmax.f32 %v11373_v27, %v11094_v9  ;;  %v11095_v2 = vmax.f32 %v10591_v34, 0.0 }
 0x698   : > { %v11375_v29 = vmax.f32 %v11374_v53, %v11095_v2  ;;  %v14214_v52 = vpop.f32.mrb[48].mxu0 }
 0x699   : > { %v10603_v32 = vpop.f32.mrb[49].mxu0  ;;  %v10612_v5 = vadd.f32 %v17780_v47, %v14214_v52 }
 0x69a   : > { %v11376_v11 = vmax.f32 %v11375_v29, %v11096_v16  ;;  %v10604_v46 = vadd.f32 %v17780_v47, %v10603_v32  ;;  %v14215_v12 = vpop.f32.mrb[50].mxu0 }
 0x69b   : > { %v10606_v7 = vpop.f32.mrb[51].mxu0  ;;  %v10615_v19 = vadd.f32 %v17780_v47, %v14215_v12  ;;  %v11100_v49 = vmax.f32 %v10612_v5, 0.0 }
 0x69c   : > { %v11098_v1 = vmax.f32 %v10604_v46, 0.0  ;;  %v11377_v24 = vmax.f32 %v11376_v11, %v11097_v48  ;;  %v10607_v14 = vadd.f32 %v17780_v47, %v10606_v7 }
 0x69d   : > { %v11101_v51 = vmax.f32 %v10615_v19, 0.0 }
 0x69e   : > { %v11378_v26 = vmax.f32 %v11377_v24, %v11098_v1  ;;  %v11099_v33 = vmax.f32 %v10607_v14, 0.0 }
 0x6a0   : > { %v11379_v39 = vmax.f32 %v11378_v26, %v11099_v33  ;;  %v14218_v23 = vpop.f32.mrb[52].mxu0 }
 0x6a1   : > { %v10619_v21 = vpop.f32.mrb[53].mxu0  ;;  %v10628_v62 = vadd.f32 %v17780_v47, %v14218_v23 }
 0x6a2   : > { %v11380_v31 = vmax.f32 %v11379_v39, %v11100_v49  ;;  %v10620_v3 = vadd.f32 %v17780_v47, %v10619_v21  ;;  %v14219_v25 = vpop.f32.mrb[54].mxu0 }
 0x6a3   : > { %v10622_v37 = vpop.f32.mrb[55].mxu0  ;;  %v10631_v60 = vadd.f32 %v17780_v47, %v14219_v25  ;;  %v11104_v30 = vmax.f32 %v10628_v62, 0.0 }
 0x6a4   : > { %v11102_v15 = vmax.f32 %v10620_v3, 0.0  ;;  %v11381_v38 = vmax.f32 %v11380_v31, %v11101_v51  ;;  %v10623_v58 = vadd.f32 %v17780_v47, %v10622_v37 }
 0x6a5   : > { %v11105_v8 = vmax.f32 %v10631_v60, 0.0 }
 0x6a6   : > { %v11382_v61 = vmax.f32 %v11381_v38, %v11102_v15  ;;  %v11103_v18 = vmax.f32 %v10623_v58, 0.0 }
 0x6a8   : > { %v11383_v45 = vmax.f32 %v11382_v61, %v11103_v18  ;;  %v14222_v20 = vpop.f32.mrb[56].mxu0 }
 0x6a9   : > { %v10635_v43 = vpop.f32.mrb[57].mxu0  ;;  %v10644_v56 = vadd.f32 %v17780_v47, %v14222_v20 }
 0x6aa   : > { %v11384_v4 = vmax.f32 %v11383_v45, %v11104_v30  ;;  %v10636_v41 = vadd.f32 %v17780_v47, %v10635_v43  ;;  %v14223_v54 = vpop.f32.mrb[58].mxu0 }
 0x6ab   : > { %v10638_v36 = vpop.f32.mrb[59].mxu0  ;;  %v10647_v13 = vadd.f32 %v17780_v47, %v14223_v54  ;;  %v11108_v57 = vmax.f32 %v10644_v56, 0.0 }
 0x6ac   : > { %v11106_v59 = vmax.f32 %v10636_v41, 0.0  ;;  %v11385_v0 = vmax.f32 %v11384_v4, %v11105_v8  ;;  %v10639_v42 = vadd.f32 %v17780_v47, %v10638_v36 }
 0x6ad   : > { %v11109_v9 = vmax.f32 %v10647_v13, 0.0 }
 0x6ae   : > { %v11386_v55 = vmax.f32 %v11385_v0, %v11106_v59  ;;  %v11107_v22 = vmax.f32 %v10639_v42, 0.0 }
 0x6b0   : > { %v11387_v44 = vmax.f32 %v11386_v55, %v11107_v22  ;;  %v14226_v28 = vpop.f32.mrb[60].mxu0 }
 0x6b1   : > { %v10651_v10 = vpop.f32.mrb[61].mxu0  ;;  %v10660_v2 = vadd.f32 %v17780_v47, %v14226_v28 }
 0x6b2   : > { %v11388_v27 = vmax.f32 %v11387_v44, %v11108_v57  ;;  %v10652_v34 = vadd.f32 %v17780_v47, %v10651_v10  ;;  %v14227_v53 = vpop.f32.mrb[62].mxu0 }
 0x6b3   : > { %v10654_v40 = vpop.f32.mrb[63].mxu0  ;;  %v10663_v48 = vadd.f32 %v17780_v47, %v14227_v53  ;;  %v11112_v46 = vmax.f32 %v10660_v2, 0.0 }
 0x6b4   : > { %v11110_v16 = vmax.f32 %v10652_v34, 0.0  ;;  %v11389_v29 = vmax.f32 %v11388_v27, %v11109_v9  ;;  %v10655_v52 = vadd.f32 %v17780_v47, %v10654_v40 }
 0x6b5   : > { %v11113_v1 = vmax.f32 %v10663_v48, 0.0 }
 0x6b6   : > { %v11390_v32 = vmax.f32 %v11389_v29, %v11110_v16  ;;  %v11111_v11 = vmax.f32 %v10655_v52, 0.0 }
 0x6b8   : > { %v11391_v12 = vmax.f32 %v11390_v32, %v11111_v11  ;;  %v14230_v7 = vpop.f32.mrb[64].mxu0 }
 0x6b9   : > { %v10667_v5 = vpop.f32.mrb[65].mxu0  ;;  %v10676_v49 = vadd.f32 %v17780_v47, %v14230_v7 }
 0x6ba   : > { %v11392_v24 = vmax.f32 %v11391_v12, %v11112_v46  ;;  %v10668_v14 = vadd.f32 %v17780_v47, %v10667_v5  ;;  %v14231_v26 = vpop.f32.mrb[66].mxu0 }
 0x6bb   : > { %v10670_v19 = vpop.f32.mrb[67].mxu0  ;;  %v10679_v51 = vadd.f32 %v17780_v47, %v14231_v26  ;;  %v11116_v25 = vmax.f32 %v10676_v49, 0.0 }
 0x6bc   : > { %v11393_v33 = vmax.f32 %v11392_v24, %v11113_v1  ;;  %v10671_v39 = vadd.f32 %v17780_v47, %v10670_v19  ;;  %v11114_v21 = vmax.f32 %v10668_v14, 0.0 }
 0x6bd   : > { %v11117_v58 = vmax.f32 %v10679_v51, 0.0 }
 0x6be   : > { %v11394_v23 = vrot.slane %v11393_v33, 4  ;;  %v11115_v31 = vmax.f32 %v10671_v39, 0.0 }
 0x6c0   : > { %v11395_v3 = vmax.f32 %v11393_v33, %v11394_v23  ;;  %v11400_v37 = vmax.f32 %v11114_v21, %v11115_v31  ;;  %v14234_v62 = vpop.f32.mrb[68].mxu0 }
 0x6c1   : > { %v10683_v15 = vpop.f32.mrb[69].mxu0  ;;  %v10692_v30 = vadd.f32 %v17780_v47, %v14234_v62 }
 0x6c2   : > { %v11396_v38 = vrot.slane %v11395_v3, 2  ;;  %v11401_v61 = vmax.f32 %v11400_v37, %v11116_v25  ;;  %v10684_v60 = vadd.f32 %v17780_v47, %v10683_v15  ;;  %v14235_v18 = vpop.f32.mrb[70].mxu0 }
 0x6c3   : > { %v10686_v45 = vpop.f32.mrb[71].mxu0  ;;  %v10695_v36 = vadd.f32 %v17780_v47, %v14235_v18  ;;  %v11120_v0 = vmax.f32 %v10692_v30, 0.0 }
 0x6c4   : > { %v11397_v20 = vmax.f32 %v11395_v3, %v11396_v38  ;;  %v11118_v43 = vmax.f32 %v10684_v60, 0.0  ;;  %v11402_v8 = vmax.f32 %v11401_v61, %v11117_v58  ;;  %v10687_v4 = vadd.f32 %v17780_v47, %v10686_v45 }
 0x6c5   : > { %v11121_v22 = vmax.f32 %v10695_v36, 0.0 }
 0x6c6   : > { %v11398_v41 = vrot.slane %v11397_v20, 1  ;;  %v11403_v54 = vmax.f32 %v11402_v8, %v11118_v43  ;;  %v11119_v56 = vmax.f32 %v10687_v4, 0.0 }
 0x6c8   : > { %v17882_v59 = vmax.f32 %v11397_v20, %v11398_v41  ;;  %v11404_v42 = vmax.f32 %v11403_v54, %v11119_v56  ;;  %v14238_v55 = vpop.f32.mrb[72].mxu0 }
 0x6c9   : > { %v10699_v13 = vpop.f32.mrb[73].mxu0  ;;  %v10708_v9 = vadd.f32 %v17780_v47, %v14238_v55 }
 0x6ca   : > { %v11405_v57 = vmax.f32 %v11404_v42, %v11120_v0  ;;  %v10700_v44 = vadd.f32 %v17780_v47, %v10699_v13  ;;  %v14239_v28 = vpop.f32.mrb[74].mxu0 }
 0x6cb   : > { %v10702_v10 = vpop.f32.mrb[75].mxu0  ;;  %v10711_v2 = vadd.f32 %v17780_v47, %v14239_v28  ;;  %v11124_v29 = vmax.f32 %v10708_v9, 0.0 }
 0x6cc   : > { %v11122_v27 = vmax.f32 %v10700_v44, 0.0  ;;  %v11406_v34 = vmax.f32 %v11405_v57, %v11121_v22  ;;  %v10703_v53 = vadd.f32 %v17780_v47, %v10702_v10 }
 0x6cd   : > { %v11125_v11 = vmax.f32 %v10711_v2, 0.0 }
 0x6ce   : > { %v11407_v40 = vmax.f32 %v11406_v34, %v11122_v27  ;;  %v11123_v16 = vmax.f32 %v10703_v53, 0.0 }
 0x6d0   : > { %v11408_v52 = vmax.f32 %v11407_v40, %v11123_v16  ;;  %v14242_v32 = vpop.f32.mrb[76].mxu0 }
 0x6d1   : > { %v10715_v48 = vpop.f32.mrb[77].mxu0  ;;  %v10724_v1 = vadd.f32 %v17780_v47, %v14242_v32 }
 0x6d2   : > { %v11409_v46 = vmax.f32 %v11408_v52, %v11124_v29  ;;  %v10716_v12 = vadd.f32 %v17780_v47, %v10715_v48  ;;  %v14243_v7 = vpop.f32.mrb[78].mxu0 }
 0x6d3   : > { %v10718_v5 = vpop.f32.mrb[79].mxu0  ;;  %v10727_v33 = vadd.f32 %v17780_v47, %v14243_v7  ;;  %v11128_v39 = vmax.f32 %v10724_v1, 0.0 }
 0x6d4   : > { %v11126_v24 = vmax.f32 %v10716_v12, 0.0  ;;  %v11410_v14 = vmax.f32 %v11409_v46, %v11125_v11  ;;  %v10719_v26 = vadd.f32 %v17780_v47, %v10718_v5 }
 0x6d5   : > { %v11129_v31 = vmax.f32 %v10727_v33, 0.0 }
 0x6d6   : > { %v11411_v19 = vmax.f32 %v11410_v14, %v11126_v24  ;;  %v11127_v49 = vmax.f32 %v10719_v26, 0.0 }
 0x6d8   : > { %v11412_v23 = vmax.f32 %v11411_v19, %v11127_v49  ;;  %v14246_v21 = vpop.f32.mrb[80].mxu0 }
 0x6d9   : > { %v10731_v51 = vpop.f32.mrb[81].mxu0  ;;  %v10740_v15 = vadd.f32 %v17780_v47, %v14246_v21 }
 0x6da   : > { %v11413_v3 = vmax.f32 %v11412_v23, %v11128_v39  ;;  %v10732_v25 = vadd.f32 %v17780_v47, %v10731_v51  ;;  %v14247_v37 = vpop.f32.mrb[82].mxu0 }
 0x6db   : > { %v10734_v62 = vpop.f32.mrb[83].mxu0  ;;  %v10743_v18 = vadd.f32 %v17780_v47, %v14247_v37  ;;  %v11132_v45 = vmax.f32 %v10740_v15, 0.0 }
 0x6dc   : > { %v11130_v38 = vmax.f32 %v10732_v25, 0.0  ;;  %v11414_v58 = vmax.f32 %v11413_v3, %v11129_v31  ;;  %v10735_v61 = vadd.f32 %v17780_v47, %v10734_v62 }
 0x6dd   : > { %v11133_v4 = vmax.f32 %v10743_v18, 0.0 }
 0x6de   : > { %v11415_v60 = vmax.f32 %v11414_v58, %v11130_v38  ;;  %v11131_v30 = vmax.f32 %v10735_v61, 0.0 }
 0x6e0   : > { %v11416_v20 = vmax.f32 %v11415_v60, %v11131_v30  ;;  %v14250_v43 = vpop.f32.mrb[84].mxu0 }
 0x6e1   : > { %v10747_v8 = vpop.f32.mrb[85].mxu0  ;;  %v10756_v0 = vadd.f32 %v17780_v47, %v14250_v43 }
 0x6e2   : > { %v11417_v41 = vmax.f32 %v11416_v20, %v11132_v45  ;;  %v10748_v54 = vadd.f32 %v17780_v47, %v10747_v8  ;;  %v14251_v36 = vpop.f32.mrb[86].mxu0 }
 0x6e3   : > { %v10750_v56 = vpop.f32.mrb[87].mxu0  ;;  %v10759_v57 = vadd.f32 %v17780_v47, %v14251_v36  ;;  %v11136_v28 = vmax.f32 %v10756_v0, 0.0 }
 0x6e4   : > { %v11134_v42 = vmax.f32 %v10748_v54, 0.0  ;;  %v11418_v55 = vmax.f32 %v11417_v41, %v11133_v4  ;;  %v10751_v13 = vadd.f32 %v17780_v47, %v10750_v56 }
 0x6e5   : > { %v11137_v34 = vmax.f32 %v10759_v57, 0.0 }
 0x6e6   : > { %v11419_v22 = vmax.f32 %v11418_v55, %v11134_v42  ;;  %v11135_v44 = vmax.f32 %v10751_v13, 0.0 }
 0x6e8   : > { %v11420_v10 = vmax.f32 %v11419_v22, %v11135_v44  ;;  %v14254_v9 = vpop.f32.mrb[88].mxu0  ;;  %v17915_v44 = vld [vmem:[%s18039_s10] ss:$0 sm:$0xff] }
 0x6e9   : > { %v10763_v27 = vpop.f32.mrb[89].mxu0  ;;  %v10772_v29 = vadd.f32 %v17780_v47, %v14254_v9 }
 0x6ea   : > { %v11421_v53 = vmax.f32 %v11420_v10, %v11136_v28  ;;  %v10764_v40 = vadd.f32 %v17780_v47, %v10763_v27  ;;  %v14255_v2 = vpop.f32.mrb[90].mxu0 }
 0x6eb   : > { %v10766_v16 = vpop.f32.mrb[91].mxu0  ;;  %v10775_v46 = vadd.f32 %v17780_v47, %v14255_v2  ;;  %v11140_v7 = vmax.f32 %v10772_v29, 0.0 }
 0x6ec   : > { %v11138_v52 = vmax.f32 %v10764_v40, 0.0  ;;  %v11422_v32 = vmax.f32 %v11421_v53, %v11137_v34  ;;  %v10767_v48 = vadd.f32 %v17780_v47, %v10766_v16 }
 0x6ed   : > { %v11141_v14 = vmax.f32 %v10775_v46, 0.0 }
 0x6ee   : > { %v11423_v11 = vmax.f32 %v11422_v32, %v11138_v52  ;;  %v11139_v12 = vmax.f32 %v10767_v48, 0.0 }
 0x6f0   : > { %v11424_v5 = vmax.f32 %v11423_v11, %v11139_v12  ;;  %v14258_v1 = vpop.f32.mrb[92].mxu0 }
 0x6f1   : > { %v10779_v24 = vpop.f32.mrb[93].mxu0  ;;  %v10788_v39 = vadd.f32 %v17780_v47, %v14258_v1 }
 0x6f2   : > { %v11425_v26 = vmax.f32 %v11424_v5, %v11140_v7  ;;  %v10780_v19 = vadd.f32 %v17780_v47, %v10779_v24  ;;  %v14259_v33 = vpop.f32.mrb[94].mxu0 }
 0x6f3   : > { %v10782_v49 = vpop.f32.mrb[95].mxu0  ;;  %v10791_v3 = vadd.f32 %v17780_v47, %v14259_v33  ;;  %v11144_v37 = vmax.f32 %v10788_v39, 0.0 }
 0x6f4   : > { %v11142_v23 = vmax.f32 %v10780_v19, 0.0  ;;  %v11426_v21 = vmax.f32 %v11425_v26, %v11141_v14  ;;  %v10783_v51 = vadd.f32 %v17780_v47, %v10782_v49 }
 0x6f5   : > { %v11145_v58 = vmax.f32 %v10791_v3, 0.0 }
 0x6f6   : > { %v11427_v31 = vmax.f32 %v11426_v21, %v11142_v23  ;;  %v11143_v25 = vmax.f32 %v10783_v51, 0.0 }
 0x6f8   : > { %v11428_v62 = vmax.f32 %v11427_v31, %v11143_v25  ;;  %v14262_v15 = vpop.f32.mrb[96].mxu0 }
 0x6f9   : > { %v10795_v38 = vpop.f32.mrb[97].mxu0  ;;  %v10804_v20 = vadd.f32 %v17780_v47, %v14262_v15 }
 0x6fa   : > { %v11429_v61 = vmax.f32 %v11428_v62, %v11144_v37  ;;  %v10796_v60 = vadd.f32 %v17780_v47, %v10795_v38  ;;  %v14263_v18 = vpop.f32.mrb[98].mxu0 }
 0x6fb   : > { %v10798_v30 = vpop.f32.mrb[99].mxu0  ;;  %v10807_v41 = vadd.f32 %v17780_v47, %v14263_v18  ;;  %v11148_v56 = vmax.f32 %v10804_v20, 0.0 }
 0x6fc   : > { %v11430_v45 = vmax.f32 %v11429_v61, %v11145_v58  ;;  %v10799_v43 = vadd.f32 %v17780_v47, %v10798_v30  ;;  %v11146_v4 = vmax.f32 %v10796_v60, 0.0 }
 0x6fd   : > { %v11149_v22 = vmax.f32 %v10807_v41, 0.0 }
 0x6fe   : > { %v11431_v8 = vrot.slane %v11430_v45, 4  ;;  %v11147_v54 = vmax.f32 %v10799_v43, 0.0 }
 0x700   : > { %v11432_v36 = vmax.f32 %v11430_v45, %v11431_v8  ;;  %v11437_v0 = vmax.f32 %v11146_v4, %v11147_v54  ;;  %v14266_v42 = vpop.f32.mrb[100].mxu0 }
 0x701   : > { %v10811_v55 = vpop.f32.mrb[101].mxu0  ;;  %v10820_v9 = vadd.f32 %v17915_v44, %v14266_v42 }
 0x702   : > { %v11433_v13 = vrot.slane %v11432_v36, 2  ;;  %v11438_v57 = vmax.f32 %v11437_v0, %v11148_v56  ;;  %v10812_v28 = vadd.f32 %v17915_v44, %v10811_v55  ;;  %v14267_v10 = vpop.f32.mrb[102].mxu0 }
 0x703   : > { %v10814_v47 = vpop.f32.mrb[103].mxu0  ;;  %v10823_v29 = vadd.f32 %v17915_v44, %v14267_v10  ;;  %v11152_v48 = vmax.f32 %v10820_v9, 0.0 }
 0x704   : > { %v11434_v27 = vmax.f32 %v11432_v36, %v11433_v13  ;;  %v11150_v34 = vmax.f32 %v10812_v28, 0.0  ;;  %v11439_v53 = vmax.f32 %v11438_v57, %v11149_v22  ;;  %v10815_v40 = vadd.f32 %v17915_v44, %v10814_v47 }
 0x705   : > { %v11153_v7 = vmax.f32 %v10823_v29, 0.0 }
 0x706   : > { %v11435_v2 = vrot.slane %v11434_v27, 1  ;;  %v11440_v16 = vmax.f32 %v11439_v53, %v11150_v34  ;;  %v11151_v52 = vmax.f32 %v10815_v40, 0.0 }
 0x708   : > { %v17921_v32 = vmax.f32 %v11434_v27, %v11435_v2  ;;  %v11441_v11 = vmax.f32 %v11440_v16, %v11151_v52  ;;  %v14270_v46 = vpop.f32.mrb[104].mxu0 }
 0x709   : > { %v10827_v12 = vpop.f32.mrb[105].mxu0  ;;  %v10836_v26 = vadd.f32 %v17915_v44, %v14270_v46 }
 0x70a   : > { %v11442_v5 = vmax.f32 %v11441_v11, %v11152_v48  ;;  %v10828_v1 = vadd.f32 %v17915_v44, %v10827_v12  ;;  %v14271_v24 = vpop.f32.mrb[106].mxu0 }
 0x70b   : > { %v10830_v14 = vpop.f32.mrb[107].mxu0  ;;  %v10839_v23 = vadd.f32 %v17915_v44, %v14271_v24  ;;  %v11156_v51 = vmax.f32 %v10836_v26, 0.0 }
 0x70c   : > { %v11154_v19 = vmax.f32 %v10828_v1, 0.0  ;;  %v11443_v33 = vmax.f32 %v11442_v5, %v11153_v7  ;;  %v10831_v49 = vadd.f32 %v17915_v44, %v10830_v14 }
 0x70d   : > { %v11157_v37 = vmax.f32 %v10839_v23, 0.0 }
 0x70e   : > { %v11444_v39 = vmax.f32 %v11443_v33, %v11154_v19  ;;  %v11155_v21 = vmax.f32 %v10831_v49, 0.0 }
 0x710   : > { %v11445_v31 = vmax.f32 %v11444_v39, %v11155_v21  ;;  %v14274_v3 = vpop.f32.mrb[108].mxu0 }
 0x711   : > { %v10843_v25 = vpop.f32.mrb[109].mxu0  ;;  %v10852_v61 = vadd.f32 %v17915_v44, %v14274_v3 }
 0x712   : > { %v11446_v62 = vmax.f32 %v11445_v31, %v11156_v51  ;;  %v10844_v15 = vadd.f32 %v17915_v44, %v10843_v25  ;;  %v14275_v38 = vpop.f32.mrb[110].mxu0 }
 0x713   : > { %v10846_v58 = vpop.f32.mrb[111].mxu0  ;;  %v10855_v20 = vadd.f32 %v17915_v44, %v14275_v38  ;;  %v11160_v8 = vmax.f32 %v10852_v61, 0.0 }
 0x714   : > { %v11158_v60 = vmax.f32 %v10844_v15, 0.0  ;;  %v11447_v18 = vmax.f32 %v11446_v62, %v11157_v37  ;;  %v10847_v30 = vadd.f32 %v17915_v44, %v10846_v58 }
 0x715   : > { %v11161_v36 = vmax.f32 %v10855_v20, 0.0 }
 0x716   : > { %v11448_v45 = vmax.f32 %v11447_v18, %v11158_v60  ;;  %v11159_v43 = vmax.f32 %v10847_v30, 0.0 }
 0x718   : > { %v11449_v4 = vmax.f32 %v11448_v45, %v11159_v43  ;;  %v14278_v41 = vpop.f32.mrb[112].mxu0 }
 0x719   : > { %v10859_v54 = vpop.f32.mrb[113].mxu0  ;;  %v10868_v13 = vadd.f32 %v17915_v44, %v14278_v41 }
 0x71a   : > { %v11450_v56 = vmax.f32 %v11449_v4, %v11160_v8  ;;  %v10860_v0 = vadd.f32 %v17915_v44, %v10859_v54  ;;  %v14279_v42 = vpop.f32.mrb[114].mxu0 }
 0x71b   : > { %v10862_v55 = vpop.f32.mrb[115].mxu0  ;;  %v10871_v9 = vadd.f32 %v17915_v44, %v14279_v42  ;;  %v11164_v27 = vmax.f32 %v10868_v13, 0.0 }
 0x71c   : > { %v11162_v22 = vmax.f32 %v10860_v0, 0.0  ;;  %v11451_v57 = vmax.f32 %v11450_v56, %v11161_v36  ;;  %v10863_v28 = vadd.f32 %v17915_v44, %v10862_v55 }
 0x71d   : > { %v11165_v2 = vmax.f32 %v10871_v9, 0.0 }
 0x71e   : > { %v11452_v10 = vmax.f32 %v11451_v57, %v11162_v22  ;;  %v11163_v47 = vmax.f32 %v10863_v28, 0.0 }
 0x720   : > { %v11453_v34 = vmax.f32 %v11452_v10, %v11163_v47  ;;  %v14282_v53 = vpop.f32.mrb[116].mxu0 }
 0x721   : > { %v10875_v40 = vpop.f32.mrb[117].mxu0  ;;  %v10884_v11 = vadd.f32 %v17915_v44, %v14282_v53 }
 0x722   : > { %v11454_v16 = vmax.f32 %v11453_v34, %v11164_v27  ;;  %v10876_v29 = vadd.f32 %v17915_v44, %v10875_v40  ;;  %v14283_v52 = vpop.f32.mrb[118].mxu0 }
 0x723   : > { %v10878_v48 = vpop.f32.mrb[119].mxu0  ;;  %v10887_v1 = vadd.f32 %v17915_v44, %v14283_v52  ;;  %v11168_v14 = vmax.f32 %v10884_v11, 0.0 }
 0x724   : > { %v11166_v46 = vmax.f32 %v10876_v29, 0.0  ;;  %v11455_v12 = vmax.f32 %v11454_v16, %v11165_v2  ;;  %v10879_v7 = vadd.f32 %v17915_v44, %v10878_v48 }
 0x725   : > { %v11169_v49 = vmax.f32 %v10887_v1, 0.0 }
 0x726   : > { %v11456_v5 = vmax.f32 %v11455_v12, %v11166_v46  ;;  %v11167_v24 = vmax.f32 %v10879_v7, 0.0 }
 0x728   : > { %v11457_v26 = vmax.f32 %v11456_v5, %v11167_v24  ;;  %v14286_v19 = vpop.f32.mrb[120].mxu0 }
 0x729   : > { %v10891_v33 = vpop.f32.mrb[121].mxu0  ;;  %v10900_v31 = vadd.f32 %v17915_v44, %v14286_v19 }
 0x72a   : > { %v11458_v39 = vmax.f32 %v11457_v26, %v11168_v14  ;;  %v10892_v23 = vadd.f32 %v17915_v44, %v10891_v33  ;;  %v14287_v21 = vpop.f32.mrb[122].mxu0 }
 0x72b   : > { %v10894_v51 = vpop.f32.mrb[123].mxu0  ;;  %v10903_v15 = vadd.f32 %v17915_v44, %v14287_v21  ;;  %v11172_v58 = vmax.f32 %v10900_v31, 0.0 }
 0x72c   : > { %v11170_v3 = vmax.f32 %v10892_v23, 0.0  ;;  %v11459_v25 = vmax.f32 %v11458_v39, %v11169_v49  ;;  %v10895_v37 = vadd.f32 %v17915_v44, %v10894_v51 }
 0x72d   : > { %v11173_v30 = vmax.f32 %v10903_v15, 0.0 }
 0x72e   : > { %v11460_v62 = vmax.f32 %v11459_v25, %v11170_v3  ;;  %v11171_v38 = vmax.f32 %v10895_v37, 0.0 }
 0x730   : > { %v11461_v61 = vmax.f32 %v11460_v62, %v11171_v38  ;;  %v14290_v60 = vpop.f32.mrb[124].mxu0 }
 0x731   : > { %v10907_v18 = vpop.f32.mrb[125].mxu0  ;;  %v10916_v4 = vadd.f32 %v17915_v44, %v14290_v60 }
 0x732   : > { %v11462_v45 = vmax.f32 %v11461_v61, %v11172_v58  ;;  %v10908_v20 = vadd.f32 %v17915_v44, %v10907_v18  ;;  %v14291_v43 = vpop.f32.mrb[126].mxu0 }
 0x733   : > { %v10910_v8 = vpop.f32.mrb[127].mxu0  ;;  %v10919_v0 = vadd.f32 %v17915_v44, %v14291_v43  ;;  %v11176_v55 = vmax.f32 %v10916_v4, 0.0 }
 0x734   : > { %v11174_v41 = vmax.f32 %v10908_v20, 0.0  ;;  %v11463_v54 = vmax.f32 %v11462_v45, %v11173_v30  ;;  %v10911_v36 = vadd.f32 %v17915_v44, %v10910_v8  ;;  %v11487_v44 = vsel (!%p12302_p3), %vm11486_vm3, %v17664_v63, %v17593_v6 }
 0x735   : > { %v11177_v22 = vmax.f32 %v10919_v0, 0.0  ;;  %v11489_v40 = vsel (!%p12302_p3), %vm11488_vm4, %v17735_v35, %v11487_v44 }
 0x736   : > { %v11464_v56 = vmax.f32 %v11463_v54, %v11174_v41  ;;  %v11175_v42 = vmax.f32 %v10911_v36, 0.0  ;;  %v11491_v2 = vsel (!%p12302_p3), %vm11490_vm5, %v17806_v50, %v11489_v40 }
 0x737   : > { %v11493_v16 = vsel (!%p12302_p3), %vm11492_vm6, %v17848_v17, %v11491_v2 }
 0x738   : > { %v11465_v13 = vmax.f32 %v11464_v56, %v11175_v42  ;;  %v11495_v29 = vsel (!%p12302_p3), %vm11494_vm7, %v17882_v59, %v11493_v16 }
 0x739   : > { %v11497_v52 = vsel (!%p12302_p3), %vm11496_vm8, %v17921_v32, %v11495_v29 }
 0x73a   : > { %v11466_v57 = vmax.f32 %v11465_v13, %v11176_v55 }
 0x73c   : > { %v11467_v28 = vmax.f32 %v11466_v57, %v11177_v22 }
 0x73e   : > { %v11468_v10 = vrot.slane %v11467_v28, 4 }
 0x740   : > { %v11469_v9 = vmax.f32 %v11467_v28, %v11468_v10 }
 0x742   : > { %v11470_v47 = vrot.slane %v11469_v9, 2  ;;  %11477 = sbr.rel (%p12302_p3) target bundleno = 1868 (0x74c), region = 109 }
 0x744   : > { %v11471_v27 = vmax.f32 %v11469_v9, %v11470_v47 }
 0x746   : > { %v11472_v34 = vrot.slane %v11471_v27, 1 }
 0x748   : > { %v11473_v53 = vmax.f32 %v11471_v27, %v11472_v34 }
 0x74a   : > { %v11499_v48 = vsel %vm11498_vm9, %v11473_v53, %v11497_v52 }
 0x74b   : > { %11501 = vst [vmem:[%s17948_s28] sm:$0xff] %v11499_v48 }
 0x74c PF: > { %s18125_s20 = sld [smem:[#allocation7_spill]] }
 0x752   : > { %p12303_p4 = scmp.le.s32.totalorder %s18125_s20, 0 }
 0x753   : > { %vm11515_vm10 = vcmask (!%p12303_p4), 1041409   ;;  %vm11517_vm11 = vcmask (!%p12303_p4), 1042434   ;;  %vm11519_vm12 = vcmask (!%p12303_p4), 1043459   ;;  %vm11521_vm13 = vcmask (!%p12303_p4), 1044484   ;;  %v11506_v5 = vld [vmem:[%s17948_s28] sm:$0xff] (!%p12303_p4) }
 0x754   : > { %11505 = sbr.rel (%p12303_p4) target bundleno = 1886 (0x75e), region = 113  ;;  %v11516_v11 = vsel (!%p12303_p4), %vm11515_vm10, %v17664_v63, %v17593_v6  ;;  %vm11523_vm14 = vcmask (!%p12303_p4), 1045509   ;;  %vm11525_vm15 = vcmask (!%p12303_p4), 1046534   ;;  %vm11527_vm0 = vcmask (!%p12303_p4), 1047559  }
 0x755   : > { %v11518_v46 = vsel (!%p12303_p4), %vm11517_vm11, %v17735_v35, %v11516_v11 }
 0x756   : > { %v11520_v12 = vsel (!%p12303_p4), %vm11519_vm12, %v17806_v50, %v11518_v46 }
 0x757   : > { %v11522_v7 = vsel (!%p12303_p4), %vm11521_vm13, %v17848_v17, %v11520_v12 }
 0x758   : > { %v11524_v1 = vsel (!%p12303_p4), %vm11523_vm14, %v17882_v59, %v11522_v7 }
 0x759   : > { %v11526_v24 = vsel (!%p12303_p4), %vm11525_vm15, %v17921_v32, %v11524_v1 }
 0x75a   : > { %v11528_v14 = vsel (!%p12303_p4), %vm11527_vm0, %v11473_v53, %v11526_v24 }
 0x75b   : > { %v11530_v26 = vmax.f32 %v11506_v5, %v11528_v14 }
 0x75d   : > { %11531 = vst [vmem:[%s17948_s28] sm:$0xff] %v11530_v26 }
 0x75e PF: > { %s18126_s29 = sld [smem:[#allocation8_spill]]  ;;  %s18127_s17 = sld [smem:[#allocation46_spill]] }
 0x75f   : > { %s11546_s11 = sshll.u32 %s17948_s28, 4  ;;  %s11533_s20 = scalar_lea.sflag [#allocation4], %s1461_s13  ;;  %s11547_s11 = int_to_ptr.vmem [resolvable:$true] %s11546_s11 }
 0x760   : > { %s14545_s0 = scalar_lea.vmem %s11547_s11, 128  ;;  %s14657_s1 = smov [#allocation3]  }
 0x761   : > { %p14546_p5 = scmp.ne.s32.totalorder %s11547_s11, %s14545_s0  ;;  %s14549_s2 = sshll.u32 %s14657_s1, 4  ;;  %s14550_s2 = int_to_ptr.vmem [resolvable:$false] %s14549_s2 }
 0x762   : > { %s14551_s3 = scalar_lea.vmem %s14550_s2, 256  ;;  %p14552_p9 = scmp.lt.s32.totalorder %s11547_s11, %s14550_s2 }
 0x763   : > { %p14547_p6 = pnand %p14546_p5, %p14790_p7  ;;  %p14553_p10 = scmp.lt.s32.totalorder %s14551_s3, %s14545_s0 }
 0x764   : > { %s12305_s15 = sshll.u32 %s18126_s29, 7  ;;  %s18128_s30 = smov %s18127_s17 }
 0x765   : > { %s17973_s23 = scalar_lea.hbm %s18127_s17, %s12305_s15  ;;  %p14548_p8 = pneg %p14547_p6 }
 0x766   : > { %p14554_p11 = por %p14553_p10, %p14552_p9 }
 0x768   : > { %p14555_p13 = pnand %p14554_p11, %p14548_p8 }
 0x76a   : > { %14558 = shalt.err (!%p14555_p13)
}
 0x76b   : > { %s14559_s13 = scalar_lea.hbm %s17973_s23, 128  ;;  %s14563_s1 = scalar_lea.hbm %s18128_s30, 256 }
 0x76c   : > { %p14560_p0 = scmp.ne.s32.totalorder %s17973_s23, %s14559_s13  ;;  %p14564_p3 = scmp.lt.u32.totalorder %s17973_s23, %s18128_s30 }
 0x76d   : > { %p14565_p4 = scmp.lt.u32.totalorder %s14563_s1, %s14559_s13  ;;  %p14567_p6 = scmp.lt.u32.totalorder %s14559_s13, %s17973_s23 }
 0x76e   : > { %p14561_p1 = pnand %p14560_p0, %p14790_p7 }
 0x76f   : > { %p14566_p5 = por %p14565_p4, %p14564_p3 }
 0x770   : > { %p14562_p2 = pneg %p14561_p1 }
 0x771   : > { %p14568_p8 = por %p14567_p6, %p14566_p5 }
 0x773   : > { %p14569_p9 = pnand %p14568_p8, %p14562_p2 }
 0x775   : > { %14572 = shalt.err (!%p14569_p9)
}
 0x776   : > { %14296 = dma.vmem_to_hbm [thread:$0]  (%p14790_p7), %s11547_s11, 128, %s17973_s23, %s11533_s20  }
 0x777 PF: > { %s18129_s0 = sld [smem:[#allocation6_spill]]  ;;  %p14302_p10 = scmp.ge.s32.totalorder %s14655_s26, 2 }
 0x779   : > { %p14299_p11 = pnand %p14302_p10, %p14798_p12 }
 0x77d   : > { %s11558_s12 = sand.u32 1, %s18129_s0  }
 0x77e   : > { %s11559_s14 = scalar_lea.sflag [#allocation4], %s11558_s12 }
 0x77f   : > { %14614 = dma.done.wait (!%p14299_p11), %s11559_s14, 128  }
 0x780   : > { %14616 = vsyncadd (!%p14299_p11), %s11559_s14, 4294967168  ;;  %s24_s26 = sadd.s32 1, %s14655_s26   ;;  %s18131_s16 = sld [smem:[#allocation9_spill]] }
 0x781   : > { %p21_p13 = scmp.ge.s32.totalorder %s24_s26, 6   ;;  %s18132_s11 = sld [smem:[#allocation10_spill]] }
 0x782   : > { %s18133_s17 = smov %s14623_s18  ;;  %s18134_s18 = smov %s14627_s19 }
 0x783   : > { %s18135_s19 = smov %s14803_s22  ;;  %s18136_s20 = smov %s14635_s21 }
 0x784   : > { %s18137_s21 = smov %s14806_s27  ;;  %s18138_s22 = smov %s14647_s24 }
 0x785   : > { %s18139_s23 = smov %s14651_s25  ;;  %23 = sbr.rel (!%p21_p13) target bundleno = 12 (0xc), region = 153 }
 0x786   : > { %s18140_s24 = smov %s18131_s16 }
 0x787   : > { %s18141_s25 = smov %s18132_s11 }
 0x78c   :  { %11564 = vsyncpa [#allocation4], 1 }
 0x78d   :  { %11566 = vsyncpa [#allocation4 + $0x1], 1 }

</bundles_post_ra>
